<compile_context>
chip_gen: v6e
topology: v6e:2x2x1
jax: 0.10.0
libtpu: 0.0.40
codegen_flags: <defaults>
</compile_context>

<pallas_src>
import functools

import jax
import jax.numpy as jnp
from jax.experimental import pallas as pl
from jax.experimental.pallas import tpu as pltpu


def _rup(x, m=128):
    return ((x + m - 1) // m) * m


def _vmem_limit_bytes():
    # v5e/v6e have 128 MiB VMEM -> allow big per-step tiles; v7x only 64 MiB.
    try:
        cap = int(pltpu.get_tpu_info().vmem_capacity_bytes)
    except Exception:
        cap = 64 * 1024 * 1024
    return int(min(100 * 1024 * 1024, (cap * 3) // 4))


# ----------------------------------------------------------------------------
# Fused kernel: conv1+bn1+relu -> conv2+bn2+relu -> conv3+bn3+relu,
# lane-layout concat + alpha-gated identity accumulated in one f32 buffer,
# optional fused 1x1 remap conv.
# ----------------------------------------------------------------------------
def _msres_kernel(x_ref, w1_ref, w2_ref, w3_ref, aff_ref, *rest,
                  H, W, s2, s3, remap):
    if remap:
        wr_ref, o_ref, xbuf, h1buf, h2buf, acc = rest
    else:
        o_ref, xbuf, h1buf, h2buf, acc = rest

    HW = H * W
    n_pad = (H + 2) * W                  # flattened zero-bordered image rows
    top = 8 + W                          # interior start row in the buffers
    Kx = x_ref.shape[-1]
    N1 = w1_ref.shape[-1]
    N2 = w2_ref.shape[-1]
    N3 = w3_ref.shape[-1]

    # Column-edge masks for the x-1 / x+1 windows, (rows, 1) broadcast along
    # lanes (built once, reused by all three convs).
    col = jax.lax.broadcasted_iota(jnp.int32, (n_pad, 1), 0) % W
    keep_l = (col != 0).astype(jnp.bfloat16)          # x-1 neighbour valid
    keep_r = (col != W - 1).astype(jnp.bfloat16)      # x+1 neighbour valid

    # Zero ONLY the halo rows (8 alignment rows + 1-row spatial border top and
    # bottom); interiors are fully overwritten below.  Done every step because
    # scratch is uninitialised on a core's first step (megacore sharding).
    for buf in (xbuf, h1buf, h2buf):
        kp = buf.shape[-1]
        buf[0:top, :] = jnp.zeros((top, kp), buf.dtype)
        buf[top + HW:top + HW + W + 8, :] = jnp.zeros((W + 8, kp), buf.dtype)

    x = x_ref[0]                                      # (HW, Kx) bf16 lane-dense
    xbuf[top:top + HW, :] = x

    aff = aff_ref[...]                                # (8, Cpmax) f32

    def conv3x3(src_ref, w_ref, scale, shift):
        # src_ref: (8 + (H+2)*W + 8, Kp) bf16 with zero halo rows.
        np_ = w_ref.shape[-1]
        acc_t = jnp.zeros((HW, np_), jnp.float32)
        for dx in range(3):                           # x-1, x, x+1 neighbours
            win = src_ref[8 + dx - 1:8 + dx - 1 + n_pad, :]
            if dx == 0:
                win = win * keep_l
            elif dx == 2:
                win = win * keep_r
            for dy in range(3):
                r0 = dy * W                           # multiple of 8 -> aligned
                acc_t += jnp.dot(win[r0:r0 + HW, :], w_ref[dy, dx, :, :],
                                 preferred_element_type=jnp.float32)
        # Folded BN(+conv-bias) affine + ReLU in f32 (v5e VPU has no bf16).
        return jnp.maximum(acc_t * scale + shift, 0.0)

    # Single f32 accumulator: alpha-gated identity first, conv slabs added as
    # they are produced (concat == disjoint real lanes of the slabs).
    alpha = aff[6:7, 0:Kx]
    acc[...] = alpha * x.astype(jnp.float32)

    h1 = conv3x3(xbuf, w1_ref, aff[0:1, 0:N1], aff[1:2, 0:N1])
    acc[:, 0:N1] += h1
    h1buf[top:top + HW, :] = h1.astype(h1buf.dtype)

    h2 = conv3x3(h1buf, w2_ref, aff[2:3, 0:N2], aff[3:4, 0:N2])
    acc[:, s2:s2 + N2] += h2
    h2buf[top:top + HW, :] = h2.astype(h2buf.dtype)

    h3 = conv3x3(h2buf, w3_ref, aff[4:5, 0:N3], aff[5:6, 0:N3])
    acc[:, s3:s3 + N3] += h3

    out = acc[...]
    if remap:                                         # fused 1x1 remap conv
        br = aff[7:8, 0:wr_ref.shape[-1]]
        out = jnp.dot(out.astype(wr_ref.dtype), wr_ref[...],
                      preferred_element_type=jnp.float32) + br
    o_ref[0] = out.astype(o_ref.dtype)


# ----------------------------------------------------------------------------
# Wrapper: NCHW <-> lane-dense flattened NHWC; single pallas_call per block.
# (In a stacked-hourglass chain one would keep the padded (N, HW, Cp) bf16
#  layout between blocks and skip these transposes/pads entirely.)
# ----------------------------------------------------------------------------
def multiscale_resblock(x_nchw, params):
    N, C, H, W = x_nchw.shape
    assert W % 8 == 0, "flattened-row layout needs W % 8 == 0"

    Kx = params["w1p"].shape[2]
    N1 = params["w1p"].shape[3]
    N2 = params["w2p"].shape[3]
    remap = params["remap"]
    c_out = params["c_out"]
    out_lanes = params["wrp"].shape[-1] if remap else Kx
    HW = H * W
    buf_rows = (H + 2) * W + 16

    x = jnp.transpose(x_nchw, (0, 2, 3, 1)).reshape(N, HW, C)
    x = jnp.pad(x, ((0, 0), (0, 0), (0, Kx - C))).astype(jnp.bfloat16)

    kernel = functools.partial(_msres_kernel, H=H, W=W,
                               s2=params["s2"], s3=params["s3"], remap=remap)

    in_specs = [
        pl.BlockSpec((1, HW, Kx), lambda n: (n, 0, 0)),            # x per image
        pl.BlockSpec(params["w1p"].shape, lambda n: (0, 0, 0, 0)),  # resident
        pl.BlockSpec(params["w2p"].shape, lambda n: (0, 0, 0, 0)),
        pl.BlockSpec(params["w3p"].shape, lambda n: (0, 0, 0, 0)),
        pl.BlockSpec(params["aff"].shape, lambda n: (0, 0)),        # affines
    ]
    args = [x, params["w1p"], params["w2p"], params["w3p"], params["aff"]]
    if remap:
        in_specs.append(pl.BlockSpec(params["wrp"].shape, lambda n: (0, 0)))
        args.append(params["wrp"])

    out = pl.pallas_call(
        kernel,
        out_shape=jax.ShapeDtypeStruct((N, HW, out_lanes), jnp.bfloat16),
        grid=(N,),
        in_specs=in_specs,
        out_specs=pl.BlockSpec((1, HW, out_lanes), lambda n: (n, 0, 0)),
        scratch_shapes=[
            pltpu.VMEM((buf_rows, Kx), jnp.bfloat16),   # zero-bordered x
            pltpu.VMEM((buf_rows, N1), jnp.bfloat16),   # zero-bordered out1
            pltpu.VMEM((buf_rows, N2), jnp.bfloat16),   # zero-bordered out2
            pltpu.VMEM((HW, Kx), jnp.float32),          # single f32 accumulator
        ],
        compiler_params=pltpu.CompilerParams(
            dimension_semantics=("parallel",),
            vmem_limit_bytes=_vmem_limit_bytes()),
    )(*args)

    out = out[..., :c_out].astype(jnp.float32).reshape(N, H, W, c_out)
    return jnp.transpose(out, (0, 3, 1, 2))


# ----------------------------------------------------------------------------
# Deterministic synthetic parameters (no checkpoint), pre-folded & lane-packed
# at per-conv real (ceil-128) widths.
# ----------------------------------------------------------------------------
def init_params(key, C, C_out=None, gating_mode="per_channel", eps=1e-5):
    C_out = C if C_out is None else C_out
    assert C % 4 == 0
    C1, C2 = C // 2, C // 4

    # concat lane layout: out1 -> [0,C1), out2 -> [C1,C1+C2), out3 -> [C1+C2,C)
    Kx = _rup(C)                               # x / concat / accumulator lanes
    N1 = _rup(C1)                              # conv1 slab [0, N1)
    s2 = (C1 // 128) * 128                     # conv2 slab start (128-aligned)
    N2 = _rup(C1 + C2) - s2
    o2 = C1 - s2                               # out2 offset inside its slab
    s3 = ((C1 + C2) // 128) * 128              # conv3 slab start (128-aligned)
    N3 = _rup(C) - s3
    o3 = C1 + C2 - s3
    remap = C != C_out
    Coutp = _rup(C_out)
    Cpmax = max(Kx, N1, N2, N3, Coutp)

    ks = jax.random.split(key, 12)

    def conv_w(k, cin, cout, ksz=3):
        fan_in = ksz * ksz * cin
        return jax.random.normal(k, (ksz, ksz, cin, cout), jnp.float32) / fan_in ** 0.5

    def bn(k, c):
        kg, kb, km, kv = jax.random.split(k, 4)
        gamma = 1.0 + 0.1 * jax.random.normal(kg, (c,), jnp.float32)
        beta = 0.1 * jax.random.normal(kb, (c,), jnp.float32)
        mean = 0.1 * jax.random.normal(km, (c,), jnp.float32)
        var = 1.0 + 0.1 * jnp.abs(jax.random.normal(kv, (c,), jnp.float32))
        scale = gamma * jax.lax.rsqrt(var + eps)
        return scale, beta - mean * scale

    w1 = conv_w(ks[0], C, C1);  b1 = 0.01 * jax.random.normal(ks[1], (C1,), jnp.float32)
    w2 = conv_w(ks[2], C1, C2); b2 = 0.01 * jax.random.normal(ks[3], (C2,), jnp.float32)
    w3 = conv_w(ks[4], C2, C2); b3 = 0.01 * jax.random.normal(ks[5], (C2,), jnp.float32)
    bn1s, bn1t = bn(ks[6], C1)
    bn2s, bn2t = bn(ks[7], C2)
    bn3s, bn3t = bn(ks[8], C2)

    # Fold conv bias into eval-mode BN: BN(conv(x)+b) = conv(x)*s + (s*b + t)
    s1v, t1v = bn1s, bn1s * b1 + bn1t
    s2v, t2v = bn2s, bn2s * b2 + bn2t
    s3v, t3v = bn3s, bn3s * b3 + bn3t

    if gating_mode == "per_channel":
        alpha = 0.5 * jax.random.normal(ks[9], (C,), jnp.float32)
    elif gating_mode == "single":
        alpha = jnp.full((C,), 0.3, jnp.float32)
    else:  # "standard"
        alpha = jnp.ones((C,), jnp.float32)

    if remap:
        wr = jax.random.normal(ks[10], (C, C_out), jnp.float32) / C ** 0.5
        br = 0.01 * jax.random.normal(ks[11], (C_out,), jnp.float32)
    else:
        wr = None
        br = jnp.zeros((C_out,), jnp.float32)

    def embed_w(w, kp, np_, k_off, n_off):
        cin, cout = w.shape[2], w.shape[3]
        wp = jnp.zeros((3, 3, kp, np_), jnp.float32)
        wp = wp.at[:, :, k_off:k_off + cin, n_off:n_off + cout].set(w)
        return wp.astype(jnp.bfloat16)

    def embed_vec(v, off):
        return jnp.zeros((Cpmax,), jnp.float32).at[off:off + v.shape[0]].set(v)

    w1p = embed_w(w1, Kx, N1, 0, 0)
    w2p = embed_w(w2, N1, N2, 0, o2)
    w3p = embed_w(w3, N2, N3, o2, o3)

    aff = jnp.stack([
        embed_vec(s1v, 0), embed_vec(t1v, 0),
        embed_vec(s2v, o2), embed_vec(t2v, o2),
        embed_vec(s3v, o3), embed_vec(t3v, o3),
        embed_vec(alpha, 0), embed_vec(br, 0),
    ], axis=0)                                        # (8, Cpmax) f32

    params = dict(remap=remap, c_out=C_out, s2=s2, s3=s3,
                  w1p=w1p, w2p=w2p, w3p=w3p, aff=aff,
                  ref=dict(w1=w1, w2=w2, w3=w3, s1=s1v, t1=t1v, s2=s2v, t2=t2v,
                           s3=s3v, t3=t3v, alpha=alpha, wr=wr, br=br))
    if remap:
        wrp = jnp.zeros((Kx, Coutp), jnp.float32).at[:C, :C_out].set(wr)
        params["wrp"] = wrp.astype(jnp.bfloat16)
    return params


# ----------------------------------------------------------------------------
# Pure-JAX reference (same bf16-operand / f32-accumulate policy as the kernel).
# ----------------------------------------------------------------------------
def _ref_forward(x_nchw, rp):
    x = jnp.transpose(x_nchw, (0, 2, 3, 1)).astype(jnp.bfloat16)

    def conv3x3(h, w):
        return jax.lax.conv_general_dilated(
            h.astype(jnp.bfloat16), w.astype(jnp.bfloat16),
            window_strides=(1, 1), padding=((1, 1), (1, 1)),
            dimension_numbers=("NHWC", "HWIO", "NHWC"),
            preferred_element_type=jnp.float32)

    h1 = jnp.maximum(conv3x3(x, rp["w1"]) * rp["s1"] + rp["t1"], 0.0)
    h2 = jnp.maximum(conv3x3(h1, rp["w2"]) * rp["s2"] + rp["t2"], 0.0)
    h3 = jnp.maximum(conv3x3(h2, rp["w3"]) * rp["s3"] + rp["t3"], 0.0)
    out = jnp.concatenate([h1, h2, h3], axis=-1) + x.astype(jnp.float32) * rp["alpha"]
    if rp["wr"] is not None:
        n, hh, ww, cc = out.shape
        out = (jnp.dot(out.reshape(-1, cc).astype(jnp.bfloat16),
                       rp["wr"].astype(jnp.bfloat16),
                       preferred_element_type=jnp.float32)
               + rp["br"]).reshape(n, hh, ww, -1)
    return jnp.transpose(out, (0, 3, 1, 2))


if __name__ == "__main__":
    key = jax.random.PRNGKey(0)
    kx, kp1, kp2 = jax.random.split(key, 3)

    N, C, H, W = 2, 4, 16, 16
    x = jax.random.normal(kx, (N, C, H, W), jnp.float32)

    # Case 1: in_channels == out_channels (no remap conv), per-channel gating.
    params = init_params(kp1, C)
    out = jax.block_until_ready(jax.jit(lambda xx: multiscale_resblock(xx, params))(x))
    assert out.shape == (N, C, H, W), out.shape
    assert bool(jnp.all(jnp.isfinite(out)))
    ref = _ref_forward(x, params["ref"])
    assert jnp.allclose(out, ref, atol=3e-2, rtol=3e-2), \
        float(jnp.max(jnp.abs(out - ref)))

    # Case 2: in_channels != out_channels -> fused 1x1 remap conv.
    C_out = 8
    params2 = init_params(kp2, C, C_out=C_out)
    out2 = jax.block_until_ready(jax.jit(lambda xx: multiscale_resblock(xx, params2))(x))
    assert out2.shape == (N, C_out, H, W), out2.shape
    assert bool(jnp.all(jnp.isfinite(out2)))
    ref2 = _ref_forward(x, params2["ref"])
    assert jnp.allclose(out2, ref2, atol=3e-2, rtol=3e-2), \
        float(jnp.max(jnp.abs(out2 - ref2)))

    print("KERNEL_OK")
</pallas_src>

<mosaic_0001>
module attributes {stable_mosaic.version = 11 : i64} {
  func.func @_msres_kernel(%arg0: i32, %arg1: memref<1x256x128xbf16, #tpu.memory_space<vmem>>, %arg2: memref<3x3x128x128xbf16, #tpu.memory_space<vmem>>, %arg3: memref<3x3x128x128xbf16, #tpu.memory_space<vmem>>, %arg4: memref<3x3x128x128xbf16, #tpu.memory_space<vmem>>, %arg5: memref<8x128xf32, #tpu.memory_space<vmem>>, %arg6: memref<1x256x128xbf16, #tpu.memory_space<vmem>>, %arg7: memref<304x128xbf16, #tpu.memory_space<vmem>>, %arg8: memref<304x128xbf16, #tpu.memory_space<vmem>>, %arg9: memref<304x128xbf16, #tpu.memory_space<vmem>>, %arg10: memref<256x128xf32, #tpu.memory_space<vmem>>) attributes {dimension_semantics = [#tpu.dimension_semantics<parallel>], iteration_bounds = array<i64: 2>, scalar_prefetch = 0 : i64, scratch_operands = 4 : i64, tpu.core_type = #tpu.core_type<tc>, window_params = [{transform_indices = @transform_0, window_bounds = array<i64: 1, 256, 128>}, {pipeline_mode = #tpu.pipeline_mode<synchronous>, transform_indices = @transform_1, window_bounds = array<i64: 3, 3, 128, 128>}, {pipeline_mode = #tpu.pipeline_mode<synchronous>, transform_indices = @transform_2, window_bounds = array<i64: 3, 3, 128, 128>}, {pipeline_mode = #tpu.pipeline_mode<synchronous>, transform_indices = @transform_3, window_bounds = array<i64: 3, 3, 128, 128>}, {pipeline_mode = #tpu.pipeline_mode<synchronous>, transform_indices = @transform_4, window_bounds = array<i64: 8, 128>}, {transform_indices = @transform_5, window_bounds = array<i64: 1, 256, 128>}]} {
    %0 = tpu.iota {dimensions = array<i32: 0>} : vector<288x1xi32>
    %c16_i32 = arith.constant 16 : i32
    %c0_i32 = arith.constant 0 : i32
    %1 = arith.cmpi eq, %c16_i32, %c0_i32 : i32
    %c1_i32 = arith.constant 1 : i32
    %2 = arith.select %1, %c1_i32, %c16_i32 : i32
    %3 = vector.broadcast %2 : i32 to vector<288x1xi32>
    %4 = arith.remsi %0, %3 : vector<288x1xi32>
    %c0_i32_0 = arith.constant 0 : i32
    %5 = vector.broadcast %c0_i32_0 : i32 to vector<288x1xi32>
    %6 = arith.cmpi ne, %4, %5 : vector<288x1xi32>
    %c0_i32_1 = arith.constant 0 : i32
    %7 = vector.broadcast %c0_i32_1 : i32 to vector<288x1xi32>
    %8 = arith.cmpi slt, %4, %7 : vector<288x1xi32>
    %c0_i32_2 = arith.constant 0 : i32
    %9 = arith.cmpi slt, %2, %c0_i32_2 : i32
    %10 = vector.broadcast %9 : i1 to vector<288x1xi1>
    %11 = vector.broadcast %10 : vector<288x1xi1> to vector<288x1xi1>
    %12 = arith.xori %8, %11 : vector<288x1xi1>
    %13 = arith.andi %12, %6 : vector<288x1xi1>
    %14 = vector.broadcast %2 : i32 to vector<288x1xi32>
    %15 = arith.addi %4, %14 : vector<288x1xi32>
    %16 = arith.select %13, %15, %4 : vector<288x1xi1>, vector<288x1xi32>
    %c0_i32_3 = arith.constant 0 : i32
    %17 = vector.broadcast %c0_i32_3 : i32 to vector<288x1xi32>
    %18 = arith.cmpi ne, %16, %17 : vector<288x1xi32>
    %19 = arith.extui %18 : vector<288x1xi1> to vector<288x1xi32>
    %20 = arith.sitofp %19 : vector<288x1xi32> to vector<288x1xf32>
    %21 = arith.truncf %20 : vector<288x1xf32> to vector<288x1xbf16>
    %c15_i32 = arith.constant 15 : i32
    %22 = vector.broadcast %c15_i32 : i32 to vector<288x1xi32>
    %23 = arith.cmpi ne, %16, %22 : vector<288x1xi32>
    %24 = arith.extui %23 : vector<288x1xi1> to vector<288x1xi32>
    %25 = arith.sitofp %24 : vector<288x1xi32> to vector<288x1xf32>
    %26 = arith.truncf %25 : vector<288x1xf32> to vector<288x1xbf16>
    %cst = arith.constant 0.000000e+00 : bf16
    %27 = vector.broadcast %cst : bf16 to vector<24x128xbf16>
    %c0 = arith.constant 0 : index
    %c0_4 = arith.constant 0 : index
    %28 = vector.load %arg7[%c0, %c0_4] : memref<304x128xbf16, #tpu.memory_space<vmem>>, vector<24x128xbf16>
    tpu.vector_store %arg7[%c0, %c0_4], %27 {strides = array<i32>} : memref<304x128xbf16, #tpu.memory_space<vmem>>, vector<24x128xbf16>,
    %cst_5 = arith.constant 0.000000e+00 : bf16
    %29 = vector.broadcast %cst_5 : bf16 to vector<24x128xbf16>
    %c280 = arith.constant 280 : index
    %c0_6 = arith.constant 0 : index
    %30 = vector.load %arg7[%c280, %c0_6] : memref<304x128xbf16, #tpu.memory_space<vmem>>, vector<24x128xbf16>
    tpu.vector_store %arg7[%c280, %c0_6], %29 {strides = array<i32>} : memref<304x128xbf16, #tpu.memory_space<vmem>>, vector<24x128xbf16>,
    %cst_7 = arith.constant 0.000000e+00 : bf16
    %31 = vector.broadcast %cst_7 : bf16 to vector<24x128xbf16>
    %c0_8 = arith.constant 0 : index
    %c0_9 = arith.constant 0 : index
    %32 = vector.load %arg8[%c0_8, %c0_9] : memref<304x128xbf16, #tpu.memory_space<vmem>>, vector<24x128xbf16>
    tpu.vector_store %arg8[%c0_8, %c0_9], %31 {strides = array<i32>} : memref<304x128xbf16, #tpu.memory_space<vmem>>, vector<24x128xbf16>,
    %cst_10 = arith.constant 0.000000e+00 : bf16
    %33 = vector.broadcast %cst_10 : bf16 to vector<24x128xbf16>
    %c280_11 = arith.constant 280 : index
    %c0_12 = arith.constant 0 : index
    %34 = vector.load %arg8[%c280_11, %c0_12] : memref<304x128xbf16, #tpu.memory_space<vmem>>, vector<24x128xbf16>
    tpu.vector_store %arg8[%c280_11, %c0_12], %33 {strides = array<i32>} : memref<304x128xbf16, #tpu.memory_space<vmem>>, vector<24x128xbf16>,
    %cst_13 = arith.constant 0.000000e+00 : bf16
    %35 = vector.broadcast %cst_13 : bf16 to vector<24x128xbf16>
    %c0_14 = arith.constant 0 : index
    %c0_15 = arith.constant 0 : index
    %36 = vector.load %arg9[%c0_14, %c0_15] : memref<304x128xbf16, #tpu.memory_space<vmem>>, vector<24x128xbf16>
    tpu.vector_store %arg9[%c0_14, %c0_15], %35 {strides = array<i32>} : memref<304x128xbf16, #tpu.memory_space<vmem>>, vector<24x128xbf16>,
    %cst_16 = arith.constant 0.000000e+00 : bf16
    %37 = vector.broadcast %cst_16 : bf16 to vector<24x128xbf16>
    %c280_17 = arith.constant 280 : index
    %c0_18 = arith.constant 0 : index
    %38 = vector.load %arg9[%c280_17, %c0_18] : memref<304x128xbf16, #tpu.memory_space<vmem>>, vector<24x128xbf16>
    tpu.vector_store %arg9[%c280_17, %c0_18], %37 {strides = array<i32>} : memref<304x128xbf16, #tpu.memory_space<vmem>>, vector<24x128xbf16>,
    %c0_19 = arith.constant 0 : index
    %c0_20 = arith.constant 0 : index
    %c0_21 = arith.constant 0 : index
    %39 = vector.load %arg1[%c0_19, %c0_20, %c0_21] : memref<1x256x128xbf16, #tpu.memory_space<vmem>>, vector<1x256x128xbf16>
    %40 = vector.shape_cast %39 : vector<1x256x128xbf16> to vector<256x128xbf16>
    %c24 = arith.constant 24 : index
    %c0_22 = arith.constant 0 : index
    %41 = vector.load %arg7[%c24, %c0_22] : memref<304x128xbf16, #tpu.memory_space<vmem>>, vector<256x128xbf16>
    tpu.vector_store %arg7[%c24, %c0_22], %40 {strides = array<i32>} : memref<304x128xbf16, #tpu.memory_space<vmem>>, vector<256x128xbf16>,
    %c0_23 = arith.constant 0 : index
    %c0_24 = arith.constant 0 : index
    %42 = vector.load %arg5[%c0_23, %c0_24] : memref<8x128xf32, #tpu.memory_space<vmem>>, vector<8x128xf32>
    %43 = vector.extract_strided_slice %42 {offsets = [6, 0], sizes = [1, 128], strides = [1, 1]} : vector<8x128xf32> to vector<1x128xf32>
    %44 = arith.extf %40 : vector<256x128xbf16> to vector<256x128xf32>
    %45 = vector.broadcast %43 : vector<1x128xf32> to vector<256x128xf32>
    %46 = arith.mulf %45, %44 : vector<256x128xf32>
    %c0_25 = arith.constant 0 : index
    %c0_26 = arith.constant 0 : index
    %47 = vector.load %arg10[%c0_25, %c0_26] : memref<256x128xf32, #tpu.memory_space<vmem>>, vector<256x128xf32>
    tpu.vector_store %arg10[%c0_25, %c0_26], %46 {strides = array<i32>} : memref<256x128xf32, #tpu.memory_space<vmem>>, vector<256x128xf32>,
    %48 = vector.extract_strided_slice %42 {offsets = [0, 0], sizes = [1, 128], strides = [1, 1]} : vector<8x128xf32> to vector<1x128xf32>
    %49 = vector.extract_strided_slice %42 {offsets = [1, 0], sizes = [1, 128], strides = [1, 1]} : vector<8x128xf32> to vector<1x128xf32>
    %cst_27 = arith.constant 0.000000e+00 : f32
    %50 = vector.broadcast %cst_27 : f32 to vector<256x128xf32>
    %c7 = arith.constant 7 : index
    %c0_28 = arith.constant 0 : index
    %51 = vector.load %arg7[%c7, %c0_28] : memref<304x128xbf16, #tpu.memory_space<vmem>>, vector<288x128xbf16>
    %52 = vector.broadcast %21 : vector<288x1xbf16> to vector<288x128xbf16>
    %53 = arith.mulf %51, %52 : vector<288x128xbf16>
    %54 = vector.extract_strided_slice %53 {offsets = [0, 0], sizes = [256, 128], strides = [1, 1]} : vector<288x128xbf16> to vector<256x128xbf16>
    %c0_29 = arith.constant 0 : index
    %c0_30 = arith.constant 0 : index
    %c0_31 = arith.constant 0 : index
    %c0_32 = arith.constant 0 : index
    %55 = vector.load %arg2[%c0_29, %c0_30, %c0_31, %c0_32] : memref<3x3x128x128xbf16, #tpu.memory_space<vmem>>, vector<1x1x128x128xbf16>
    %56 = vector.shape_cast %55 : vector<1x1x128x128xbf16> to vector<128x128xbf16>
    %cst_33 = arith.constant dense<0.000000e+00> : vector<256x128xf32>
    %57 = tpu.matmul %54, %56, %cst_33 {dimension_numbers = #tpu.dot_dimension_numbers<[1], [0], [0], [1], [0, 0, 1, 1], [], []>} : vector<256x128xbf16>, vector<128x128xbf16>, vector<256x128xf32> -> vector<256x128xf32>
    %58 = arith.addf %50, %57 : vector<256x128xf32>
    %59 = vector.extract_strided_slice %53 {offsets = [16, 0], sizes = [256, 128], strides = [1, 1]} : vector<288x128xbf16> to vector<256x128xbf16>
    %c1 = arith.constant 1 : index
    %c0_34 = arith.constant 0 : index
    %c0_35 = arith.constant 0 : index
    %c0_36 = arith.constant 0 : index
    %60 = vector.load %arg2[%c1, %c0_34, %c0_35, %c0_36] : memref<3x3x128x128xbf16, #tpu.memory_space<vmem>>, vector<1x1x128x128xbf16>
    %61 = vector.shape_cast %60 : vector<1x1x128x128xbf16> to vector<128x128xbf16>
    %cst_37 = arith.constant dense<0.000000e+00> : vector<256x128xf32>
    %62 = tpu.matmul %59, %61, %cst_37 {dimension_numbers = #tpu.dot_dimension_numbers<[1], [0], [0], [1], [0, 0, 1, 1], [], []>} : vector<256x128xbf16>, vector<128x128xbf16>, vector<256x128xf32> -> vector<256x128xf32>
    %63 = arith.addf %58, %62 : vector<256x128xf32>
    %64 = vector.extract_strided_slice %53 {offsets = [32, 0], sizes = [256, 128], strides = [1, 1]} : vector<288x128xbf16> to vector<256x128xbf16>
    %c2 = arith.constant 2 : index
    %c0_38 = arith.constant 0 : index
    %c0_39 = arith.constant 0 : index
    %c0_40 = arith.constant 0 : index
    %65 = vector.load %arg2[%c2, %c0_38, %c0_39, %c0_40] : memref<3x3x128x128xbf16, #tpu.memory_space<vmem>>, vector<1x1x128x128xbf16>
    %66 = vector.shape_cast %65 : vector<1x1x128x128xbf16> to vector<128x128xbf16>
    %cst_41 = arith.constant dense<0.000000e+00> : vector<256x128xf32>
    %67 = tpu.matmul %64, %66, %cst_41 {dimension_numbers = #tpu.dot_dimension_numbers<[1], [0], [0], [1], [0, 0, 1, 1], [], []>} : vector<256x128xbf16>, vector<128x128xbf16>, vector<256x128xf32> -> vector<256x128xf32>
    %68 = arith.addf %63, %67 : vector<256x128xf32>
    %c8 = arith.constant 8 : index
    %c0_42 = arith.constant 0 : index
    %69 = vector.load %arg7[%c8, %c0_42] : memref<304x128xbf16, #tpu.memory_space<vmem>>, vector<288x128xbf16>
    %70 = vector.extract_strided_slice %69 {offsets = [0, 0], sizes = [256, 128], strides = [1, 1]} : vector<288x128xbf16> to vector<256x128xbf16>
    %c0_43 = arith.constant 0 : index
    %c1_44 = arith.constant 1 : index
    %c0_45 = arith.constant 0 : index
    %c0_46 = arith.constant 0 : index
    %71 = vector.load %arg2[%c0_43, %c1_44, %c0_45, %c0_46] : memref<3x3x128x128xbf16, #tpu.memory_space<vmem>>, vector<1x1x128x128xbf16>
    %72 = vector.shape_cast %71 : vector<1x1x128x128xbf16> to vector<128x128xbf16>
    %cst_47 = arith.constant dense<0.000000e+00> : vector<256x128xf32>
    %73 = tpu.matmul %70, %72, %cst_47 {dimension_numbers = #tpu.dot_dimension_numbers<[1], [0], [0], [1], [0, 0, 1, 1], [], []>} : vector<256x128xbf16>, vector<128x128xbf16>, vector<256x128xf32> -> vector<256x128xf32>
    %74 = arith.addf %68, %73 : vector<256x128xf32>
    %75 = vector.extract_strided_slice %69 {offsets = [16, 0], sizes = [256, 128], strides = [1, 1]} : vector<288x128xbf16> to vector<256x128xbf16>
    %c1_48 = arith.constant 1 : index
    %c1_49 = arith.constant 1 : index
    %c0_50 = arith.constant 0 : index
    %c0_51 = arith.constant 0 : index
    %76 = vector.load %arg2[%c1_48, %c1_49, %c0_50, %c0_51] : memref<3x3x128x128xbf16, #tpu.memory_space<vmem>>, vector<1x1x128x128xbf16>
    %77 = vector.shape_cast %76 : vector<1x1x128x128xbf16> to vector<128x128xbf16>
    %cst_52 = arith.constant dense<0.000000e+00> : vector<256x128xf32>
    %78 = tpu.matmul %75, %77, %cst_52 {dimension_numbers = #tpu.dot_dimension_numbers<[1], [0], [0], [1], [0, 0, 1, 1], [], []>} : vector<256x128xbf16>, vector<128x128xbf16>, vector<256x128xf32> -> vector<256x128xf32>
    %79 = arith.addf %74, %78 : vector<256x128xf32>
    %80 = vector.extract_strided_slice %69 {offsets = [32, 0], sizes = [256, 128], strides = [1, 1]} : vector<288x128xbf16> to vector<256x128xbf16>
    %c2_53 = arith.constant 2 : index
    %c1_54 = arith.constant 1 : index
    %c0_55 = arith.constant 0 : index
    %c0_56 = arith.constant 0 : index
    %81 = vector.load %arg2[%c2_53, %c1_54, %c0_55, %c0_56] : memref<3x3x128x128xbf16, #tpu.memory_space<vmem>>, vector<1x1x128x128xbf16>
    %82 = vector.shape_cast %81 : vector<1x1x128x128xbf16> to vector<128x128xbf16>
    %cst_57 = arith.constant dense<0.000000e+00> : vector<256x128xf32>
    %83 = tpu.matmul %80, %82, %cst_57 {dimension_numbers = #tpu.dot_dimension_numbers<[1], [0], [0], [1], [0, 0, 1, 1], [], []>} : vector<256x128xbf16>, vector<128x128xbf16>, vector<256x128xf32> -> vector<256x128xf32>
    %84 = arith.addf %79, %83 : vector<256x128xf32>
    %c9 = arith.constant 9 : index
    %c0_58 = arith.constant 0 : index
    %85 = vector.load %arg7[%c9, %c0_58] : memref<304x128xbf16, #tpu.memory_space<vmem>>, vector<288x128xbf16>
    %86 = vector.broadcast %26 : vector<288x1xbf16> to vector<288x128xbf16>
    %87 = arith.mulf %85, %86 : vector<288x128xbf16>
    %88 = vector.extract_strided_slice %87 {offsets = [0, 0], sizes = [256, 128], strides = [1, 1]} : vector<288x128xbf16> to vector<256x128xbf16>
    %c0_59 = arith.constant 0 : index
    %c2_60 = arith.constant 2 : index
    %c0_61 = arith.constant 0 : index
    %c0_62 = arith.constant 0 : index
    %89 = vector.load %arg2[%c0_59, %c2_60, %c0_61, %c0_62] : memref<3x3x128x128xbf16, #tpu.memory_space<vmem>>, vector<1x1x128x128xbf16>
    %90 = vector.shape_cast %89 : vector<1x1x128x128xbf16> to vector<128x128xbf16>
    %cst_63 = arith.constant dense<0.000000e+00> : vector<256x128xf32>
    %91 = tpu.matmul %88, %90, %cst_63 {dimension_numbers = #tpu.dot_dimension_numbers<[1], [0], [0], [1], [0, 0, 1, 1], [], []>} : vector<256x128xbf16>, vector<128x128xbf16>, vector<256x128xf32> -> vector<256x128xf32>
    %92 = arith.addf %84, %91 : vector<256x128xf32>
    %93 = vector.extract_strided_slice %87 {offsets = [16, 0], sizes = [256, 128], strides = [1, 1]} : vector<288x128xbf16> to vector<256x128xbf16>
    %c1_64 = arith.constant 1 : index
    %c2_65 = arith.constant 2 : index
    %c0_66 = arith.constant 0 : index
    %c0_67 = arith.constant 0 : index
    %94 = vector.load %arg2[%c1_64, %c2_65, %c0_66, %c0_67] : memref<3x3x128x128xbf16, #tpu.memory_space<vmem>>, vector<1x1x128x128xbf16>
    %95 = vector.shape_cast %94 : vector<1x1x128x128xbf16> to vector<128x128xbf16>
    %cst_68 = arith.constant dense<0.000000e+00> : vector<256x128xf32>
    %96 = tpu.matmul %93, %95, %cst_68 {dimension_numbers = #tpu.dot_dimension_numbers<[1], [0], [0], [1], [0, 0, 1, 1], [], []>} : vector<256x128xbf16>, vector<128x128xbf16>, vector<256x128xf32> -> vector<256x128xf32>
    %97 = arith.addf %92, %96 : vector<256x128xf32>
    %98 = vector.extract_strided_slice %87 {offsets = [32, 0], sizes = [256, 128], strides = [1, 1]} : vector<288x128xbf16> to vector<256x128xbf16>
    %c2_69 = arith.constant 2 : index
    %c2_70 = arith.constant 2 : index
    %c0_71 = arith.constant 0 : index
    %c0_72 = arith.constant 0 : index
    %99 = vector.load %arg2[%c2_69, %c2_70, %c0_71, %c0_72] : memref<3x3x128x128xbf16, #tpu.memory_space<vmem>>, vector<1x1x128x128xbf16>
    %100 = vector.shape_cast %99 : vector<1x1x128x128xbf16> to vector<128x128xbf16>
    %cst_73 = arith.constant dense<0.000000e+00> : vector<256x128xf32>
    %101 = tpu.matmul %98, %100, %cst_73 {dimension_numbers = #tpu.dot_dimension_numbers<[1], [0], [0], [1], [0, 0, 1, 1], [], []>} : vector<256x128xbf16>, vector<128x128xbf16>, vector<256x128xf32> -> vector<256x128xf32>
    %102 = arith.addf %97, %101 : vector<256x128xf32>
    %103 = vector.broadcast %48 : vector<1x128xf32> to vector<256x128xf32>
    %104 = arith.mulf %102, %103 : vector<256x128xf32>
    %105 = vector.broadcast %49 : vector<1x128xf32> to vector<256x128xf32>
    %106 = arith.addf %104, %105 : vector<256x128xf32>
    %cst_74 = arith.constant 0.000000e+00 : f32
    %107 = vector.broadcast %cst_74 : f32 to vector<256x128xf32>
    %108 = arith.maximumf %106, %107 : vector<256x128xf32>
    %c0_75 = arith.constant 0 : index
    %c0_76 = arith.constant 0 : index
    %109 = vector.load %arg10[%c0_75, %c0_76] : memref<256x128xf32, #tpu.memory_space<vmem>>, vector<256x128xf32>
    %110 = arith.addf %109, %108 : vector<256x128xf32>
    %c0_77 = arith.constant 0 : index
    %c0_78 = arith.constant 0 : index
    %111 = vector.load %arg10[%c0_77, %c0_78] : memref<256x128xf32, #tpu.memory_space<vmem>>, vector<256x128xf32>
    tpu.vector_store %arg10[%c0_77, %c0_78], %110 {strides = array<i32>} : memref<256x128xf32, #tpu.memory_space<vmem>>, vector<256x128xf32>,
    %112 = arith.truncf %108 : vector<256x128xf32> to vector<256x128xbf16>
    %c24_79 = arith.constant 24 : index
    %c0_80 = arith.constant 0 : index
    %113 = vector.load %arg8[%c24_79, %c0_80] : memref<304x128xbf16, #tpu.memory_space<vmem>>, vector<256x128xbf16>
    tpu.vector_store %arg8[%c24_79, %c0_80], %112 {strides = array<i32>} : memref<304x128xbf16, #tpu.memory_space<vmem>>, vector<256x128xbf16>,
    %114 = vector.extract_strided_slice %42 {offsets = [2, 0], sizes = [1, 128], strides = [1, 1]} : vector<8x128xf32> to vector<1x128xf32>
    %115 = vector.extract_strided_slice %42 {offsets = [3, 0], sizes = [1, 128], strides = [1, 1]} : vector<8x128xf32> to vector<1x128xf32>
    %cst_81 = arith.constant 0.000000e+00 : f32
    %116 = vector.broadcast %cst_81 : f32 to vector<256x128xf32>
    %c7_82 = arith.constant 7 : index
    %c0_83 = arith.constant 0 : index
    %117 = vector.load %arg8[%c7_82, %c0_83] : memref<304x128xbf16, #tpu.memory_space<vmem>>, vector<288x128xbf16>
    %118 = vector.broadcast %21 : vector<288x1xbf16> to vector<288x128xbf16>
    %119 = arith.mulf %117, %118 : vector<288x128xbf16>
    %120 = vector.extract_strided_slice %119 {offsets = [0, 0], sizes = [256, 128], strides = [1, 1]} : vector<288x128xbf16> to vector<256x128xbf16>
    %c0_84 = arith.constant 0 : index
    %c0_85 = arith.constant 0 : index
    %c0_86 = arith.constant 0 : index
    %c0_87 = arith.constant 0 : index
    %121 = vector.load %arg3[%c0_84, %c0_85, %c0_86, %c0_87] : memref<3x3x128x128xbf16, #tpu.memory_space<vmem>>, vector<1x1x128x128xbf16>
    %122 = vector.shape_cast %121 : vector<1x1x128x128xbf16> to vector<128x128xbf16>
    %cst_88 = arith.constant dense<0.000000e+00> : vector<256x128xf32>
    %123 = tpu.matmul %120, %122, %cst_88 {dimension_numbers = #tpu.dot_dimension_numbers<[1], [0], [0], [1], [0, 0, 1, 1], [], []>} : vector<256x128xbf16>, vector<128x128xbf16>, vector<256x128xf32> -> vector<256x128xf32>
    %124 = arith.addf %116, %123 : vector<256x128xf32>
    %125 = vector.extract_strided_slice %119 {offsets = [16, 0], sizes = [256, 128], strides = [1, 1]} : vector<288x128xbf16> to vector<256x128xbf16>
    %c1_89 = arith.constant 1 : index
    %c0_90 = arith.constant 0 : index
    %c0_91 = arith.constant 0 : index
    %c0_92 = arith.constant 0 : index
    %126 = vector.load %arg3[%c1_89, %c0_90, %c0_91, %c0_92] : memref<3x3x128x128xbf16, #tpu.memory_space<vmem>>, vector<1x1x128x128xbf16>
    %127 = vector.shape_cast %126 : vector<1x1x128x128xbf16> to vector<128x128xbf16>
    %cst_93 = arith.constant dense<0.000000e+00> : vector<256x128xf32>
    %128 = tpu.matmul %125, %127, %cst_93 {dimension_numbers = #tpu.dot_dimension_numbers<[1], [0], [0], [1], [0, 0, 1, 1], [], []>} : vector<256x128xbf16>, vector<128x128xbf16>, vector<256x128xf32> -> vector<256x128xf32>
    %129 = arith.addf %124, %128 : vector<256x128xf32>
    %130 = vector.extract_strided_slice %119 {offsets = [32, 0], sizes = [256, 128], strides = [1, 1]} : vector<288x128xbf16> to vector<256x128xbf16>
    %c2_94 = arith.constant 2 : index
    %c0_95 = arith.constant 0 : index
    %c0_96 = arith.constant 0 : index
    %c0_97 = arith.constant 0 : index
    %131 = vector.load %arg3[%c2_94, %c0_95, %c0_96, %c0_97] : memref<3x3x128x128xbf16, #tpu.memory_space<vmem>>, vector<1x1x128x128xbf16>
    %132 = vector.shape_cast %131 : vector<1x1x128x128xbf16> to vector<128x128xbf16>
    %cst_98 = arith.constant dense<0.000000e+00> : vector<256x128xf32>
    %133 = tpu.matmul %130, %132, %cst_98 {dimension_numbers = #tpu.dot_dimension_numbers<[1], [0], [0], [1], [0, 0, 1, 1], [], []>} : vector<256x128xbf16>, vector<128x128xbf16>, vector<256x128xf32> -> vector<256x128xf32>
    %134 = arith.addf %129, %133 : vector<256x128xf32>
    %c8_99 = arith.constant 8 : index
    %c0_100 = arith.constant 0 : index
    %135 = vector.load %arg8[%c8_99, %c0_100] : memref<304x128xbf16, #tpu.memory_space<vmem>>, vector<288x128xbf16>
    %136 = vector.extract_strided_slice %135 {offsets = [0, 0], sizes = [256, 128], strides = [1, 1]} : vector<288x128xbf16> to vector<256x128xbf16>
    %c0_101 = arith.constant 0 : index
    %c1_102 = arith.constant 1 : index
    %c0_103 = arith.constant 0 : index
    %c0_104 = arith.constant 0 : index
    %137 = vector.load %arg3[%c0_101, %c1_102, %c0_103, %c0_104] : memref<3x3x128x128xbf16, #tpu.memory_space<vmem>>, vector<1x1x128x128xbf16>
    %138 = vector.shape_cast %137 : vector<1x1x128x128xbf16> to vector<128x128xbf16>
    %cst_105 = arith.constant dense<0.000000e+00> : vector<256x128xf32>
    %139 = tpu.matmul %136, %138, %cst_105 {dimension_numbers = #tpu.dot_dimension_numbers<[1], [0], [0], [1], [0, 0, 1, 1], [], []>} : vector<256x128xbf16>, vector<128x128xbf16>, vector<256x128xf32> -> vector<256x128xf32>
    %140 = arith.addf %134, %139 : vector<256x128xf32>
    %141 = vector.extract_strided_slice %135 {offsets = [16, 0], sizes = [256, 128], strides = [1, 1]} : vector<288x128xbf16> to vector<256x128xbf16>
    %c1_106 = arith.constant 1 : index
    %c1_107 = arith.constant 1 : index
    %c0_108 = arith.constant 0 : index
    %c0_109 = arith.constant 0 : index
    %142 = vector.load %arg3[%c1_106, %c1_107, %c0_108, %c0_109] : memref<3x3x128x128xbf16, #tpu.memory_space<vmem>>, vector<1x1x128x128xbf16>
    %143 = vector.shape_cast %142 : vector<1x1x128x128xbf16> to vector<128x128xbf16>
    %cst_110 = arith.constant dense<0.000000e+00> : vector<256x128xf32>
    %144 = tpu.matmul %141, %143, %cst_110 {dimension_numbers = #tpu.dot_dimension_numbers<[1], [0], [0], [1], [0, 0, 1, 1], [], []>} : vector<256x128xbf16>, vector<128x128xbf16>, vector<256x128xf32> -> vector<256x128xf32>
    %145 = arith.addf %140, %144 : vector<256x128xf32>
    %146 = vector.extract_strided_slice %135 {offsets = [32, 0], sizes = [256, 128], strides = [1, 1]} : vector<288x128xbf16> to vector<256x128xbf16>
    %c2_111 = arith.constant 2 : index
    %c1_112 = arith.constant 1 : index
    %c0_113 = arith.constant 0 : index
    %c0_114 = arith.constant 0 : index
    %147 = vector.load %arg3[%c2_111, %c1_112, %c0_113, %c0_114] : memref<3x3x128x128xbf16, #tpu.memory_space<vmem>>, vector<1x1x128x128xbf16>
    %148 = vector.shape_cast %147 : vector<1x1x128x128xbf16> to vector<128x128xbf16>
    %cst_115 = arith.constant dense<0.000000e+00> : vector<256x128xf32>
    %149 = tpu.matmul %146, %148, %cst_115 {dimension_numbers = #tpu.dot_dimension_numbers<[1], [0], [0], [1], [0, 0, 1, 1], [], []>} : vector<256x128xbf16>, vector<128x128xbf16>, vector<256x128xf32> -> vector<256x128xf32>
    %150 = arith.addf %145, %149 : vector<256x128xf32>
    %c9_116 = arith.constant 9 : index
    %c0_117 = arith.constant 0 : index
    %151 = vector.load %arg8[%c9_116, %c0_117] : memref<304x128xbf16, #tpu.memory_space<vmem>>, vector<288x128xbf16>
    %152 = vector.broadcast %26 : vector<288x1xbf16> to vector<288x128xbf16>
    %153 = arith.mulf %151, %152 : vector<288x128xbf16>
    %154 = vector.extract_strided_slice %153 {offsets = [0, 0], sizes = [256, 128], strides = [1, 1]} : vector<288x128xbf16> to vector<256x128xbf16>
    %c0_118 = arith.constant 0 : index
    %c2_119 = arith.constant 2 : index
    %c0_120 = arith.constant 0 : index
    %c0_121 = arith.constant 0 : index
    %155 = vector.load %arg3[%c0_118, %c2_119, %c0_120, %c0_121] : memref<3x3x128x128xbf16, #tpu.memory_space<vmem>>, vector<1x1x128x128xbf16>
    %156 = vector.shape_cast %155 : vector<1x1x128x128xbf16> to vector<128x128xbf16>
    %cst_122 = arith.constant dense<0.000000e+00> : vector<256x128xf32>
    %157 = tpu.matmul %154, %156, %cst_122 {dimension_numbers = #tpu.dot_dimension_numbers<[1], [0], [0], [1], [0, 0, 1, 1], [], []>} : vector<256x128xbf16>, vector<128x128xbf16>, vector<256x128xf32> -> vector<256x128xf32>
    %158 = arith.addf %150, %157 : vector<256x128xf32>
    %159 = vector.extract_strided_slice %153 {offsets = [16, 0], sizes = [256, 128], strides = [1, 1]} : vector<288x128xbf16> to vector<256x128xbf16>
    %c1_123 = arith.constant 1 : index
    %c2_124 = arith.constant 2 : index
    %c0_125 = arith.constant 0 : index
    %c0_126 = arith.constant 0 : index
    %160 = vector.load %arg3[%c1_123, %c2_124, %c0_125, %c0_126] : memref<3x3x128x128xbf16, #tpu.memory_space<vmem>>, vector<1x1x128x128xbf16>
    %161 = vector.shape_cast %160 : vector<1x1x128x128xbf16> to vector<128x128xbf16>
    %cst_127 = arith.constant dense<0.000000e+00> : vector<256x128xf32>
    %162 = tpu.matmul %159, %161, %cst_127 {dimension_numbers = #tpu.dot_dimension_numbers<[1], [0], [0], [1], [0, 0, 1, 1], [], []>} : vector<256x128xbf16>, vector<128x128xbf16>, vector<256x128xf32> -> vector<256x128xf32>
    %163 = arith.addf %158, %162 : vector<256x128xf32>
    %164 = vector.extract_strided_slice %153 {offsets = [32, 0], sizes = [256, 128], strides = [1, 1]} : vector<288x128xbf16> to vector<256x128xbf16>
    %c2_128 = arith.constant 2 : index
    %c2_129 = arith.constant 2 : index
    %c0_130 = arith.constant 0 : index
    %c0_131 = arith.constant 0 : index
    %165 = vector.load %arg3[%c2_128, %c2_129, %c0_130, %c0_131] : memref<3x3x128x128xbf16, #tpu.memory_space<vmem>>, vector<1x1x128x128xbf16>
    %166 = vector.shape_cast %165 : vector<1x1x128x128xbf16> to vector<128x128xbf16>
    %cst_132 = arith.constant dense<0.000000e+00> : vector<256x128xf32>
    %167 = tpu.matmul %164, %166, %cst_132 {dimension_numbers = #tpu.dot_dimension_numbers<[1], [0], [0], [1], [0, 0, 1, 1], [], []>} : vector<256x128xbf16>, vector<128x128xbf16>, vector<256x128xf32> -> vector<256x128xf32>
    %168 = arith.addf %163, %167 : vector<256x128xf32>
    %169 = vector.broadcast %114 : vector<1x128xf32> to vector<256x128xf32>
    %170 = arith.mulf %168, %169 : vector<256x128xf32>
    %171 = vector.broadcast %115 : vector<1x128xf32> to vector<256x128xf32>
    %172 = arith.addf %170, %171 : vector<256x128xf32>
    %cst_133 = arith.constant 0.000000e+00 : f32
    %173 = vector.broadcast %cst_133 : f32 to vector<256x128xf32>
    %174 = arith.maximumf %172, %173 : vector<256x128xf32>
    %c0_134 = arith.constant 0 : index
    %c0_135 = arith.constant 0 : index
    %175 = vector.load %arg10[%c0_134, %c0_135] : memref<256x128xf32, #tpu.memory_space<vmem>>, vector<256x128xf32>
    %176 = arith.addf %175, %174 : vector<256x128xf32>
    %c0_136 = arith.constant 0 : index
    %c0_137 = arith.constant 0 : index
    %177 = vector.load %arg10[%c0_136, %c0_137] : memref<256x128xf32, #tpu.memory_space<vmem>>, vector<256x128xf32>
    tpu.vector_store %arg10[%c0_136, %c0_137], %176 {strides = array<i32>} : memref<256x128xf32, #tpu.memory_space<vmem>>, vector<256x128xf32>,
    %178 = arith.truncf %174 : vector<256x128xf32> to vector<256x128xbf16>
    %c24_138 = arith.constant 24 : index
    %c0_139 = arith.constant 0 : index
    %179 = vector.load %arg9[%c24_138, %c0_139] : memref<304x128xbf16, #tpu.memory_space<vmem>>, vector<256x128xbf16>
    tpu.vector_store %arg9[%c24_138, %c0_139], %178 {strides = array<i32>} : memref<304x128xbf16, #tpu.memory_space<vmem>>, vector<256x128xbf16>,
    %180 = vector.extract_strided_slice %42 {offsets = [4, 0], sizes = [1, 128], strides = [1, 1]} : vector<8x128xf32> to vector<1x128xf32>
    %181 = vector.extract_strided_slice %42 {offsets = [5, 0], sizes = [1, 128], strides = [1, 1]} : vector<8x128xf32> to vector<1x128xf32>
    %cst_140 = arith.constant 0.000000e+00 : f32
    %182 = vector.broadcast %cst_140 : f32 to vector<256x128xf32>
    %c7_141 = arith.constant 7 : index
    %c0_142 = arith.constant 0 : index
    %183 = vector.load %arg9[%c7_141, %c0_142] : memref<304x128xbf16, #tpu.memory_space<vmem>>, vector<288x128xbf16>
    %184 = vector.broadcast %21 : vector<288x1xbf16> to vector<288x128xbf16>
    %185 = arith.mulf %183, %184 : vector<288x128xbf16>
    %186 = vector.extract_strided_slice %185 {offsets = [0, 0], sizes = [256, 128], strides = [1, 1]} : vector<288x128xbf16> to vector<256x128xbf16>
    %c0_143 = arith.constant 0 : index
    %c0_144 = arith.constant 0 : index
    %c0_145 = arith.constant 0 : index
    %c0_146 = arith.constant 0 : index
    %187 = vector.load %arg4[%c0_143, %c0_144, %c0_145, %c0_146] : memref<3x3x128x128xbf16, #tpu.memory_space<vmem>>, vector<1x1x128x128xbf16>
    %188 = vector.shape_cast %187 : vector<1x1x128x128xbf16> to vector<128x128xbf16>
    %cst_147 = arith.constant dense<0.000000e+00> : vector<256x128xf32>
    %189 = tpu.matmul %186, %188, %cst_147 {dimension_numbers = #tpu.dot_dimension_numbers<[1], [0], [0], [1], [0, 0, 1, 1], [], []>} : vector<256x128xbf16>, vector<128x128xbf16>, vector<256x128xf32> -> vector<256x128xf32>
    %190 = arith.addf %182, %189 : vector<256x128xf32>
    %191 = vector.extract_strided_slice %185 {offsets = [16, 0], sizes = [256, 128], strides = [1, 1]} : vector<288x128xbf16> to vector<256x128xbf16>
    %c1_148 = arith.constant 1 : index
    %c0_149 = arith.constant 0 : index
    %c0_150 = arith.constant 0 : index
    %c0_151 = arith.constant 0 : index
    %192 = vector.load %arg4[%c1_148, %c0_149, %c0_150, %c0_151] : memref<3x3x128x128xbf16, #tpu.memory_space<vmem>>, vector<1x1x128x128xbf16>
    %193 = vector.shape_cast %192 : vector<1x1x128x128xbf16> to vector<128x128xbf16>
    %cst_152 = arith.constant dense<0.000000e+00> : vector<256x128xf32>
    %194 = tpu.matmul %191, %193, %cst_152 {dimension_numbers = #tpu.dot_dimension_numbers<[1], [0], [0], [1], [0, 0, 1, 1], [], []>} : vector<256x128xbf16>, vector<128x128xbf16>, vector<256x128xf32> -> vector<256x128xf32>
    %195 = arith.addf %190, %194 : vector<256x128xf32>
    %196 = vector.extract_strided_slice %185 {offsets = [32, 0], sizes = [256, 128], strides = [1, 1]} : vector<288x128xbf16> to vector<256x128xbf16>
    %c2_153 = arith.constant 2 : index
    %c0_154 = arith.constant 0 : index
    %c0_155 = arith.constant 0 : index
    %c0_156 = arith.constant 0 : index
    %197 = vector.load %arg4[%c2_153, %c0_154, %c0_155, %c0_156] : memref<3x3x128x128xbf16, #tpu.memory_space<vmem>>, vector<1x1x128x128xbf16>
    %198 = vector.shape_cast %197 : vector<1x1x128x128xbf16> to vector<128x128xbf16>
    %cst_157 = arith.constant dense<0.000000e+00> : vector<256x128xf32>
    %199 = tpu.matmul %196, %198, %cst_157 {dimension_numbers = #tpu.dot_dimension_numbers<[1], [0], [0], [1], [0, 0, 1, 1], [], []>} : vector<256x128xbf16>, vector<128x128xbf16>, vector<256x128xf32> -> vector<256x128xf32>
    %200 = arith.addf %195, %199 : vector<256x128xf32>
    %c8_158 = arith.constant 8 : index
    %c0_159 = arith.constant 0 : index
    %201 = vector.load %arg9[%c8_158, %c0_159] : memref<304x128xbf16, #tpu.memory_space<vmem>>, vector<288x128xbf16>
    %202 = vector.extract_strided_slice %201 {offsets = [0, 0], sizes = [256, 128], strides = [1, 1]} : vector<288x128xbf16> to vector<256x128xbf16>
    %c0_160 = arith.constant 0 : index
    %c1_161 = arith.constant 1 : index
    %c0_162 = arith.constant 0 : index
    %c0_163 = arith.constant 0 : index
    %203 = vector.load %arg4[%c0_160, %c1_161, %c0_162, %c0_163] : memref<3x3x128x128xbf16, #tpu.memory_space<vmem>>, vector<1x1x128x128xbf16>
    %204 = vector.shape_cast %203 : vector<1x1x128x128xbf16> to vector<128x128xbf16>
    %cst_164 = arith.constant dense<0.000000e+00> : vector<256x128xf32>
    %205 = tpu.matmul %202, %204, %cst_164 {dimension_numbers = #tpu.dot_dimension_numbers<[1], [0], [0], [1], [0, 0, 1, 1], [], []>} : vector<256x128xbf16>, vector<128x128xbf16>, vector<256x128xf32> -> vector<256x128xf32>
    %206 = arith.addf %200, %205 : vector<256x128xf32>
    %207 = vector.extract_strided_slice %201 {offsets = [16, 0], sizes = [256, 128], strides = [1, 1]} : vector<288x128xbf16> to vector<256x128xbf16>
    %c1_165 = arith.constant 1 : index
    %c1_166 = arith.constant 1 : index
    %c0_167 = arith.constant 0 : index
    %c0_168 = arith.constant 0 : index
    %208 = vector.load %arg4[%c1_165, %c1_166, %c0_167, %c0_168] : memref<3x3x128x128xbf16, #tpu.memory_space<vmem>>, vector<1x1x128x128xbf16>
    %209 = vector.shape_cast %208 : vector<1x1x128x128xbf16> to vector<128x128xbf16>
    %cst_169 = arith.constant dense<0.000000e+00> : vector<256x128xf32>
    %210 = tpu.matmul %207, %209, %cst_169 {dimension_numbers = #tpu.dot_dimension_numbers<[1], [0], [0], [1], [0, 0, 1, 1], [], []>} : vector<256x128xbf16>, vector<128x128xbf16>, vector<256x128xf32> -> vector<256x128xf32>
    %211 = arith.addf %206, %210 : vector<256x128xf32>
    %212 = vector.extract_strided_slice %201 {offsets = [32, 0], sizes = [256, 128], strides = [1, 1]} : vector<288x128xbf16> to vector<256x128xbf16>
    %c2_170 = arith.constant 2 : index
    %c1_171 = arith.constant 1 : index
    %c0_172 = arith.constant 0 : index
    %c0_173 = arith.constant 0 : index
    %213 = vector.load %arg4[%c2_170, %c1_171, %c0_172, %c0_173] : memref<3x3x128x128xbf16, #tpu.memory_space<vmem>>, vector<1x1x128x128xbf16>
    %214 = vector.shape_cast %213 : vector<1x1x128x128xbf16> to vector<128x128xbf16>
    %cst_174 = arith.constant dense<0.000000e+00> : vector<256x128xf32>
    %215 = tpu.matmul %212, %214, %cst_174 {dimension_numbers = #tpu.dot_dimension_numbers<[1], [0], [0], [1], [0, 0, 1, 1], [], []>} : vector<256x128xbf16>, vector<128x128xbf16>, vector<256x128xf32> -> vector<256x128xf32>
    %216 = arith.addf %211, %215 : vector<256x128xf32>
    %c9_175 = arith.constant 9 : index
    %c0_176 = arith.constant 0 : index
    %217 = vector.load %arg9[%c9_175, %c0_176] : memref<304x128xbf16, #tpu.memory_space<vmem>>, vector<288x128xbf16>
    %218 = vector.broadcast %26 : vector<288x1xbf16> to vector<288x128xbf16>
    %219 = arith.mulf %217, %218 : vector<288x128xbf16>
    %220 = vector.extract_strided_slice %219 {offsets = [0, 0], sizes = [256, 128], strides = [1, 1]} : vector<288x128xbf16> to vector<256x128xbf16>
    %c0_177 = arith.constant 0 : index
    %c2_178 = arith.constant 2 : index
    %c0_179 = arith.constant 0 : index
    %c0_180 = arith.constant 0 : index
    %221 = vector.load %arg4[%c0_177, %c2_178, %c0_179, %c0_180] : memref<3x3x128x128xbf16, #tpu.memory_space<vmem>>, vector<1x1x128x128xbf16>
    %222 = vector.shape_cast %221 : vector<1x1x128x128xbf16> to vector<128x128xbf16>
    %cst_181 = arith.constant dense<0.000000e+00> : vector<256x128xf32>
    %223 = tpu.matmul %220, %222, %cst_181 {dimension_numbers = #tpu.dot_dimension_numbers<[1], [0], [0], [1], [0, 0, 1, 1], [], []>} : vector<256x128xbf16>, vector<128x128xbf16>, vector<256x128xf32> -> vector<256x128xf32>
    %224 = arith.addf %216, %223 : vector<256x128xf32>
    %225 = vector.extract_strided_slice %219 {offsets = [16, 0], sizes = [256, 128], strides = [1, 1]} : vector<288x128xbf16> to vector<256x128xbf16>
    %c1_182 = arith.constant 1 : index
    %c2_183 = arith.constant 2 : index
    %c0_184 = arith.constant 0 : index
    %c0_185 = arith.constant 0 : index
    %226 = vector.load %arg4[%c1_182, %c2_183, %c0_184, %c0_185] : memref<3x3x128x128xbf16, #tpu.memory_space<vmem>>, vector<1x1x128x128xbf16>
    %227 = vector.shape_cast %226 : vector<1x1x128x128xbf16> to vector<128x128xbf16>
    %cst_186 = arith.constant dense<0.000000e+00> : vector<256x128xf32>
    %228 = tpu.matmul %225, %227, %cst_186 {dimension_numbers = #tpu.dot_dimension_numbers<[1], [0], [0], [1], [0, 0, 1, 1], [], []>} : vector<256x128xbf16>, vector<128x128xbf16>, vector<256x128xf32> -> vector<256x128xf32>
    %229 = arith.addf %224, %228 : vector<256x128xf32>
    %230 = vector.extract_strided_slice %219 {offsets = [32, 0], sizes = [256, 128], strides = [1, 1]} : vector<288x128xbf16> to vector<256x128xbf16>
    %c2_187 = arith.constant 2 : index
    %c2_188 = arith.constant 2 : index
    %c0_189 = arith.constant 0 : index
    %c0_190 = arith.constant 0 : index
    %231 = vector.load %arg4[%c2_187, %c2_188, %c0_189, %c0_190] : memref<3x3x128x128xbf16, #tpu.memory_space<vmem>>, vector<1x1x128x128xbf16>
    %232 = vector.shape_cast %231 : vector<1x1x128x128xbf16> to vector<128x128xbf16>
    %cst_191 = arith.constant dense<0.000000e+00> : vector<256x128xf32>
    %233 = tpu.matmul %230, %232, %cst_191 {dimension_numbers = #tpu.dot_dimension_numbers<[1], [0], [0], [1], [0, 0, 1, 1], [], []>} : vector<256x128xbf16>, vector<128x128xbf16>, vector<256x128xf32> -> vector<256x128xf32>
    %234 = arith.addf %229, %233 : vector<256x128xf32>
    %235 = vector.broadcast %180 : vector<1x128xf32> to vector<256x128xf32>
    %236 = arith.mulf %234, %235 : vector<256x128xf32>
    %237 = vector.broadcast %181 : vector<1x128xf32> to vector<256x128xf32>
    %238 = arith.addf %236, %237 : vector<256x128xf32>
    %cst_192 = arith.constant 0.000000e+00 : f32
    %239 = vector.broadcast %cst_192 : f32 to vector<256x128xf32>
    %240 = arith.maximumf %238, %239 : vector<256x128xf32>
    %c0_193 = arith.constant 0 : index
    %c0_194 = arith.constant 0 : index
    %241 = vector.load %arg10[%c0_193, %c0_194] : memref<256x128xf32, #tpu.memory_space<vmem>>, vector<256x128xf32>
    %242 = arith.addf %241, %240 : vector<256x128xf32>
    %c0_195 = arith.constant 0 : index
    %c0_196 = arith.constant 0 : index
    %243 = vector.load %arg10[%c0_195, %c0_196] : memref<256x128xf32, #tpu.memory_space<vmem>>, vector<256x128xf32>
    tpu.vector_store %arg10[%c0_195, %c0_196], %242 {strides = array<i32>} : memref<256x128xf32, #tpu.memory_space<vmem>>, vector<256x128xf32>,
    %c0_197 = arith.constant 0 : index
    %c0_198 = arith.constant 0 : index
    %244 = vector.load %arg10[%c0_197, %c0_198] : memref<256x128xf32, #tpu.memory_space<vmem>>, vector<256x128xf32>
    %245 = arith.truncf %244 : vector<256x128xf32> to vector<256x128xbf16>
    %c0_199 = arith.constant 0 : index
    %c0_200 = arith.constant 0 : index
    %c0_201 = arith.constant 0 : index
    %246 = vector.load %arg6[%c0_199, %c0_200, %c0_201] : memref<1x256x128xbf16, #tpu.memory_space<vmem>>, vector<1x256x128xbf16>
    %247 = vector.shape_cast %246 : vector<1x256x128xbf16> to vector<256x128xbf16>
    %248 = vector.shape_cast %245 : vector<256x128xbf16> to vector<1x256x128xbf16>
    tpu.vector_store %arg6[%c0_199, %c0_200, %c0_201], %248 {strides = array<i32>} : memref<1x256x128xbf16, #tpu.memory_space<vmem>>, vector<1x256x128xbf16>,
    return
  }
  func.func @transform_0(%arg0: i32) -> (i32, i32, i32) {
    %c0_i32 = arith.constant 0 : i32
    %c0_i32_0 = arith.constant 0 : i32
    %c0_i32_1 = arith.constant 0 : i32
    return %arg0, %c0_i32, %c0_i32_0 : i32, i32, i32
  }
  func.func @transform_1(%arg0: i32) -> (i32, i32, i32, i32) {
    %c0_i32 = arith.constant 0 : i32
    %c0_i32_0 = arith.constant 0 : i32
    %c0_i32_1 = arith.constant 0 : i32
    %c0_i32_2 = arith.constant 0 : i32
    %c0_i32_3 = arith.constant 0 : i32
    return %c0_i32, %c0_i32_0, %c0_i32_1, %c0_i32_2 : i32, i32, i32, i32
  }
  func.func @transform_2(%arg0: i32) -> (i32, i32, i32, i32) {
    %c0_i32 = arith.constant 0 : i32
    %c0_i32_0 = arith.constant 0 : i32
    %c0_i32_1 = arith.constant 0 : i32
    %c0_i32_2 = arith.constant 0 : i32
    %c0_i32_3 = arith.constant 0 : i32
    return %c0_i32, %c0_i32_0, %c0_i32_1, %c0_i32_2 : i32, i32, i32, i32
  }
  func.func @transform_3(%arg0: i32) -> (i32, i32, i32, i32) {
    %c0_i32 = arith.constant 0 : i32
    %c0_i32_0 = arith.constant 0 : i32
    %c0_i32_1 = arith.constant 0 : i32
    %c0_i32_2 = arith.constant 0 : i32
    %c0_i32_3 = arith.constant 0 : i32
    return %c0_i32, %c0_i32_0, %c0_i32_1, %c0_i32_2 : i32, i32, i32, i32
  }
  func.func @transform_4(%arg0: i32) -> (i32, i32) {
    %c0_i32 = arith.constant 0 : i32
    %c0_i32_0 = arith.constant 0 : i32
    %c0_i32_1 = arith.constant 0 : i32
    return %c0_i32, %c0_i32_0 : i32, i32
  }
  func.func @transform_5(%arg0: i32) -> (i32, i32, i32) {
    %c0_i32 = arith.constant 0 : i32
    %c0_i32_0 = arith.constant 0 : i32
    %c0_i32_1 = arith.constant 0 : i32
    return %arg0, %c0_i32, %c0_i32_0 : i32, i32, i32
  }
}

</mosaic_0001>

<bundles_post_ra>
// kernel: _lambda_.1
= control target key start
LH: loop header
LB: loop body
LE: loop exit
PB: predicated region body
PF: predicated region fallthrough
CT: control target
= control target key end

     0   :  { %10 = vsyncpa [#allocation7], 0  ;;  %s21852_s0 = inlined_call_operand.vmem [shape: bf16[2,256,128], index: 0, kind: input, shape index: {}]   ;;  %s21853_s1 = inlined_call_operand.hbm [shape: bf16[3,3,128,128], index: 1, kind: input, shape index: {}]   ;;  %s21854_s2 = inlined_call_operand.hbm [shape: bf16[3,3,128,128], index: 2, kind: input, shape index: {}]   ;;  %s21855_s3 = inlined_call_operand.vmem [shape: bf16[3,3,128,128], index: 3, kind: input, shape index: {}]   ;;  %s21856_s4 = inlined_call_operand.vmem [shape: f32[8,128], index: 4, kind: input, shape index: {}]   ;;  %s21857_s5 = inlined_call_operand.vmem [shape: bf16[2,256,128], index: 5, kind: output, shape index: {}]  }
   0x1   :  { %11 = vsyncpa [#allocation9], 0  ;;  %s16352_s18 = smov 0  }
   0x2 LB: > { %s16358_s19 = sadd.s32 4294967295, %s16311_s18   ;;  %p12922_p0 = scmp.ge.s32.totalorder %s16311_s18, 1  ;;  %s16311_s18 = sphi %s16352_s18, %s17_s18  }
   0x3   : > { %p158_p1 = scmp.lt.s32.totalorder %s16311_s18, 3  ;;  %s16313_s20 = smov [#allocation6]  }
   0x4   : > { %s170_s21 = sshll.u32 %s16313_s20, 4  ;;  %p15939_p3 = scmp.eq.s32.totalorder %s16358_s19, 0  ;;  %s171_s21 = int_to_ptr.vmem [resolvable:$true] %s170_s21 }
   0x5   : > { %p16362_p2 = pnand %p12922_p0, %p158_p1  ;;  %s16314_s23 = smov [#allocation8]  }
   0x6   : > { %s183_s24 = sshll.u32 %s16314_s23, 4  ;;  %s16256_s26 = scalar_lea.vmem %s171_s21, 9216  ;;  %s184_s24 = int_to_ptr.vmem [resolvable:$true] %s183_s24 }
   0x7   : > { %p15932_p4 = pneg %p16362_p2  ;;  %p16257_p7 = scmp.ne.s32.totalorder %s171_s21, %s16256_s26 }
   0x8   : > { %p16264_p10 = scmp.lt.s32.totalorder %s171_s21, %s171_s21  ;;  %p16265_p11 = scmp.lt.s32.totalorder %s16256_s26, %s16256_s26 }
   0x9   : > { %p16371_p5 = pnand %p15939_p3, %p15932_p4 }
   0xa   : > { %p16266_p12 = por %p16265_p11, %p16264_p10 }
   0xb   : > { %p16247_p6 = pneg %p16371_p5 }
   0xd   : > { %p16259_p8 = pnand %p16257_p7, %p16247_p6 }
   0xf   : > { %p16260_p9 = pneg %p16259_p8 }
  0x11   : > { %p16267_p13 = pnand %p16266_p12, %p16260_p9 }
  0x13   : > { %16270 = shalt.err (!%p16267_p13)
}
  0x14   : > { %s16315_s27 = smov 64   ;;  %s16316_s28 = smov 4  }
  0x15   : > { %15935 = dma.hbm_to_vmem [thread:$0]  (!%p16371_p5), %s21853_s1, 9216, %s171_s21, [#allocation7], %s16315_s27, %s16315_s27, %s16316_s28  }
  0x16   : > { %s16282_s6 = scalar_lea.vmem %s184_s24, 9216  ;;  %p16290_p7 = scmp.lt.s32.totalorder %s184_s24, %s184_s24 }
  0x17   : > { %p16283_p0 = scmp.ne.s32.totalorder %s184_s24, %s16282_s6  ;;  %p16291_p8 = scmp.lt.s32.totalorder %s16282_s6, %s16282_s6 }
  0x19   : > { %p16285_p1 = pnand %p16283_p0, %p16247_p6  ;;  %p16292_p10 = por %p16291_p8, %p16290_p7 }
  0x1b   : > { %p16286_p4 = pneg %p16285_p1 }
  0x1d   : > { %p16293_p9 = pnand %p16292_p10, %p16286_p4 }
  0x1f   : > { %16296 = shalt.err (!%p16293_p9)
}
  0x20   : > { %15938 = dma.hbm_to_vmem [thread:$0]  (!%p16371_p5), %s21854_s2, 9216, %s184_s24, [#allocation9], %s16315_s27, %s16315_s27, %s16316_s28  }
  0x21   : > { %213 = sbr.rel (%p16362_p2) target bundleno = 1701 (0x6a5), region = 40 }
  0x26   : > { %16302 = dma.done.wait (%p15939_p3), [#allocation7], 9216  }
  0x27   : > { %16304 = vsyncadd (%p15939_p3), [#allocation7], 4294958080 }
  0x28   : > { %16306 = dma.done.wait (%p15939_p3), [#allocation9], 9216  }
  0x29   : > { %16308 = vsyncadd (%p15939_p3), [#allocation9], 4294958080  ;;  %v256_v0 = vlaneseq  ;;  %p245_p6 = scmp.lt.s32.totalorder %s16358_s19, 1  ;;  %v16317_v1 = vmov 0   ;;  %v16318_v3 = vmov 839922192  }
  0x2a   : > { %979 = vst [vmem:[#allocation2 + $0x8] sm:$0xf] %v16317_v1  ;;  %977 = vst [vmem:[#allocation2] sm:$0xf] %v16317_v1  ;;  %v1216_v4 = vunpack.c.l.s4 %v16318_v3  ;;  %v16319_v5 = vmov 1985246804  }
  0x2b   : > { %978 = vst [vmem:[#allocation2 + $0x4] sm:$0xf] %v16317_v1  ;;  %980 = vst [vmem:[#allocation2 + $0x8c] sm:$0xf] %v16317_v1  ;;  %v16404_v2 = vshrl.u32 %v256_v0, 7  ;;  %v1223_v6 = vunpack.c.l.s4 %v16319_v5  ;;  %s23075_s19 = smov (!%p245_p6, %s16358_s19), 1 }
  0x2c   : > { %981 = vst [vmem:[#allocation2 + $0x90] sm:$0xf] %v16317_v1  ;;  %982 = vst [vmem:[#allocation2 + $0x94] sm:$0xf] %v16317_v1  ;;  %v1217_v10 = vunpack.c.0.s8 %v1216_v4  ;;  %v15960_v14 = vld [vmem:[#allocation6 + $0xf8] sm:$0xff]   ;;  %v21860_v15 = vmov 0.0  }
  0x2d   : > { %983 = vst [vmem:[#allocation3] sm:$0xf] %v16317_v1  ;;  %984 = vst [vmem:[#allocation3 + $0x4] sm:$0xf] %v16317_v1  ;;  %v259_v7 = vadd.s32 16, %v16404_v2  ;;  %v261_v8 = vadd.s32 32, %v16404_v2  ;;  %v1224_v11 = vunpack.c.0.s8 %v1223_v6  ;;  %14612 = vmatprep.subr.bf16.mxu0 %v15960_v14  ;;  %15908 = vmatprep.subr.bf16.mxu1 %v15960_v14 }
  0x2e   : > { %985 = vst [vmem:[#allocation3 + $0x8] sm:$0xf] %v16317_v1  ;;  %986 = vst [vmem:[#allocation3 + $0x8c] sm:$0xf] %v16317_v1  ;;  %v297_v9 = vand.u32 15, %v16404_v2  ;;  %v15961_v18 = vld [vmem:[#allocation6 + $0xf0] sm:$0xff]   ;;  %v16423_v21 = vsub.s32 %v1217_v10, %v16404_v2  ;;  %14613 = vmatpush3.bf16.msra.mxu0 %v15960_v14  ;;  %15916 = vmatpush3.bf16.msra.mxu1 %v15960_v14 }
  0x2f   : > { %987 = vst [vmem:[#allocation3 + $0x90] sm:$0xf] %v16317_v1  ;;  %988 = vst [vmem:[#allocation3 + $0x94] sm:$0xf] %v16317_v1  ;;  %v311_v12 = vand.u32 15, %v259_v7  ;;  %v325_v13 = vand.u32 15, %v261_v8  ;;  %v16416_v17 = vsub.s32 %v1224_v11, %v16404_v2  ;;  %14614 = vmatprep.subr.bf16.mxu0 %v15961_v18  ;;  %15909 = vmatprep.subr.bf16.mxu1 %v15961_v18 }
  0x30   : > { %989 = vst [vmem:[#allocation4] sm:$0xf] %v16317_v1  ;;  %990 = vst [vmem:[#allocation4 + $0x4] sm:$0xf] %v16317_v1  ;;  %vm725_vm0 = vcmp.ne.s32.totalorder %v297_v9, 0  ;;  %v21858_v19 = vmov 1.0  }
  0x31   : > { %991 = vst [vmem:[#allocation4 + $0x8] sm:$0xf] %v16317_v1  ;;  %992 = vst [vmem:[#allocation4 + $0x8c] sm:$0xf] %v16317_v1  ;;  %v12933_v16 = vsel %vm725_vm0, 1.0, %v21860_v15  ;;  %vm727_vm1 = vcmp.ne.s32.totalorder %v311_v12, 0 }
  0x32   : > { %993 = vst [vmem:[#allocation4 + $0x90] sm:$0xf] %v16317_v1  ;;  %994 = vst [vmem:[#allocation4 + $0x94] sm:$0xf] %v16317_v1  ;;  %v16419_v20 = vpack.c.bf16 %v21858_v19, %v12933_v16  ;;  %vm1467_vm2 = vsmask.f32 3328  ;;  %14615 = vmatpush3.bf16.msra.mxu0 %v15961_v18  ;;  %15917 = vmatpush3.bf16.msra.mxu1 %v15961_v18 }
  0x33   : > { %22133 = vst [vmem:[#allocation12_spill] sm:$0xff] %v16404_v2  ;;  %22134 = vst [vmem:[#allocation13_spill] sm:$0xff] %v16416_v17  ;;  %vm1468_vm3 = vsmask.f32 7440  ;;  %s13591_s9 = sshll.u32 %s23075_s19, 7  ;;  %vm729_vm4 = vcmp.ne.s32.totalorder %v325_v13, 0 }
  0x34   : > { %v12934_v22 = vsel %vm727_vm1, 1.0, %v21860_v15  ;;  %v1228_v23 = vrot.slane %v16419_v20, %v16416_v17  ;;  %v16429_v24 = vadd.s32 128, %v16404_v2  ;;  %v15962_v25 = vld [vmem:[#allocation6 + $0xe8] sm:$0xff]   ;;  %v12935_v26 = vsel %vm729_vm4, 1.0, %v21860_v15  ;;  %s16438_s12 = scalar_lea.vmem %s21852_s0, %s13591_s9  ;;  %v15963_v35 = vld [vmem:[#allocation6 + $0xe0] sm:$0xff]   ;;  %v15964_v51 = vld [vmem:[#allocation6 + $0xd8] sm:$0xff]   ;;  %s21675_s13 = scalar_lea.vmem %s21857_s5, %s13591_s9 }
  0x35   : > { %v834_v27 = vpack.c.bf16 %v21858_v19, %v12934_v22  ;;  %v835_v28 = vpack.c.bf16 %v21858_v19, %v12935_v26  ;;  %v16442_v30 = vadd.s32 144, %v16404_v2  ;;  %v16447_v34 = vadd.s32 160, %v16404_v2  ;;  %14616 = vmatprep.subr.bf16.mxu0 %v15962_v25  ;;  %15910 = vmatprep.subr.bf16.mxu1 %v15962_v25  ;;  %v16456_v39 = vld [vmem:[%s16438_s12] sm:$0xf]  ;;  %v16459_v40 = vld [vmem:[%s16438_s12 + $0x4] sm:$0xf]  ;;  %vm16480_vm5 = vmor %vm1467_vm2, %vm1468_vm3 }
  0x36   : > { %v1480_v29 = vshll.u32 %v1228_v23, 16  ;;  %v1484_v33 = vshrl.u32 %v1228_v23, 16  ;;  %22135 = vst [vmem:[#allocation14_spill] sm:$0xff] %v16456_v39  ;;  %22136 = vst [vmem:[#allocation15_spill] sm:$0xff] %v16459_v40  ;;  %v16462_v41 = vld [vmem:[%s16438_s12 + $0x8] sm:$0xf]  ;;  %14617 = vmatpush3.bf16.msra.mxu0 %v15962_v25  ;;  %15918 = vmatpush3.bf16.msra.mxu1 %v15962_v25 }
  0x37   : > { %v1235_v31 = vrot.slane %v834_v27, %v16423_v21  ;;  %v1242_v32 = vrot.slane %v834_v27, %v16416_v17  ;;  %v1249_v36 = vrot.slane %v835_v28, %v16423_v21  ;;  %v16451_v37 = vrot.slane %v835_v28, %v16416_v17  ;;  %22137 = vst [vmem:[#allocation16_spill] sm:$0xff] %v16462_v41  ;;  %v16469_v50 = vld [vmem:[%s16438_s12 + $0x3c] sm:$0xf]  ;;  %v16471_v52 = vld [vmem:[#allocation2 + $0x8] sm:$0xf] }
  0x38   : > { %v16453_v38 = vrot.slane %v1480_v29, 5  ;;  %1027 = vst [vmem:[#allocation2 + $0xc] sm:$0xf] %v16456_v39  ;;  %1028 = vst [vmem:[#allocation2 + $0x10] sm:$0xf] %v16459_v40  ;;  %v1486_v42 = vrot.slane %v1484_v33, 4  ;;  %14618 = vmatprep.subr.bf16.mxu0 %v15963_v35  ;;  %15911 = vmatprep.subr.bf16.mxu1 %v15963_v35  ;;  %v16527_v27 = vrot.slane %v16419_v20, %v16423_v21 }
  0x39   : > { %1029 = vst [vmem:[#allocation2 + $0x14] sm:$0xf] %v16462_v41  ;;  %v1490_v43 = vshll.u32 %v1235_v31, 16  ;;  %v1494_v44 = vshrl.u32 %v1235_v31, 16  ;;  %v1500_v45 = vshll.u32 %v1242_v32, 16  ;;  %v1504_v46 = vshrl.u32 %v1242_v32, 16 }
  0x3a   : > { %v1510_v47 = vshll.u32 %v1249_v36, 16  ;;  %v1514_v48 = vshrl.u32 %v1249_v36, 16  ;;  %v1520_v49 = vshll.u32 %v16451_v37, 16  ;;  %22138 = vst [vmem:[#allocation17_spill] sm:$0xff] %v16469_v50  ;;  %v1487_v53 = vor.u32 %v1486_v42, %v16453_v38  ;;  %v16475_v57 = vld [vmem:[%s16438_s12 + $0x40] sm:$0xf]  ;;  %14619 = vmatpush3.bf16.msra.mxu0 %v15963_v35  ;;  %15919 = vmatpush3.bf16.msra.mxu1 %v15963_v35 }
  0x3b   : > { %v1492_v54 = vrot.slane %v1490_v43, 5  ;;  %v1496_v55 = vrot.slane %v1494_v44, 4  ;;  %v1502_v56 = vrot.slane %v1500_v45, 5  ;;  %22139 = vst [vmem:[#allocation18_spill] sm:$0xff] %v16475_v57  ;;  %1042 = vst [vmem:[#allocation2 + $0x48] sm:$0xf] %v16469_v50  ;;  %14620 = vmatprep.subr.bf16.mxu0 %v15964_v51  ;;  %15912 = vmatprep.subr.bf16.mxu1 %v15964_v51 }
  0x3c   : > { %v1506_v59 = vrot.slane %v1504_v46, 4  ;;  %v1512_v60 = vrot.slane %v1510_v47, 5  ;;  %v1516_v61 = vrot.slane %v1514_v48, 4  ;;  %v16484_v62 = vrot.slane %v1520_v49, 5  ;;  %v16487_v63 = vld [vmem:[%s16438_s12 + $0x44] sm:$0xf] }
  0x3d   : > { %22142 = vst [vmem:[#allocation19_spill] sm:$0xff] %v16487_v63  ;;  %1043 = vst [vmem:[#allocation2 + $0x4c] sm:$0xf] %v16475_v57  ;;  %v1488_v0 = vrot.slane %v1487_v53, 4  ;;  %v1497_v1 = vor.u32 %v1496_v55, %v1492_v54  ;;  %v409_v3 = vand.u32 15, %v16429_v24  ;;  %v423_v4 = vand.u32 15, %v16442_v30 }
  0x3e   : > { %v16493_v5 = vld [vmem:[%s16438_s12 + $0x48] sm:$0xf]  ;;  %1044 = vst [vmem:[#allocation2 + $0x50] sm:$0xf] %v16487_v63  ;;  %v1507_v6 = vor.u32 %v1506_v59, %v1502_v56  ;;  %v1517_v7 = vor.u32 %v1516_v61, %v1512_v60  ;;  %v437_v8 = vand.u32 15, %v16447_v34  ;;  %v263_v9 = vadd.s32 48, %v16404_v2  ;;  %14621 = vmatpush3.bf16.msra.mxu0 %v15964_v51  ;;  %15920 = vmatpush3.bf16.msra.mxu1 %v15964_v51 }
  0x3f   : > { %22143 = vst [vmem:[#allocation20_spill] sm:$0xff] %v16493_v5  ;;  %1045 = vst [vmem:[#allocation2 + $0x54] sm:$0xf] %v16493_v5  ;;  %v16500_v10 = vld [vmem:[%s16438_s12 + $0xc] sm:$0xf]  ;;  %v15965_v12 = vld [vmem:[#allocation6 + $0xd0] sm:$0xff]   ;;  %v16507_v13 = vsel %vm16480_vm5, %v1488_v0, %v1492_v54 }
  0x40   : > { %22144 = vst [vmem:[#allocation21_spill] sm:$0xff] %v16500_v10  ;;  %v16503_v11 = vld [vmem:[%s16438_s12 + $0x10] sm:$0xf]  ;;  %22146 = vst [vmem:[#allocation23_spill] sm:$0xff] %v16507_v13  ;;  %v1498_v14 = vrot.slane %v1497_v1, 4  ;;  %vm16509_vm6 = vcmp.ne.s32.totalorder %v409_v3, 0  ;;  %v1868_v26 = vmul.bf16 %v16507_v13, %v16471_v52  ;;  %14622 = vmatprep.subr.bf16.mxu0 %v15965_v12  ;;  %15913 = vmatprep.subr.bf16.mxu1 %v15965_v12 }
  0x41   : > { %22145 = vst [vmem:[#allocation22_spill] sm:$0xff] %v16503_v11  ;;  %vm16513_vm7 = vcmp.ne.s32.totalorder %v423_v4, 0  ;;  %1030 = vst [vmem:[#allocation2 + $0x18] sm:$0xf] %v16500_v10  ;;  %v16520_v22 = vld [vmem:[%s16438_s12 + $0x4c] sm:$0xf] }
  0x42   : > { %1031 = vst [vmem:[#allocation2 + $0x1c] sm:$0xf] %v16503_v11  ;;  %22151 = vst [vmem:[#allocation24_spill] sm:$0xff] %v16520_v22  ;;  %v1163_v23 = vld [vmem:[#allocation2 + $0xc] sm:$0xf]  ;;  %v16531_v28 = vsel %vm16480_vm5, %v1498_v14, %v1502_v56  ;;  %v1508_v29 = vrot.slane %v1507_v6, 4  ;;  %14623 = vmatpush3.bf16.msra.mxu0 %v15965_v12  ;;  %15921 = vmatpush3.bf16.msra.mxu1 %v15965_v12 }
  0x43   : > { %v1164_v24 = vld [vmem:[#allocation2 + $0x10] sm:$0xf]  ;;  %v1165_v25 = vld [vmem:[#allocation2 + $0x14] sm:$0xf]  ;;  %1046 = vst [vmem:[#allocation2 + $0x58] sm:$0xf] %v16520_v22  ;;  %v1869_v32 = vmul.bf16 %v16531_v28, %v1163_v23 }
  0x44   : > { %22152 = vst [vmem:[#allocation25_spill] sm:$0xff] %v16531_v28  ;;  %v1518_v30 = vrot.slane %v1517_v7, 4  ;;  %vm745_vm8 = vcmp.ne.s32.totalorder %v437_v8, 0  ;;  %v16534_v31 = vld [vmem:[%s16438_s12 + $0x50] sm:$0xf]  ;;  %v12941_v33 = vsel %vm16509_vm6, 1.0, %v21860_v15  ;;  %v16547_v35 = vsel %vm16480_vm5, %v1508_v29, %v1512_v60 }
  0x45   : > { %22153 = vst [vmem:[#allocation26_spill] sm:$0xff] %v16534_v31  ;;  %v12942_v20 = vsel %vm16513_vm7, 1.0, %v21860_v15  ;;  %v12943_v34 = vsel %vm745_vm8, 1.0, %v21860_v15  ;;  %1047 = vst [vmem:[#allocation2 + $0x5c] sm:$0xf] %v16534_v31  ;;  %v16555_v42 = vpack.c.bf16 %v21858_v19, %v12941_v33  ;;  %v339_v43 = vand.u32 15, %v263_v9 }
  0x46   : > { %22154 = vst [vmem:[#allocation27_spill] sm:$0xff] %v16547_v35  ;;  %v16552_v36 = vsel %vm16480_vm5, %v1518_v30, %v16484_v62  ;;  %vm2019_vm9 = vsmask.f32 4352  ;;  %v15966_v44 = vld [vmem:[#allocation6 + $0xc8] sm:$0xff]   ;;  %v1870_v45 = vmul.bf16 %v16547_v35, %v1164_v24  ;;  %v12969_v47 = vcombine.low %v1868_v26, %v1869_v32  ;;  %v15967_v59 = vld [vmem:[#allocation6 + $0xc0] sm:$0xff]   ;;  %v15976_v41 = vld [vmem:[#allocation6 + $0x18] sm:$0xff]  }
  0x47   : > { %22155 = vst [vmem:[#allocation28_spill] sm:$0xff] %v16552_v36  ;;  %v1871_v46 = vmul.bf16 %v16552_v36, %v1165_v25  ;;  %v1524_v48 = vshrl.u32 %v16451_v37, 16  ;;  %v842_v49 = vpack.c.bf16 %v21858_v19, %v12942_v20  ;;  %v843_v51 = vpack.c.bf16 %v21858_v19, %v12943_v34  ;;  %14624 = vmatprep.subr.bf16.mxu0 %v15966_v44  ;;  %v16715_v31 = vld [vmem:[%s16438_s12 + $0x6c] sm:$0xf]  ;;  %v15987_v35 = vld [vmem:[#allocation6 + $0x130] sm:$0xff]  }
  0x48   : > { %v1340_v52 = vrot.slane %v16555_v42, %v16416_v17  ;;  %vm731_vm10 = vcmp.ne.s32.totalorder %v339_v43, 0  ;;  %v2021_v54 = vshrl.u32 %v12969_v47, 16  ;;  %v2024_v55 = vshll.u32 %v12969_v47, 16  ;;  %15914 = vmatprep.subr.bf16.mxu1 %v15966_v44  ;;  %14625 = vmatpush3.bf16.msra.mxu0 %v15966_v44  ;;  %v16577_v43 = vld [vmem:[#allocation6 + $0x38] sm:$0xff]   ;;  %22178 = vst [vmem:[#allocation49_spill] sm:$0xff] %v16715_v31 }
  0x49   : > { %v12970_v53 = vcombine.low %v1870_v45, %v1871_v46  ;;  %v12936_v56 = vsel %vm731_vm10, 1.0, %v21860_v15  ;;  %v1347_v60 = vrot.slane %v842_v49, %v16423_v21  ;;  %v1354_v61 = vrot.slane %v842_v49, %v16416_v17  ;;  %15922 = vmatpush3.bf16.msra.mxu1 %v15966_v44  ;;  %14626 = vmatprep.subr.bf16.mxu0 %v15967_v59  ;;  %v1178_v45 = vld [vmem:[#allocation2 + $0x48] sm:$0xf]  ;;  %v1196_v58 = vld [vmem:[#allocation2 + $0x90] sm:$0xf] }
  0x4a   : > { %v1361_v0 = vrot.slane %v843_v51, %v16423_v21  ;;  %v1640_v1 = vshll.u32 %v1340_v52, 16  ;;  %v2023_v3 = vrot.slane %v2021_v54, 3  ;;  %v2026_v4 = vrot.slane %v2024_v55, 4  ;;  %15915 = vmatprep.subr.bf16.mxu1 %v15967_v59  ;;  %1054 = vst [vmem:[#allocation2 + $0x78] sm:$0xf] %v16715_v31 }
  0x4b   : > { %v2029_v6 = vshrl.u32 %v12970_v53, 16  ;;  %v2032_v7 = vshll.u32 %v12970_v53, 16  ;;  %v16569_v8 = vrot.slane %v843_v51, %v16416_v17  ;;  %v1644_v12 = vshrl.u32 %v1340_v52, 16  ;;  %v16581_v51 = vld [vmem:[#allocation6 + $0x1b8] sm:$0xff]   ;;  %v1179_v53 = vld [vmem:[#allocation2 + $0x4c] sm:$0xf] }
  0x4c   : > { %v16571_v9 = vrot.slane %v1640_v1, 5  ;;  %v1650_v14 = vshll.u32 %v1347_v60, 16  ;;  %v16573_v16 = vor.u32 %v2026_v4, %v2023_v3  ;;  %v1654_v24 = vshrl.u32 %v1347_v60, 16  ;;  %14627 = vmatpush3.bf16.msra.mxu0 %v15967_v59  ;;  %v1180_v1 = vld [vmem:[#allocation2 + $0x50] sm:$0xf] }
  0x4d   : > { %v2031_v18 = vrot.slane %v2029_v6, 3  ;;  %v2034_v23 = vrot.slane %v2032_v7, 4  ;;  %v1646_v25 = vrot.slane %v1644_v12, 4  ;;  %v1660_v29 = vshll.u32 %v1354_v61, 16  ;;  %15923 = vmatpush3.bf16.msra.mxu1 %v15967_v59  ;;  %v16600_v12 = vld [vmem:[%s16438_s12 + $0x54] sm:$0xf]  ;;  %14708 = vmatprep.subr.bf16.mxu0 %v16581_v51 }
  0x4e   : > { %v1652_v26 = vrot.slane %v1650_v14, 5  ;;  %v1664_v30 = vshrl.u32 %v1354_v61, 16  ;;  %v1656_v33 = vrot.slane %v1654_v24, 4  ;;  %v1670_v20 = vshll.u32 %v1361_v0, 16  ;;  %v16589_v61 = vld [vmem:[%s16438_s12 + $0x14] sm:$0xf]  ;;  %14660 = vmatprep.subr.bf16.mxu1 %v16577_v43 }
  0x4f   : > { %v16575_v32 = vor.u32 %v2034_v23, %v2031_v18  ;;  %v1674_v34 = vshrl.u32 %v1361_v0, 16  ;;  %v1647_v46 = vor.u32 %v1646_v25, %v16571_v9  ;;  %v1662_v47 = vrot.slane %v1660_v29, 5  ;;  %22156 = vst [vmem:[#allocation29_spill] sm:$0xff] %v16589_v61  ;;  %v16592_v0 = vld [vmem:[%s16438_s12 + $0x18] sm:$0xf]  ;;  %22158 = vst [vmem:[#allocation31_spill] sm:$0xff] %v16600_v12 }
  0x50   : > { %v1666_v44 = vrot.slane %v1664_v30, 4  ;;  %v1680_v49 = vshll.u32 %v16569_v8, 16  ;;  %v1657_v54 = vor.u32 %v1656_v33, %v1652_v26  ;;  %v1672_v55 = vrot.slane %v1670_v20, 5  ;;  %22157 = vst [vmem:[#allocation30_spill] sm:$0xff] %v16592_v0  ;;  %1032 = vst [vmem:[#allocation2 + $0x20] sm:$0xf] %v16589_v61 }
  0x51   : > { %v16586_v52 = vsel %vm2019_vm9, %v16573_v16, %v16575_v32  ;;  %v1676_v60 = vrot.slane %v1674_v34, 4  ;;  %v1648_v3 = vrot.slane %v1647_v46, 4  ;;  %v836_v7 = vpack.c.bf16 %v21858_v19, %v12936_v56  ;;  %1033 = vst [vmem:[#allocation2 + $0x24] sm:$0xf] %v16592_v0  ;;  %v16603_v14 = vld [vmem:[%s16438_s12 + $0x58] sm:$0xf] }
  0x52   : > { %v1667_v4 = vor.u32 %v1666_v44, %v1662_v47  ;;  %v16594_v6 = vrot.slane %v1680_v49, 5  ;;  %22159 = vst [vmem:[#allocation32_spill] sm:$0xff] %v16603_v14  ;;  %14628 = vmatprep.mubr.bf16.mxu0 %v16586_v52  ;;  %v1181_v59 = vld [vmem:[#allocation2 + $0x54] sm:$0xf]  ;;  %v1658_v18 = vrot.slane %v1657_v54, 4  ;;  %v1526_v24 = vrot.slane %v1524_v48, 4 }
  0x53   : > { %v1677_v23 = vor.u32 %v1676_v60, %v1672_v55  ;;  %v279_v56 = vadd.s32 176, %v16404_v2  ;;  %1048 = vst [vmem:[#allocation2 + $0x60] sm:$0xf] %v16600_v12  ;;  %1049 = vst [vmem:[#allocation2 + $0x64] sm:$0xf] %v16603_v14  ;;  %v16617_v29 = vsel %vm16480_vm5, %v1648_v3, %v1652_v26  ;;  %v1263_v33 = vrot.slane %v836_v7, %v16423_v21 }
  0x54   : > { %v16613_v25 = vld [vmem:[%s16438_s12 + $0x1c] sm:$0xf]  ;;  %22161 = vst [vmem:[#allocation34_spill] sm:$0xff] %v16617_v29  ;;  %v1668_v30 = vrot.slane %v1667_v4, 4  ;;  %v16621_v37 = vrot.slane %v836_v7, %v16416_v17  ;;  %v16625_v48 = vld [vmem:[%s16438_s12 + $0x20] sm:$0xf]  ;;  %v16633_v34 = vsel %vm16480_vm5, %v1658_v18, %v1662_v47  ;;  %v1884_v46 = vmul.bf16 %v16617_v29, %v1178_v45 }
  0x55   : > { %22160 = vst [vmem:[#allocation33_spill] sm:$0xff] %v16613_v25  ;;  %22162 = vst [vmem:[#allocation35_spill] sm:$0xff] %v16625_v48  ;;  %v16629_v20 = vld [vmem:[%s16438_s12 + $0x5c] sm:$0xf]  ;;  %v1678_v26 = vrot.slane %v1677_v23, 4  ;;  %v1527_v44 = vor.u32 %v1526_v24, %v16484_v62  ;;  %v1885_v60 = vmul.bf16 %v16633_v34, %v1179_v53  ;;  %v1530_v47 = vshll.u32 %v1263_v33, 16 }
  0x56   : > { %1034 = vst [vmem:[#allocation2 + $0x28] sm:$0xf] %v16613_v25  ;;  %22163 = vst [vmem:[#allocation36_spill] sm:$0xff] %v16629_v20  ;;  %v16639_v49 = vld [vmem:[%s16438_s12 + $0x60] sm:$0xf]  ;;  %v16644_v54 = vsel %vm16480_vm5, %v1668_v30, %v1672_v55  ;;  %v1534_v4 = vshrl.u32 %v1263_v33, 16 }
  0x57   : > { %22164 = vst [vmem:[#allocation37_spill] sm:$0xff] %v16633_v34  ;;  %1035 = vst [vmem:[#allocation2 + $0x2c] sm:$0xf] %v16625_v48  ;;  %v1166_v3 = vld [vmem:[#allocation2 + $0x18] sm:$0xf]  ;;  %v16651_v62 = vsel %vm16480_vm5, %v1678_v26, %v16594_v6  ;;  %v1886_v45 = vmul.bf16 %v16644_v54, %v1180_v1  ;;  %v1528_v7 = vrot.slane %v1527_v44, 4  ;;  %v12977_v23 = vcombine.low %v1884_v46, %v1885_v60 }
  0x58   : > { %22165 = vst [vmem:[#allocation38_spill] sm:$0xff] %v16639_v49  ;;  %1050 = vst [vmem:[#allocation2 + $0x68] sm:$0xf] %v16629_v20  ;;  %v1540_v18 = vshll.u32 %v16621_v37, 16  ;;  %v1887_v55 = vmul.bf16 %v16651_v62, %v1181_v59  ;;  %v1532_v24 = vrot.slane %v1530_v47, 5  ;;  %v1536_v53 = vrot.slane %v1534_v4, 4 }
  0x59   : > { %22166 = vst [vmem:[#allocation39_spill] sm:$0xff] %v16644_v54  ;;  %1051 = vst [vmem:[#allocation2 + $0x6c] sm:$0xf] %v16639_v49  ;;  %v451_v33 = vand.u32 15, %v279_v56  ;;  %v1684_v19 = vshrl.u32 %v16569_v8, 16  ;;  %v265_v15 = vadd.s32 64, %v16404_v2 }
  0x5a   : > { %22167 = vst [vmem:[#allocation40_spill] sm:$0xff] %v16651_v62  ;;  %v16656_v30 = vrot.slane %v1540_v18, 5  ;;  %v12978_v49 = vcombine.low %v1886_v45, %v1887_v55  ;;  %v2092_v26 = vshrl.u32 %v12977_v23, 16  ;;  %v2095_v12 = vshll.u32 %v12977_v23, 16  ;;  %v1167_v8 = vld [vmem:[#allocation2 + $0x1c] sm:$0xf] }
  0x5b   : > { %v16662_v1 = vsel %vm16480_vm5, %v1528_v7, %v1532_v24  ;;  %v1537_v44 = vor.u32 %v1536_v53, %v1532_v24  ;;  %vm747_vm11 = vcmp.ne.s32.totalorder %v451_v33, 0  ;;  %v1686_v46 = vrot.slane %v1684_v19, 4 }
  0x5c   : > { %22168 = vst [vmem:[#allocation41_spill] sm:$0xff] %v16662_v1  ;;  %v1872_v59 = vmul.bf16 %v16662_v1, %v1166_v3  ;;  %v2094_v60 = vrot.slane %v2092_v26, 3  ;;  %v2097_v47 = vrot.slane %v2095_v12, 4  ;;  %v2101_v56 = vshrl.u32 %v12978_v49, 16  ;;  %v16677_v26 = vld [vmem:[%s16438_s12 + $0x24] sm:$0xf] }
  0x5d   : > { %v2104_v4 = vshll.u32 %v12978_v49, 16  ;;  %v1538_v18 = vrot.slane %v1537_v44, 4  ;;  %v22169_v20 = vmov 0.0   ;;  %v1687_v55 = vor.u32 %v1686_v46, %v16594_v6  ;;  %22172 = vst [vmem:[#allocation43_spill] sm:$0xff] %v16677_v26  ;;  %1036 = vst [vmem:[#allocation2 + $0x30] sm:$0xf] %v16677_v26 }
  0x5e   : > { %v12944_v45 = vsel %vm747_vm11, 1.0, %v22169_v20  ;;  %v353_v23 = vand.u32 15, %v265_v15  ;;  %v16667_v7 = vor.u32 %v2097_v47, %v2094_v60  ;;  %v2103_v3 = vrot.slane %v2101_v56, 3  ;;  %v16685_v60 = vld [vmem:[%s16438_s12 + $0x28] sm:$0xf] }
  0x5f   : > { %v2106_v24 = vrot.slane %v2104_v4, 4  ;;  %v22170_v19 = vmov 1.0   ;;  %v16673_v12 = vsel %vm16480_vm5, %v1538_v18, %v16656_v30  ;;  %v1688_v49 = vrot.slane %v1687_v55, 4  ;;  %22173 = vst [vmem:[#allocation44_spill] sm:$0xff] %v16685_v60  ;;  %v16689_v47 = vld [vmem:[%s16438_s12 + $0x64] sm:$0xf] }
  0x60   : > { %v844_v53 = vpack.c.bf16 %v22170_v19, %v12944_v45  ;;  %22171 = vst [vmem:[#allocation42_spill] sm:$0xff] %v16673_v12  ;;  %vm733_vm12 = vcmp.ne.s32.totalorder %v353_v23, 0  ;;  %v1544_v33 = vshrl.u32 %v16621_v37, 16  ;;  %v1873_v6 = vmul.bf16 %v16673_v12, %v1167_v8  ;;  %22174 = vst [vmem:[#allocation45_spill] sm:$0xff] %v16689_v47  ;;  %v16692_v56 = vld [vmem:[%s16438_s12 + $0x68] sm:$0xf] }
  0x61   : > { %v16679_v15 = vor.u32 %v2106_v24, %v2103_v3  ;;  %22175 = vst [vmem:[#allocation46_spill] sm:$0xff] %v16692_v56  ;;  %v12937_v37 = vsel %vm733_vm12, 1.0, %v22169_v20  ;;  %v281_v18 = vadd.s32 192, %v16404_v2  ;;  %v16697_v8 = vadd.s32 80, %v16404_v2  ;;  %1037 = vst [vmem:[#allocation2 + $0x34] sm:$0xf] %v16685_v60 }
  0x62   : > { %v1375_v44 = vrot.slane %v844_v53, %v16423_v21  ;;  %v1382_v46 = vrot.slane %v844_v53, %v16416_v17  ;;  %v1546_v4 = vrot.slane %v1544_v33, 4  ;;  %1052 = vst [vmem:[#allocation2 + $0x70] sm:$0xf] %v16689_v47  ;;  %1053 = vst [vmem:[#allocation2 + $0x74] sm:$0xf] %v16692_v56  ;;  %v12971_v23 = vcombine.low %v1872_v59, %v1873_v6 }
  0x63   : > { %v16703_v45 = vld [vmem:[%s16438_s12 + $0x2c] sm:$0xf]  ;;  %v16708_v55 = vsel %vm2019_vm9, %v16667_v7, %v16679_v15  ;;  %v1182_v3 = vld [vmem:[#allocation2 + $0x58] sm:$0xf]  ;;  %v16711_v33 = vld [vmem:[%s16438_s12 + $0x30] sm:$0xf]  ;;  %v837_v56 = vpack.c.bf16 %v22170_v19, %v12937_v37 }
  0x64   : > { %22176 = vst [vmem:[#allocation47_spill] sm:$0xff] %v16703_v45  ;;  %v1690_v24 = vshll.u32 %v1375_v44, 16  ;;  %v1694_v53 = vshrl.u32 %v1375_v44, 16  ;;  %22177 = vst [vmem:[#allocation48_spill] sm:$0xff] %v16711_v33  ;;  %14644 = vmatprep.mubr.bf16.mxu1 %v16708_v55  ;;  %v1700_v47 = vshll.u32 %v1382_v46, 16  ;;  %v1547_v14 = vor.u32 %v1546_v4, %v16656_v30 }
  0x65   : > { %1038 = vst [vmem:[#allocation2 + $0x38] sm:$0xf] %v16703_v45  ;;  %v465_v63 = vand.u32 15, %v281_v18  ;;  %1039 = vst [vmem:[#allocation2 + $0x3c] sm:$0xf] %v16711_v33  ;;  %v2038_v6 = vshrl.u32 %v12971_v23, 16  ;;  %v1277_v50 = vrot.slane %v837_v56, %v16423_v21  ;;  %v16728_v37 = vrot.slane %v837_v56, %v16416_v17 }
  0x66   : > { %v16722_v59 = vld [vmem:[%s16438_s12 + $0x70] sm:$0xf]  ;;  %v2041_v44 = vshll.u32 %v12971_v23, 16  ;;  %v1692_v22 = vrot.slane %v1690_v24, 5  ;;  %v1696_v57 = vrot.slane %v1694_v53, 4  ;;  %v1702_v5 = vrot.slane %v1700_v47, 5 }
  0x67   : > { %22179 = vst [vmem:[#allocation50_spill] sm:$0xff] %v16722_v59  ;;  %1055 = vst [vmem:[#allocation2 + $0x7c] sm:$0xf] %v16722_v59  ;;  %v1548_v30 = vrot.slane %v1547_v14, 4  ;;  %v2040_v4 = vrot.slane %v2038_v6, 3  ;;  %v1550_v24 = vshll.u32 %v1277_v50, 16 }
  0x68   : > { %v2043_v18 = vrot.slane %v2041_v44, 4  ;;  %v16732_v33 = vsel %vm16480_vm5, %v1688_v49, %v1692_v22  ;;  %v1697_v31 = vor.u32 %v1696_v57, %v1692_v22  ;;  %v1554_v53 = vshrl.u32 %v1277_v50, 16  ;;  %v1183_v26 = vld [vmem:[#allocation2 + $0x5c] sm:$0xf]  ;;  %v1168_v6 = vld [vmem:[#allocation2 + $0x20] sm:$0xf] }
  0x69   : > { %22180 = vst [vmem:[#allocation51_spill] sm:$0xff] %v16732_v33  ;;  %v1888_v23 = vmul.bf16 %v16732_v33, %v1182_v3  ;;  %v1560_v59 = vshll.u32 %v16728_v37, 16  ;;  %v15971_v56 = vld [vmem:[#allocation6 + $0x1b0] sm:$0xff]   ;;  %vm749_vm13 = vcmp.ne.s32.totalorder %v465_v63, 0  ;;  %v1704_v14 = vshrl.u32 %v1382_v46, 16 }
  0x6a   : > { %v16736_v47 = vor.u32 %v2043_v18, %v2040_v4  ;;  %v1698_v45 = vrot.slane %v1697_v31, 4  ;;  %v1552_v44 = vrot.slane %v1550_v24, 5  ;;  %v1556_v48 = vrot.slane %v1554_v53, 4  ;;  %v16897_v62 = vld [vmem:[#allocation2 + $0x34] sm:$0xf] }
  0x6b   : > { %v16738_v60 = vrot.slane %v1560_v59, 5  ;;  %v12945_v57 = vsel %vm749_vm13, 1.0, %v22169_v20  ;;  %v1706_v63 = vrot.slane %v1704_v14, 4  ;;  %v1169_v59 = vld [vmem:[#allocation2 + $0x24] sm:$0xf] }
  0x6c   : > { %v16744_v50 = vsel %vm2019_vm9, %v16575_v32, %v16736_v47  ;;  %v16748_v22 = vsel %vm16480_vm5, %v1698_v45, %v1702_v5  ;;  %v845_v31 = vpack.c.bf16 %v22170_v19, %v12945_v57  ;;  %v16755_v46 = vsel %vm16480_vm5, %v1548_v30, %v1552_v44  ;;  %v16766_v30 = vld [vmem:[%s16438_s12 + $0x34] sm:$0xf] }
  0x6d   : > { %22181 = vst [vmem:[#allocation52_spill] sm:$0xff] %v16748_v22  ;;  %14629 = vmatmul.mubr.bf16.vlgmr.msra.gmra.mxu0 %v16744_v50  ;;  %v1889_v49 = vmul.bf16 %v16748_v22, %v1183_v26  ;;  %22182 = vst [vmem:[#allocation53_spill] sm:$0xff] %v16755_v46  ;;  %v1557_v3 = vor.u32 %v1556_v48, %v1552_v44  ;;  %v367_v32 = vand.u32 15, %v16697_v8  ;;  %v1564_v48 = vshrl.u32 %v16728_v37, 16  ;;  %v15973_v8 = vld [vmem:[#allocation6 + $0x1a8] sm:$0xff]  }
  0x6e   : > { %14709 = vmatpush3.bf16.msra.mxu0 %v16581_v51  ;;  %v1874_v45 = vmul.bf16 %v16755_v46, %v1168_v6  ;;  %v1389_v4 = vrot.slane %v845_v31, %v16423_v21  ;;  %v16762_v18 = vrot.slane %v845_v31, %v16416_v17  ;;  %v1707_v26 = vor.u32 %v1706_v63, %v1702_v5  ;;  %v16768_v51 = vld [vmem:[#allocation2 + $0x60] sm:$0xf]  ;;  %v16772_v31 = vld [vmem:[%s16438_s12 + $0x38] sm:$0xf] }
  0x6f   : > { %v12979_v24 = vcombine.low %v1888_v23, %v1889_v49  ;;  %14710 = vmatprep.subr.bf16.mxu0 %v15971_v56  ;;  %v1558_v53 = vrot.slane %v1557_v3, 4  ;;  %vm735_vm14 = vcmp.ne.s32.totalorder %v367_v32, 0  ;;  %22183 = vst [vmem:[#allocation54_spill] sm:$0xff] %v16766_v30  ;;  %22184 = vst [vmem:[#allocation55_spill] sm:$0xff] %v16772_v31  ;;  %v16783_v49 = vld [vmem:[%s16438_s12 + $0x74] sm:$0xf] }
  0x70   : > { %v1708_v14 = vrot.slane %v1707_v26, 4  ;;  %v1710_v6 = vshll.u32 %v1389_v4, 16  ;;  %v1714_v44 = vshrl.u32 %v1389_v4, 16  ;;  %v1720_v57 = vshll.u32 %v16762_v18, 16  ;;  %1040 = vst [vmem:[#allocation2 + $0x40] sm:$0xf] %v16766_v30 }
  0x71   : > { %v2110_v5 = vshrl.u32 %v12979_v24, 16  ;;  %v2113_v23 = vshll.u32 %v12979_v24, 16  ;;  %v16778_v37 = vsel %vm16480_vm5, %v1558_v53, %v16738_v60  ;;  %v12938_v63 = vsel %vm735_vm14, 1.0, %v22169_v20  ;;  %1041 = vst [vmem:[#allocation2 + $0x44] sm:$0xf] %v16772_v31  ;;  %22186 = vst [vmem:[#allocation57_spill] sm:$0xff] %v16783_v49 }
  0x72   : > { %22185 = vst [vmem:[#allocation56_spill] sm:$0xff] %v16778_v37  ;;  %14711 = vmatpush3.bf16.msra.mxu0 %v15971_v56  ;;  %v1875_v3 = vmul.bf16 %v16778_v37, %v1169_v59  ;;  %v1712_v32 = vrot.slane %v1710_v6, 5  ;;  %v1716_v4 = vrot.slane %v1714_v44, 4  ;;  %v16786_v26 = vrot.slane %v1720_v57, 5  ;;  %v16789_v24 = vld [vmem:[%s16438_s12 + $0x78] sm:$0xf] }
  0x73   : > { %22187 = vst [vmem:[#allocation58_spill] sm:$0xff] %v16789_v24  ;;  %1056 = vst [vmem:[#allocation2 + $0x80] sm:$0xf] %v16783_v49  ;;  %v2112_v53 = vrot.slane %v2110_v5, 3  ;;  %v2115_v30 = vrot.slane %v2113_v23, 4  ;;  %v838_v61 = vpack.c.bf16 %v22170_v19, %v12938_v63  ;;  %v1566_v25 = vrot.slane %v1564_v48, 4  ;;  %14712 = vmatprep.subr.bf16.mxu0 %v15973_v8 }
  0x74   : > { %v15975_v31 = vld [vmem:[#allocation6 + $0x1a0] sm:$0xff]   ;;  %1057 = vst [vmem:[#allocation2 + $0x84] sm:$0xf] %v16789_v24  ;;  %v16795_v56 = vld [vmem:[%s16438_s12 + $0x7c] sm:$0xf]  ;;  %v12972_v59 = vcombine.low %v1874_v45, %v1875_v3  ;;  %v16799_v44 = vsel %vm16480_vm5, %v1708_v14, %v1712_v32  ;;  %v1717_v57 = vor.u32 %v1716_v4, %v1712_v32  ;;  %v283_v49 = vadd.s32 208, %v16404_v2 }
  0x75   : > { %22188 = vst [vmem:[#allocation59_spill] sm:$0xff] %v16795_v56  ;;  %v1185_v6 = vld [vmem:[#allocation2 + $0x64] sm:$0xf]  ;;  %22189 = vst [vmem:[#allocation60_spill] sm:$0xff] %v16799_v44  ;;  %v16803_v5 = vor.u32 %v2115_v30, %v2112_v53  ;;  %v1890_v48 = vmul.bf16 %v16799_v44, %v16768_v51  ;;  %v1291_v23 = vrot.slane %v838_v61, %v16423_v21  ;;  %v15970_v45 = vld [vmem:[#allocation6 + $0x30] sm:$0xff]  }
  0x76   : > { %1058 = vst [vmem:[#allocation2 + $0x88] sm:$0xf] %v16795_v56  ;;  %v1298_v63 = vrot.slane %v838_v61, %v16416_v17  ;;  %v2047_v3 = vshrl.u32 %v12972_v59, 16  ;;  %v2050_v24 = vshll.u32 %v12972_v59, 16  ;;  %v1718_v11 = vrot.slane %v1717_v57, 4  ;;  %14713 = vmatpush3.bf16.msra.mxu0 %v15973_v8  ;;  %v15977_v51 = vld [vmem:[#allocation6 + $0x198] sm:$0xff]  }
  0x77   : > { %v1567_v14 = vor.u32 %v1566_v25, %v16738_v60  ;;  %v16813_v32 = vsel %vm2019_vm9, %v16679_v15, %v16803_v5  ;;  %v1570_v30 = vshll.u32 %v1291_v23, 16  ;;  %v1574_v4 = vshrl.u32 %v1291_v23, 16  ;;  %14714 = vmatprep.subr.bf16.mxu0 %v15975_v31  ;;  %v1170_v60 = vld [vmem:[#allocation2 + $0x28] sm:$0xf]  ;;  %v16894_v44 = vld [vmem:[#allocation2 + $0x70] sm:$0xf] }
  0x78   : > { %v1580_v53 = vshll.u32 %v1298_v63, 16  ;;  %14645 = vmatmul.mubr.bf16.vlgmr.msra.gmra.mxu1 %v16813_v32  ;;  %v2049_v61 = vrot.slane %v2047_v3, 3  ;;  %v2052_v56 = vrot.slane %v2050_v24, 4  ;;  %v16819_v59 = vsel %vm16480_vm5, %v1718_v11, %v16786_v26  ;;  %v15972_v3 = vld [vmem:[#allocation6 + $0x28] sm:$0xff]  }
  0x79   : > { %22190 = vst [vmem:[#allocation61_spill] sm:$0xff] %v16819_v59  ;;  %v1568_v25 = vrot.slane %v1567_v14, 4  ;;  %14661 = vmatpush3.bf16.msra.mxu1 %v16577_v43  ;;  %v1891_v15 = vmul.bf16 %v16819_v59, %v1185_v6  ;;  %v1572_v8 = vrot.slane %v1570_v30, 5  ;;  %v1576_v57 = vrot.slane %v1574_v4, 4  ;;  %v15979_v30 = vld [vmem:[#allocation6 + $0x190] sm:$0xff]  }
  0x7a   : > { %v1582_v23 = vrot.slane %v1580_v53, 5  ;;  %14662 = vmatprep.subr.bf16.mxu1 %v15970_v45  ;;  %v16823_v0 = vor.u32 %v2052_v56, %v2049_v61  ;;  %v479_v40 = vand.u32 15, %v283_v49  ;;  %v1724_v24 = vshrl.u32 %v16762_v18, 16  ;;  %14715 = vmatpush3.bf16.msra.mxu0 %v15975_v31  ;;  %v15974_v49 = vld [vmem:[#allocation6 + $0x20] sm:$0xff]  }
  0x7b   : > { %v269_v11 = vadd.s32 96, %v16404_v2  ;;  %v12980_v10 = vcombine.low %v1890_v48, %v1891_v15  ;;  %v16829_v43 = vsel %vm16480_vm5, %v1568_v25, %v1572_v8  ;;  %v1577_v6 = vor.u32 %v1576_v57, %v1572_v8  ;;  %14716 = vmatprep.subr.bf16.mxu0 %v15977_v51  ;;  %v1171_v53 = vld [vmem:[#allocation2 + $0x2c] sm:$0xf]  ;;  %v15981_v57 = vld [vmem:[#allocation6 + $0x188] sm:$0xff]  }
  0x7c   : > { %22191 = vst [vmem:[#allocation62_spill] sm:$0xff] %v16829_v43  ;;  %v1584_v14 = vshrl.u32 %v1298_v63, 16  ;;  %v16834_v56 = vsel %vm2019_vm9, %v16736_v47, %v16823_v0  ;;  %v1876_v18 = vmul.bf16 %v16829_v43, %v1170_v60  ;;  %vm751_vm15 = vcmp.ne.s32.totalorder %v479_v40, 0  ;;  %v16987_v43 = vld [vmem:[#allocation2 + $0x7c] sm:$0xf] }
  0x7d   : > { %v1726_v31 = vrot.slane %v1724_v24, 4  ;;  %14663 = vmatpush3.bf16.msra.mxu1 %v15970_v45  ;;  %14632 = vmatprep.mubr.bf16.mxu0 %v16834_v56  ;;  %v2119_v48 = vshrl.u32 %v12980_v10, 16  ;;  %v2122_v4 = vshll.u32 %v12980_v10, 16  ;;  %v1578_v61 = vrot.slane %v1577_v6, 4 }
  0x7e   : > { %v12946_v63 = vsel %vm751_vm15, 1.0, %v22169_v20  ;;  %14664 = vmatprep.subr.bf16.mxu1 %v15972_v3  ;;  %v381_v47 = vand.u32 15, %v269_v11  ;;  %v1586_v8 = vrot.slane %v1584_v14, 4  ;;  %14717 = vmatpush3.bf16.msra.mxu0 %v15977_v51  ;;  %v285_v10 = vadd.s32 224, %v16404_v2 }
  0x7f   : > { %v846_v25 = vpack.c.bf16 %v22170_v19, %v12946_v63  ;;  %v1727_v15 = vor.u32 %v1726_v31, %v16786_v26  ;;  %v2121_v40 = vrot.slane %v2119_v48, 3  ;;  %v2124_v60 = vrot.slane %v2122_v4, 4  ;;  %14718 = vmatprep.subr.bf16.mxu0 %v15979_v30  ;;  %v16851_v4 = vld [vmem:[#allocation2 + $0x68] sm:$0xf] }
  0x80   : > { %v16843_v45 = vsel %vm16480_vm5, %v1578_v61, %v1582_v23  ;;  %vm737_vm0 = vcmp.ne.s32.totalorder %v381_v47, 0  ;;  %v1587_v51 = vor.u32 %v1586_v8, %v1582_v23  ;;  %v493_v14 = vand.u32 15, %v285_v10  ;;  %v15983_v23 = vld [vmem:[#allocation6 + $0x180] sm:$0xff]   ;;  %v15978_v10 = vld [vmem:[#allocation6 + $0x10] sm:$0xff]  }
  0x81   : > { %22192 = vst [vmem:[#allocation63_spill] sm:$0xff] %v16843_v45  ;;  %v1877_v24 = vmul.bf16 %v16843_v45, %v1171_v53  ;;  %v1403_v6 = vrot.slane %v846_v25, %v16423_v21  ;;  %v1410_v26 = vrot.slane %v846_v25, %v16416_v17  ;;  %v1728_v31 = vrot.slane %v1727_v15, 4  ;;  %14665 = vmatpush3.bf16.msra.mxu1 %v15972_v3 }
  0x82   : > { %v16849_v11 = vor.u32 %v2124_v60, %v2121_v40  ;;  %14666 = vmatprep.subr.bf16.mxu1 %v15974_v49  ;;  %14719 = vmatpush3.bf16.msra.mxu0 %v15979_v30  ;;  %v12939_v25 = vsel %vm737_vm0, 1.0, %v22169_v20  ;;  %v1588_v3 = vrot.slane %v1587_v51, 4  ;;  %vm753_vm1 = vcmp.ne.s32.totalorder %v493_v14, 0  ;;  %v16862_v51 = vld [vmem:[#allocation2 + $0x6c] sm:$0xf] }
  0x83   : > { %v12973_v48 = vcombine.low %v1876_v18, %v1877_v24  ;;  %v1730_v61 = vshll.u32 %v1403_v6, 16  ;;  %v1734_v63 = vshrl.u32 %v1403_v6, 16  ;;  %v1740_v39 = vshll.u32 %v1410_v26, 16  ;;  %14720 = vmatprep.subr.bf16.mxu0 %v15981_v57 }
  0x84   : > { %v16856_v53 = vsel %vm2019_vm9, %v16803_v5, %v16849_v11  ;;  %v839_v30 = vpack.c.bf16 %v22170_v19, %v12939_v25  ;;  %v12947_v60 = vsel %vm753_vm1, 1.0, %v22169_v20  ;;  %v1744_v5 = vshrl.u32 %v1410_v26, 16 }
  0x85   : > { %14648 = vmatprep.mubr.bf16.mxu1 %v16856_v53  ;;  %v2056_v18 = vshrl.u32 %v12973_v48, 16  ;;  %v2059_v15 = vshll.u32 %v12973_v48, 16  ;;  %v1732_v47 = vrot.slane %v1730_v61, 5  ;;  %v1736_v8 = vrot.slane %v1734_v63, 4  ;;  %14667 = vmatpush3.bf16.msra.mxu1 %v15974_v49 }
  0x86   : > { %v1742_v40 = vrot.slane %v1740_v39, 5  ;;  %14668 = vmatprep.subr.bf16.mxu1 %v15976_v41  ;;  %14721 = vmatpush3.bf16.msra.mxu0 %v15981_v57  ;;  %v1305_v49 = vrot.slane %v839_v30, %v16423_v21  ;;  %v1312_v48 = vrot.slane %v839_v30, %v16416_v17  ;;  %v847_v26 = vpack.c.bf16 %v22170_v19, %v12947_v60 }
  0x87   : > { %v2058_v24 = vrot.slane %v2056_v18, 3  ;;  %v2061_v6 = vrot.slane %v2059_v15, 4  ;;  %v16866_v14 = vsel %vm16480_vm5, %v1728_v31, %v1732_v47  ;;  %v1737_v59 = vor.u32 %v1736_v8, %v1732_v47  ;;  %14722 = vmatprep.subr.bf16.mxu0 %v15983_v23  ;;  %v15980_v18 = vld [vmem:[#allocation6 + $0x8] sm:$0xff]  }
  0x88   : > { %22193 = vst [vmem:[#allocation64_spill] sm:$0xff] %v16866_v14  ;;  %v1892_v39 = vmul.bf16 %v16866_v14, %v16851_v4  ;;  %v1746_v25 = vrot.slane %v1744_v5, 4  ;;  %v271_v31 = vadd.s32 112, %v16404_v2  ;;  %v1172_v15 = vld [vmem:[#allocation2 + $0x30] sm:$0xf]  ;;  %v1590_v47 = vshll.u32 %v1305_v49, 16 }
  0x89   : > { %v16873_v61 = vor.u32 %v2061_v6, %v2058_v24  ;;  %v1738_v63 = vrot.slane %v1737_v59, 4  ;;  %v1594_v57 = vshrl.u32 %v1305_v49, 16  ;;  %v1600_v8 = vshll.u32 %v1312_v48, 16  ;;  %14669 = vmatpush3.bf16.msra.mxu1 %v15976_v41  ;;  %v16877_v14 = vld [vmem:[#allocation6 + $0x138] sm:$0xff]  }
  0x8a   : > { %v1417_v4 = vrot.slane %v847_v26, %v16423_v21  ;;  %v16889_v60 = vrot.slane %v847_v26, %v16416_v17  ;;  %v1747_v5 = vor.u32 %v1746_v25, %v1742_v40  ;;  %14670 = vmatprep.subr.bf16.mxu1 %v15978_v10  ;;  %v1592_v24 = vrot.slane %v1590_v47, 5  ;;  %14723 = vmatpush3.bf16.msra.mxu0 %v15983_v23  ;;  %v15982_v23 = vld [vmem:[#allocation6] sm:$0xff]  }
  0x8b   : > { %v16882_v30 = vsel %vm2019_vm9, %v16823_v0, %v16873_v61  ;;  %v16886_v59 = vsel %vm16480_vm5, %v1738_v63, %v1742_v40  ;;  %v1596_v6 = vrot.slane %v1594_v57, 4  ;;  %v1602_v49 = vrot.slane %v1600_v8, 5  ;;  %14804 = vmatprep.subr.bf16.mxu0 %v16877_v14 }
  0x8c   : > { %22194 = vst [vmem:[#allocation65_spill] sm:$0xff] %v16886_v59  ;;  %14633 = vmatmul.mubr.bf16.gmra.mxu0 %v16882_v30  ;;  %v1893_v41 = vmul.bf16 %v16886_v59, %v16862_v51  ;;  %v1748_v0 = vrot.slane %v1747_v5, 4  ;;  %v1750_v22 = vshll.u32 %v1417_v4, 16  ;;  %v1754_v33 = vshrl.u32 %v1417_v4, 16 }
  0x8d   : > { %v1760_v63 = vshll.u32 %v16889_v60, 16  ;;  %v16901_v40 = vsel %vm16480_vm5, %v1588_v3, %v1592_v24  ;;  %v1597_v25 = vor.u32 %v1596_v6, %v1592_v24  ;;  %v395_v59 = vand.u32 15, %v271_v31  ;;  %14671 = vmatpush3.bf16.msra.mxu1 %v15978_v10  ;;  %v16912_v6 = vld [vmem:[#allocation6 + $0x78] sm:$0xff]  }
  0x8e   : > { %v12981_v26 = vcombine.low %v1892_v39, %v1893_v41  ;;  %22195 = vst [vmem:[#allocation66_spill] sm:$0xff] %v16901_v40  ;;  %v1878_v47 = vmul.bf16 %v16901_v40, %v1172_v15  ;;  %v1752_v57 = vrot.slane %v1750_v22, 5  ;;  %v1756_v8 = vrot.slane %v1754_v33, 4  ;;  %14672 = vmatprep.subr.bf16.mxu1 %v15980_v18  ;;  %v16951_v40 = vld [vmem:[#allocation2 + $0x3c] sm:$0xf] }
  0x8f   : > { %v16905_v4 = vrot.slane %v1760_v63, 5  ;;  %v1598_v41 = vrot.slane %v1597_v25, 4  ;;  %vm739_vm2 = vcmp.ne.s32.totalorder %v395_v59, 0  ;;  %v1604_v24 = vshrl.u32 %v1312_v48, 16  ;;  %v16918_v63 = vld [vmem:[#allocation2 + $0x74] sm:$0xf] }
  0x90   : > { %v2128_v39 = vshrl.u32 %v12981_v26, 16  ;;  %v2131_v5 = vshll.u32 %v12981_v26, 16  ;;  %v16909_v3 = vsel %vm16480_vm5, %v1748_v0, %v1752_v57  ;;  %v1757_v31 = vor.u32 %v1756_v8, %v1752_v57 }
  0x91   : > { %22196 = vst [vmem:[#allocation67_spill] sm:$0xff] %v16909_v3  ;;  %v12940_v10 = vsel %vm739_vm2, 1.0, %v22169_v20  ;;  %v16916_v15 = vsel %vm16480_vm5, %v1598_v41, %v1602_v49  ;;  %v1894_v59 = vmul.bf16 %v16909_v3, %v16894_v44  ;;  %14673 = vmatpush3.bf16.msra.mxu1 %v15980_v18  ;;  %v1606_v25 = vrot.slane %v1604_v24, 4 }
  0x92   : > { %v2130_v22 = vrot.slane %v2128_v39, 3  ;;  %v2133_v33 = vrot.slane %v2131_v5, 4  ;;  %22197 = vst [vmem:[#allocation68_spill] sm:$0xff] %v16916_v15  ;;  %v1879_v0 = vmul.bf16 %v16916_v15, %v16897_v62  ;;  %v1758_v26 = vrot.slane %v1757_v31, 4  ;;  %14674 = vmatprep.subr.bf16.mxu1 %v15982_v23 }
  0x93   : > { %v840_v48 = vpack.c.bf16 %v22170_v19, %v12940_v10  ;;  %v287_v8 = vadd.s32 240, %v16404_v2  ;;  %v1764_v39 = vshrl.u32 %v16889_v60, 16  ;;  %v16929_v5 = vrot.slane %v16555_v42, %v16423_v21 }
  0x94   : > { %v2134_v57 = vor.u32 %v2133_v33, %v2130_v22  ;;  %v12974_v41 = vcombine.low %v1878_v47, %v1879_v0  ;;  %v16934_v18 = vsel %vm16480_vm5, %v1758_v26, %v16905_v4  ;;  %v1607_v22 = vor.u32 %v1606_v25, %v1602_v49  ;;  %v16945_v0 = vld [vmem:[#allocation2 + $0x38] sm:$0xf] }
  0x95   : > { %22198 = vst [vmem:[#allocation69_spill] sm:$0xff] %v16934_v18  ;;  %v1319_v31 = vrot.slane %v840_v48, %v16423_v21  ;;  %v1326_v10 = vrot.slane %v840_v48, %v16416_v17  ;;  %v1895_v60 = vmul.bf16 %v16934_v18, %v16918_v63  ;;  %v507_v42 = vand.u32 15, %v287_v8  ;;  %14675 = vmatpush3.bf16.msra.mxu1 %v15982_v23 }
  0x96   : > { %v16940_v24 = vsel %vm2019_vm9, %v16849_v11, %v2134_v57  ;;  %v2065_v47 = vshrl.u32 %v12974_v41, 16  ;;  %v2068_v33 = vshll.u32 %v12974_v41, 16  ;;  %14756 = vmatprep.subr.bf16.mxu1 %v16912_v6  ;;  %v1608_v54 = vrot.slane %v1607_v22, 4 }
  0x97   : > { %14649 = vmatmul.mubr.bf16.gmra.mxu1 %v16940_v24  ;;  %v1610_v26 = vshll.u32 %v1319_v31, 16  ;;  %v1614_v3 = vshrl.u32 %v1319_v31, 16  ;;  %v12982_v48 = vcombine.low %v1894_v59, %v1895_v60  ;;  %v1620_v11 = vshll.u32 %v1326_v10, 16 }
  0x98   : > { %vm755_vm3 = vcmp.ne.s32.totalorder %v507_v42, 0  ;;  %v2067_v34 = vrot.slane %v2065_v47, 3  ;;  %v2070_v29 = vrot.slane %v2068_v33, 4  ;;  %v1766_v47 = vrot.slane %v1764_v39, 4 }
  0x99   : > { %v1612_v18 = vrot.slane %v1610_v26, 5  ;;  %v1616_v49 = vrot.slane %v1614_v3, 4  ;;  %v2137_v25 = vshrl.u32 %v12982_v48, 16  ;;  %v2140_v23 = vshll.u32 %v12982_v48, 16 }
  0x9a   : > { %v1622_v8 = vrot.slane %v1620_v11, 5  ;;  %v12948_v15 = vsel %vm755_vm3, 1.0, %v22169_v20  ;;  %v16949_v41 = vor.u32 %v2070_v29, %v2067_v34  ;;  %v1624_v26 = vshrl.u32 %v1326_v10, 16 }
  0x9b   : > { %v16955_v31 = vsel %vm16480_vm5, %v1608_v54, %v1612_v18  ;;  %v1617_v59 = vor.u32 %v1616_v49, %v1612_v18  ;;  %v848_v60 = vpack.c.bf16 %v22170_v19, %v12948_v15  ;;  %v2139_v22 = vrot.slane %v2137_v25, 3 }
  0x9c   : > { %22199 = vst [vmem:[#allocation70_spill] sm:$0xff] %v16955_v31  ;;  %v2142_v42 = vrot.slane %v2140_v23, 4  ;;  %v1880_v3 = vmul.bf16 %v16955_v31, %v16945_v0  ;;  %v16963_v29 = vsel %vm2019_vm9, %v16873_v61, %v16949_v41  ;;  %v1767_v15 = vor.u32 %v1766_v47, %v16905_v4  ;;  %v16976_v61 = vld [vmem:[#allocation2 + $0x78] sm:$0xf] }
  0x9d   : > { %v1618_v34 = vrot.slane %v1617_v59, 4  ;;  %v1431_v33 = vrot.slane %v848_v60, %v16423_v21  ;;  %v1438_v54 = vrot.slane %v848_v60, %v16416_v17  ;;  %14636 = vmatprep.mubr.bf16.mxu0 %v16963_v29  ;;  %v1630_v48 = vshll.u32 %v16929_v5, 16 }
  0x9e   : > { %v16968_v18 = vor.u32 %v2142_v42, %v2139_v22  ;;  %v1768_v4 = vrot.slane %v1767_v15, 4  ;;  %v1626_v10 = vrot.slane %v1624_v26, 4  ;;  %v289_v45 = vadd.s32 256, %v16404_v2 }
  0x9f   : > { %v16974_v39 = vsel %vm16480_vm5, %v1618_v34, %v1622_v8  ;;  %v1770_v11 = vshll.u32 %v1431_v33, 16  ;;  %v1774_v49 = vshrl.u32 %v1431_v33, 16  ;;  %v1780_v25 = vshll.u32 %v1438_v54, 16 }
  0xa0   : > { %22200 = vst [vmem:[#allocation71_spill] sm:$0xff] %v16974_v39  ;;  %v16980_v23 = vsel %vm2019_vm9, %v2134_v57, %v16968_v18  ;;  %v1881_v59 = vmul.bf16 %v16974_v39, %v16951_v40  ;;  %v1632_v47 = vrot.slane %v1630_v48, 5  ;;  %v1627_v31 = vor.u32 %v1626_v10, %v1622_v8  ;;  %v16996_v8 = vld [vmem:[#allocation2 + $0x40] sm:$0xf] }
  0xa1   : > { %14652 = vmatprep.mubr.bf16.mxu1 %v16980_v23  ;;  %v1772_v60 = vrot.slane %v1770_v11, 5  ;;  %v1776_v22 = vrot.slane %v1774_v49, 4  ;;  %v1782_v42 = vrot.slane %v1780_v25, 5  ;;  %v1634_v33 = vshrl.u32 %v16929_v5, 16 }
  0xa2   : > { %v12975_v34 = vcombine.low %v1880_v3, %v1881_v59  ;;  %v1784_v26 = vshrl.u32 %v1438_v54, 16  ;;  %v291_v39 = vadd.s32 272, %v16404_v2  ;;  %v1628_v5 = vrot.slane %v1627_v31, 4 }
  0xa3   : > { %v16991_v57 = vsel %vm16480_vm5, %v1768_v4, %v1772_v60  ;;  %v1777_v15 = vor.u32 %v1776_v22, %v1772_v60  ;;  %v1636_v25 = vrot.slane %v1634_v33, 4  ;;  %v521_v59 = vand.u32 15, %v289_v45 }
  0xa4   : > { %22201 = vst [vmem:[#allocation72_spill] sm:$0xff] %v16991_v57  ;;  %v2074_v11 = vshrl.u32 %v12975_v34, 16  ;;  %v2077_v49 = vshll.u32 %v12975_v34, 16  ;;  %v1896_v3 = vmul.bf16 %v16991_v57, %v16976_v61  ;;  %v1786_v10 = vrot.slane %v1784_v26, 4 }
  0xa5   : > { %v1778_v48 = vrot.slane %v1777_v15, 4  ;;  %v17000_v4 = vsel %vm16480_vm5, %v1628_v5, %v1632_v47  ;;  %v535_v54 = vand.u32 15, %v291_v39  ;;  %v1637_v22 = vor.u32 %v1636_v25, %v1632_v47  ;;  %v1177_v15 = vld [vmem:[#allocation2 + $0x44] sm:$0xf] }
  0xa6   : > { %v2076_v37 = vrot.slane %v2074_v11, 3  ;;  %v2079_v46 = vrot.slane %v2077_v49, 4  ;;  %22202 = vst [vmem:[#allocation73_spill] sm:$0xff] %v17000_v4  ;;  %vm757_vm4 = vcmp.ne.s32.totalorder %v521_v59, 0  ;;  %v1787_v33 = vor.u32 %v1786_v10, %v1782_v42 }
  0xa7   : > { %v17004_v60 = vsel %vm16480_vm5, %v1778_v48, %v1782_v42  ;;  %v12949_v45 = vsel %vm757_vm4, 1.0, %v22169_v20  ;;  %v1638_v26 = vrot.slane %v1637_v22, 4  ;;  %v1882_v11 = vmul.bf16 %v17000_v4, %v16996_v8 }
  0xa8   : > { %22203 = vst [vmem:[#allocation74_spill] sm:$0xff] %v17004_v60  ;;  %v2080_v34 = vor.u32 %v2079_v46, %v2076_v37  ;;  %v1897_v31 = vmul.bf16 %v17004_v60, %v16987_v43  ;;  %v849_v39 = vpack.c.bf16 %v22170_v19, %v12949_v45  ;;  %vm759_vm6 = vcmp.ne.s32.totalorder %v535_v54, 0  ;;  %v17030_v54 = vld [vmem:[#allocation2 + $0x80] sm:$0xf] }
  0xa9   : > { %v12950_v46 = vsel %vm759_vm6, 1.0, %v22169_v20  ;;  %v1471_v37 = vshll.u32 %v16527_v27, 16  ;;  %v17022_v42 = vsel %vm16480_vm5, %v1638_v26, %v16571_v9  ;;  %v1788_v10 = vrot.slane %v1787_v33, 4 }
  0xaa   : > { %v17014_v49 = vsel %vm2019_vm9, %v16949_v41, %v2080_v34  ;;  %v12983_v47 = vcombine.low %v1896_v3, %v1897_v31  ;;  %22204 = vst [vmem:[#allocation75_spill] sm:$0xff] %v17022_v42  ;;  %v1445_v5 = vrot.slane %v849_v39, %v16423_v21  ;;  %v1452_v48 = vrot.slane %v849_v39, %v16416_v17 }
  0xab   : > { %14637 = vmatmul.mubr.bf16.gmra.mxu0 %v17014_v49  ;;  %v17027_v25 = vpack.c.bf16 %v22170_v19, %v12950_v46  ;;  %v1883_v59 = vmul.bf16 %v17022_v42, %v1177_v15  ;;  %vm4105_vm12 = vsmask.f32 256  ;;  %vm4106_vm13 = vsmask.f32 4368 }
  0xac   : > { %v2146_v41 = vshrl.u32 %v12983_v47, 16  ;;  %v2149_v3 = vshll.u32 %v12983_v47, 16  ;;  %v1790_v22 = vshll.u32 %v1445_v5, 16  ;;  %v1794_v31 = vshrl.u32 %v1445_v5, 16  ;;  %v17039_v5 = vld [vmem:[#allocation2 + $0x84] sm:$0xf]  ;;  %vm17256_vm15 = vmor %vm4105_vm12, %vm4106_vm13 }
  0xad   : > { %v1800_v45 = vshll.u32 %v1452_v48, 16  ;;  %v17034_v9 = vrot.slane %v17027_v25, %v16423_v21  ;;  %v12976_v39 = vcombine.low %v1882_v11, %v1883_v59  ;;  %v1804_v57 = vshrl.u32 %v1452_v48, 16 }
  0xae   : > { %v2148_v26 = vrot.slane %v2146_v41, 3  ;;  %v2151_v60 = vrot.slane %v2149_v3, 4  ;;  %v1792_v46 = vrot.slane %v1790_v22, 5  ;;  %v1796_v4 = vrot.slane %v1794_v31, 4 }
  0xaf   : > { %v1802_v12 = vrot.slane %v1800_v45, 5  ;;  %v1810_v47 = vshll.u32 %v17034_v9, 16  ;;  %v2083_v33 = vshrl.u32 %v12976_v39, 16  ;;  %v2086_v42 = vshll.u32 %v12976_v39, 16  ;;  %v17058_v45 = vld [vmem:[#allocation2 + $0x88] sm:$0xf] }
  0xb0   : > { %v17037_v15 = vor.u32 %v2151_v60, %v2148_v26  ;;  %v1806_v1 = vrot.slane %v1804_v57, 4  ;;  %v17043_v36 = vsel %vm16480_vm5, %v1788_v10, %v1792_v46  ;;  %v1797_v41 = vor.u32 %v1796_v4, %v1792_v46 }
  0xb1   : > { %22205 = vst [vmem:[#allocation76_spill] sm:$0xff] %v17043_v36  ;;  %v17045_v3 = vrot.slane %v1471_v37, 5  ;;  %v1474_v11 = vshrl.u32 %v16527_v27, 16  ;;  %v2085_v60 = vrot.slane %v2083_v33, 3  ;;  %v2088_v59 = vrot.slane %v2086_v42, 4 }
  0xb2   : > { %v17051_v48 = vsel %vm2019_vm9, %v16968_v18, %v17037_v15  ;;  %v1898_v57 = vmul.bf16 %v17043_v36, %v17030_v54  ;;  %v1798_v22 = vrot.slane %v1797_v41, 4  ;;  %v1807_v10 = vor.u32 %v1806_v1, %v1802_v12  ;;  %v17080_v33 = vld [vmem:[#allocation2 + $0x4] sm:$0xf] }
  0xb3   : > { %22206 = vst [vmem:[#allocation77_spill] sm:$0xff] %v17045_v3  ;;  %14653 = vmatmul.mubr.bf16.gmra.mxu1 %v17051_v48  ;;  %v17056_v31 = vrot.slane %v1810_v47, 5  ;;  %v1476_v4 = vrot.slane %v1474_v11, 4  ;;  %v2089_v37 = vor.u32 %v2088_v59, %v2085_v60  ;;  %v1160_v47 = vld [vmem:[#allocation2] sm:$0x8] }
  0xb4   : > { %v12995_v27 = vcombine.low %v1898_v57, %v1898_v57  ;;  %v17062_v18 = vsel %vm16480_vm5, %v1798_v22, %v1802_v12  ;;  %v1808_v26 = vrot.slane %v1807_v10, 4  ;;  %v1866_v22 = vmul.bf16 %v17045_v3, %v1160_v47 }
  0xb5   : > { %22207 = vst [vmem:[#allocation78_spill] sm:$0xff] %v17062_v18  ;;  %v1477_v42 = vor.u32 %v1476_v4, %v17045_v3  ;;  %v17066_v39 = vsel %vm2019_vm9, %v2080_v34, %v2089_v37  ;;  %v1899_v1 = vmul.bf16 %v17062_v18, %v17039_v5  ;;  %v17072_v46 = vsel %vm2019_vm9, %v2089_v37, %v16667_v7 }
  0xb6   : > { %14640 = vmatprep.mubr.bf16.mxu0 %v17066_v39  ;;  %v17078_v12 = vsel %vm16480_vm5, %v1808_v26, %v17056_v31  ;;  %v2413_v34 = vshrl.u32 %v12995_v27, 16  ;;  %v2416_v7 = vshll.u32 %v12995_v27, 16  ;;  %v1814_v10 = vshrl.u32 %v17034_v9, 16 }
  0xb7   : > { %22208 = vst [vmem:[#allocation79_spill] sm:$0xff] %v17078_v12  ;;  %v1478_v41 = vrot.slane %v1477_v42, 4  ;;  %v12984_v11 = vcombine.low %v1898_v57, %v1899_v1  ;;  %14641 = vmatmul.mubr.bf16.gmra.mxu0 %v17072_v46  ;;  %v17085_v60 = vmul.bf16 %v17078_v12, %v17058_v45  ;;  %v1466_v47 = vrot.slane %v17027_v25, %v16416_v17 }
  0xb8   : > { %14724 = vmatprep.mubr.bf16.mxu0 %v16744_v50  ;;  %v2415_v4 = vrot.slane %v2413_v34, 3  ;;  %v2418_v42 = vrot.slane %v2416_v7, 4  ;;  %v1816_v28 = vrot.slane %v1814_v10, 4  ;;  %vm4605_vm4 = vsmask.f32 7424 }
  0xb9   : > { %v17090_v59 = vsel %vm16480_vm5, %v1478_v41, %v16453_v38  ;;  %v2155_v57 = vshrl.u32 %v12984_v11, 16  ;;  %v2158_v37 = vshll.u32 %v12984_v11, 16  ;;  %v12985_v26 = vcombine.low %v17085_v60, %v17085_v60 }
  0xba   : > { %22209 = vst [vmem:[#allocation80_spill] sm:$0xff] %v17090_v59  ;;  %v1867_v27 = vmul.bf16 %v17090_v59, %v17080_v33  ;;  %v2419_v36 = vor.u32 %v2418_v42, %v2415_v4  ;;  %v1820_v10 = vshll.u32 %v1466_v47, 16  ;;  %v15989_v4 = vld [vmem:[#allocation6 + $0x128] sm:$0xff]  }
  0xbb   : > { %v2157_v1 = vrot.slane %v2155_v57, 3  ;;  %v2160_v12 = vrot.slane %v2158_v37, 4  ;;  %v2164_v38 = vshrl.u32 %v12985_v26, 16  ;;  %v2167_v41 = vshll.u32 %v12985_v26, 16 }
  0xbc   : > { %v12994_v18 = vcombine.low %v1866_v22, %v1867_v27  ;;  %v17105_v7 = vsel %vm2019_vm9, %v17037_v15, %v2419_v36  ;;  %v17121_v26 = vcombine.low %v16897_v62, %v16945_v0  ;;  %v1822_v27 = vrot.slane %v1820_v10, 5  ;;  %v15986_v0 = vld [vmem:[#allocation6 + $0x70] sm:$0xff]  }
  0xbd   : > { %v17101_v9 = vor.u32 %v2160_v12, %v2157_v1  ;;  %v2166_v34 = vrot.slane %v2164_v38, 3  ;;  %v2169_v11 = vrot.slane %v2167_v41, 4  ;;  %v17132_v62 = vcombine.low %v16862_v51, %v16894_v44  ;;  %v1195_v1 = vld [vmem:[#allocation2 + $0x8c] sm:$0xf]  ;;  %v15995_v41 = vld [vmem:[#allocation6 + $0x110] sm:$0xff]  }
  0xbe   : > { %v2404_v13 = vshrl.u32 %v12994_v18, 16  ;;  %v2407_v3 = vshll.u32 %v12994_v18, 16  ;;  %v1824_v18 = vshrl.u32 %v1466_v47, 16  ;;  %22210 = vst [vmem:[#allocation81_spill] sm:$0xff] %v17121_v26  ;;  %v260_v51 = vadd.s32 24, %v16404_v2 }
  0xbf   : > { %v17110_v22 = vsel %vm2019_vm9, %v17037_v15, %v17101_v9  ;;  %v2170_v57 = vor.u32 %v2169_v11, %v2166_v34  ;;  %14725 = vmatmul.mubr.bf16.vlgmr.msra.gmra.mxu0 %v16834_v56  ;;  %v1817_v15 = vor.u32 %v1816_v28, %v17056_v31  ;;  %v258_v31 = vadd.s32 8, %v16404_v2 }
  0xc0   : > { %14656 = vmatprep.mubr.bf16.mxu1 %v17110_v22  ;;  %v2406_v25 = vrot.slane %v2404_v13, 3  ;;  %v2409_v12 = vrot.slane %v2407_v3, 4  ;;  %14805 = vmatpush3.bf16.msra.mxu0 %v16877_v14  ;;  %v15991_v13 = vld [vmem:[#allocation6 + $0x120] sm:$0xff]   ;;  %v17125_v14 = vcombine.low %v16951_v40, %v16996_v8  ;;  %v1826_v42 = vrot.slane %v1824_v18, 4  ;;  %v15993_v8 = vld [vmem:[#allocation6 + $0x118] sm:$0xff]  }
  0xc1   : > { %v2171_v36 = vsel %vm2019_vm9, %v17101_v9, %v2170_v57  ;;  %14728 = vmatprep.mubr.bf16.mxu0 %v16882_v30  ;;  %14806 = vmatprep.subr.bf16.mxu0 %v15987_v35  ;;  %v1818_v28 = vrot.slane %v1817_v15, 4  ;;  %v17137_v40 = vcombine.low %v16918_v63, %v16976_v61  ;;  %v262_v61 = vadd.s32 40, %v16404_v2  ;;  %v15997_v57 = vld [vmem:[#allocation6 + $0x108] sm:$0xff]   ;;  %v15999_v15 = vld [vmem:[#allocation6 + $0x100] sm:$0xff]  }
  0xc2   : > { %14657 = vmatmul.mubr.bf16.gmra.mxu1 %v2171_v36  ;;  %v2410_v37 = vor.u32 %v2409_v12, %v2406_v25  ;;  %22211 = vst [vmem:[#allocation82_spill] sm:$0xff] %v17125_v14  ;;  %v1827_v44 = vor.u32 %v1826_v42, %v1822_v27  ;;  %v318_v38 = vand.u32 15, %v260_v51  ;;  %v264_v11 = vadd.s32 56, %v16404_v2 }
  0xc3   : > { %v17151_v63 = vsel %vm16480_vm5, %v1818_v28, %v1822_v27  ;;  %v15994_v27 = vld [vmem:[#allocation6 + $0x50] sm:$0xff]   ;;  %v268_v51 = vadd.s32 88, %v16404_v2 }
  0xc4   : > { %v2411_v3 = vsel %vm2019_vm9, %v2410_v37, %v16573_v16  ;;  %14807 = vmatpush3.bf16.msra.mxu0 %v15987_v35  ;;  %v17141_v35 = vcombine.low %v16987_v43, %v17030_v54  ;;  %v17145_v16 = vcombine.low %v17039_v5, %v17058_v45  ;;  %22212 = vst [vmem:[#allocation83_spill] sm:$0xff] %v17151_v63  ;;  %v304_v43 = vand.u32 15, %v258_v31  ;;  %v15988_v54 = vld [vmem:[#allocation6 + $0x68] sm:$0xff]  }
  0xc5   : > { %14676 = vmatprep.mubr.bf16.mxu1 %v2411_v3  ;;  %14808 = vmatprep.subr.bf16.mxu0 %v15989_v4  ;;  %v1901_v5 = vmul.bf16 %v17151_v63, %v1195_v1  ;;  %v17158_v45 = vrot.slane %v1827_v44, 4  ;;  %vm854_vm7 = vcmp.ne.s32.totalorder %v318_v38, 15  ;;  %v17188_v1 = vld [vmem:[#allocation6 + $0xb8] sm:$0xff]  }
  0xc6   : > { %vm852_vm5 = vcmp.ne.s32.totalorder %v304_v43, 15  ;;  %v12952_v25 = vsel %vm854_vm7, 1.0, %v22169_v20 }
  0xc7   : > { %14729 = vmatmul.mubr.bf16.gmra.mxu0 %v16963_v29  ;;  %22213 = vst [vmem:[#allocation84_spill] sm:$0xff] %v17158_v45  ;;  %v1902_v47 = vmul.bf16 %v17158_v45, %v1196_v58  ;;  %v12951_v34 = vsel %vm852_vm5, 1.0, %v22169_v20  ;;  %v16215_v58 = vld [vmem:[#allocation2 + $0xc] sm:$0xf] }
  0xc8   : > { %14732 = vmatprep.mubr.bf16.mxu0 %v17014_v49  ;;  %14809 = vmatpush3.bf16.msra.mxu0 %v15989_v4  ;;  %v959_v12 = vpack.c.bf16 %v12951_v34, %v22170_v19  ;;  %v346_v4 = vand.u32 15, %v264_v11  ;;  %v374_v34 = vand.u32 15, %v268_v51 }
  0xc9   : > { %14810 = vmatprep.subr.bf16.mxu0 %v15991_v13  ;;  %v13005_v36 = vcombine.low %v1902_v47, %v1902_v47 }
  0xca   : > { %14677 = vmatmul.mubr.bf16.vlgmr.msra.gmra.mxu1 %v16586_v52  ;;  %v332_v52 = vand.u32 15, %v262_v61  ;;  %v17178_v3 = vrot.slane %v959_v12, %v16416_v17  ;;  %vm17182_vm10 = vcmp.ne.s32.totalorder %v346_v4, 15  ;;  %vm17237_vm14 = vcmp.ne.s32.totalorder %v374_v34, 15 }
  0xcb   : > { %14757 = vmatpush3.bf16.msra.mxu1 %v16912_v6  ;;  %14680 = vmatprep.mubr.bf16.mxu1 %v16744_v50  ;;  %v15990_v50 = vld [vmem:[#allocation6 + $0x60] sm:$0xff]   ;;  %v13004_v6 = vcombine.low %v17085_v60, %v1901_v5  ;;  %v15992_v60 = vld [vmem:[#allocation6 + $0x58] sm:$0xff]   ;;  %v2665_v31 = vshrl.u32 %v13005_v36, 16 }
  0xcc   : > { %14758 = vmatprep.subr.bf16.mxu1 %v15986_v0  ;;  %14811 = vmatpush3.bf16.msra.mxu0 %v15991_v13  ;;  %vm856_vm8 = vcmp.ne.s32.totalorder %v332_v52, 15  ;;  %v17175_v13 = vrot.slane %v959_v12, %v16423_v21  ;;  %v4117_v38 = vshrl.u32 %v17178_v3, 16  ;;  %v3799_v12 = vld [vmem:[#allocation2 + $0x8] sm:$0xf] }
  0xcd   : > { %14812 = vmatprep.subr.bf16.mxu0 %v15993_v8  ;;  %v2656_v10 = vshrl.u32 %v13004_v6, 16  ;;  %v2659_v18 = vshll.u32 %v13004_v6, 16  ;;  %v12953_v37 = vsel %vm856_vm8, 1.0, %v22169_v20  ;;  %v17206_v47 = vrot.slane %v2665_v31, 3 }
  0xce   : > { %v4109_v5 = vshrl.u32 %v17175_v13, 16 }
  0xcf   : > { %14759 = vmatpush3.bf16.msra.mxu1 %v15986_v0  ;;  %14733 = vmatmul.mubr.bf16.gmra.mxu0 %v17066_v39  ;;  %v2658_v42 = vrot.slane %v2656_v10, 3  ;;  %v2661_v28 = vrot.slane %v2659_v18, 4  ;;  %v961_v0 = vpack.c.bf16 %v12953_v37, %v22170_v19  ;;  %v17221_v18 = vrot.slane %v4117_v38, 7 }
  0xd0   : > { %14760 = vmatprep.subr.bf16.mxu1 %v15988_v54  ;;  %14736 = vmatprep.mubr.bf16.mxu0 %v17072_v46  ;;  %v4111_v10 = vrot.slane %v4109_v5, 7 }
  0xd1   : > { %14813 = vmatpush3.bf16.msra.mxu0 %v15993_v8  ;;  %v2668_v8 = vshll.u32 %v13005_v36, 16  ;;  %v17204_v6 = vor.u32 %v2661_v28, %v2658_v42  ;;  %v4120_v36 = vshll.u32 %v17178_v3, 16  ;;  %v17231_v37 = vrot.slane %v961_v0, %v16416_v17 }
  0xd2   : > { %14681 = vmatmul.mubr.bf16.gmra.mxu1 %v16834_v56  ;;  %14814 = vmatprep.subr.bf16.mxu0 %v15995_v41  ;;  %v960_v56 = vpack.c.bf16 %v12952_v25, %v22170_v19  ;;  %v4115_v44 = vrot.slane %v4111_v10, 4 }
  0xd3   : > { %14684 = vmatprep.mubr.bf16.mxu1 %v16882_v30  ;;  %14761 = vmatpush3.bf16.msra.mxu1 %v15988_v54  ;;  %v266_v30 = vadd.s32 72, %v16404_v2  ;;  %v17211_v11 = vrot.slane %v2668_v8, 4  ;;  %v4122_v51 = vor.u32 %v4120_v36, %v17221_v18 }
  0xd4   : > { %14762 = vmatprep.subr.bf16.mxu1 %v15990_v50  ;;  %v17191_v43 = vrot.slane %v960_v56, %v16423_v21  ;;  %v17194_v61 = vrot.slane %v960_v56, %v16416_v17  ;;  %v17228_v56 = vadd.s32 104, %v16404_v2 }
  0xd5   : > { %14815 = vmatpush3.bf16.msra.mxu0 %v15995_v41  ;;  %v360_v54 = vand.u32 15, %v266_v30  ;;  %v16216_v41 = vld [vmem:[#allocation2 + $0x10] sm:$0xf] }
  0xd6   : > { %14816 = vmatprep.subr.bf16.mxu0 %v15997_v57  ;;  %v17199_v52 = vcombine.low %v16215_v58, %v16216_v41  ;;  %v4135_v25 = vshrl.u32 %v17194_v61, 16  ;;  %v4138_v31 = vshll.u32 %v17194_v61, 16  ;;  %v4124_v61 = vrot.slane %v17221_v18, 4  ;;  %v16218_v58 = vld [vmem:[#allocation2 + $0x18] sm:$0xf] }
  0xd7   : > { %14737 = vmatmul.mubr.bf16.gmra.mxu0 %v16708_v55  ;;  %14763 = vmatpush3.bf16.msra.mxu1 %v15990_v50  ;;  %v12954_v50 = vsel %vm17182_vm10, 1.0, %v22169_v20  ;;  %vm17216_vm11 = vcmp.ne.s32.totalorder %v360_v54, 15 }
  0xd8   : > { %14740 = vmatprep.mubr.bf16.mxu0 %v16813_v32  ;;  %14764 = vmatprep.subr.bf16.mxu1 %v15992_v60  ;;  %v962_v4 = vpack.c.bf16 %v12954_v50, %v22170_v19  ;;  %v12955_v3 = vsel %vm17216_vm11, 1.0, %v22169_v20  ;;  %v17243_v28 = vrot.slane %v4135_v25, 7  ;;  %v16219_v50 = vld [vmem:[#allocation2 + $0x1c] sm:$0xf]  ;;  %v4153_v25 = vshrl.u32 %v17231_v37, 16 }
  0xd9   : > { %14817 = vmatpush3.bf16.msra.mxu0 %v15997_v57  ;;  %v4126_v57 = vshrl.u32 %v17191_v43, 16  ;;  %v963_v38 = vpack.c.bf16 %v12955_v3, %v22170_v19 }
  0xda   : > { %14685 = vmatmul.mubr.bf16.gmra.mxu1 %v16963_v29  ;;  %14818 = vmatprep.subr.bf16.mxu0 %v15999_v15  ;;  %v15996_v29 = vld [vmem:[#allocation6 + $0x48] sm:$0xff]   ;;  %v17252_v54 = vrot.slane %v962_v4, %v16423_v21  ;;  %v17264_v5 = vrot.slane %v962_v4, %v16416_v17  ;;  %v4140_v36 = vor.u32 %v4138_v31, %v17243_v28  ;;  %v12956_v4 = vsel %vm17237_vm14, 1.0, %v22169_v20 }
  0xdb   : > { %14688 = vmatprep.mubr.bf16.mxu1 %v17014_v49  ;;  %14765 = vmatpush3.bf16.msra.mxu1 %v15992_v60  ;;  %v17209_v49 = vrot.slane %v961_v0, %v16423_v21  ;;  %v15998_v60 = vld [vmem:[#allocation6 + $0x40] sm:$0xff]   ;;  %v4128_v42 = vrot.slane %v4126_v57, 7  ;;  %v17247_v0 = vld [vmem:[#allocation6 + $0x1f8] sm:$0xff]   ;;  %v4142_v31 = vrot.slane %v17243_v28, 4 }
  0xdc   : > { %14766 = vmatprep.subr.bf16.mxu1 %v15994_v27  ;;  %v4162_v3 = vshrl.u32 %v17252_v54, 16 }
  0xdd   : > { %14819 = vmatpush3.bf16.msra.mxu0 %v15999_v15  ;;  %v4112_v15 = vshll.u32 %v17175_v13, 16  ;;  %v4144_v30 = vshrl.u32 %v17209_v49, 16  ;;  %v4129_v13 = vshll.u32 %v17191_v43, 16  ;;  %v4147_v8 = vshll.u32 %v17209_v49, 16  ;;  %v16220_v49 = vld [vmem:[#allocation2 + $0x20] sm:$0xf] }
  0xde   : > { %14900 = vmatprep.subr.bf16.mxu0 %v17188_v1  ;;  %v17269_v34 = vcombine.low %v16219_v50, %v16220_v49  ;;  %v4133_v18 = vrot.slane %v4128_v42, 4 }
  0xdf   : > { %14741 = vmatmul.mubr.bf16.gmra.mxu0 %v16856_v53  ;;  %14767 = vmatpush3.bf16.msra.mxu1 %v15994_v27  ;;  %v17271_v57 = vrot.slane %v4144_v30, 7  ;;  %v17284_v30 = vsel %vm17256_vm15, %v4115_v44, %v4122_v51  ;;  %v2671_v27 = vor.u32 %v17211_v11, %v17206_v47  ;;  %v3922_v51 = vrot.slane %v963_v38, %v16416_v17  ;;  %v3801_v47 = vld [vmem:[#allocation2 + $0x10] sm:$0xf] }
  0xe0   : > { %14744 = vmatprep.mubr.bf16.mxu0 %v16940_v24  ;;  %14768 = vmatprep.subr.bf16.mxu1 %v15996_v29  ;;  %22223 = vst [vmem:[#allocation86_spill] sm:$0xff] %v17269_v34  ;;  %22224 = vst [vmem:[#allocation87_spill] sm:$0xff] %v17284_v30  ;;  %v4469_v28 = vmul.bf16 %v17284_v30, %v3799_v12 }
  0xe1   : > { %v4149_v44 = vor.u32 %v4147_v8, %v17271_v57  ;;  %v4156_v8 = vshll.u32 %v17231_v37, 16  ;;  %v4151_v50 = vrot.slane %v17271_v57, 4  ;;  %v4189_v12 = vshrl.u32 %v3922_v51, 16  ;;  %v17319_v37 = vld [vmem:[#allocation2 + $0x14] sm:$0xf] }
  0xe2   : > { %14689 = vmatmul.mubr.bf16.gmra.mxu1 %v17066_v39  ;;  %v3798_v39 = vld [vmem:[#allocation2 + $0x4] sm:$0xf] }
  0xe3   : > { %14692 = vmatprep.mubr.bf16.mxu1 %v17072_v46  ;;  %14769 = vmatpush3.bf16.msra.mxu1 %v15996_v29  ;;  %v17260_v46 = vor.u32 %v4112_v15, %v4111_v10  ;;  %v16217_v29 = vld [vmem:[#allocation2 + $0x14] sm:$0xf]  ;;  %v4131_v10 = vor.u32 %v4129_v13, %v4128_v42  ;;  %v2663_v15 = vsel %vm2019_vm9, %v17101_v9, %v17204_v6  ;;  %v388_v42 = vand.u32 15, %v17228_v56 }
  0xe4   : > { %14770 = vmatprep.subr.bf16.mxu1 %v15998_v60  ;;  %v17267_v41 = vcombine.low %v16217_v29, %v16218_v58  ;;  %v4171_v9 = vshrl.u32 %v17264_v5, 16  ;;  %v964_v56 = vpack.c.bf16 %v12956_v4, %v22170_v19  ;;  %v3800_v29 = vld [vmem:[#allocation2 + $0xc] sm:$0xf]  ;;  %v4155_v58 = vrot.slane %v4153_v25, 7 }
  0xe5   : > { %22222 = vst [vmem:[#allocation85_spill] sm:$0xff] %v17260_v46  ;;  %v4468_v13 = vmul.bf16 %v17260_v46, %v3798_v39  ;;  %v17302_v11 = vsel %vm17256_vm15, %v4124_v61, %v4131_v10  ;;  %v17306_v39 = vsel %vm17256_vm15, %v4133_v18, %v4140_v36  ;;  %vm864_vm0 = vcmp.ne.s32.totalorder %v388_v42, 15  ;;  %v16233_v46 = vld [vmem:[#allocation2 + $0x60] sm:$0xf] }
  0xe6   : > { %22225 = vst [vmem:[#allocation88_spill] sm:$0xff] %v17302_v11  ;;  %22226 = vst [vmem:[#allocation89_spill] sm:$0xff] %v17306_v39  ;;  %v4173_v49 = vrot.slane %v4171_v9, 7  ;;  %v4174_v61 = vshll.u32 %v17264_v5, 16  ;;  %v4470_v18 = vmul.bf16 %v17302_v11, %v3800_v29  ;;  %v4471_v36 = vmul.bf16 %v17306_v39, %v3801_v47 }
  0xe7   : > { %14745 = vmatmul.mubr.bf16.gmra.mxu0 %v16980_v23  ;;  %14771 = vmatpush3.bf16.msra.mxu1 %v15998_v60  ;;  %v3915_v60 = vrot.slane %v963_v38, %v16423_v21  ;;  %v4164_v38 = vrot.slane %v4162_v3, 7  ;;  %v3929_v25 = vrot.slane %v964_v56, %v16423_v21  ;;  %v3936_v57 = vrot.slane %v964_v56, %v16416_v17 }
  0xe8   : > { %14748 = vmatprep.mubr.bf16.mxu0 %v17051_v48  ;;  %14852 = vmatprep.subr.bf16.mxu1 %v17247_v0  ;;  %v12957_v5 = vsel %vm864_vm0, 1.0, %v22169_v20  ;;  %v4158_v4 = vor.u32 %v4156_v8, %v4155_v58  ;;  %v4160_v3 = vrot.slane %v4155_v58, 4  ;;  %v17329_v30 = vrot.slane %v4189_v12, 7 }
  0xe9   : > { %v4180_v10 = vshrl.u32 %v3915_v60, 16  ;;  %v4183_v9 = vshll.u32 %v3915_v60, 16  ;;  %v4169_v29 = vrot.slane %v4164_v38, 4  ;;  %v965_v56 = vpack.c.bf16 %v12957_v5, %v22170_v19  ;;  %v3803_v60 = vld [vmem:[#allocation2 + $0x18] sm:$0xf] }
  0xea   : > { %14693 = vmatmul.mubr.bf16.gmra.mxu1 %v16708_v55  ;;  %v4165_v55 = vshll.u32 %v17252_v54, 16  ;;  %v17323_v54 = vsel %vm17256_vm15, %v4142_v31, %v4149_v44  ;;  %v4192_v31 = vshll.u32 %v3922_v51, 16  ;;  %v4198_v44 = vshrl.u32 %v3929_v25, 16 }
  0xeb   : > { %14696 = vmatprep.mubr.bf16.mxu1 %v16813_v32  ;;  %v17317_v32 = vcombine.low %v4468_v13, %v4469_v28  ;;  %22227 = vst [vmem:[#allocation90_spill] sm:$0xff] %v17323_v54  ;;  %v4176_v13 = vor.u32 %v4174_v61, %v4173_v49  ;;  %v4182_v47 = vrot.slane %v4180_v10, 7  ;;  %v272_v28 = vadd.s32 120, %v16404_v2 }
  0xec   : > { %v4167_v42 = vor.u32 %v4165_v55, %v4164_v38  ;;  %v17335_v58 = vcombine.low %v4470_v18, %v4471_v36  ;;  %v4207_v8 = vshrl.u32 %v3936_v57, 16  ;;  %v17343_v51 = vsel %vm17256_vm15, %v4151_v50, %v4158_v4  ;;  %v3804_v55 = vld [vmem:[#allocation2 + $0x1c] sm:$0xf] }
  0xed   : > { %22228 = vst [vmem:[#allocation91_spill] sm:$0xff] %v17343_v51  ;;  %v17351_v61 = vsel %vm17256_vm15, %v4169_v29, %v4176_v13  ;;  %v4185_v10 = vor.u32 %v4183_v9, %v4182_v47  ;;  %v4187_v18 = vrot.slane %v4182_v47, 4  ;;  %v4194_v36 = vor.u32 %v4192_v31, %v17329_v30  ;;  %v3806_v47 = vld [vmem:[#allocation2 + $0x24] sm:$0xf]  ;;  %v3807_v31 = vld [vmem:[#allocation2 + $0x28] sm:$0xf] }
  0xee   : > { %22230 = vst [vmem:[#allocation93_spill] sm:$0xff] %v17351_v61  ;;  %v4200_v12 = vrot.slane %v4198_v44, 7  ;;  %v17355_v50 = vrot.slane %v965_v56, %v16423_v21  ;;  %v17357_v5 = vrot.slane %v4207_v8, 7  ;;  %v4210_v4 = vshll.u32 %v3936_v57, 16  ;;  %v16004_v29 = vld [vmem:[#allocation6 + $0xb0] sm:$0xff]  }
  0xef   : > { %14749 = vmatmul.mubr.bf16.gmra.mxu0 %v17110_v22  ;;  %v2672_v22 = vsel %vm2019_vm9, %v17204_v6, %v2671_v27  ;;  %v17347_v6 = vsel %vm17256_vm15, %v4160_v3, %v4167_v42  ;;  %v4178_v27 = vrot.slane %v4173_v49, 4  ;;  %v17360_v3 = vrot.slane %v965_v56, %v16416_v17 }
  0xf0   : > { %14752 = vmatprep.mubr.bf16.mxu0 %v2663_v15  ;;  %v4472_v15 = vmul.bf16 %v17323_v54, %v17319_v37  ;;  %22229 = vst [vmem:[#allocation92_spill] sm:$0xff] %v17347_v6  ;;  %v4201_v37 = vshll.u32 %v3929_v25, 16  ;;  %v274_v49 = vadd.s32 136, %v16404_v2  ;;  %v4609_v42 = vshll.u32 %v17317_v32, 16 }
  0xf1   : > { %v4614_v9 = vshll.u32 %v17335_v58, 16  ;;  %v4473_v25 = vmul.bf16 %v17343_v51, %v3803_v60  ;;  %v4474_v13 = vmul.bf16 %v17347_v6, %v3804_v55  ;;  %v17376_v44 = vsel %vm17256_vm15, %v4187_v18, %v4194_v36  ;;  %v16007_v6 = vld [vmem:[#allocation6 + $0x1e0] sm:$0xff]   ;;  %v16015_v51 = vld [vmem:[#allocation6 + $0x88] sm:$0xff]  }
  0xf2   : > { %14697 = vmatmul.mubr.bf16.gmra.mxu1 %v16856_v53  ;;  %v3805_v53 = vld [vmem:[#allocation2 + $0x20] sm:$0xf]  ;;  %22232 = vst [vmem:[#allocation95_spill] sm:$0xff] %v17376_v44  ;;  %v4196_v56 = vrot.slane %v17329_v30, 4  ;;  %v4216_v60 = vshrl.u32 %v17355_v50, 16  ;;  %v4205_v8 = vrot.slane %v4200_v12, 4  ;;  %v4212_v55 = vor.u32 %v4210_v4, %v17357_v5 }
  0xf3   : > { %14700 = vmatprep.mubr.bf16.mxu1 %v16940_v24  ;;  %v402_v24 = vand.u32 15, %v272_v28  ;;  %v4475_v57 = vmul.bf16 %v17351_v61, %v3805_v53  ;;  %v17372_v28 = vsel %vm17256_vm15, %v4178_v27, %v4185_v10  ;;  %v4225_v53 = vshrl.u32 %v17360_v3, 16  ;;  %v3808_v4 = vld [vmem:[#allocation2 + $0x2c] sm:$0xf]  ;;  %v16013_v61 = vld [vmem:[#allocation6 + $0x90] sm:$0xff]  }
  0xf4   : > { %22231 = vst [vmem:[#allocation94_spill] sm:$0xff] %v17372_v28  ;;  %v416_v27 = vand.u32 15, %v274_v49  ;;  %v17384_v10 = vrot.slane %v4609_v42, 1  ;;  %v276_v30 = vadd.s32 152, %v16404_v2  ;;  %v17390_v36 = vrot.slane %v4614_v9, 1 }
  0xf5   : > { %vm866_vm1 = vcmp.ne.s32.totalorder %v402_v24, 15  ;;  %v17386_v24 = vcombine.low %v4472_v15, %v4473_v25  ;;  %v3809_v49 = vld [vmem:[#allocation2 + $0x30] sm:$0xf]  ;;  %v4218_v15 = vrot.slane %v4216_v60, 7  ;;  %v4219_v42 = vshll.u32 %v17355_v50, 16 }
  0xf6   : > { %v12958_v18 = vsel %vm866_vm1, 1.0, %v22169_v20  ;;  %v4228_v25 = vshll.u32 %v17360_v3, 16  ;;  %v17404_v9 = vsel %vm17256_vm15, %v4205_v8, %v4212_v55  ;;  %vm17409_vm2 = vcmp.ne.s32.totalorder %v416_v27, 15  ;;  %v16223_v60 = vld [vmem:[#allocation2 + $0x28] sm:$0xf] }
  0xf7   : > { %14753 = vmatmul.mubr.bf16.gmra.mxu0 %v2672_v22  ;;  %v4203_v22 = vor.u32 %v4201_v37, %v4200_v12  ;;  %v17392_v37 = vcombine.low %v4474_v13, %v4475_v57  ;;  %v4477_v12 = vmul.bf16 %v17376_v44, %v3807_v31  ;;  %22234 = vst [vmem:[#allocation97_spill] sm:$0xff] %v17404_v9  ;;  %v17406_v13 = vrot.slane %v4225_v53, 7  ;;  %v16221_v31 = vld [vmem:[#allocation2 + $0x8] sm:$0xf] }
  0xf8   : > { %14820 = vmatprep.mubr.bf16.mxu0 %v17199_v52  ;;  %v966_v57 = vpack.c.bf16 %v12958_v18, %v22170_v19  ;;  %v4622_v50 = vshll.u32 %v17386_v24, 16  ;;  %v430_v3 = vand.u32 15, %v276_v30  ;;  %v4214_v27 = vrot.slane %v17357_v5, 4 }
  0xf9   : > { %v4630_v55 = vshll.u32 %v17392_v37, 16  ;;  %v4479_v30 = vmul.bf16 %v17404_v9, %v3809_v49  ;;  %v278_v5 = vadd.s32 168, %v16404_v2  ;;  %v3811_v49 = vld [vmem:[#allocation2 + $0x38] sm:$0xf] }
  0xfa   : > { %14701 = vmatmul.mubr.bf16.gmra.mxu1 %v16980_v23  ;;  %v4476_v23 = vmul.bf16 %v17372_v28, %v3806_v47  ;;  %vm17439_vm3 = vcmp.ne.s32.totalorder %v430_v3, 15  ;;  %v16005_v28 = vld [vmem:[#allocation6 + $0x1e8] sm:$0xff]  }
  0xfb   : > { %14704 = vmatprep.mubr.bf16.mxu1 %v17051_v48  ;;  %v17398_v48 = vsel %vm17256_vm15, %v4196_v56, %v4203_v22  ;;  %v13014_v56 = vcombine.low %v17080_v33, %v16221_v31  ;;  %v16222_v22 = vld [vmem:[#allocation2 + $0x24] sm:$0xf]  ;;  %v16006_v33 = vld [vmem:[#allocation6 + $0xa8] sm:$0xff]   ;;  %v4221_v31 = vor.u32 %v4219_v42, %v4218_v15  ;;  %v17445_v47 = vrot.slane %v4630_v55, 1  ;;  %v16003_v55 = vld [vmem:[#allocation6 + $0x1f0] sm:$0xff]  }
  0xfc   : > { %22233 = vst [vmem:[#allocation96_spill] sm:$0xff] %v17398_v48  ;;  %v17418_v8 = vcombine.low %v16222_v22, %v16223_v60  ;;  %v17421_v53 = vcombine.low %v4476_v23, %v4477_v12  ;;  %v4478_v18 = vmul.bf16 %v17398_v48, %v3808_v4  ;;  %v4223_v22 = vrot.slane %v4218_v15, 4  ;;  %v16225_v15 = vld [vmem:[#allocation2 + $0x30] sm:$0xf]  ;;  %v16008_v4 = vld [vmem:[#allocation6 + $0xa0] sm:$0xff]  }
  0xfd   : > { %v4230_v60 = vor.u32 %v4228_v25, %v17406_v13  ;;  %v17432_v23 = vrot.slane %v966_v57, %v16423_v21  ;;  %v17435_v12 = vrot.slane %v4622_v50, 1 }
  0xfe   : > { %22237 = vst [vmem:[#allocation98_spill] sm:$0xff] %v17418_v8  ;;  %v4638_v38 = vshll.u32 %v17421_v53, 16  ;;  %v17449_v48 = vcombine.low %v4478_v18, %v4479_v30  ;;  %v12960_v18 = vsel %vm17439_vm3, 1.0, %v22169_v20  ;;  %v444_v30 = vand.u32 15, %v278_v5 }
  0xff   : > { %14821 = vmatmul.mubr.bf16.vlgmr.msra.gmra.mxu0 %v17267_v41  ;;  %v968_v9 = vpack.c.bf16 %v12960_v18, %v22170_v19 }
 0x100   : > { %14901 = vmatpush3.bf16.msra.mxu0 %v17188_v1  ;;  %14824 = vmatprep.mubr.bf16.mxu0 %v17269_v34  ;;  %v12959_v1 = vsel %vm17409_vm2, 1.0, %v22169_v20  ;;  %22241 = vst [vmem:[#allocation100_spill] sm:$0xff] %v17449_v48  ;;  %vm17491_vm6 = vcmp.ne.s32.totalorder %v444_v30, 15 }
 0x101   : > { %14902 = vmatprep.subr.bf16.mxu0 %v16004_v29  ;;  %v967_v50 = vpack.c.bf16 %v12959_v1, %v22170_v19  ;;  %v4234_v1 = vshrl.u32 %v17432_v23, 16 }
 0x102   : > { %14705 = vmatmul.mubr.bf16.gmra.mxu1 %v17105_v7  ;;  %v16224_v7 = vld [vmem:[#allocation2 + $0x2c] sm:$0xf] }
 0x103   : > { %14772 = vmatprep.mubr.bf16.mxu1 %v13014_v56  ;;  %v17443_v25 = vcombine.low %v16224_v7, %v16225_v15  ;;  %v3810_v56 = vld [vmem:[#allocation2 + $0x34] sm:$0xf]  ;;  %v17457_v7 = vrot.slane %v966_v57, %v16416_v17  ;;  %v17461_v15 = vsel %vm17256_vm15, %v4223_v22, %v4230_v60  ;;  %v17469_v57 = vrot.slane %v4638_v38, 1  ;;  %v16011_v22 = vld [vmem:[#allocation6 + $0x98] sm:$0xff]  }
 0x104   : > { %14903 = vmatpush3.bf16.msra.mxu0 %v16004_v29  ;;  %v17454_v29 = vsel %vm17256_vm15, %v4214_v27, %v4221_v31  ;;  %22243 = vst [vmem:[#allocation102_spill] sm:$0xff] %v17461_v15  ;;  %v17472_v27 = vrot.slane %v967_v50, %v16423_v21  ;;  %v280_v31 = vadd.s32 184, %v16404_v2  ;;  %v4481_v42 = vmul.bf16 %v17461_v15, %v3811_v49  ;;  %v16227_v38 = vld [vmem:[#allocation2 + $0x44] sm:$0xf]  ;;  %v16228_v15 = vld [vmem:[#allocation2 + $0x4c] sm:$0xf] }
 0x105   : > { %22240 = vst [vmem:[#allocation99_spill] sm:$0xff] %v17443_v25  ;;  %14904 = vmatprep.subr.bf16.mxu0 %v16006_v33  ;;  %22242 = vst [vmem:[#allocation101_spill] sm:$0xff] %v17454_v29  ;;  %v4480_v60 = vmul.bf16 %v17454_v29, %v3810_v56  ;;  %v4243_v3 = vshrl.u32 %v17457_v7, 16  ;;  %v4237_v49 = vshll.u32 %v17432_v23, 16  ;;  %v17489_v5 = vrot.slane %v967_v50, %v16416_v17  ;;  %v16229_v56 = vld [vmem:[#allocation2 + $0x50] sm:$0xf] }
 0x106   : > { %v458_v29 = vand.u32 15, %v280_v31  ;;  %v17498_v44 = vcombine.low %v16228_v15, %v16229_v56  ;;  %v4246_v30 = vshll.u32 %v17457_v7, 16  ;;  %v12961_v31 = vsel %vm17491_vm6, 1.0, %v22169_v20 }
 0x107   : > { %14825 = vmatmul.mubr.bf16.gmra.mxu0 %v17418_v8  ;;  %v17500_v23 = vcombine.low %v4480_v60, %v4481_v42  ;;  %v17502_v50 = vrot.slane %v4243_v3, 7  ;;  %v282_v15 = vadd.s32 200, %v16404_v2  ;;  %v16230_v3 = vld [vmem:[#allocation2 + $0x54] sm:$0xf]  ;;  %v16231_v60 = vld [vmem:[#allocation2 + $0x58] sm:$0xf] }
 0x108   : > { %14828 = vmatprep.mubr.bf16.mxu0 %v17443_v25  ;;  %14905 = vmatpush3.bf16.msra.mxu0 %v16006_v33  ;;  %v17481_v33 = vrot.slane %v4234_v1, 7  ;;  %v16226_v1 = vld [vmem:[#allocation2 + $0x48] sm:$0xf]  ;;  %22247 = vst [vmem:[#allocation104_spill] sm:$0xff] %v17498_v44  ;;  %v17514_v42 = vcombine.low %v16230_v3, %v16231_v60  ;;  %v22250_v7 = vshrl.u32 %v17317_v32, 16  ;;  %v4261_v54 = vshrl.u32 %v17489_v5, 16 }
 0x109   : > { %14906 = vmatprep.subr.bf16.mxu0 %v16008_v4  ;;  %v17495_v18 = vcombine.low %v16227_v38, %v16226_v1  ;;  %22248 = vst [vmem:[#allocation105_spill] sm:$0xff] %v17500_v23  ;;  %v4255_v1 = vshll.u32 %v17472_v27, 16  ;;  %v22251_v3 = vshrl.u32 %v17335_v58, 16  ;;  %vm17529_vm5 = vcmp.ne.s32.totalorder %v458_v29, 15  ;;  %v16234_v58 = vld [vmem:[#allocation2 + $0x64] sm:$0xf] }
 0x10a   : > { %14773 = vmatmul.mubr.bf16.vlgmr.msra.gmra.mxu1 %v17199_v52  ;;  %v4241_v38 = vrot.slane %v17481_v33, 4  ;;  %22249 = vst [vmem:[#allocation106_spill] sm:$0xff] %v17514_v42  ;;  %v4612_v56 = vor.u32 %v17384_v10, %v22250_v7  ;;  %v16232_v52 = vld [vmem:[#allocation2 + $0x5c] sm:$0xf]  ;;  %v4654_v10 = vshll.u32 %v17500_v23, 16  ;;  %v17536_v7 = vrot.slane %v968_v9, %v16416_v17 }
 0x10b   : > { %14853 = vmatpush3.bf16.msra.mxu1 %v17247_v0  ;;  %14776 = vmatprep.mubr.bf16.mxu1 %v17267_v41  ;;  %22246 = vst [vmem:[#allocation103_spill] sm:$0xff] %v17495_v18  ;;  %v4252_v0 = vshrl.u32 %v17472_v27, 16  ;;  %v4620_v60 = vor.u32 %v22251_v3, %v17390_v36  ;;  %v4264_v27 = vshll.u32 %v17489_v5, 16  ;;  %v4239_v29 = vor.u32 %v4237_v49, %v17481_v33  ;;  %v16010_v33 = vld [vmem:[#allocation6 + $0x1d8] sm:$0xff]  }
 0x10c   : > { %14854 = vmatprep.subr.bf16.mxu1 %v16003_v55  ;;  %14907 = vmatpush3.bf16.msra.mxu0 %v16008_v4  ;;  %v17507_v4 = vrot.slane %v968_v9, %v16423_v21  ;;  %v472_v3 = vand.u32 15, %v282_v15  ;;  %v17547_v9 = vsel %vm4605_vm4, %v4612_v56, %v17390_v36  ;;  %v4248_v5 = vor.u32 %v4246_v30, %v17502_v50 }
 0x10d   : > { %14908 = vmatprep.subr.bf16.mxu0 %v16011_v22  ;;  %v17527_v11 = vrot.slane %v4252_v0, 7  ;;  %v22254_v49 = vshll.u32 %v17449_v48, 16  ;;  %v284_v36 = vadd.s32 216, %v16404_v2  ;;  %v4279_v56 = vshrl.u32 %v17536_v7, 16 }
 0x10e   : > { %vm17580_vm7 = vcmp.ne.s32.totalorder %v472_v3, 15  ;;  %v17585_v30 = vrot.slane %v4654_v10, 1  ;;  %v16012_v3 = vld [vmem:[#allocation6 + $0x1d0] sm:$0xff]   ;;  %v4273_v10 = vshll.u32 %v17507_v4, 16 }
 0x10f   : > { %14855 = vmatpush3.bf16.msra.mxu1 %v16003_v55  ;;  %14829 = vmatmul.mubr.bf16.gmra.mxu0 %v17121_v26  ;;  %v17522_v55 = vcombine.low %v16232_v52, %v16233_v46  ;;  %v969_v46 = vpack.c.bf16 %v12961_v31, %v22170_v19  ;;  %v16235_v52 = vld [vmem:[#allocation2 + $0x68] sm:$0xf]  ;;  %v17550_v31 = vrot.slane %v4261_v54, 7  ;;  %v17557_v15 = vrot.slane %v22254_v49, 1 }
 0x110   : > { %14856 = vmatprep.subr.bf16.mxu1 %v16005_v28  ;;  %14832 = vmatprep.mubr.bf16.mxu0 %v17125_v14  ;;  %v17540_v0 = vcombine.low %v16234_v58, %v16235_v52  ;;  %v12962_v58 = vsel %vm17529_vm5, 1.0, %v22169_v20  ;;  %v4257_v52 = vor.u32 %v4255_v1, %v17527_v11  ;;  %v17564_v54 = vsel %vm4605_vm4, %v4620_v60, %v17435_v12  ;;  %v16017_v49 = vld [vmem:[#allocation6 + $0x80] sm:$0xff]  }
 0x111   : > { %14909 = vmatpush3.bf16.msra.mxu0 %v16011_v22  ;;  %v4270_v22 = vshrl.u32 %v17507_v4, 16  ;;  %22255 = vst [vmem:[#allocation107_spill] sm:$0xff] %v17557_v15  ;;  %v17569_v32 = vrot.slane %v969_v46, %v16423_v21  ;;  %v970_v60 = vpack.c.bf16 %v12962_v58, %v22170_v19  ;;  %22260 = vst [vmem:[#allocation109_spill] sm:$0xff] %v17585_v30  ;;  %v17594_v58 = vld [vmem:[#allocation2 + $0x3c] sm:$0xf]  ;;  %v17614_v4 = vld [vmem:[#allocation6 + $0x238] sm:$0xff]  }
 0x112   : > { %14777 = vmatmul.mubr.bf16.gmra.mxu1 %v17269_v34  ;;  %14910 = vmatprep.subr.bf16.mxu0 %v16013_v61  ;;  %v17607_v45 = vrot.slane %v969_v46, %v16416_v17 }
 0x113   : > { %14780 = vmatprep.mubr.bf16.mxu1 %v17418_v8  ;;  %14857 = vmatpush3.bf16.msra.mxu1 %v16005_v28  ;;  %v4250_v28 = vrot.slane %v17502_v50, 4  ;;  %v22256_v50 = vrot.slane %v17406_v13, 4  ;;  %v17589_v13 = vsel %vm17256_vm15, %v4241_v38, %v4248_v5  ;;  %v486_v38 = vand.u32 15, %v284_v36  ;;  %v3813_v5 = vld [vmem:[#allocation2 + $0x40] sm:$0xf] }
 0x114   : > { %14858 = vmatprep.subr.bf16.mxu1 %v16007_v6  ;;  %22261 = vst [vmem:[#allocation110_spill] sm:$0xff] %v17589_v13  ;;  %v4288_v63 = vshrl.u32 %v17569_v32, 16  ;;  %v4282_v36 = vshll.u32 %v17536_v7, 16  ;;  %v17621_v46 = vrot.slane %v970_v60, %v16423_v21 }
 0x115   : > { %14911 = vmatpush3.bf16.msra.mxu0 %v16013_v61  ;;  %v17575_v1 = vsel %vm17256_vm15, %v22256_v50, %v4239_v29  ;;  %v17577_v61 = vrot.slane %v4270_v22, 7  ;;  %v4259_v29 = vrot.slane %v17527_v11, 4  ;;  %v4266_v22 = vor.u32 %v4264_v27, %v17550_v31  ;;  %v17602_v11 = vld [vmem:[#allocation2 + $0x44] sm:$0xf] }
 0x116   : > { %14912 = vmatprep.subr.bf16.mxu0 %v16015_v51  ;;  %22257 = vst [vmem:[#allocation108_spill] sm:$0xff] %v17575_v1  ;;  %v17598_v50 = vsel %vm17256_vm15, %v4250_v28, %v4257_v52  ;;  %v17604_v27 = vrot.slane %v4279_v56, 7  ;;  %v12963_v28 = vsel %vm17580_vm7, 1.0, %v22169_v20  ;;  %v286_v56 = vadd.s32 232, %v16404_v2 }
 0x117   : > { %14833 = vmatmul.mubr.bf16.gmra.mxu0 %v17495_v18  ;;  %14859 = vmatpush3.bf16.msra.mxu1 %v16007_v6  ;;  %22262 = vst [vmem:[#allocation111_spill] sm:$0xff] %v17598_v50  ;;  %v4268_v6 = vrot.slane %v17550_v31, 4  ;;  %v16014_v31 = vld [vmem:[#allocation6 + $0x1c8] sm:$0xff]   ;;  %v17627_v39 = vsel %vm17256_vm15, %v4259_v29, %v4266_v22  ;;  %v17632_v52 = vrot.slane %v970_v60, %v16416_v17  ;;  %vm17636_vm8 = vcmp.ne.s32.totalorder %v486_v38, 15 }
 0x118   : > { %14836 = vmatprep.mubr.bf16.mxu0 %v17498_v44  ;;  %14860 = vmatprep.subr.bf16.mxu1 %v16010_v33  ;;  %22263 = vst [vmem:[#allocation112_spill] sm:$0xff] %v17627_v39  ;;  %v4286_v59 = vrot.slane %v17604_v27, 4  ;;  %v4275_v7 = vor.u32 %v4273_v10, %v17577_v61  ;;  %v971_v8 = vpack.c.bf16 %v12963_v28, %v22170_v19  ;;  %v22266_v29 = vshrl.u32 %v17386_v24, 16  ;;  %v16016_v28 = vld [vmem:[#allocation6 + $0x1c0] sm:$0xff]  }
 0x119   : > { %14913 = vmatpush3.bf16.msra.mxu0 %v16015_v51  ;;  %v17616_v51 = vld [vmem:[#allocation2 + $0x48] sm:$0xf]  ;;  %v17648_v60 = vrot.slane %v4288_v63, 7  ;;  %v4297_v10 = vshrl.u32 %v17607_v45, 16  ;;  %v4483_v38 = vmul.bf16 %v17589_v13, %v3813_v5  ;;  %v500_v24 = vand.u32 15, %v286_v56 }
 0x11a   : > { %14781 = vmatmul.mubr.bf16.gmra.mxu1 %v17443_v25  ;;  %14914 = vmatprep.subr.bf16.mxu0 %v16017_v49  ;;  %v4291_v25 = vshll.u32 %v17569_v32, 16  ;;  %v17644_v22 = vor.u32 %v22266_v29, %v17435_v12  ;;  %v4482_v32 = vmul.bf16 %v17575_v1, %v17594_v58  ;;  %v4485_v63 = vmul.bf16 %v17627_v39, %v17616_v51  ;;  %v17676_v29 = vld [vmem:[#allocation2 + $0x4c] sm:$0xf] }
 0x11b   : > { %14784 = vmatprep.mubr.bf16.mxu1 %v17121_v26  ;;  %14861 = vmatpush3.bf16.msra.mxu1 %v16010_v33  ;;  %v288_v33 = vadd.s32 248, %v16404_v2  ;;  %v4306_v26 = vshrl.u32 %v17621_v46, 16  ;;  %v4284_v12 = vor.u32 %v4282_v36, %v17604_v27  ;;  %v4315_v58 = vshrl.u32 %v17632_v52, 16 }
 0x11c   : > { %14862 = vmatprep.subr.bf16.mxu1 %v16012_v3  ;;  %v12964_v5 = vsel %vm17636_vm8, 1.0, %v22169_v20  ;;  %vm880_vm10 = vcmp.ne.s32.totalorder %v500_v24, 15  ;;  %v4293_v27 = vor.u32 %v4291_v25, %v17648_v60  ;;  %v4299_v36 = vrot.slane %v4297_v10, 7 }
 0x11d   : > { %14915 = vmatpush3.bf16.msra.mxu0 %v16017_v49  ;;  %v4484_v49 = vmul.bf16 %v17598_v50, %v17602_v11  ;;  %v17667_v11 = vsel %vm17256_vm15, %v4268_v6, %v4275_v7  ;;  %v514_v51 = vand.u32 15, %v288_v33  ;;  %v4300_v56 = vshll.u32 %v17607_v45, 16  ;;  %v17686_v45 = vld [vmem:[#allocation2 + $0x50] sm:$0xf] }
 0x11e   : > { %14996 = vmatprep.subr.bf16.mxu0 %v17614_v4  ;;  %22267 = vst [vmem:[#allocation113_spill] sm:$0xff] %v17667_v11  ;;  %v12965_v34 = vsel %vm880_vm10, 1.0, %v22169_v20  ;;  %v4308_v50 = vrot.slane %v4306_v26, 7  ;;  %v4309_v6 = vshll.u32 %v17621_v46, 16  ;;  %v17680_v7 = vrot.slane %v971_v8, %v16416_v17  ;;  %v17692_v46 = vld [vmem:[#allocation6 + $0x178] sm:$0xff]  }
 0x11f   : > { %14837 = vmatmul.mubr.bf16.gmra.mxu0 %v17514_v42  ;;  %14863 = vmatpush3.bf16.msra.mxu1 %v16012_v3  ;;  %v17670_v3 = vrot.slane %v971_v8, %v16423_v21  ;;  %v972_v24 = vpack.c.bf16 %v12964_v5, %v22170_v19  ;;  %v17684_v25 = vcombine.low %v4482_v32, %v4483_v38  ;;  %v4295_v33 = vrot.slane %v17648_v60, 4  ;;  %v17694_v8 = vld [vmem:[#allocation2 + $0x54] sm:$0xf] }
 0x120   : > { %14840 = vmatprep.mubr.bf16.mxu0 %v17522_v55  ;;  %14864 = vmatprep.subr.bf16.mxu1 %v16014_v31  ;;  %v17689_v10 = vrot.slane %v4315_v58, 7  ;;  %v4318_v26 = vshll.u32 %v17632_v52, 16  ;;  %22268 = vst [vmem:[#allocation114_spill] sm:$0xff] %v17692_v46  ;;  %v4304_v39 = vrot.slane %v4299_v36, 4  ;;  %vm882_vm11 = vcmp.ne.s32.totalorder %v514_v51, 15 }
 0x121   : > { %v4324_v5 = vshrl.u32 %v17670_v3, 16  ;;  %v17698_v32 = vcombine.low %v4484_v49, %v4485_v63  ;;  %v22269_v38 = vrot.slane %v17577_v61, 4  ;;  %v4302_v58 = vor.u32 %v4300_v56, %v4299_v36 }
 0x122   : > { %14785 = vmatmul.mubr.bf16.gmra.mxu1 %v17125_v14  ;;  %v17710_v1 = vsel %vm17256_vm15, %v4286_v59, %v4293_v27  ;;  %v4311_v13 = vor.u32 %v4309_v6, %v4308_v50  ;;  %v17714_v49 = vrot.slane %v972_v24, %v16423_v21  ;;  %v4313_v61 = vrot.slane %v4308_v50, 4 }
 0x123   : > { %14788 = vmatprep.mubr.bf16.mxu1 %v17495_v18  ;;  %14865 = vmatpush3.bf16.msra.mxu1 %v16014_v31  ;;  %v973_v31 = vpack.c.bf16 %v12965_v34, %v22170_v19  ;;  %v17704_v60 = vsel %vm17256_vm15, %v22269_v38, %v4284_v12  ;;  %22271 = vst [vmem:[#allocation116_spill] sm:$0xff] %v17710_v1  ;;  %v4333_v34 = vshrl.u32 %v17680_v7, 16  ;;  %v12966_v51 = vsel %vm882_vm11, 1.0, %v22169_v20 }
 0x124   : > { %14866 = vmatprep.subr.bf16.mxu1 %v16016_v28  ;;  %22270 = vst [vmem:[#allocation115_spill] sm:$0xff] %v17704_v60  ;;  %v4320_v63 = vor.u32 %v4318_v26, %v17689_v10  ;;  %v17719_v12 = vrot.slane %v972_v24, %v16416_v17  ;;  %v4326_v6 = vrot.slane %v4324_v5, 7  ;;  %v4327_v24 = vshll.u32 %v17670_v3, 16 }
 0x125   : > { %v4055_v36 = vrot.slane %v973_v31, %v16423_v21  ;;  %v4062_v50 = vrot.slane %v973_v31, %v16416_v17  ;;  %v17737_v26 = vrot.slane %v4333_v34, 7  ;;  %v4336_v38 = vshll.u32 %v17680_v7, 16  ;;  %v17753_v34 = vld [vmem:[#allocation2 + $0x58] sm:$0xf]  ;;  %v17755_v7 = vld [vmem:[#allocation2 + $0x5c] sm:$0xf] }
 0x126   : > { %v4342_v59 = vshrl.u32 %v17714_v49, 16  ;;  %v974_v31 = vpack.c.bf16 %v12966_v51, %v22170_v19  ;;  %v17749_v5 = vsel %vm17256_vm15, %v4313_v61, %v4320_v63  ;;  %v4322_v3 = vrot.slane %v17689_v10, 4 }
 0x127   : > { %14841 = vmatmul.mubr.bf16.gmra.mxu0 %v17540_v0  ;;  %14867 = vmatpush3.bf16.msra.mxu1 %v16016_v28  ;;  %v17731_v28 = vsel %vm17256_vm15, %v4295_v33, %v4302_v58  ;;  %v17745_v33 = vsel %vm17256_vm15, %v4304_v39, %v4311_v13  ;;  %22274 = vst [vmem:[#allocation119_spill] sm:$0xff] %v17749_v5  ;;  %v4351_v58 = vshrl.u32 %v17719_v12, 16  ;;  %v4360_v56 = vshrl.u32 %v4055_v36, 16  ;;  %v17759_v13 = vld [vmem:[#allocation2 + $0x60] sm:$0xf] }
 0x128   : > { %14844 = vmatprep.mubr.bf16.mxu0 %v17132_v62  ;;  %14948 = vmatprep.subr.bf16.mxu1 %v17692_v46  ;;  %22272 = vst [vmem:[#allocation117_spill] sm:$0xff] %v17731_v28  ;;  %22273 = vst [vmem:[#allocation118_spill] sm:$0xff] %v17745_v33  ;;  %v4369_v51 = vshrl.u32 %v4062_v50, 16  ;;  %v4069_v52 = vrot.slane %v974_v31, %v16423_v21  ;;  %v4076_v27 = vrot.slane %v974_v31, %v16416_v17 }
 0x129   : > { %v4331_v39 = vrot.slane %v4326_v6, 4  ;;  %v4345_v61 = vshll.u32 %v17714_v49, 16  ;;  %v4354_v63 = vshll.u32 %v17719_v12, 16  ;;  %v290_v10 = vadd.s32 264, %v16404_v2 }
 0x12a   : > { %14789 = vmatmul.mubr.bf16.gmra.mxu1 %v17498_v44  ;;  %v4338_v44 = vor.u32 %v4336_v38, %v17737_v26  ;;  %v4344_v18 = vrot.slane %v4342_v59, 7  ;;  %v4378_v14 = vshrl.u32 %v4069_v52, 16  ;;  %v4353_v46 = vrot.slane %v4351_v58, 7  ;;  %v3822_v59 = vld [vmem:[#allocation2 + $0x64] sm:$0xf] }
 0x12b   : > { %14792 = vmatprep.mubr.bf16.mxu1 %v17514_v42  ;;  %v4329_v42 = vor.u32 %v4327_v24, %v4326_v6  ;;  %v4363_v23 = vshll.u32 %v4055_v36, 16  ;;  %v4372_v30 = vshll.u32 %v4062_v50, 16  ;;  %v4387_v31 = vshrl.u32 %v4076_v27, 16 }
 0x12c   : > { %v4362_v17 = vrot.slane %v4360_v56, 7  ;;  %v4371_v48 = vrot.slane %v4369_v51, 7  ;;  %v4381_v49 = vshll.u32 %v4069_v52, 16  ;;  %v4390_v15 = vshll.u32 %v4076_v27, 16  ;;  %v3823_v56 = vld [vmem:[#allocation2 + $0x68] sm:$0xf] }
 0x12d   : > { %v4489_v12 = vmul.bf16 %v17731_v28, %v17753_v34  ;;  %v4490_v6 = vmul.bf16 %v17745_v33, %v17755_v7  ;;  %v4380_v24 = vrot.slane %v4378_v14, 7  ;;  %v17771_v38 = vrot.slane %v4387_v31, 7 }
 0x12e   : > { %v4491_v36 = vmul.bf16 %v17749_v5, %v17759_v13  ;;  %v17778_v50 = vsel %vm17256_vm15, %v4322_v3, %v4329_v42  ;;  %v4340_v52 = vrot.slane %v17737_v26, 4  ;;  %v528_v27 = vand.u32 15, %v290_v10  ;;  %v3824_v5 = vld [vmem:[#allocation2 + $0x6c] sm:$0xf]  ;;  %v3825_v42 = vld [vmem:[#allocation2 + $0x70] sm:$0xf] }
 0x12f   : > { %14845 = vmatmul.mubr.bf16.gmra.mxu0 %v17137_v40  ;;  %22275 = vst [vmem:[#allocation120_spill] sm:$0xff] %v17778_v50  ;;  %v17784_v14 = vsel %vm17256_vm15, %v4331_v39, %v4338_v44  ;;  %v4347_v58 = vor.u32 %v4345_v61, %v4344_v18  ;;  %v4349_v34 = vrot.slane %v4344_v18, 4  ;;  %v4356_v7 = vor.u32 %v4354_v63, %v4353_v46 }
 0x130   : > { %14848 = vmatprep.mubr.bf16.mxu0 %v17141_v35  ;;  %22276 = vst [vmem:[#allocation121_spill] sm:$0xff] %v17784_v14  ;;  %v4358_v51 = vrot.slane %v4353_v46, 4  ;;  %v4365_v31 = vor.u32 %v4363_v23, %v4362_v17  ;;  %v4367_v13 = vrot.slane %v4362_v17, 4  ;;  %v4374_v33 = vor.u32 %v4372_v30, %v4371_v48  ;;  %v3826_v23 = vld [vmem:[#allocation2 + $0x74] sm:$0xf] }
 0x131   : > { %v4376_v3 = vrot.slane %v4371_v48, 4  ;;  %v4383_v28 = vor.u32 %v4381_v49, %v4380_v24  ;;  %v4385_v26 = vrot.slane %v4380_v24, 4  ;;  %v4392_v10 = vor.u32 %v4390_v15, %v17771_v38  ;;  %v3827_v30 = vld [vmem:[#allocation2 + $0x78] sm:$0xf]  ;;  %v3828_v46 = vld [vmem:[#allocation2 + $0x7c] sm:$0xf] }
 0x132   : > { %14793 = vmatmul.mubr.bf16.gmra.mxu1 %v17522_v55  ;;  %v22277_v2 = vmul.bf16 %v17704_v60, %v17686_v45  ;;  %v22278_v44 = vmul.bf16 %v17667_v11, %v17676_v29  ;;  %v4492_v18 = vmul.bf16 %v17778_v50, %v3822_v59  ;;  %v4493_v17 = vmul.bf16 %v17784_v14, %v3823_v56 }
 0x133   : > { %14796 = vmatprep.mubr.bf16.mxu1 %v17540_v0  ;;  %vm17797_vm12 = vcmp.ne.s32.totalorder %v528_v27, 15  ;;  %v4670_v45 = vshll.u32 %v17698_v32, 16  ;;  %v17810_v29 = vsel %vm17256_vm15, %v4349_v34, %v4356_v7  ;;  %v22283_v61 = vshll.u32 %v17684_v25, 16  ;;  %v3829_v27 = vld [vmem:[#allocation2 + $0x80] sm:$0xf] }
 0x134   : > { %v17793_v39 = vcombine.low %v22278_v44, %v22277_v2  ;;  %v17806_v2 = vsel %vm17256_vm15, %v4340_v52, %v4347_v58  ;;  %22282 = vst [vmem:[#allocation123_spill] sm:$0xff] %v17810_v29  ;;  %v22284_v49 = vmul.bf16 %v17710_v1, %v17694_v8  ;;  %v17824_v24 = vsel %vm17256_vm15, %v4358_v51, %v4365_v31  ;;  %v16021_v31 = vld [vmem:[#allocation6 + $0x230] sm:$0xff]  }
 0x135   : > { %22281 = vst [vmem:[#allocation122_spill] sm:$0xff] %v17806_v2  ;;  %v17815_v63 = vrot.slane %v22283_v61, 1  ;;  %22285 = vst [vmem:[#allocation124_spill] sm:$0xff] %v17824_v24  ;;  %v17828_v52 = vsel %vm17256_vm15, %v4367_v13, %v4374_v33  ;;  %v17830_v56 = vcombine.low %v4490_v6, %v4491_v36  ;;  %v17838_v8 = vsel %vm17256_vm15, %v4385_v26, %v4392_v10  ;;  %v22294_v61 = vld [vmem:[#allocation109_spill] sm:$0xff] }
 0x136   : > { %v17820_v59 = vcombine.low %v22284_v49, %v4489_v12  ;;  %22286 = vst [vmem:[#allocation125_spill] sm:$0xff] %v17828_v52  ;;  %22288 = vst [vmem:[#allocation127_spill] sm:$0xff] %v17838_v8  ;;  %v12967_v12 = vsel %vm17797_vm12, 1.0, %v22169_v20  ;;  %v4678_v33 = vshll.u32 %v17793_v39, 16  ;;  %v17845_v58 = vcombine.low %v4492_v18, %v4493_v17 }
 0x137   : > { %14849 = vmatmul.mubr.bf16.gmra.mxu0 %v17145_v16  ;;  %v4494_v6 = vmul.bf16 %v17806_v2, %v3824_v5  ;;  %v4495_v36 = vmul.bf16 %v17810_v29, %v3825_v42  ;;  %v4496_v7 = vmul.bf16 %v17824_v24, %v3826_v23  ;;  %v4497_v51 = vmul.bf16 %v17828_v52, %v3827_v30  ;;  %v22315_v52 = vld [vmem:[#allocation106_spill] sm:$0xff] }
 0x138   : > { %14916 = vmatprep.mubr.bf16.mxu0 %v17547_v9  ;;  %v17834_v9 = vsel %vm17256_vm15, %v4376_v3, %v4383_v28  ;;  %v17850_v28 = vrot.slane %v4670_v45, 1  ;;  %v4686_v13 = vshll.u32 %v17820_v59, 16  ;;  %v4499_v26 = vmul.bf16 %v17838_v8, %v3829_v27  ;;  %v16023_v45 = vld [vmem:[#allocation6 + $0x228] sm:$0xff]   ;;  %v22299_v8 = vld [vmem:[#allocation98_spill] sm:$0xff] }
 0x139   : > { %22287 = vst [vmem:[#allocation126_spill] sm:$0xff] %v17834_v9  ;;  %v4498_v3 = vmul.bf16 %v17834_v9, %v3828_v46  ;;  %v17859_v5 = vpack.c.bf16 %v12967_v12, %v22170_v19  ;;  %v17864_v42 = vsel %vm4605_vm4, %v17644_v22, %v17445_v47  ;;  %v4694_v44 = vshll.u32 %v17830_v56, 16  ;;  %v22298_v9 = vld [vmem:[#allocation114_spill] sm:$0xff] }
 0x13a   : > { %14797 = vmatmul.mubr.bf16.gmra.mxu1 %v17132_v62  ;;  %v17868_v18 = vrot.slane %v4678_v33, 1  ;;  %v4702_v17 = vshll.u32 %v17845_v58, 16  ;;  %v17871_v23 = vcombine.low %v4494_v6, %v4495_v36  ;;  %v22289_v30 = vshrl.u32 %v17392_v37, 16  ;;  %v16025_v36 = vld [vmem:[#allocation6 + $0x220] sm:$0xff]   ;;  %v17934_v33 = vpop.f32.mrf.mxu0 }
 0x13b   : > { %14800 = vmatprep.mubr.bf16.mxu1 %v17137_v40  ;;  %v17877_v46 = vcombine.low %v4496_v7, %v4497_v51  ;;  %v17881_v22 = vrot.slane %v4686_v13, 1  ;;  %v17884_v49 = vcombine.low %v4498_v3, %v4499_v26  ;;  %v17888_v27 = vrot.slane %v17859_v5, %v16423_v21  ;;  %v22291_v26 = vld [vmem:[#allocation107_spill] sm:$0xff] }
 0x13c   : > { %v4636_v48 = vor.u32 %v22289_v30, %v17445_v47  ;;  %v22290_v37 = vshrl.u32 %v17421_v53, 16  ;;  %v17893_v12 = vrot.slane %v4694_v44, 1  ;;  %v4710_v6 = vshll.u32 %v17871_v23, 16 }
 0x13d   : > { %v17900_v7 = vrot.slane %v4702_v17, 1  ;;  %v4718_v51 = vshll.u32 %v17877_v46, 16  ;;  %v4726_v13 = vshll.u32 %v17884_v49, 16  ;;  %v4396_v3 = vshrl.u32 %v17888_v27, 16  ;;  %v22295_v17 = vld [vmem:[#allocation105_spill] sm:$0xff] }
 0x13e   : > { %v4644_v47 = vor.u32 %v22290_v37, %v17469_v57  ;;  %v17905_v53 = vsel %vm4605_vm4, %v4636_v48, %v17469_v57  ;;  %v17913_v30 = vrot.slane %v4710_v6, 1  ;;  %v16027_v37 = vld [vmem:[#allocation6 + $0x218] sm:$0xff]   ;;  %v22296_v10 = vshrl.u32 %v22295_v17, 16  ;;  %v16022_v48 = vld [vmem:[#allocation6 + $0x168] sm:$0xff]   ;;  %v17957_v17 = vpop.f32.mrf.mxu1 }
 0x13f   : > { %14917 = vmatmul.mubr.bf16.vlgmr.msra.gmra.mxu0 %v17564_v54  ;;  %v17917_v57 = vrot.slane %v4718_v51, 1  ;;  %v17929_v51 = vrot.slane %v4726_v13, 1  ;;  %v17931_v15 = vrot.slane %v4396_v3, 7  ;;  %v16024_v13 = vld [vmem:[#allocation6 + $0x160] sm:$0xff]   ;;  %v17946_v3 = vpop.f32.mrf.mxu0 }
 0x140   : > { %14997 = vmatpush3.bf16.msra.mxu0 %v17614_v4  ;;  %14920 = vmatprep.mubr.bf16.mxu0 %v17864_v42  ;;  %v17911_v44 = vsel %vm4605_vm4, %v4644_v47, %v22291_v26  ;;  %v22292_v47 = vld [vmem:[#allocation100_spill] sm:$0xff]  ;;  %v4660_v34 = vor.u32 %v22296_v10, %v22294_v61  ;;  %v16029_v10 = vld [vmem:[#allocation6 + $0x210] sm:$0xff]  }
 0x141   : > { %14998 = vmatprep.subr.bf16.mxu0 %v16021_v31  ;;  %v22293_v4 = vshrl.u32 %v22292_v47, 16  ;;  %v22303_v47 = vld [vmem:[#allocation81_spill] sm:$0xff] }
 0x142   : > { %14801 = vmatmul.mubr.bf16.gmra.mxu1 %v17141_v35 }
 0x143   : > { %14868 = vmatprep.mubr.bf16.mxu1 %v17267_v41  ;;  %v16020_v41 = vld [vmem:[#allocation6 + $0x170] sm:$0xff]   ;;  %v4652_v6 = vor.u32 %v22293_v4, %v22291_v26  ;;  %v17944_v4 = vsel %vm4605_vm4, %v4660_v34, %v17815_v63  ;;  %v22302_v26 = vld [vmem:[#allocation99_spill] sm:$0xff] }
 0x144   : > { %14999 = vmatpush3.bf16.msra.mxu0 %v16021_v31  ;;  %v22297_v31 = vld [vmem:[#allocation86_spill] sm:$0xff] }
 0x145   : > { %15000 = vmatprep.subr.bf16.mxu0 %v16023_v45 }
 0x147   : > { %14921 = vmatmul.mubr.bf16.gmra.mxu0 %v17905_v53 }
 0x148   : > { %14924 = vmatprep.mubr.bf16.mxu0 %v17911_v44  ;;  %15001 = vmatpush3.bf16.msra.mxu0 %v16023_v45  ;;  %v17940_v45 = vsel %vm4605_vm4, %v4652_v6, %v22294_v61  ;;  %v16031_v61 = vld [vmem:[#allocation6 + $0x208] sm:$0xff]  }
 0x149   : > { %15002 = vmatprep.subr.bf16.mxu0 %v16025_v36 }
 0x14a   : > { %14869 = vmatmul.mubr.bf16.vlgmr.msra.gmra.mxu1 %v22297_v31  ;;  %v17959_v31 = vpop.f32.mrf.mxu0 }
 0x14b   : > { %14949 = vmatpush3.bf16.msra.mxu1 %v22298_v9  ;;  %14872 = vmatprep.mubr.bf16.mxu1 %v22299_v8  ;;  %v22300_v9 = vshrl.u32 %v17684_v25, 16 }
 0x14c   : > { %14950 = vmatprep.subr.bf16.mxu1 %v16020_v41  ;;  %15003 = vmatpush3.bf16.msra.mxu0 %v16025_v36  ;;  %v22301_v36 = vshrl.u32 %v17698_v32, 16  ;;  %v17972_v6 = vpop.f32.mrf.mxu0 }
 0x14d   : > { %15004 = vmatprep.subr.bf16.mxu0 %v16027_v37  ;;  %v4668_v8 = vor.u32 %v22300_v9, %v17815_v63  ;;  %v16034_v63 = vld [vmem:[#allocation6 + $0x200] sm:$0xff]   ;;  %v16028_v9 = vld [vmem:[#allocation6 + $0x150] sm:$0xff]  }
 0x14e   : > { %v4676_v34 = vor.u32 %v22301_v36, %v17850_v28  ;;  %v22306_v36 = vld [vmem:[#allocation82_spill] sm:$0xff] }
 0x14f   : > { %14951 = vmatpush3.bf16.msra.mxu1 %v16020_v41  ;;  %14925 = vmatmul.mubr.bf16.gmra.mxu0 %v17940_v45  ;;  %v16026_v41 = vld [vmem:[#allocation6 + $0x158] sm:$0xff]   ;;  %v17964_v25 = vsel %vm4605_vm4, %v4668_v8, %v17850_v28  ;;  %v22304_v28 = vshrl.u32 %v17793_v39, 16  ;;  %v22305_v8 = vshrl.u32 %v17820_v59, 16 }
 0x150   : > { %14952 = vmatprep.subr.bf16.mxu1 %v16022_v48  ;;  %14928 = vmatprep.mubr.bf16.mxu0 %v17944_v4  ;;  %v17968_v32 = vsel %vm4605_vm4, %v4676_v34, %v17868_v18 }
 0x151   : > { %15005 = vmatpush3.bf16.msra.mxu0 %v16027_v37  ;;  %v17970_v37 = vpop.f32.mrf.mxu1 }
 0x152   : > { %14873 = vmatmul.mubr.bf16.gmra.mxu1 %v22302_v26  ;;  %15006 = vmatprep.subr.bf16.mxu0 %v16029_v10  ;;  %v17985_v26 = vpop.f32.mrf.mxu0 }
 0x153   : > { %14876 = vmatprep.mubr.bf16.mxu1 %v22303_v47  ;;  %14953 = vmatpush3.bf16.msra.mxu1 %v16022_v48  ;;  %v4684_v48 = vor.u32 %v22304_v28, %v17868_v18  ;;  %v17983_v34 = vpop.f32.mrf.mxu1  ;;  %v16030_v47 = vld [vmem:[#allocation6 + $0x148] sm:$0xff]   ;;  %v22308_v18 = vshll.u32 %v17888_v27, 16  ;;  %v22311_v27 = vshrl.u32 %v17845_v58, 16 }
 0x154   : > { %14954 = vmatprep.subr.bf16.mxu1 %v16024_v13 }
 0x155   : > { %15007 = vmatpush3.bf16.msra.mxu0 %v16029_v10  ;;  %v4692_v10 = vor.u32 %v22305_v8, %v17881_v22  ;;  %v17990_v39 = vsel %vm4605_vm4, %v4684_v48, %v17881_v22  ;;  %v17999_v28 = vpop.f32.mrf.mxu1  ;;  %v18001_v8 = vpop.f32.mrf.mxu0  ;;  %v3830_v22 = vld [vmem:[#allocation2 + $0x84] sm:$0xf] }
 0x156   : > { %15008 = vmatprep.subr.bf16.mxu0 %v16031_v61  ;;  %22309 = vst [vmem:[#allocation107_spill] sm:$0xff] %v17999_v28 }
 0x157   : > { %14929 = vmatmul.mubr.bf16.gmra.mxu0 %v17964_v25  ;;  %14955 = vmatpush3.bf16.msra.mxu1 %v16024_v13  ;;  %v22307_v13 = vld [vmem:[#allocation103_spill] sm:$0xff]  ;;  %v17994_v59 = vsel %vm4605_vm4, %v4692_v10, %v17893_v12  ;;  %v22312_v10 = vrot.slane %v17771_v38, 4  ;;  %v18020_v24 = vpop.f32.mrf.mxu0 }
 0x158   : > { %14932 = vmatprep.mubr.bf16.mxu0 %v17968_v32  ;;  %14956 = vmatprep.subr.bf16.mxu1 %v16026_v41 }
 0x159   : > { %15009 = vmatpush3.bf16.msra.mxu0 %v16031_v61  ;;  %v4401_v61 = vor.u32 %v22308_v18, %v17931_v15  ;;  %v22314_v18 = vld [vmem:[#allocation104_spill] sm:$0xff] }
 0x15a   : > { %14877 = vmatmul.mubr.bf16.gmra.mxu1 %v22306_v36  ;;  %15010 = vmatprep.subr.bf16.mxu0 %v16034_v63  ;;  %v16033_v36 = vld [vmem:[#allocation6 + $0x140] sm:$0xff]  }
 0x15b   : > { %14880 = vmatprep.mubr.bf16.mxu1 %v22307_v13  ;;  %14957 = vmatpush3.bf16.msra.mxu1 %v16026_v41  ;;  %v22310_v41 = vshrl.u32 %v17830_v56, 16  ;;  %v18015_v13 = vsel %vm17256_vm15, %v22312_v10, %v4401_v61  ;;  %v18036_v61 = vpop.f32.mrf.mxu0 }
 0x15c   : > { %14958 = vmatprep.subr.bf16.mxu1 %v16028_v9  ;;  %22313 = vst [vmem:[#allocation100_spill] sm:$0xff] %v18015_v13  ;;  %v18028_v58 = vmul.bf16 %v18015_v13, %v3830_v22  ;;  %v22317_v22 = vshrl.u32 %v17877_v46, 16  ;;  %v16237_v13 = vld [vmem:[#allocation2 + $0x90] sm:$0xf] }
 0x15d   : > { %15011 = vmatpush3.bf16.msra.mxu0 %v16034_v63  ;;  %v4700_v48 = vor.u32 %v22310_v41, %v17893_v12  ;;  %v4708_v63 = vor.u32 %v22311_v27, %v17900_v7 }
 0x15e   : > { %v4724_v41 = vor.u32 %v22317_v22, %v17917_v57 }
 0x15f   : > { %14933 = vmatmul.mubr.bf16.gmra.mxu0 %v17990_v39  ;;  %14959 = vmatpush3.bf16.msra.mxu1 %v16028_v9  ;;  %v18018_v9 = vpop.f32.mrf.mxu1  ;;  %v18025_v56 = vsel %vm4605_vm4, %v4700_v48, %v17900_v7  ;;  %v18032_v38 = vsel %vm4605_vm4, %v4708_v63, %v17913_v30 }
 0x160   : > { %14936 = vmatprep.mubr.bf16.mxu0 %v17994_v59  ;;  %14960 = vmatprep.subr.bf16.mxu1 %v16030_v47  ;;  %v18063_v46 = vsel %vm4605_vm4, %v4724_v41, %v17929_v51 }
 0x161   : > { %v18034_v12 = vpop.f32.mrf.mxu1 }
 0x162   : > { %14881 = vmatmul.mubr.bf16.gmra.mxu1 %v22314_v18 }
 0x163   : > { %14884 = vmatprep.mubr.bf16.mxu1 %v22315_v52  ;;  %14961 = vmatpush3.bf16.msra.mxu1 %v16030_v47  ;;  %v22316_v52 = vshrl.u32 %v17871_v23, 16  ;;  %v13072_v47 = vcombine.low %v18028_v58, %v18028_v58  ;;  %v18049_v48 = vpop.f32.mrf.mxu1 }
 0x164   : > { %14962 = vmatprep.subr.bf16.mxu1 %v16033_v36 }
 0x165   : > { %v4716_v7 = vor.u32 %v22316_v52, %v17913_v30  ;;  %v4730_v30 = vshrl.u32 %v17884_v49, 16  ;;  %v4734_v63 = vshll.u32 %v13072_v47, 16 }
 0x167   : > { %14937 = vmatmul.mubr.bf16.gmra.mxu0 %v18025_v56  ;;  %14963 = vmatpush3.bf16.msra.mxu1 %v16033_v36  ;;  %v18056_v36 = vsel %vm4605_vm4, %v4716_v7, %v17917_v57  ;;  %v4736_v57 = vrot.slane %v4734_v63, 1 }
 0x168   : > { %14940 = vmatprep.mubr.bf16.mxu0 %v18032_v38 }
 0x16a   : > { %14885 = vmatmul.mubr.bf16.gmra.mxu1 %v17522_v55  ;;  %v18065_v55 = vpop.f32.mrf.mxu1 }
 0x16b   : > { %v18051_v27 = vpop.f32.mrf.mxu0  ;;  %14888 = vmatprep.mubr.bf16.mxu1 %v17540_v0  ;;  %22318 = vst [vmem:[#allocation109_spill] sm:$0xff] %v18065_v55  ;;  %v18072_v0 = vor.u32 %v4730_v30, %v17929_v51  ;;  %v22319_v51 = vld [vmem:[#allocation12_spill] sm:$0xff] }
 0x16c   : > { %v292_v22 = vadd.s32 280, %v22319_v51 }
 0x16d   : > { %v18058_v23 = vpop.f32.mrf.mxu0  ;;  %v4737_v52 = vsel %vm4605_vm4, %v18072_v0, %v4736_v57 }
 0x16e   : > { %v542_v30 = vand.u32 15, %v292_v22 }
 0x16f   : > { %14941 = vmatmul.mubr.bf16.gmra.mxu0 %v18056_v36  ;;  %v18068_v10 = vpop.f32.mrf.mxu0 }
 0x170   : > { %14944 = vmatprep.mubr.bf16.mxu0 %v18063_v46  ;;  %vm886_vm13 = vcmp.ne.s32.totalorder %v542_v30, 15 }
 0x171   : > { %v18078_v18 = vpop.f32.mrf.mxu0  ;;  %v12968_v22 = vsel %vm886_vm13, 1.0, %v22169_v20 }
 0x172   : > { %14889 = vmatmul.mubr.bf16.gmra.mxu1 %v17132_v62 }
 0x173   : > { %v18075_v49 = vpop.f32.mrf.mxu1  ;;  %14892 = vmatprep.mubr.bf16.mxu1 %v17137_v40 }
 0x175   : > { %v18082_v7 = vpop.f32.mrf.mxu1 }
 0x177   : > { %v18084_v47 = vpop.f32.mrf.mxu0  ;;  %14945 = vmatmul.mubr.bf16.gmra.mxu0 %v4737_v52  ;;  %v18091_v62 = vpop.f32.mrf.mxu1  ;;  %v16236_v52 = vld [vmem:[#allocation2 + $0x8c] sm:$0xf] }
 0x178   : > { %15012 = vmatprep.mubr.bf16.mxu0 %v17864_v42  ;;  %22320 = vst [vmem:[#allocation105_spill] sm:$0xff] %v18091_v62  ;;  %v13047_v2 = vcombine.low %v16236_v52, %v16237_v13  ;;  %v976_v13 = vpack.c.bf16 %v12968_v22, %v22170_v19 }
 0x179   : > { %v18088_v41 = vpop.f32.mrf.mxu0  ;;  %v18098_v57 = vpop.f32.mrf.mxu1 }
 0x17a   : > { %14893 = vmatmul.mubr.bf16.gmra.mxu1 %v17141_v35  ;;  %22321 = vst [vmem:[#allocation86_spill] sm:$0xff] %v18098_v57  ;;  %v4097_v20 = vrot.slane %v976_v13, %v16423_v21 }
 0x17b   : > { %14896 = vmatprep.mubr.bf16.mxu1 %v17145_v16  ;;  %v18094_v40 = vpop.f32.mrf.mxu0 }
 0x17d   : > { %v18096_v63 = vpop.f32.mrf.mxu0 }
 0x17f   : > { %v14726_v29 = vpop.f32.mrf.mxu0  ;;  %15013 = vmatmul.mubr.bf16.vlgmr.msra.gmra.mxu0 %v17905_v53 }
 0x180   : > { %15016 = vmatprep.mubr.bf16.mxu0 %v17911_v44 }
 0x181   : > { %v2757_v35 = vpop.f32.mrf.mxu0 }
 0x182   : > { %v18102_v50 = vpop.f32.mrf.mxu1  ;;  %14897 = vmatmul.mubr.bf16.gmra.mxu1 %v13047_v2  ;;  %v22326_v2 = vld [vmem:[#allocation13_spill] sm:$0xff] }
 0x183   : > { %22322 = vst [vmem:[#allocation114_spill] sm:$0xff] %v18102_v50  ;;  %14964 = vmatprep.mubr.bf16.mxu1 %v17564_v54  ;;  %v14727_v16 = vpop.f32.mrf.mxu0  ;;  %v4090_v54 = vrot.slane %v17859_v5, %v22326_v2  ;;  %v4104_v55 = vrot.slane %v976_v13, %v22326_v2  ;;  %v4414_v50 = vshrl.u32 %v4097_v20, 16 }
 0x184   : > { %v18106_v14 = vpop.f32.mrf.mxu1 }
 0x185   : > { %22323 = vst [vmem:[#allocation98_spill] sm:$0xff] %v18106_v14  ;;  %v2760_v1 = vpop.f32.mrf.mxu0  ;;  %v4423_v62 = vshrl.u32 %v4104_v55, 16 }
 0x186   : > { %v18108_v11 = vpop.f32.mrf.mxu1 }
 0x187   : > { %22324 = vst [vmem:[#allocation99_spill] sm:$0xff] %v18108_v11  ;;  %v14730_v52 = vpop.f32.mrf.mxu0  ;;  %15017 = vmatmul.mubr.bf16.gmra.mxu0 %v17940_v45 }
 0x188   : > { %v18112_v30 = vpop.f32.mrf.mxu1  ;;  %15020 = vmatprep.mubr.bf16.mxu0 %v17944_v4 }
 0x189   : > { %22325 = vst [vmem:[#allocation81_spill] sm:$0xff] %v18112_v30  ;;  %v2773_v60 = vpop.f32.mrf.mxu0  ;;  %v4405_v30 = vshrl.u32 %v4090_v54, 16 }
 0x18a   : > { %v14678_v57 = vpop.f32.mrf.mxu1  ;;  %14965 = vmatmul.mubr.bf16.vlgmr.msra.gmra.mxu1 %v17864_v42 }
 0x18b   : > { %v2514_v19 = vadd.f32 %v14678_v57, %v17934_v33  ;;  %14968 = vmatprep.mubr.bf16.mxu1 %v17905_v53  ;;  %v14731_v22 = vpop.f32.mrf.mxu0  ;;  %v4407_v53 = vrot.slane %v4405_v30, 7  ;;  %v4408_v57 = vshll.u32 %v4090_v54, 16 }
 0x18c   : > { %v2505_v28 = vpop.f32.mrf.mxu1 }
 0x18d   : > { %v18122_v51 = vadd.f32 %v14726_v29, %v2514_v19  ;;  %v2506_v11 = vadd.f32 %v2505_v28, %v17946_v3  ;;  %v2776_v5 = vpop.f32.mrf.mxu0  ;;  %v4425_v19 = vrot.slane %v4423_v62, 7 }
 0x18e   : > { %v14679_v14 = vpop.f32.mrf.mxu1 }
 0x18f   : > { %v18125_v42 = vadd.f32 %v2757_v35, %v2506_v11  ;;  %v2517_v21 = vadd.f32 %v14679_v14, %v17959_v31  ;;  %v14734_v13 = vpop.f32.mrf.mxu0  ;;  %15021 = vmatmul.mubr.bf16.gmra.mxu0 %v17964_v25  ;;  %v4416_v11 = vrot.slane %v4414_v50, 7  ;;  %v4417_v35 = vshll.u32 %v4097_v20, 16 }
 0x190   : > { %v2508_v33 = vpop.f32.mrf.mxu1  ;;  %15024 = vmatprep.mubr.bf16.mxu0 %v17968_v32  ;;  %v4426_v14 = vshll.u32 %v4104_v55, 16  ;;  %v4412_v20 = vrot.slane %v4407_v53, 4 }
 0x191   : > { %22327 = vst [vmem:[#allocation82_spill] sm:$0xff] %v18125_v42  ;;  %v18130_v29 = vadd.f32 %v14727_v16, %v2517_v21  ;;  %v2509_v3 = vadd.f32 %v2508_v33, %v17972_v6  ;;  %v2789_v28 = vpop.f32.mrf.mxu0  ;;  %v4403_v16 = vrot.slane %v17931_v15, 4  ;;  %v4410_v21 = vor.u32 %v4408_v57, %v4407_v53  ;;  %v3831_v15 = vld [vmem:[#allocation2 + $0x88] sm:$0xf]  ;;  %v3833_v57 = vld [vmem:[#allocation2 + $0x90] sm:$0xf] }
 0x192   : > { %v14682_v2 = vpop.f32.mrf.mxu1  ;;  %14969 = vmatmul.mubr.bf16.gmra.mxu1 %v17911_v44  ;;  %v4419_v62 = vor.u32 %v4417_v35, %v4416_v11  ;;  %v4421_v55 = vrot.slane %v4416_v11, 4 }
 0x193   : > { %v18134_v31 = vadd.f32 %v2760_v1, %v2509_v3  ;;  %v2530_v42 = vadd.f32 %v14682_v2, %v17985_v26  ;;  %14972 = vmatprep.mubr.bf16.mxu1 %v17940_v45  ;;  %v14735_v30 = vpop.f32.mrf.mxu0  ;;  %v4428_v1 = vor.u32 %v4426_v14, %v4425_v19 }
 0x194   : > { %v2521_v54 = vpop.f32.mrf.mxu1  ;;  %v18157_v11 = vsel %vm17256_vm15, %v4412_v20, %v4419_v62 }
 0x195   : > { %v18139_v6 = vadd.f32 %v14730_v52, %v2530_v42  ;;  %v2522_v33 = vadd.f32 %v2521_v54, %v18001_v8  ;;  %v2792_v44 = vpop.f32.mrf.mxu0  ;;  %v18149_v8 = vsel %vm17256_vm15, %v4403_v16, %v4410_v21  ;;  %22329 = vst [vmem:[#allocation104_spill] sm:$0xff] %v18157_v11  ;;  %v18161_v35 = vsel %vm17256_vm15, %v4421_v55, %v4428_v1 }
 0x196   : > { %v14683_v50 = vpop.f32.mrf.mxu1  ;;  %22328 = vst [vmem:[#allocation103_spill] sm:$0xff] %v18149_v8  ;;  %22330 = vst [vmem:[#allocation106_spill] sm:$0xff] %v18161_v35  ;;  %v4501_v54 = vmul.bf16 %v18149_v8, %v3831_v15  ;;  %v4503_v43 = vmul.bf16 %v18161_v35, %v3833_v57 }
 0x197   : > { %v18142_v3 = vadd.f32 %v2773_v60, %v2522_v33  ;;  %v2533_v26 = vadd.f32 %v14683_v50, %v18020_v24  ;;  %v14738_v45 = vpop.f32.mrf.mxu0  ;;  %15025 = vmatmul.mubr.bf16.gmra.mxu0 %v17990_v39  ;;  %v3832_v24 = vld [vmem:[#allocation2 + $0x8c] sm:$0xf] }
 0x198   : > { %v2524_v2 = vpop.f32.mrf.mxu1  ;;  %15028 = vmatprep.mubr.bf16.mxu0 %v17994_v59  ;;  %v18172_v50 = vmul.bf16 %v18157_v11, %v3832_v24  ;;  %v13081_v62 = vcombine.low %v18028_v58, %v4501_v54 }
 0x199   : > { %v18151_v52 = vadd.f32 %v14731_v22, %v2533_v26  ;;  %v2525_v42 = vadd.f32 %v2524_v2, %v18036_v61  ;;  %v2805_v53 = vpop.f32.mrf.mxu0  ;;  %v3834_v2 = vld [vmem:[#allocation2 + $0x94] sm:$0x1] }
 0x19a   : > { %v14686_v60 = vpop.f32.mrf.mxu1  ;;  %14973 = vmatmul.mubr.bf16.gmra.mxu1 %v17944_v4 }
 0x19b   : > { %v18163_v14 = vadd.f32 %v2776_v5, %v2525_v42  ;;  %v2546_v22 = vadd.f32 %v14686_v60, %v18051_v27  ;;  %14976 = vmatprep.mubr.bf16.mxu1 %v17964_v25  ;;  %v14739_v61 = vpop.f32.mrf.mxu0 }
 0x19c   : > { %v2537_v4 = vpop.f32.mrf.mxu1 }
 0x19d   : > { %v18168_v16 = vadd.f32 %v14734_v13, %v2546_v22  ;;  %v2538_v21 = vadd.f32 %v2537_v4, %v18058_v23  ;;  %v2808_v33 = vpop.f32.mrf.mxu0  ;;  %v18181_v23 = vrot.slane %v4425_v19, 4  ;;  %v5019_v19 = vshll.u32 %v13081_v62, 16 }
 0x19e   : > { %v14687_v5 = vpop.f32.mrf.mxu1  ;;  %v5023_v22 = vshrl.u32 %v13081_v62, 16 }
 0x19f   : > { %v18175_v20 = vadd.f32 %v2789_v28, %v2538_v21  ;;  %v2549_v27 = vadd.f32 %v14687_v5, %v18068_v10  ;;  %v14742_v25 = vpop.f32.mrf.mxu0  ;;  %15029 = vmatmul.mubr.bf16.gmra.mxu0 %v18025_v56  ;;  %22331 = vst [vmem:[#allocation13_spill] sm:$0xff] %v18181_v23  ;;  %v13091_v28 = vcombine.low %v18172_v50, %v4503_v43 }
 0x1a0   : > { %v2540_v13 = vpop.f32.mrf.mxu1  ;;  %15032 = vmatprep.mubr.bf16.mxu0 %v18032_v38 }
 0x1a1   : > { %v18183_v55 = vadd.f32 %v14735_v30, %v2549_v27  ;;  %v2541_v1 = vadd.f32 %v2540_v13, %v18078_v18  ;;  %v2821_v26 = vpop.f32.mrf.mxu0  ;;  %v4504_v30 = vmul.bf16 %v18181_v23, %v3834_v2  ;;  %v5298_v54 = vshll.u32 %v13091_v28, 16  ;;  %v16047_v23 = vld [vmem:[#allocation8 + $0x10] sm:$0xff]  }
 0x1a2   : > { %v14690_v15 = vpop.f32.mrf.mxu1  ;;  %14977 = vmatmul.mubr.bf16.gmra.mxu1 %v17968_v32 }
 0x1a3   : > { %v18188_v10 = vadd.f32 %v2792_v44, %v2541_v1  ;;  %v2562_v58 = vadd.f32 %v14690_v15, %v18084_v47  ;;  %14980 = vmatprep.mubr.bf16.mxu1 %v17990_v39  ;;  %v14743_v42 = vpop.f32.mrf.mxu0  ;;  %v5021_v39 = vrot.slane %v5019_v19, 1  ;;  %v5300_v62 = vrot.slane %v5298_v54, 1 }
 0x1a4   : > { %v2553_v60 = vpop.f32.mrf.mxu1  ;;  %v5302_v15 = vshrl.u32 %v13091_v28, 16 }
 0x1a5   : > { %v18193_v24 = vadd.f32 %v14738_v45, %v2562_v58  ;;  %v2554_v18 = vadd.f32 %v2553_v60, %v18088_v41  ;;  %v18196_v57 = vpop.f32.mrf.mxu0  ;;  %v13092_v45 = vcombine.low %v4504_v30, %v4504_v30  ;;  %v18206_v27 = vor.u32 %v5023_v22, %v5021_v39 }
 0x1a6   : > { %v14691_v32 = vpop.f32.mrf.mxu1 }
 0x1a7   : > { %v18198_v44 = vadd.f32 %v2805_v53, %v2554_v18  ;;  %v2565_v47 = vadd.f32 %v14691_v32, %v18094_v40  ;;  %v14746_v4 = vpop.f32.mrf.mxu0  ;;  %15033 = vmatmul.mubr.bf16.gmra.mxu0 %v18056_v36 }
 0x1a8   : > { %v2556_v21 = vpop.f32.mrf.mxu1  ;;  %15036 = vmatprep.mubr.bf16.mxu0 %v18063_v46 }
 0x1a9   : > { %v18203_v43 = vadd.f32 %v14739_v61, %v2565_v47  ;;  %v2557_v41 = vadd.f32 %v2556_v21, %v18096_v63  ;;  %v2837_v5 = vpop.f32.mrf.mxu0  ;;  %v5022_v61 = vsel %vm4605_vm4, %v18072_v0, %v5021_v39  ;;  %v5306_v63 = vshll.u32 %v13092_v45, 16 }
 0x1aa   : > { %v14694_v53 = vpop.f32.mrf.mxu1  ;;  %14981 = vmatmul.mubr.bf16.gmra.mxu1 %v17994_v59  ;;  %v5301_v59 = vsel %vm4605_vm4, %v18206_v27, %v5300_v62  ;;  %v5304_v0 = vor.u32 %v5302_v15, %v5300_v62  ;;  %v16035_v62 = vld [vmem:[#allocation8 + $0xf8] sm:$0xff]  }
 0x1ab   : > { %v18209_v40 = vadd.f32 %v2808_v33, %v2557_v41  ;;  %v2578_v13 = vadd.f32 %v14694_v53, %v17957_v17  ;;  %14984 = vmatprep.mubr.bf16.mxu1 %v18025_v56  ;;  %v14747_v1 = vpop.f32.mrf.mxu0  ;;  %15044 = vmatprep.subr.bf16.mxu1 %v16035_v62 }
 0x1ac   : > { %v2569_v2 = vpop.f32.mrf.mxu1  ;;  %15045 = vmatpush3.bf16.msra.mxu1 %v16035_v62 }
 0x1ad   : > { %v18215_v58 = vadd.f32 %v14742_v25, %v2578_v13  ;;  %v2570_v19 = vadd.f32 %v2569_v2, %v17970_v37  ;;  %v18218_v60 = vpop.f32.mrf.mxu0  ;;  %v5308_v25 = vrot.slane %v5306_v63, 1 }
 0x1ae   : > { %v14695_v33 = vpop.f32.mrf.mxu1 }
 0x1af   : > { %v18222_v17 = vadd.f32 %v2821_v26, %v2570_v19  ;;  %v2581_v56 = vadd.f32 %v14695_v33, %v17983_v34  ;;  %v14750_v30 = vpop.f32.mrf.mxu0  ;;  %15037 = vmatmul.mubr.bf16.gmra.mxu0 %v5022_v61  ;;  %v13082_v34 = vcombine.low %v18172_v50, %v18172_v50  ;;  %v5309_v47 = vsel %vm4605_vm4, %v5304_v0, %v5308_v25  ;;  %v22333_v33 = vld [vmem:[#allocation105_spill] sm:$0xff] }
 0x1b0   : > { %v18225_v18 = vpop.f32.mrf.mxu1  ;;  %15040 = vmatprep.mubr.bf16.mxu0 %v5301_v59 }
 0x1b1   : > { %v18227_v28 = vadd.f32 %v14743_v42, %v2581_v56  ;;  %v2853_v37 = vpop.f32.mrf.mxu0 }
 0x1b2   : > { %v14698_v22 = vpop.f32.mrf.mxu1  ;;  %14985 = vmatmul.mubr.bf16.gmra.mxu1 %v18032_v38 }
 0x1b3   : > { %v2594_v54 = vadd.f32 %v14698_v22, %v18018_v9  ;;  %14988 = vmatprep.mubr.bf16.mxu1 %v18056_v36  ;;  %v14751_v26 = vpop.f32.mrf.mxu0  ;;  %v5027_v36 = vshll.u32 %v13082_v34, 16 }
 0x1b4   : > { %v2585_v32 = vpop.f32.mrf.mxu1 }
 0x1b5   : > { %v18235_v39 = vadd.f32 %v14746_v4, %v2594_v54  ;;  %v2586_v42 = vadd.f32 %v2585_v32, %v18034_v12  ;;  %v18238_v21 = vpop.f32.mrf.mxu0 }
 0x1b6   : > { %v14699_v45 = vpop.f32.mrf.mxu1 }
 0x1b7   : > { %v18240_v41 = vadd.f32 %v2837_v5, %v2586_v42  ;;  %v2597_v9 = vadd.f32 %v14699_v45, %v18049_v48  ;;  %v14754_v38 = vpop.f32.mrf.mxu0  ;;  %15041 = vmatmul.mubr.bf16.gmra.mxu0 %v5309_v47  ;;  %v5029_v5 = vrot.slane %v5027_v36, 1  ;;  %v22335_v47 = vld [vmem:[#allocation98_spill] sm:$0xff] }
 0x1b8   : > { %v18243_v53 = vpop.f32.mrf.mxu1 }
 0x1b9   : > { %v18245_v50 = vadd.f32 %v14747_v1, %v2597_v9  ;;  %v2869_v13 = vpop.f32.mrf.mxu0 }
 0x1ba   : > { %v14702_v4 = vpop.f32.mrf.mxu1  ;;  %14989 = vmatmul.mubr.bf16.gmra.mxu1 %v18063_v46  ;;  %v5030_v46 = vsel %vm4605_vm4, %v18206_v27, %v5029_v5 }
 0x1bb   : > { %v2610_v12 = vadd.f32 %v14702_v4, %v18075_v49  ;;  %14992 = vmatprep.mubr.bf16.mxu1 %v5022_v61  ;;  %v14755_v2 = vpop.f32.mrf.mxu0  ;;  %v16036_v61 = vld [vmem:[#allocation8 + $0xf0] sm:$0xff]   ;;  %v16037_v4 = vld [vmem:[#allocation8 + $0xe8] sm:$0xff]  }
 0x1bc   : > { %v2601_v48 = vpop.f32.mrf.mxu1  ;;  %15046 = vmatprep.subr.bf16.mxu1 %v16036_v61 }
 0x1bd   : > { %v18249_v15 = vadd.f32 %v14750_v30, %v2610_v12  ;;  %v2602_v63 = vadd.f32 %v2601_v48, %v18082_v7  ;;  %v18252_v19 = vpop.f32.mrf.mxu0  ;;  %v22334_v7 = vld [vmem:[#allocation114_spill] sm:$0xff]  ;;  %15047 = vmatpush3.bf16.msra.mxu1 %v16036_v61 }
 0x1be   : > { %22332 = vst [vmem:[#allocation128_spill] sm:$0xff] %v18252_v19  ;;  %v14703_v1 = vpop.f32.mrf.mxu1  ;;  %15048 = vmatprep.subr.bf16.mxu1 %v16037_v4 }
 0x1bf   : > { %v18254_v59 = vadd.f32 %v2853_v37, %v2602_v63  ;;  %v2613_v56 = vadd.f32 %v14703_v1, %v22333_v33  ;;  %v14822_v49 = vpop.f32.mrf.mxu0 }
 0x1c0   : > { %v18259_v0 = vpop.f32.mrf.mxu1 }
 0x1c1   : > { %v18261_v25 = vadd.f32 %v14751_v26, %v2613_v56  ;;  %v3375_v30 = vpop.f32.mrf.mxu0  ;;  %v22336_v26 = vld [vmem:[#allocation99_spill] sm:$0xff]  ;;  %15049 = vmatpush3.bf16.msra.mxu1 %v16037_v4 }
 0x1c2   : > { %v14706_v22 = vpop.f32.mrf.mxu1  ;;  %14993 = vmatmul.mubr.bf16.gmra.mxu1 %v5030_v46 }
 0x1c3   : > { %v2626_v54 = vadd.f32 %v14706_v22, %v22334_v7  ;;  %v14823_v34 = vpop.f32.mrf.mxu0  ;;  %v16039_v7 = vld [vmem:[#allocation8 + $0x38] sm:$0xff]  }
 0x1c4   : > { %v2617_v37 = vpop.f32.mrf.mxu1  ;;  %15092 = vmatprep.subr.bf16.mxu0 %v16039_v7 }
 0x1c5   : > { %v18264_v32 = vadd.f32 %v14754_v38, %v2626_v54  ;;  %v2618_v42 = vadd.f32 %v2617_v37, %v22335_v47  ;;  %v18267_v27 = vpop.f32.mrf.mxu0  ;;  %15093 = vmatpush3.bf16.msra.mxu0 %v16039_v7 }
 0x1c6   : > { %v14707_v45 = vpop.f32.mrf.mxu1 }
 0x1c7   : > { %v18269_v9 = vadd.f32 %v2869_v13, %v2618_v42  ;;  %v2629_v36 = vadd.f32 %v14707_v45, %v22336_v26  ;;  %v14826_v62 = vpop.f32.mrf.mxu0  ;;  %v22337_v13 = vld [vmem:[#allocation82_spill] sm:$0xff] }
 0x1c8   : > { %v18272_v12 = vpop.f32.mrf.mxu1 }
 0x1c9   : > { %v18274_v5 = vadd.f32 %v14755_v2, %v2629_v36  ;;  %v3391_v48 = vpop.f32.mrf.mxu0  ;;  %v16041_v36 = vld [vmem:[#allocation8 + $0x30] sm:$0xff]  }
 0x1ca   : > { %v14774_v63 = vpop.f32.mrf.mxu1  ;;  %15094 = vmatprep.subr.bf16.mxu0 %v16041_v36 }
 0x1cb   : > { %v3240_v38 = vadd.f32 %v14774_v63, %v18122_v51  ;;  %v14827_v1 = vpop.f32.mrf.mxu0  ;;  %15095 = vmatpush3.bf16.msra.mxu0 %v16041_v36 }
 0x1cc   : > { %v3111_v33 = vpop.f32.mrf.mxu1 }
 0x1cd   : > { %v18277_v56 = vadd.f32 %v14822_v49, %v3240_v38  ;;  %v3238_v46 = vadd.f32 %v3111_v33, %v22337_v13  ;;  %v18280_v61 = vpop.f32.mrf.mxu0 }
 0x1ce   : > { %v14775_v22 = vpop.f32.mrf.mxu1 }
 0x1cf   : > { %v18282_v54 = vadd.f32 %v3375_v30, %v3238_v46  ;;  %v3241_v2 = vadd.f32 %v14775_v22, %v18130_v29  ;;  %v14830_v37 = vpop.f32.mrf.mxu0  ;;  %v16042_v46 = vld [vmem:[#allocation8 + $0x28] sm:$0xff]  }
 0x1d0   : > { %v18285_v47 = vpop.f32.mrf.mxu1  ;;  %15096 = vmatprep.subr.bf16.mxu0 %v16042_v46 }
 0x1d1   : > { %v18287_v42 = vadd.f32 %v14823_v34, %v3241_v2  ;;  %v3407_v51 = vpop.f32.mrf.mxu0  ;;  %15097 = vmatpush3.bf16.msra.mxu0 %v16042_v46 }
 0x1d2   : > { %v14778_v49 = vpop.f32.mrf.mxu1 }
 0x1d3   : > { %v3244_v45 = vadd.f32 %v14778_v49, %v18139_v6  ;;  %v14831_v26 = vpop.f32.mrf.mxu0 }
 0x1d4   : > { %v3127_v4 = vpop.f32.mrf.mxu1 }
 0x1d5   : > { %v18290_v63 = vadd.f32 %v14826_v62, %v3244_v45  ;;  %v3242_v30 = vadd.f32 %v3127_v4, %v18142_v3  ;;  %v18293_v38 = vpop.f32.mrf.mxu0  ;;  %v16038_v62 = vld [vmem:[#allocation8 + $0xe0] sm:$0xff]  }
 0x1d6   : > { %v14779_v29 = vpop.f32.mrf.mxu1  ;;  %15050 = vmatprep.subr.bf16.mxu1 %v16038_v62  ;;  %v16044_v45 = vld [vmem:[#allocation8 + $0x20] sm:$0xff]  }
 0x1d7   : > { %v18295_v33 = vadd.f32 %v3391_v48, %v3242_v30  ;;  %v3245_v34 = vadd.f32 %v14779_v29, %v18151_v52  ;;  %v14834_v13 = vpop.f32.mrf.mxu0  ;;  %15051 = vmatpush3.bf16.msra.mxu1 %v16038_v62  ;;  %15098 = vmatprep.subr.bf16.mxu0 %v16044_v45 }
 0x1d8   : > { %v18298_v22 = vpop.f32.mrf.mxu1  ;;  %15099 = vmatpush3.bf16.msra.mxu0 %v16044_v45 }
 0x1d9   : > { %v18300_v6 = vadd.f32 %v14827_v1, %v3245_v34  ;;  %v3423_v7 = vpop.f32.mrf.mxu0 }
 0x1da   : > { %v14782_v2 = vpop.f32.mrf.mxu1 }
 0x1db   : > { %v3248_v3 = vadd.f32 %v14782_v2, %v18168_v16  ;;  %v14835_v49 = vpop.f32.mrf.mxu0  ;;  %v16045_v16 = vld [vmem:[#allocation8 + $0x18] sm:$0xff]  }
 0x1dc   : > { %v3143_v48 = vpop.f32.mrf.mxu1  ;;  %15100 = vmatprep.subr.bf16.mxu0 %v16045_v16 }
 0x1dd   : > { %v18303_v36 = vadd.f32 %v14830_v37, %v3248_v3  ;;  %v3246_v52 = vadd.f32 %v3143_v48, %v18175_v20  ;;  %v18306_v4 = vpop.f32.mrf.mxu0  ;;  %v16040_v3 = vld [vmem:[#allocation8 + $0xd8] sm:$0xff]   ;;  %15101 = vmatpush3.bf16.msra.mxu0 %v16045_v16 }
 0x1de   : > { %22338 = vst [vmem:[#allocation105_spill] sm:$0xff] %v18306_v4  ;;  %v14783_v1 = vpop.f32.mrf.mxu1  ;;  %15052 = vmatprep.subr.bf16.mxu1 %v16040_v3  ;;  %15102 = vmatprep.subr.bf16.mxu0 %v16047_v23 }
 0x1df   : > { %v18308_v30 = vadd.f32 %v3407_v51, %v3246_v52  ;;  %v3249_v29 = vadd.f32 %v14783_v1, %v18183_v55  ;;  %v14838_v34 = vpop.f32.mrf.mxu0  ;;  %15053 = vmatpush3.bf16.msra.mxu1 %v16040_v3 }
 0x1e0   : > { %v18311_v46 = vpop.f32.mrf.mxu1 }
 0x1e1   : > { %v18313_v2 = vadd.f32 %v14831_v26, %v3249_v29  ;;  %v3439_v62 = vpop.f32.mrf.mxu0  ;;  %15103 = vmatpush3.bf16.msra.mxu0 %v16047_v23 }
 0x1e2   : > { %v14786_v37 = vpop.f32.mrf.mxu1 }
 0x1e3   : > { %v3252_v20 = vadd.f32 %v14786_v37, %v18193_v24  ;;  %v14839_v48 = vpop.f32.mrf.mxu0  ;;  %v16043_v24 = vld [vmem:[#allocation8 + $0xd0] sm:$0xff]   ;;  %v16048_v37 = vld [vmem:[#allocation8 + $0x8] sm:$0xff]  }
 0x1e4   : > { %v3159_v45 = vpop.f32.mrf.mxu1  ;;  %15054 = vmatprep.subr.bf16.mxu1 %v16043_v24  ;;  %15104 = vmatprep.subr.bf16.mxu0 %v16048_v37 }
 0x1e5   : > { %v18316_v51 = vadd.f32 %v14834_v13, %v3252_v20  ;;  %v3250_v55 = vadd.f32 %v3159_v45, %v18198_v44  ;;  %v18319_v52 = vpop.f32.mrf.mxu0  ;;  %15055 = vmatpush3.bf16.msra.mxu1 %v16043_v24  ;;  %15105 = vmatpush3.bf16.msra.mxu0 %v16048_v37  ;;  %v16050_v20 = vld [vmem:[#allocation8] sm:$0xff]  }
 0x1e6   : > { %22339 = vst [vmem:[#allocation114_spill] sm:$0xff] %v18319_v52  ;;  %v14787_v26 = vpop.f32.mrf.mxu1  ;;  %15106 = vmatprep.subr.bf16.mxu0 %v16050_v20  ;;  %v16049_v37 = vld [vmem:[#allocation8 + $0xc0] sm:$0xff]  }
 0x1e7   : > { %v18321_v1 = vadd.f32 %v3423_v7, %v3250_v55  ;;  %v3253_v29 = vadd.f32 %v14787_v26, %v18203_v43  ;;  %v14842_v16 = vpop.f32.mrf.mxu0  ;;  %v16046_v7 = vld [vmem:[#allocation8 + $0xc8] sm:$0xff]  }
 0x1e8   : > { %v18324_v35 = vpop.f32.mrf.mxu1  ;;  %15056 = vmatprep.subr.bf16.mxu1 %v16046_v7 }
 0x1e9   : > { %22340 = vst [vmem:[#allocation98_spill] sm:$0xff] %v18321_v1  ;;  %v18326_v11 = vadd.f32 %v14835_v49, %v3253_v29  ;;  %v3455_v13 = vpop.f32.mrf.mxu0  ;;  %15057 = vmatpush3.bf16.msra.mxu1 %v16046_v7  ;;  %15107 = vmatpush3.bf16.msra.mxu0 %v16050_v20 }
 0x1ea   : > { %v14790_v44 = vpop.f32.mrf.mxu1  ;;  %15058 = vmatprep.subr.bf16.mxu1 %v16049_v37 }
 0x1eb   : > { %v3256_v3 = vadd.f32 %v14790_v44, %v18215_v58  ;;  %v14843_v23 = vpop.f32.mrf.mxu0 }
 0x1ec   : > { %v3175_v45 = vpop.f32.mrf.mxu1 }
 0x1ed   : > { %v18329_v43 = vadd.f32 %v14838_v34, %v3256_v3  ;;  %v3254_v55 = vadd.f32 %v3175_v45, %v18222_v17  ;;  %v18332_v26 = vpop.f32.mrf.mxu0  ;;  %15059 = vmatpush3.bf16.msra.mxu1 %v16049_v37 }
 0x1ee   : > { %22341 = vst [vmem:[#allocation99_spill] sm:$0xff] %v18332_v26  ;;  %v14791_v49 = vpop.f32.mrf.mxu1 }
 0x1ef   : > { %v18334_v29 = vadd.f32 %v3439_v62, %v3254_v55  ;;  %v3257_v24 = vadd.f32 %v14791_v49, %v18227_v28  ;;  %v14846_v58 = vpop.f32.mrf.mxu0 }
 0x1f0   : > { %v18337_v44 = vpop.f32.mrf.mxu1 }
 0x1f1   : > { %22342 = vst [vmem:[#allocation82_spill] sm:$0xff] %v18334_v29  ;;  %v18339_v8 = vadd.f32 %v14839_v48, %v3257_v24  ;;  %v3471_v34 = vpop.f32.mrf.mxu0 }
 0x1f2   : > { %v14794_v17 = vpop.f32.mrf.mxu1 }
 0x1f3   : > { %v3260_v3 = vadd.f32 %v14794_v17, %v18235_v39  ;;  %v14847_v45 = vpop.f32.mrf.mxu0 }
 0x1f4   : > { %v3191_v19 = vpop.f32.mrf.mxu1 }
 0x1f5   : > { %v18342_v7 = vadd.f32 %v14842_v16, %v3260_v3  ;;  %v3258_v62 = vadd.f32 %v3191_v19, %v18240_v41  ;;  %v18345_v20 = vpop.f32.mrf.mxu0 }
 0x1f6   : > { %22343 = vst [vmem:[#allocation129_spill] sm:$0xff] %v18345_v20  ;;  %v14795_v28 = vpop.f32.mrf.mxu1 }
 0x1f7   : > { %v18347_v55 = vadd.f32 %v3455_v13, %v3258_v62  ;;  %v3261_v48 = vadd.f32 %v14795_v28, %v18245_v50  ;;  %v14850_v49 = vpop.f32.mrf.mxu0 }
 0x1f8   : > { %v18350_v24 = vpop.f32.mrf.mxu1 }
 0x1f9   : > { %22344 = vst [vmem:[#allocation130_spill] sm:$0xff] %v18347_v55  ;;  %22345 = vst [vmem:[#allocation131_spill] sm:$0xff] %v18350_v24  ;;  %v18352_v29 = vadd.f32 %v14843_v23, %v3261_v48  ;;  %v3487_v37 = vpop.f32.mrf.mxu0 }
 0x1fa   : > { %v14798_v39 = vpop.f32.mrf.mxu1 }
 0x1fb   : > { %v3264_v17 = vadd.f32 %v14798_v39, %v18249_v15  ;;  %v14851_v16 = vpop.f32.mrf.mxu0 }
 0x1fc   : > { %v3207_v3 = vpop.f32.mrf.mxu1 }
 0x1fd   : > { %v18355_v26 = vadd.f32 %v14846_v58, %v3264_v17  ;;  %v3262_v41 = vadd.f32 %v3207_v3, %v18254_v59  ;;  %v18358_v19 = vpop.f32.mrf.mxu0 }
 0x1fe   : > { %22346 = vst [vmem:[#allocation132_spill] sm:$0xff] %v18358_v19  ;;  %v14799_v13 = vpop.f32.mrf.mxu1 }
 0x1ff   : > { %v18360_v62 = vadd.f32 %v3471_v34, %v3262_v41  ;;  %v3265_v50 = vadd.f32 %v14799_v13, %v18261_v25  ;;  %v14918_v28 = vpop.f32.mrf.mxu0  ;;  %v18375_v41 = vld [vmem:[#allocation8 + $0x1b8] sm:$0xff]  }
 0x200   : > { %v18363_v23 = vpop.f32.mrf.mxu1  ;;  %22349 = vst [vmem:[#allocation135_spill] sm:$0xff] %v18375_v41  ;;  %15140 = vmatprep.subr.bf16.mxu1 %v18375_v41 }
 0x201   : > { %22347 = vst [vmem:[#allocation133_spill] sm:$0xff] %v18360_v62  ;;  %22348 = vst [vmem:[#allocation134_spill] sm:$0xff] %v18363_v23  ;;  %v18365_v48 = vadd.f32 %v14847_v45, %v3265_v50  ;;  %v18367_v20 = vpop.f32.mrf.mxu0 }
 0x202   : > { %v14802_v15 = vpop.f32.mrf.mxu1 }
 0x203   : > { %v3268_v58 = vadd.f32 %v14802_v15, %v18264_v32  ;;  %v14919_v39 = vpop.f32.mrf.mxu0 }
 0x204   : > { %v3223_v17 = vpop.f32.mrf.mxu1 }
 0x205   : > { %v18370_v59 = vadd.f32 %v14850_v49, %v3268_v58  ;;  %v3266_v3 = vadd.f32 %v3223_v17, %v18269_v9  ;;  %v18373_v34 = vpop.f32.mrf.mxu0 }
 0x206   : > { %v14803_v25 = vpop.f32.mrf.mxu1 }
 0x207   : > { %v18377_v13 = vadd.f32 %v3487_v37, %v3266_v3  ;;  %v3269_v45 = vadd.f32 %v14803_v25, %v18274_v5  ;;  %v14922_v50 = vpop.f32.mrf.mxu0 }
 0x208   : > { %v18381_v19 = vpop.f32.mrf.mxu1 }
 0x209   : > { %22350 = vst [vmem:[#allocation136_spill] sm:$0xff] %v18381_v19  ;;  %v18383_v32 = vadd.f32 %v14851_v16, %v3269_v45  ;;  %v18385_v49 = vpop.f32.mrf.mxu0 }
 0x20a   : > { %v14870_v15 = vpop.f32.mrf.mxu1 }
 0x20b   : > { %v3768_v9 = vadd.f32 %v14870_v15, %v18277_v56  ;;  %v14923_v58 = vpop.f32.mrf.mxu0 }
 0x20c   : > { %v18388_v17 = vpop.f32.mrf.mxu1 }
 0x20d   : > { %v18390_v62 = vadd.f32 %v14918_v28, %v3768_v9  ;;  %v18392_v37 = vpop.f32.mrf.mxu0 }
 0x20e   : > { %v14871_v5 = vpop.f32.mrf.mxu1 }
 0x20f   : > { %v3769_v3 = vadd.f32 %v14871_v5, %v18287_v42  ;;  %v14926_v25 = vpop.f32.mrf.mxu0 }
 0x210   : > { %v18395_v41 = vpop.f32.mrf.mxu1 }
 0x211   : > { %v18397_v16 = vadd.f32 %v14919_v39, %v3769_v3  ;;  %v18399_v45 = vpop.f32.mrf.mxu0 }
 0x212   : > { %22351 = vst [vmem:[#allocation137_spill] sm:$0xff] %v18399_v45  ;;  %v14874_v19 = vpop.f32.mrf.mxu1 }
 0x213   : > { %v3772_v56 = vadd.f32 %v14874_v19, %v18290_v63  ;;  %v14927_v15 = vpop.f32.mrf.mxu0 }
 0x214   : > { %v18402_v55 = vpop.f32.mrf.mxu1 }
 0x215   : > { %v18404_v28 = vadd.f32 %v14922_v50, %v3772_v56  ;;  %v18406_v9 = vpop.f32.mrf.mxu0 }
 0x216   : > { %22352 = vst [vmem:[#allocation138_spill] sm:$0xff] %v18406_v9  ;;  %v14875_v23 = vpop.f32.mrf.mxu1 }
 0x217   : > { %v3773_v42 = vadd.f32 %v14875_v23, %v18300_v6  ;;  %v14930_v5 = vpop.f32.mrf.mxu0 }
 0x218   : > { %v18409_v1 = vpop.f32.mrf.mxu1 }
 0x219   : > { %v18411_v39 = vadd.f32 %v14923_v58, %v3773_v42  ;;  %v18413_v3 = vpop.f32.mrf.mxu0 }
 0x21a   : > { %22353 = vst [vmem:[#allocation139_spill] sm:$0xff] %v18413_v3  ;;  %v14878_v24 = vpop.f32.mrf.mxu1 }
 0x21b   : > { %v3776_v63 = vadd.f32 %v14878_v24, %v18303_v36  ;;  %v14931_v19 = vpop.f32.mrf.mxu0 }
 0x21c   : > { %v18416_v52 = vpop.f32.mrf.mxu1 }
 0x21d   : > { %v18418_v50 = vadd.f32 %v14926_v25, %v3776_v63  ;;  %v18420_v56 = vpop.f32.mrf.mxu0 }
 0x21e   : > { %22354 = vst [vmem:[#allocation140_spill] sm:$0xff] %v18420_v56  ;;  %v14879_v9 = vpop.f32.mrf.mxu1  ;;  %v18436_v56 = vld [vmem:[#allocation8 + $0x78] sm:$0xff]  }
 0x21f   : > { %v3777_v6 = vadd.f32 %v14879_v9, %v18313_v2  ;;  %v14934_v23 = vpop.f32.mrf.mxu0  ;;  %22360 = vst [vmem:[#allocation146_spill] sm:$0xff] %v18436_v56  ;;  %15188 = vmatprep.subr.bf16.mxu0 %v18436_v56 }
 0x220   : > { %v18423_v45 = vpop.f32.mrf.mxu1 }
 0x221   : > { %22355 = vst [vmem:[#allocation141_spill] sm:$0xff] %v18423_v45  ;;  %v18425_v58 = vadd.f32 %v14927_v15, %v3777_v6  ;;  %v18427_v42 = vpop.f32.mrf.mxu0 }
 0x222   : > { %22357 = vst [vmem:[#allocation143_spill] sm:$0xff] %v18427_v42  ;;  %v14882_v3 = vpop.f32.mrf.mxu1 }
 0x223   : > { %22356 = vst [vmem:[#allocation142_spill] sm:$0xff] %v18425_v58  ;;  %v3780_v36 = vadd.f32 %v14882_v3, %v18316_v51  ;;  %v14935_v24 = vpop.f32.mrf.mxu0 }
 0x224   : > { %v18430_v4 = vpop.f32.mrf.mxu1 }
 0x225   : > { %v18432_v25 = vadd.f32 %v14930_v5, %v3780_v36  ;;  %v18434_v63 = vpop.f32.mrf.mxu0 }
 0x226   : > { %22359 = vst [vmem:[#allocation145_spill] sm:$0xff] %v18434_v63  ;;  %v14883_v2 = vpop.f32.mrf.mxu1 }
 0x227   : > { %22358 = vst [vmem:[#allocation144_spill] sm:$0xff] %v18432_v25  ;;  %v3781_v9 = vadd.f32 %v14883_v2, %v18326_v11  ;;  %v14938_v45 = vpop.f32.mrf.mxu0 }
 0x228   : > { %v18440_v15 = vpop.f32.mrf.mxu1 }
 0x229   : > { %v18442_v6 = vadd.f32 %v14931_v19, %v3781_v9  ;;  %v18444_v51 = vpop.f32.mrf.mxu0 }
 0x22a   : > { %22362 = vst [vmem:[#allocation148_spill] sm:$0xff] %v18444_v51  ;;  %v14886_v3 = vpop.f32.mrf.mxu1 }
 0x22b   : > { %22361 = vst [vmem:[#allocation147_spill] sm:$0xff] %v18442_v6  ;;  %v3784_v5 = vadd.f32 %v14886_v3, %v18329_v43  ;;  %v14939_v36 = vpop.f32.mrf.mxu0 }
 0x22c   : > { %v18447_v42 = vpop.f32.mrf.mxu1 }
 0x22d   : > { %v18449_v63 = vadd.f32 %v14934_v23, %v3784_v5  ;;  %v18451_v25 = vpop.f32.mrf.mxu0 }
 0x22e   : > { %22364 = vst [vmem:[#allocation150_spill] sm:$0xff] %v18451_v25  ;;  %v14887_v11 = vpop.f32.mrf.mxu1 }
 0x22f   : > { %22363 = vst [vmem:[#allocation149_spill] sm:$0xff] %v18449_v63  ;;  %v3785_v2 = vadd.f32 %v14887_v11, %v18339_v8  ;;  %v14942_v56 = vpop.f32.mrf.mxu0 }
 0x230   : > { %v18454_v58 = vpop.f32.mrf.mxu1 }
 0x231   : > { %v18456_v19 = vadd.f32 %v14935_v24, %v3785_v2  ;;  %v18458_v9 = vpop.f32.mrf.mxu0 }
 0x232   : > { %22366 = vst [vmem:[#allocation152_spill] sm:$0xff] %v18458_v9  ;;  %v14890_v51 = vpop.f32.mrf.mxu1 }
 0x233   : > { %22365 = vst [vmem:[#allocation151_spill] sm:$0xff] %v18456_v19  ;;  %v3788_v43 = vadd.f32 %v14890_v51, %v18342_v7  ;;  %v14943_v3 = vpop.f32.mrf.mxu0 }
 0x234   : > { %v18461_v6 = vpop.f32.mrf.mxu1 }
 0x235   : > { %22367 = vst [vmem:[#allocation153_spill] sm:$0xff] %v18461_v6  ;;  %v18463_v23 = vadd.f32 %v14938_v45, %v3788_v43  ;;  %v18465_v5 = vpop.f32.mrf.mxu0 }
 0x236   : > { %22369 = vst [vmem:[#allocation155_spill] sm:$0xff] %v18465_v5  ;;  %v14891_v25 = vpop.f32.mrf.mxu1 }
 0x237   : > { %22368 = vst [vmem:[#allocation154_spill] sm:$0xff] %v18463_v23  ;;  %v3789_v8 = vadd.f32 %v14891_v25, %v18352_v29  ;;  %v14946_v11 = vpop.f32.mrf.mxu0 }
 0x238   : > { %v18468_v63 = vpop.f32.mrf.mxu1 }
 0x239   : > { %v18470_v24 = vadd.f32 %v14939_v36, %v3789_v8  ;;  %v4948_v2 = vpop.f32.mrf.mxu0 }
 0x23a   : > { %v14894_v9 = vpop.f32.mrf.mxu1 }
 0x23b   : > { %22370 = vst [vmem:[#allocation156_spill] sm:$0xff] %v18470_v24  ;;  %v3792_v19 = vadd.f32 %v14894_v9, %v18355_v26  ;;  %v14947_v7 = vpop.f32.mrf.mxu0 }
 0x23c   : > { %v18473_v51 = vpop.f32.mrf.mxu1 }
 0x23d   : > { %22371 = vst [vmem:[#allocation157_spill] sm:$0xff] %v18473_v51  ;;  %v18475_v6 = vadd.f32 %v14942_v56, %v3792_v19  ;;  %v18477_v45 = vpop.f32.mrf.mxu0  ;;  %v3239_v56 = vadd.f32 %v18285_v47, %v18134_v31  ;;  %v5914_v51 = vld [vmem:[#allocation3 + $0x4] sm:$0xf]  ;;  %v22377_v31 = vld [vmem:[#allocation12_spill] sm:$0xff] }
 0x23e   : > { %22373 = vst [vmem:[#allocation159_spill] sm:$0xff] %v18477_v45  ;;  %v14895_v43 = vpop.f32.mrf.mxu1  ;;  %v5555_v47 = vsub.s32 0, %v22377_v31 }
 0x23f   : > { %22372 = vst [vmem:[#allocation158_spill] sm:$0xff] %v18475_v6  ;;  %v3793_v5 = vadd.f32 %v14895_v43, %v18365_v48  ;;  %v15014_v29 = vpop.f32.mrf.mxu0  ;;  %v5913_v43 = vld [vmem:[#allocation3] sm:$0x8] }
 0x240   : > { %v18480_v25 = vpop.f32.mrf.mxu1 }
 0x241   : > { %22374 = vst [vmem:[#allocation160_spill] sm:$0xff] %v18480_v25  ;;  %v18482_v23 = vadd.f32 %v14943_v3, %v3793_v5  ;;  %v5394_v36 = vpop.f32.mrf.mxu0  ;;  %v3766_v3 = vadd.f32 %v18388_v17, %v18282_v54  ;;  %v22380_v25 = vld [vmem:[#allocation80_spill] sm:$0xff]  ;;  %v22381_v17 = vld [vmem:[#allocation107_spill] sm:$0xff] }
 0x242   : > { %v14898_v8 = vpop.f32.mrf.mxu1  ;;  %v5951_v54 = vmul.bf16 %v5914_v51, %v22380_v25  ;;  %v3243_v51 = vadd.f32 %v18298_v22, %v18163_v14 }
 0x243   : > { %22375 = vst [vmem:[#allocation161_spill] sm:$0xff] %v18482_v23  ;;  %v3796_v24 = vadd.f32 %v14898_v8, %v18370_v59  ;;  %v15015_v26 = vpop.f32.mrf.mxu0 }
 0x244   : > { %v3751_v9 = vpop.f32.mrf.mxu1 }
 0x245   : > { %v18487_v19 = vadd.f32 %v14946_v11, %v3796_v24  ;;  %v3794_v45 = vadd.f32 %v3751_v9, %v18377_v13  ;;  %v5397_v6 = vpop.f32.mrf.mxu0  ;;  %v3503_v11 = vadd.f32 %v18267_v27, %v3239_v56  ;;  %v22379_v9 = vld [vmem:[#allocation77_spill] sm:$0xff] }
 0x246   : > { %v14899_v48 = vpop.f32.mrf.mxu1 }
 0x247   : > { %22376 = vst [vmem:[#allocation162_spill] sm:$0xff] %v18487_v19  ;;  %v18492_v5 = vadd.f32 %v4948_v2, %v3794_v45  ;;  %v3797_v59 = vadd.f32 %v14899_v48, %v18383_v32  ;;  %v18495_v8 = vpop.f32.mrf.mxu0  ;;  %v5950_v19 = vmul.bf16 %v5913_v43, %v22379_v9  ;;  %v2573_v2 = vadd.f32 %v18225_v18, %v22381_v17  ;;  %v1059_v45 = vld [vmem:[%s21856_s4] sm:$0xff] }
 0x248   : > { %v18497_v23 = vpop.f32.mrf.mxu1  ;;  %v4963_v48 = vadd.f32 %v18367_v20, %v3766_v3  ;;  %v3767_v27 = vadd.f32 %v18395_v41, %v3503_v11  ;;  %v5591_v18 = vsub.s32 1, %v22377_v31  ;;  %v18522_v9 = vrot.slane %v1059_v45, %v5555_v47  ;;  %v22383_v3 = vld [vmem:[#allocation86_spill] sm:$0xff] }
 0x249   : > { %v18501_v13 = vadd.f32 %v14947_v7, %v3797_v59  ;;  %v18503_v24 = vpop.f32.mrf.mxu0  ;;  %v22382_v59 = vld [vmem:[#allocation109_spill] sm:$0xff]  ;;  %v13158_v41 = vcombine.low %v5950_v19, %v5951_v54  ;;  %v2605_v11 = vadd.f32 %v18259_v0, %v22383_v3  ;;  %v3507_v19 = vadd.f32 %v18280_v61, %v3243_v51 }
 0x24a   : > { %v14966_v32 = vpop.f32.mrf.mxu1  ;;  %v2589_v43 = vadd.f32 %v18243_v53, %v22382_v59  ;;  %v3247_v53 = vadd.f32 %v18311_v46, %v18188_v10  ;;  %v4964_v14 = vadd.f32 %v18373_v34, %v3767_v27  ;;  %v18541_v0 = vrot.slane %v1059_v45, %v5591_v18  ;;  %v22384_v61 = vld [vmem:[#allocation81_spill] sm:$0xff] }
 0x24b   : > { %22378 = vst [vmem:[#allocation163_spill] sm:$0xff] %v18501_v13  ;;  %v5244_v7 = vadd.f32 %v14966_v32, %v18390_v62  ;;  %v18515_v56 = vpop.f32.mrf.mxu0  ;;  %v2901_v62 = vadd.f32 %v18196_v57, %v2573_v2  ;;  %v3770_v57 = vadd.f32 %v18402_v55, %v18295_v33  ;;  %v18554_v2 = vadd.f32 %v18272_v12, %v22384_v61 }
 0x24c   : > { %v5115_v17 = vpop.f32.mrf.mxu1  ;;  %v6490_v45 = vshll.u32 %v13158_v41, 16  ;;  %v3771_v27 = vadd.f32 %v18409_v1, %v3507_v19 }
 0x24d   : > { %v5523_v25 = vadd.f32 %v15014_v29, %v5244_v7  ;;  %v5242_v13 = vadd.f32 %v5115_v17, %v4963_v48  ;;  %v18524_v20 = vpop.f32.mrf.mxu0  ;;  %v18536_v48 = vadd.f32 %v18218_v60, %v2589_v43  ;;  %v18550_v60 = vadd.f32 %v18238_v21, %v2605_v11 }
 0x24e   : > { %v14967_v32 = vpop.f32.mrf.mxu1  ;;  %v3251_v21 = vadd.f32 %v18324_v35, %v18209_v40  ;;  %v4967_v51 = vadd.f32 %v18385_v49, %v3770_v57  ;;  %v18579_v11 = vrot.slane %v6490_v45, 4  ;;  %v3255_v19 = vadd.f32 %v18337_v44, %v2901_v62 }
 0x24f   : > { %v5521_v22 = vadd.f32 %v5394_v36, %v5242_v13  ;;  %v5245_v29 = vadd.f32 %v14967_v32, %v18397_v16  ;;  %v18533_v47 = vpop.f32.mrf.mxu0  ;;  %v5559_v10 = vmul.f32 %v18522_v9, %v5523_v25  ;;  %v18547_v16 = vld [vmem:[#allocation3 + $0x8] sm:$0xf]  ;;  %v6487_v13 = vshrl.u32 %v13158_v41, 16 }
 0x250   : > { %v5118_v54 = vpop.f32.mrf.mxu1  ;;  %v3511_v25 = vadd.f32 %v18293_v38, %v3247_v53  ;;  %v4968_v32 = vadd.f32 %v18392_v37, %v3771_v27  ;;  %v3774_v53 = vadd.f32 %v18416_v52, %v18308_v30 }
 0x251   : > { %v5557_v46 = vmul.f32 %v18522_v9, %v5521_v22  ;;  %v5243_v34 = vadd.f32 %v5118_v54, %v4964_v14  ;;  %v18545_v36 = vpop.f32.mrf.mxu0  ;;  %v5524_v33 = vadd.f32 %v15015_v26, %v5245_v29  ;;  %v22385_v26 = vld [vmem:[#allocation23_spill] sm:$0xff]  ;;  %v18568_v38 = vadd.f32 %v18541_v0, %v5559_v10  ;;  %v22389_v10 = vld [vmem:[#allocation105_spill] sm:$0xff] }
 0x252   : > { %v14970_v55 = vpop.f32.mrf.mxu1  ;;  %v5952_v17 = vmul.bf16 %v18547_v16, %v22385_v26  ;;  %v18575_v3 = vrot.slane %v6487_v13, 3 }
 0x253   : > { %v5593_v7 = vadd.f32 %v18541_v0, %v5557_v46  ;;  %v5522_v59 = vadd.f32 %v5397_v6, %v5243_v34  ;;  %v18559_v43 = vpop.f32.mrf.mxu0  ;;  %v5248_v12 = vadd.f32 %v14970_v55, %v18404_v28  ;;  %22386 = vst [vmem:[#allocation107_spill] sm:$0xff] %v18568_v38  ;;  %v5560_v35 = vmul.f32 %v18522_v9, %v5524_v33  ;;  %v22391_v33 = vld [vmem:[#allocation137_spill] sm:$0xff] }
 0x254   : > { %v5131_v18 = vpop.f32.mrf.mxu1  ;;  %v3515_v46 = vadd.f32 %v22389_v10, %v3251_v21  ;;  %v22068_v30 = vmax.f32 %v18568_v38, 0.0  ;;  %v4971_v55 = vadd.f32 %v22391_v33, %v3774_v53  ;;  %v22392_v21 = vld [vmem:[#allocation114_spill] sm:$0xff] }
 0x255   : > { %v18570_v1 = vmax.f32 %v5593_v7, 0.0  ;;  %v5558_v6 = vmul.f32 %v18522_v9, %v5522_v59  ;;  %v18573_v41 = vpop.f32.mrf.mxu0  ;;  %v5527_v40 = vadd.f32 %v18495_v8, %v5248_v12  ;;  %v5246_v49 = vadd.f32 %v5131_v18, %v4967_v51  ;;  %v22397_v53 = vld [vmem:[#allocation98_spill] sm:$0xff] }
 0x256   : > { %v14971_v28 = vpop.f32.mrf.mxu1  ;;  %v18601_v61 = vadd.f32 %v18541_v0, %v5560_v35  ;;  %v3519_v51 = vadd.f32 %v22392_v21, %v3255_v19  ;;  %v22399_v10 = vld [vmem:[#allocation142_spill] sm:$0xff] }
 0x257   : > { %22387 = vst [vmem:[#allocation109_spill] sm:$0xff] %v18570_v1  ;;  %v13593_v14 = vpack.c.bf16 %v18570_v1, %v18570_v1  ;;  %v18587_v22 = vadd.f32 %v18541_v0, %v5558_v6  ;;  %v18589_v29 = vpop.f32.mrf.mxu0  ;;  %v5563_v8 = vmul.f32 %v18522_v9, %v5527_v40  ;;  %v5525_v57 = vadd.f32 %v18503_v24, %v5246_v49  ;;  %v22494_v1 = vld [vmem:[#allocation78_spill] sm:$0xff] }
 0x258   : > { %v5249_v54 = vadd.f32 %v14971_v28, %v18411_v39  ;;  %v5134_v37 = vpop.f32.mrf.mxu1  ;;  %22390 = vst [vmem:[#allocation81_spill] sm:$0xff] %v18601_v61  ;;  %v6493_v39 = vor.u32 %v18579_v11, %v18575_v3  ;;  %v22067_v19 = vmax.f32 %v18601_v61, 0.0 }
 0x259   : > { %22388 = vst [vmem:[#allocation86_spill] sm:$0xff] %v18587_v22  ;;  %5881 = vst [vmem:[#allocation3 + $0xc] sm:$0xf] %v13593_v14  ;;  %v22066_v52 = vmax.f32 %v18587_v22, 0.0  ;;  %v5247_v34 = vadd.f32 %v5134_v37, %v4968_v32  ;;  %v18598_v13 = vpop.f32.mrf.mxu0  ;;  %v5561_v44 = vmul.f32 %v18522_v9, %v5525_v57  ;;  %v18619_v18 = vadd.f32 %v18541_v0, %v5563_v8  ;;  %v22396_v32 = vld [vmem:[#allocation131_spill] sm:$0xff] }
 0x25a   : > { %v5528_v24 = vadd.f32 %v18515_v56, %v5249_v54  ;;  %v14974_v62 = vpop.f32.mrf.mxu1  ;;  %v22393_v56 = vld [vmem:[#allocation141_spill] sm:$0xff]  ;;  %v3778_v14 = vadd.f32 %v18430_v4, %v22397_v53  ;;  %v3779_v4 = vadd.f32 %v18440_v15, %v3515_v46  ;;  %v22402_v46 = vld [vmem:[#allocation99_spill] sm:$0xff] }
 0x25b   : > { %v13692_v45 = vpack.c.bf16 %v22068_v30, %v22066_v52  ;;  %v5526_v27 = vadd.f32 %v18524_v20, %v5247_v34  ;;  %v5252_v7 = vadd.f32 %v14974_v62, %v18418_v50  ;;  %v18614_v59 = vpop.f32.mrf.mxu0  ;;  %v3775_v12 = vadd.f32 %v22393_v56, %v3511_v25  ;;  %22394 = vst [vmem:[#allocation105_spill] sm:$0xff] %v18619_v18  ;;  %v22421_v30 = vld [vmem:[#allocation130_spill] sm:$0xff] }
 0x25c   : > { %v18622_v6 = vadd.f32 %v18541_v0, %v5561_v44  ;;  %v5147_v35 = vpop.f32.mrf.mxu1  ;;  %v5564_v40 = vmul.f32 %v18522_v9, %v5528_v24  ;;  %v3259_v25 = vadd.f32 %v22396_v32, %v18536_v48  ;;  %v22400_v48 = vld [vmem:[#allocation138_spill] sm:$0xff]  ;;  %v22065_v62 = vmax.f32 %v18619_v18, 0.0  ;;  %v22405_v32 = vld [vmem:[#allocation139_spill] sm:$0xff]  ;;  %v22489_v18 = vld [vmem:[#allocation69_spill] sm:$0xff] }
 0x25d   : > { %13919 = vst [vmem:[#allocation3 + $0x10] sm:$0xff] %v13692_v45   ;;  %v5562_v20 = vmul.f32 %v18522_v9, %v5526_v27  ;;  %v5531_v50 = vadd.f32 %v18533_v47, %v5252_v7  ;;  %v5250_v49 = vadd.f32 %v5147_v35, %v4971_v55  ;;  %v18627_v28 = vpop.f32.mrf.mxu0  ;;  %v4972_v24 = vadd.f32 %v22400_v48, %v3775_v12  ;;  %v22403_v12 = vld [vmem:[#allocation134_spill] sm:$0xff] }
 0x25e   : > { %22395 = vst [vmem:[#allocation137_spill] sm:$0xff] %v18622_v6  ;;  %v22064_v8 = vmax.f32 %v18622_v6, 0.0  ;;  %v14975_v57 = vpop.f32.mrf.mxu1  ;;  %v18661_v56 = vadd.f32 %v22402_v46, %v3259_v25  ;;  %v18665_v35 = vadd.f32 %v22403_v12, %v18550_v60  ;;  %v4975_v53 = vadd.f32 %v22405_v32, %v3778_v14 }
 0x25f   : > { %v18636_v54 = vadd.f32 %v18541_v0, %v5562_v20  ;;  %v5567_v37 = vmul.f32 %v18522_v9, %v5531_v50  ;;  %v5529_v47 = vadd.f32 %v18545_v36, %v5250_v49  ;;  %v5253_v34 = vadd.f32 %v14975_v57, %v22399_v10  ;;  %v18641_v44 = vpop.f32.mrf.mxu0 }
 0x260   : > { %v13697_v33 = vpack.c.bf16 %v22064_v8, %v22067_v19  ;;  %v5150_v55 = vpop.f32.mrf.mxu1  ;;  %v18650_v45 = vld [vmem:[#allocation3 + $0xc] sm:$0xf]  ;;  %v18653_v36 = vadd.f32 %v18541_v0, %v5564_v40  ;;  %v22404_v40 = vld [vmem:[#allocation25_spill] sm:$0xff] }
 0x261   : > { %22398 = vst [vmem:[#allocation114_spill] sm:$0xff] %v18636_v54  ;;  %v22062_v27 = vmax.f32 %v18636_v54, 0.0  ;;  %v5565_v7 = vmul.f32 %v18522_v9, %v5529_v47  ;;  %v5532_v21 = vadd.f32 %v18559_v43, %v5253_v34  ;;  %v18658_v15 = vpop.f32.mrf.mxu0  ;;  %v5251_v20 = vadd.f32 %v5150_v55, %v4972_v24  ;;  %v22408_v34 = vld [vmem:[#allocation144_spill] sm:$0xff]  ;;  %v22416_v8 = vld [vmem:[#allocation143_spill] sm:$0xff] }
 0x262   : > { %22401 = vst [vmem:[#allocation141_spill] sm:$0xff] %v18653_v36  ;;  %13920 = vst [vmem:[#allocation3 + $0x18] sm:$0xff] %v13697_v33   ;;  %v14978_v50 = vpop.f32.mrf.mxu1  ;;  %v5953_v49 = vmul.bf16 %v18650_v45, %v22404_v40  ;;  %v18675_v25 = vadd.f32 %v18541_v0, %v5567_v37  ;;  %v22409_v33 = vld [vmem:[#allocation140_spill] sm:$0xff]  ;;  %v22063_v37 = vmax.f32 %v18653_v36, 0.0  ;;  %v22488_v36 = vld [vmem:[#allocation67_spill] sm:$0xff] }
 0x263   : > { %v13702_v43 = vpack.c.bf16 %v22065_v62, %v22062_v27  ;;  %v18678_v57 = vadd.f32 %v18541_v0, %v5565_v7  ;;  %v18680_v60 = vpop.f32.mrf.mxu0  ;;  %v5568_v47 = vmul.f32 %v18522_v9, %v5532_v21  ;;  %v5530_v10 = vadd.f32 %v18573_v41, %v5251_v20  ;;  %v22410_v41 = vld [vmem:[#allocation82_spill] sm:$0xff] }
 0x264   : > { %22406 = vst [vmem:[#allocation131_spill] sm:$0xff] %v18675_v25  ;;  %v5256_v48 = vadd.f32 %v14978_v50, %v22408_v34  ;;  %v5163_v14 = vpop.f32.mrf.mxu1  ;;  %v13133_v24 = vcombine.low %v5952_v17, %v5953_v49  ;;  %v4976_v55 = vadd.f32 %v22409_v33, %v3779_v4  ;;  %v18693_v21 = vld [vmem:[#allocation3 + $0x10] sm:$0xf]  ;;  %v3782_v20 = vadd.f32 %v18447_v42, %v22410_v41 }
 0x265   : > { %22407 = vst [vmem:[#allocation98_spill] sm:$0xff] %v18678_v57  ;;  %13921 = vst [vmem:[#allocation3 + $0x20] sm:$0xff] %v13702_v43   ;;  %v22061_v7 = vmax.f32 %v18678_v57, 0.0  ;;  %v5254_v46 = vadd.f32 %v5163_v14, %v4975_v53  ;;  %v18691_v12 = vpop.f32.mrf.mxu0  ;;  %v5566_v50 = vmul.f32 %v18522_v9, %v5530_v10  ;;  %v3783_v4 = vadd.f32 %v18454_v58, %v3519_v51  ;;  %v22411_v43 = vld [vmem:[#allocation147_spill] sm:$0xff]  ;;  %v18706_v14 = vld [vmem:[#allocation3 + $0x14] sm:$0xf] }
 0x266   : > { %v5535_v16 = vadd.f32 %v18589_v29, %v5256_v48  ;;  %v14979_v17 = vpop.f32.mrf.mxu1  ;;  %v6104_v49 = vshrl.u32 %v13133_v24, 16  ;;  %v22070_v10 = vmax.f32 %v18675_v25, 0.0  ;;  %v18712_v29 = vadd.f32 %v18541_v0, %v5568_v47  ;;  %v22414_v48 = vld [vmem:[#allocation27_spill] sm:$0xff]  ;;  %v22487_v57 = vld [vmem:[#allocation65_spill] sm:$0xff] }
 0x267   : > { %v13707_v32 = vpack.c.bf16 %v22061_v7, %v22063_v37  ;;  %v5533_v53 = vadd.f32 %v18598_v13, %v5254_v46  ;;  %v5257_v34 = vadd.f32 %v14979_v17, %v22411_v43  ;;  %v18708_v42 = vpop.f32.mrf.mxu0  ;;  %v18715_v58 = vadd.f32 %v18541_v0, %v5566_v50  ;;  %v22415_v37 = vld [vmem:[#allocation28_spill] sm:$0xff] }
 0x268   : > { %22412 = vst [vmem:[#allocation142_spill] sm:$0xff] %v18712_v29  ;;  %v5166_v51 = vpop.f32.mrf.mxu1  ;;  %v5954_v33 = vmul.bf16 %v18693_v21, %v22414_v48  ;;  %v5571_v13 = vmul.f32 %v18522_v9, %v5535_v16  ;;  %v6107_v17 = vshll.u32 %v13133_v24, 16  ;;  %v6106_v27 = vrot.slane %v6104_v49, 3  ;;  %v22419_v24 = vld [vmem:[#allocation145_spill] sm:$0xff] }
 0x269   : > { %22413 = vst [vmem:[#allocation138_spill] sm:$0xff] %v18715_v58  ;;  %13922 = vst [vmem:[#allocation3 + $0x28] sm:$0xff] %v13707_v32   ;;  %v5569_v46 = vmul.f32 %v18522_v9, %v5533_v53  ;;  %v5255_v41 = vadd.f32 %v5166_v51, %v4976_v55  ;;  %v22069_v43 = vmax.f32 %v18715_v58, 0.0  ;;  %v5536_v7 = vadd.f32 %v18614_v59, %v5257_v34  ;;  %v22418_v32 = vld [vmem:[#allocation149_spill] sm:$0xff]  ;;  %v5474_v55 = vpop.f32.mrf.mxu0  ;;  %v22486_v58 = vld [vmem:[#allocation64_spill] sm:$0xff] }
 0x26a   : > { %v14982_v47 = vpop.f32.mrf.mxu1  ;;  %v5955_v50 = vmul.bf16 %v18706_v14, %v22415_v37  ;;  %v4979_v62 = vadd.f32 %v22416_v8, %v3782_v20  ;;  %v4980_v51 = vadd.f32 %v22419_v24, %v3783_v4  ;;  %v22076_v19 = vmax.f32 %v18712_v29, 0.0 }
 0x26b   : > { %v18727_v52 = vadd.f32 %v18541_v0, %v5569_v46  ;;  %v5534_v16 = vadd.f32 %v18627_v28, %v5255_v41  ;;  %v5260_v53 = vadd.f32 %v14982_v47, %v22418_v32  ;;  %v13712_v59 = vpack.c.bf16 %v22070_v10, %v22069_v43  ;;  %v22422_v43 = vld [vmem:[#allocation153_spill] sm:$0xff] }
 0x26c   : > { %v5179_v49 = vpop.f32.mrf.mxu1  ;;  %v6109_v34 = vrot.slane %v6107_v17, 4  ;;  %v18738_v8 = vadd.f32 %v18541_v0, %v5571_v13  ;;  %v5572_v4 = vmul.f32 %v18522_v9, %v5536_v7  ;;  %v13134_v24 = vcombine.low %v5954_v33, %v5955_v50 }
 0x26d   : > { %22417 = vst [vmem:[#allocation99_spill] sm:$0xff] %v18727_v52  ;;  %v22074_v20 = vmax.f32 %v18727_v52, 0.0  ;;  %v5570_v28 = vmul.f32 %v18522_v9, %v5534_v16  ;;  %v5539_v46 = vadd.f32 %v18641_v44, %v5260_v53  ;;  %13923 = vst [vmem:[#allocation3 + $0x30] sm:$0xff] %v13712_v59   ;;  %v5258_v41 = vadd.f32 %v5179_v49, %v4979_v62  ;;  %v18755_v16 = vpop.f32.mrf.mxu0  ;;  %v22426_v49 = vld [vmem:[#allocation148_spill] sm:$0xff] }
 0x26e   : > { %22420 = vst [vmem:[#allocation134_spill] sm:$0xff] %v18738_v8  ;;  %v6110_v47 = vor.u32 %v6109_v34, %v6106_v27  ;;  %v14983_v32 = vpop.f32.mrf.mxu1  ;;  %v3786_v10 = vadd.f32 %v22422_v43, %v22421_v30  ;;  %v3787_v13 = vadd.f32 %v18468_v63, %v18661_v56  ;;  %v22424_v63 = vld [vmem:[#allocation151_spill] sm:$0xff]  ;;  %v22075_v33 = vmax.f32 %v18738_v8, 0.0 }
 0x26f   : > { %v13717_v17 = vpack.c.bf16 %v22074_v20, %v22076_v19  ;;  %v18753_v44 = vadd.f32 %v18541_v0, %v5570_v28  ;;  %v5575_v62 = vmul.f32 %v18522_v9, %v5539_v46  ;;  %v5537_v27 = vadd.f32 %v18658_v15, %v5258_v41  ;;  %v5477_v41 = vpop.f32.mrf.mxu0  ;;  %v22438_v20 = vld [vmem:[#allocation156_spill] sm:$0xff] }
 0x270   : > { %v6494_v30 = vsel %vm2019_vm9, %v6493_v39, %v6110_v47  ;;  %v5261_v56 = vadd.f32 %v14983_v32, %v22424_v63  ;;  %v5182_v7 = vpop.f32.mrf.mxu1  ;;  %v6112_v53 = vshrl.u32 %v13134_v24, 16  ;;  %v18767_v59 = vadd.f32 %v18541_v0, %v5572_v4 }
 0x271   : > { %22423 = vst [vmem:[#allocation139_spill] sm:$0xff] %v18753_v44  ;;  %13924 = vst [vmem:[#allocation3 + $0x38] sm:$0xff] %v13717_v17   ;;  %v22072_v43 = vmax.f32 %v18753_v44, 0.0  ;;  %15108 = vmatprep.mubr.bf16.mxu0 %v6494_v30  ;;  %v5259_v50 = vadd.f32 %v5182_v7, %v4980_v51  ;;  %v5573_v15 = vmul.f32 %v18522_v9, %v5537_v27  ;;  %v6115_v11 = vshll.u32 %v13134_v24, 16 }
 0x272   : > { %22425 = vst [vmem:[#allocation144_spill] sm:$0xff] %v18767_v59  ;;  %v5540_v3 = vadd.f32 %v18680_v60, %v5261_v56  ;;  %v14986_v39 = vpop.f32.mrf.mxu1  ;;  %v4983_v34 = vadd.f32 %v22426_v49, %v3786_v10  ;;  %v6114_v51 = vrot.slane %v6112_v53, 3  ;;  %v18778_v4 = vadd.f32 %v18541_v0, %v5575_v62  ;;  %v18790_v56 = vld [vmem:[#allocation3 + $0x18] sm:$0xf]  ;;  %v22430_v62 = vld [vmem:[#allocation150_spill] sm:$0xff] }
 0x273   : > { %v13722_v28 = vpack.c.bf16 %v22075_v33, %v22072_v43  ;;  %v5538_v46 = vadd.f32 %v18691_v12, %v5259_v50  ;;  %v18781_v32 = vadd.f32 %v18541_v0, %v5573_v15  ;;  %v6117_v24 = vrot.slane %v6115_v11, 4  ;;  %v22429_v12 = vld [vmem:[#allocation154_spill] sm:$0xff]  ;;  %v22431_v49 = vld [vmem:[#allocation133_spill] sm:$0xff] }
 0x274   : > { %22427 = vst [vmem:[#allocation140_spill] sm:$0xff] %v18778_v4  ;;  %v5576_v60 = vmul.f32 %v18522_v9, %v5540_v3  ;;  %v5195_v17 = vpop.f32.mrf.mxu1  ;;  %v18787_v27 = vcombine.low %v18650_v45, %v18693_v21  ;;  %v5264_v30 = vadd.f32 %v14986_v39, %v22429_v12  ;;  %v4984_v7 = vadd.f32 %v22430_v62, %v3787_v13  ;;  %v18797_v3 = vld [vmem:[#allocation3 + $0x1c] sm:$0xf]  ;;  %v16058_v13 = vld [vmem:[#allocation8 + $0x70] sm:$0xff]  }
 0x275   : > { %22428 = vst [vmem:[#allocation82_spill] sm:$0xff] %v18781_v32  ;;  %13925 = vst [vmem:[#allocation3 + $0x40] sm:$0xff] %v13722_v28   ;;  %v5574_v10 = vmul.f32 %v18522_v9, %v5538_v46  ;;  %v5262_v63 = vadd.f32 %v5195_v17, %v4983_v34  ;;  %v22073_v50 = vmax.f32 %v18767_v59, 0.0  ;;  %v22071_v53 = vmax.f32 %v18781_v32, 0.0  ;;  %v22432_v28 = vld [vmem:[#allocation157_spill] sm:$0xff]  ;;  %v15038_v46 = vpop.f32.mrf.mxu0  ;;  %v22439_v17 = vld [vmem:[#allocation146_spill] sm:$0xff] }
 0x276   : > { %v18795_v15 = vor.u32 %v6117_v24, %v6114_v51  ;;  %v14987_v11 = vpop.f32.mrf.mxu1  ;;  %v3790_v45 = vadd.f32 %v22432_v28, %v22431_v49  ;;  %v5543_v39 = vadd.f32 %v18708_v42, %v5264_v30  ;;  %v22434_v12 = vld [vmem:[#allocation41_spill] sm:$0xff]  ;;  %v18814_v49 = vld [vmem:[#allocation3 + $0x20] sm:$0xf]  ;;  %v18817_v42 = vadd.f32 %v18541_v0, %v5576_v60 }
 0x277   : > { %v18802_v21 = vadd.f32 %v18541_v0, %v5574_v10  ;;  %v5541_v34 = vadd.f32 %v5474_v55, %v5262_v63  ;;  %v13727_v51 = vpack.c.bf16 %v22071_v53, %v22073_v50  ;;  %v5956_v62 = vmul.bf16 %v18790_v56, %v22434_v12  ;;  %v22436_v63 = vld [vmem:[#allocation42_spill] sm:$0xff] }
 0x278   : > { %v6119_v24 = vsel %vm2019_vm9, %v6110_v47, %v18795_v15  ;;  %v5198_v10 = vpop.f32.mrf.mxu1  ;;  %22435 = vst [vmem:[#allocation143_spill] sm:$0xff] %v18817_v42  ;;  %v5957_v28 = vmul.bf16 %v18797_v3, %v22436_v63  ;;  %v18823_v53 = vld [vmem:[#allocation3 + $0x24] sm:$0xf]  ;;  %v22437_v47 = vld [vmem:[#allocation129_spill] sm:$0xff]  ;;  %v5579_v50 = vmul.f32 %v18522_v9, %v5543_v39  ;;  %v5265_v60 = vadd.f32 %v14987_v11, %v22438_v20  ;;  %v5490_v39 = vpop.f32.mrf.mxu0 }
 0x279   : > { %22433 = vst [vmem:[#allocation147_spill] sm:$0xff] %v18802_v21  ;;  %15060 = vmatprep.mubr.bf16.mxu1 %v6119_v24  ;;  %15109 = vmatmul.mubr.bf16.vlgmr.msra.gmra.mxu0 %v6119_v24  ;;  %v5577_v30 = vmul.f32 %v18522_v9, %v5541_v34  ;;  %v3527_v43 = vadd.f32 %v22437_v47, %v18665_v35  ;;  %13926 = vst [vmem:[#allocation3 + $0x48] sm:$0xff] %v13727_v51   ;;  %v22440_v24 = vld [vmem:[#allocation152_spill] sm:$0xff]  ;;  %v22441_v34 = vmax.f32 %v18802_v21, 0.0  ;;  %v22444_v35 = vld [vmem:[#allocation53_spill] sm:$0xff] }
 0x27a   : > { %v5263_v33 = vadd.f32 %v5198_v10, %v4984_v7  ;;  %v14990_v19 = vpop.f32.mrf.mxu1  ;;  %15189 = vmatpush3.bf16.msra.mxu0 %v22439_v17  ;;  %v4987_v55 = vadd.f32 %v22440_v24, %v3790_v45  ;;  %v22442_v63 = vmax.f32 %v18778_v4, 0.0  ;;  %v5958_v51 = vmul.bf16 %v18814_v49, %v22444_v35  ;;  %v16059_v20 = vld [vmem:[#allocation8 + $0x68] sm:$0xff]   ;;  %v22445_v10 = vld [vmem:[#allocation56_spill] sm:$0xff] }
 0x27b   : > { %v18836_v37 = vadd.f32 %v18541_v0, %v5577_v30  ;;  %15190 = vmatprep.subr.bf16.mxu0 %v16058_v13  ;;  %v13135_v7 = vcombine.low %v5956_v62, %v5957_v28  ;;  %v5544_v11 = vadd.f32 %v18755_v16, %v5265_v60  ;;  %v5959_v45 = vmul.bf16 %v18823_v53, %v22445_v10  ;;  %v15039_v60 = vpop.f32.mrf.mxu0 }
 0x27c   : > { %v13732_v12 = vpack.c.bf16 %v22442_v63, %v22441_v34  ;;  %v5542_v17 = vadd.f32 %v5477_v41, %v5263_v33  ;;  %v5211_v47 = vpop.f32.mrf.mxu1  ;;  %v22080_v24 = vmax.f32 %v18817_v42, 0.0  ;;  %v22446_v63 = vld [vmem:[#allocation158_spill] sm:$0xff]  ;;  %v18847_v35 = vadd.f32 %v18541_v0, %v5579_v50  ;;  %v22448_v41 = vld [vmem:[#allocation128_spill] sm:$0xff]  ;;  %v16054_v42 = vld [vmem:[#allocation8 + $0x1a8] sm:$0xff]  }
 0x27d   : > { %22443 = vst [vmem:[#allocation149_spill] sm:$0xff] %v18836_v37  ;;  %v22079_v30 = vmax.f32 %v18836_v37, 0.0  ;;  %v5268_v34 = vadd.f32 %v14990_v19, %v22446_v63  ;;  %v5266_v48 = vadd.f32 %v5211_v47, %v4987_v55  ;;  %v6121_v40 = vshrl.u32 %v13135_v7, 16  ;;  %v16061_v50 = vld [vmem:[#allocation8 + $0x60] sm:$0xff]  }
 0x27e   : > { %13927 = vst [vmem:[#allocation3 + $0x50] sm:$0xff] %v13732_v12   ;;  %22447 = vst [vmem:[#allocation145_spill] sm:$0xff] %v18847_v35  ;;  %v6124_v62 = vshll.u32 %v13135_v7, 16  ;;  %v5578_v16 = vmul.f32 %v18522_v9, %v5542_v17  ;;  %v14991_v33 = vpop.f32.mrf.mxu1  ;;  %15191 = vmatpush3.bf16.msra.mxu0 %v16058_v13  ;;  %v2913_v28 = vadd.f32 %v22448_v41, %v18554_v2  ;;  %v22449_v47 = vld [vmem:[#allocation160_spill] sm:$0xff] }
 0x27f   : > { %v13737_v12 = vpack.c.bf16 %v22079_v30, %v22080_v24  ;;  %v5580_v19 = vmul.f32 %v18522_v9, %v5544_v11  ;;  %v13136_v55 = vcombine.low %v5958_v51, %v5959_v45  ;;  %15192 = vmatprep.subr.bf16.mxu0 %v16059_v20  ;;  %v3791_v7 = vadd.f32 %v22449_v47, %v3527_v43  ;;  %v18861_v30 = vld [vmem:[#allocation3 + $0x28] sm:$0xf]  ;;  %v22451_v11 = vld [vmem:[#allocation136_spill] sm:$0xff] }
 0x280   : > { %v6123_v63 = vrot.slane %v6121_v40, 3  ;;  %v6126_v17 = vrot.slane %v6124_v62, 4  ;;  %v18859_v13 = vadd.f32 %v18541_v0, %v5578_v16  ;;  %v5214_v10 = vpop.f32.mrf.mxu1  ;;  %v5547_v26 = vadd.f32 %v15038_v46, %v5268_v34  ;;  %v16053_v40 = vld [vmem:[#allocation8 + $0x1b0] sm:$0xff]   ;;  %v18870_v46 = vld [vmem:[#allocation3 + $0x2c] sm:$0xf] }
 0x281   : > { %13928 = vst [vmem:[#allocation3 + $0x58] sm:$0xff] %v13737_v12   ;;  %v6130_v2 = vshrl.u32 %v13136_v55, 16  ;;  %v6133_v41 = vshll.u32 %v13136_v55, 16  ;;  %v5545_v37 = vadd.f32 %v5490_v39, %v5266_v48  ;;  %v3267_v51 = vadd.f32 %v22451_v11, %v2913_v28  ;;  %v5493_v48 = vpop.f32.mrf.mxu0  ;;  %v18872_v39 = vld [vmem:[#allocation3 + $0x30] sm:$0xf]  ;;  %v22453_v28 = vld [vmem:[#allocation155_spill] sm:$0xff] }
 0x282   : > { %22450 = vst [vmem:[#allocation130_spill] sm:$0xff] %v18859_v13  ;;  %v22082_v45 = vmax.f32 %v18847_v35, 0.0  ;;  %v6127_v24 = vor.u32 %v6126_v17, %v6123_v63  ;;  %v22081_v43 = vmax.f32 %v18859_v13, 0.0  ;;  %15193 = vmatpush3.bf16.msra.mxu0 %v16059_v20  ;;  %v18867_v62 = vadd.f32 %v18541_v0, %v5580_v19  ;;  %v14994_v34 = vpop.f32.mrf.mxu1  ;;  %v22454_v19 = vld [vmem:[#allocation62_spill] sm:$0xff]  ;;  %v18885_v17 = vld [vmem:[#allocation3 + $0x34] sm:$0xf] }
 0x283   : > { %v6132_v16 = vrot.slane %v6130_v2, 3  ;;  %v6135_v12 = vrot.slane %v6133_v41, 4  ;;  %v5581_v55 = vmul.f32 %v18522_v9, %v5545_v37  ;;  %15194 = vmatprep.subr.bf16.mxu0 %v16061_v50  ;;  %v4988_v47 = vadd.f32 %v22453_v28, %v3791_v7  ;;  %v16062_v41 = vld [vmem:[#allocation8 + $0x58] sm:$0xff]   ;;  %v22459_v35 = vld [vmem:[#allocation66_spill] sm:$0xff] }
 0x284   : > { %22452 = vst [vmem:[#allocation153_spill] sm:$0xff] %v18867_v62  ;;  %v18877_v63 = vsel %vm2019_vm9, %v18795_v15, %v6127_v24  ;;  %v13742_v20 = vpack.c.bf16 %v22082_v45, %v22081_v43  ;;  %v5960_v37 = vmul.bf16 %v18861_v30, %v22454_v19  ;;  %v5583_v7 = vmul.f32 %v18522_v9, %v5547_v26  ;;  %v22456_v11 = vld [vmem:[#allocation135_spill] sm:$0xff]  ;;  %v22458_v45 = vld [vmem:[#allocation161_spill] sm:$0xff] }
 0x285   : > { %15061 = vmatmul.mubr.bf16.vlgmr.msra.gmra.mxu1 %v18877_v63  ;;  %15112 = vmatprep.mubr.bf16.mxu0 %v18877_v63  ;;  %v18889_v2 = vor.u32 %v6135_v12, %v6132_v16  ;;  %v18893_v15 = vadd.f32 %v18541_v0, %v5581_v55  ;;  %v22457_v28 = vld [vmem:[#allocation63_spill] sm:$0xff]  ;;  %v5269_v19 = vadd.f32 %v14991_v33, %v22458_v45  ;;  %v22460_v55 = vld [vmem:[#allocation68_spill] sm:$0xff] }
 0x286   : > { %15141 = vmatpush3.bf16.msra.mxu1 %v22456_v11  ;;  %13929 = vst [vmem:[#allocation3 + $0x60] sm:$0xff] %v13742_v20   ;;  %v5961_v43 = vmul.bf16 %v18870_v46, %v22457_v28  ;;  %v5267_v13 = vadd.f32 %v5214_v10, %v4988_v47  ;;  %v5962_v21 = vmul.bf16 %v18872_v39, %v22459_v35  ;;  %v15042_v11 = vpop.f32.mrf.mxu0  ;;  %v5227_v28 = vpop.f32.mrf.mxu1  ;;  %v16064_v47 = vld [vmem:[#allocation8 + $0x50] sm:$0xff]   ;;  %v22463_v35 = vmax.f32 %v18867_v62, 0.0 }
 0x287   : > { %22455 = vst [vmem:[#allocation151_spill] sm:$0xff] %v18893_v15  ;;  %v18904_v26 = vsel %vm2019_vm9, %v6127_v24, %v18889_v2  ;;  %15142 = vmatprep.subr.bf16.mxu1 %v16053_v40  ;;  %v5963_v20 = vmul.bf16 %v18885_v17, %v22460_v55  ;;  %15195 = vmatpush3.bf16.msra.mxu0 %v16061_v50  ;;  %v22461_v24 = vld [vmem:[#allocation132_spill] sm:$0xff]  ;;  %v22464_v55 = vmax.f32 %v18893_v15, 0.0 }
 0x288   : > { %15064 = vmatprep.mubr.bf16.mxu1 %v18904_v26  ;;  %15113 = vmatmul.mubr.bf16.gmra.mxu0 %v18904_v26  ;;  %v13137_v10 = vcombine.low %v5960_v37, %v5961_v43  ;;  %v5548_v33 = vadd.f32 %v15039_v60, %v5269_v19  ;;  %v5546_v45 = vadd.f32 %v5493_v48, %v5267_v13  ;;  %v22465_v48 = vld [vmem:[#allocation162_spill] sm:$0xff]  ;;  %v19006_v59 = vld [vmem:[#allocation3 + $0x58] sm:$0xf] }
 0x289   : > { %v3531_v16 = vadd.f32 %v22461_v24, %v3267_v51  ;;  %v18913_v12 = vadd.f32 %v18541_v0, %v5583_v7  ;;  %v13747_v32 = vpack.c.bf16 %v22464_v55, %v22463_v35  ;;  %v13138_v4 = vcombine.low %v5962_v21, %v5963_v20  ;;  %15196 = vmatprep.subr.bf16.mxu0 %v16062_v41  ;;  %v5506_v7 = vpop.f32.mrf.mxu0  ;;  %v18923_v24 = vld [vmem:[#allocation3 + $0x38] sm:$0xf]  ;;  %v14995_v21 = vpop.f32.mrf.mxu1  ;;  %v16055_v35 = vld [vmem:[#allocation8 + $0x1a0] sm:$0xff]  }
 0x28a   : > { %v6139_v50 = vshrl.u32 %v13137_v10, 16  ;;  %v6142_v44 = vshll.u32 %v13137_v10, 16  ;;  %15143 = vmatpush3.bf16.msra.mxu1 %v16053_v40  ;;  %v5584_v43 = vmul.f32 %v18522_v9, %v5548_v33  ;;  %v5582_v60 = vmul.f32 %v18522_v9, %v5546_v45 }
 0x28b   : > { %22462 = vst [vmem:[#allocation148_spill] sm:$0xff] %v18913_v12  ;;  %13930 = vst [vmem:[#allocation3 + $0x68] sm:$0xff] %v13747_v32   ;;  %v6148_v13 = vshrl.u32 %v13138_v4, 16  ;;  %v6151_v51 = vshll.u32 %v13138_v4, 16  ;;  %v5272_v19 = vadd.f32 %v14994_v34, %v22465_v48  ;;  %v5270_v37 = vadd.f32 %v5227_v28, %v18492_v5  ;;  %15144 = vmatprep.subr.bf16.mxu1 %v16054_v42  ;;  %v18929_v32 = vld [vmem:[#allocation3 + $0x3c] sm:$0xf] }
 0x28c   : > { %15197 = vmatpush3.bf16.msra.mxu0 %v16062_v41  ;;  %v3795_v40 = vadd.f32 %v18497_v23, %v3531_v16  ;;  %v6141_v55 = vrot.slane %v6139_v50, 3  ;;  %v6144_v20 = vrot.slane %v6142_v44, 4  ;;  %v18927_v10 = vadd.f32 %v18541_v0, %v5582_v60  ;;  %v22467_v41 = vld [vmem:[#allocation70_spill] sm:$0xff]  ;;  %v22469_v60 = vld [vmem:[#allocation71_spill] sm:$0xff] }
 0x28d   : > { %15198 = vmatprep.subr.bf16.mxu0 %v16064_v47  ;;  %v6150_v4 = vrot.slane %v6148_v13, 3  ;;  %v6153_v34 = vrot.slane %v6151_v51, 4  ;;  %v5551_v5 = vadd.f32 %v15042_v11, %v5272_v19  ;;  %v5549_v28 = vadd.f32 %v5506_v7, %v5270_v37  ;;  %v15043_v13 = vpop.f32.mrf.mxu0  ;;  %v5230_v51 = vpop.f32.mrf.mxu1  ;;  %v16065_v19 = vld [vmem:[#allocation8 + $0x48] sm:$0xff]   ;;  %v22470_v37 = vld [vmem:[#allocation159_spill] sm:$0xff] }
 0x28e   : > { %22466 = vst [vmem:[#allocation154_spill] sm:$0xff] %v18927_v10  ;;  %v22091_v33 = vmax.f32 %v18913_v12, 0.0  ;;  %v6145_v45 = vor.u32 %v6144_v20, %v6141_v55  ;;  %v22090_v48 = vmax.f32 %v18927_v10, 0.0  ;;  %v5964_v23 = vmul.bf16 %v18923_v24, %v22467_v41  ;;  %15145 = vmatpush3.bf16.msra.mxu1 %v16054_v42  ;;  %v18954_v20 = vld [vmem:[#allocation3 + $0x44] sm:$0xf]  ;;  %v22473_v10 = vld [vmem:[#allocation73_spill] sm:$0xff] }
 0x28f   : > { %v18936_v44 = vadd.f32 %v18541_v0, %v5584_v43  ;;  %v18938_v16 = vor.u32 %v6153_v34, %v6150_v4  ;;  %v5585_v50 = vmul.f32 %v18522_v9, %v5549_v28  ;;  %v5965_v11 = vmul.bf16 %v18929_v32, %v22469_v60  ;;  %15146 = vmatprep.subr.bf16.mxu1 %v16055_v35  ;;  %v18952_v43 = vld [vmem:[#allocation3 + $0x40] sm:$0xf]  ;;  %v16057_v4 = vld [vmem:[#allocation8 + $0x198] sm:$0xff]   ;;  %v16067_v28 = vld [vmem:[#allocation8 + $0x40] sm:$0xff]   ;;  %v5509_v41 = vpop.f32.mrf.mxu0 }
 0x290   : > { %v4992_v7 = vadd.f32 %v22470_v37, %v3795_v40  ;;  %v18946_v55 = vsel %vm2019_vm9, %v18889_v2, %v6145_v45  ;;  %v13752_v42 = vpack.c.bf16 %v22091_v33, %v22090_v48  ;;  %15199 = vmatpush3.bf16.msra.mxu0 %v16064_v47  ;;  %v5587_v2 = vmul.f32 %v18522_v9, %v5551_v5  ;;  %v22472_v37 = vld [vmem:[#allocation163_spill] sm:$0xff] }
 0x291   : > { %22468 = vst [vmem:[#allocation150_spill] sm:$0xff] %v18936_v44  ;;  %15065 = vmatmul.mubr.bf16.gmra.mxu1 %v18946_v55  ;;  %15116 = vmatprep.mubr.bf16.mxu0 %v18946_v55  ;;  %v18960_v40 = vsel %vm2019_vm9, %v6145_v45, %v18938_v16  ;;  %v18964_v34 = vadd.f32 %v18541_v0, %v5585_v50  ;;  %v22098_v60 = vmax.f32 %v18936_v44, 0.0  ;;  %v22474_v50 = vld [vmem:[#allocation75_spill] sm:$0xff]  ;;  %v22476_v44 = vld [vmem:[#allocation34_spill] sm:$0xff] }
 0x292   : > { %13931 = vst [vmem:[#allocation3 + $0x70] sm:$0xff] %v13752_v42   ;;  %15068 = vmatprep.mubr.bf16.mxu1 %v18960_v40  ;;  %15117 = vmatmul.mubr.bf16.gmra.mxu0 %v18960_v40  ;;  %v13139_v47 = vcombine.low %v5964_v23, %v5965_v11  ;;  %v5273_v48 = vadd.f32 %v14995_v21, %v22472_v37  ;;  %v16060_v42 = vld [vmem:[#allocation8 + $0x190] sm:$0xff]   ;;  %v18975_v21 = vld [vmem:[#allocation3 + $0x48] sm:$0xf] }
 0x293   : > { %22471 = vst [vmem:[#allocation133_spill] sm:$0xff] %v18964_v34  ;;  %v5271_v33 = vadd.f32 %v5230_v51, %v4992_v7  ;;  %v22097_v45 = vmax.f32 %v18964_v34, 0.0  ;;  %v5966_v5 = vmul.bf16 %v18952_v43, %v22473_v10  ;;  %v5967_v15 = vmul.bf16 %v18954_v20, %v22474_v50  ;;  %15147 = vmatpush3.bf16.msra.mxu1 %v16055_v35  ;;  %v18977_v51 = vld [vmem:[#allocation3 + $0x4c] sm:$0xf]  ;;  %v18986_v50 = vld [vmem:[#allocation3 + $0x50] sm:$0xf] }
 0x294   : > { %15200 = vmatprep.subr.bf16.mxu0 %v16065_v19  ;;  %v6157_v12 = vshrl.u32 %v13139_v47, 16  ;;  %v6160_v62 = vshll.u32 %v13139_v47, 16  ;;  %v5552_v23 = vadd.f32 %v15043_v13, %v5273_v48  ;;  %15148 = vmatprep.subr.bf16.mxu1 %v16057_v4  ;;  %v18980_v7 = vadd.f32 %v18541_v0, %v5587_v2  ;;  %v18990_v47 = vld [vmem:[#allocation3 + $0x54] sm:$0xf]  ;;  %v19033_v52 = vld [vmem:[#allocation3 + $0x68] sm:$0xf] }
 0x295   : > { %v5550_v11 = vadd.f32 %v5509_v41, %v5271_v33  ;;  %15201 = vmatpush3.bf16.msra.mxu0 %v16065_v19  ;;  %v13757_v35 = vpack.c.bf16 %v22097_v45, %v22098_v60  ;;  %v13140_v37 = vcombine.low %v5966_v5, %v5967_v15  ;;  %v18992_v19 = vld [vmem:[#allocation8 + $0x1f8] sm:$0xff]   ;;  %v5968_v45 = vmul.bf16 %v18975_v21, %v22476_v44  ;;  %v22477_v15 = vld [vmem:[#allocation37_spill] sm:$0xff]  ;;  %v22480_v34 = vld [vmem:[#allocation40_spill] sm:$0xff] }
 0x296   : > { %22475 = vst [vmem:[#allocation157_spill] sm:$0xff] %v18980_v7  ;;  %15202 = vmatprep.subr.bf16.mxu0 %v16067_v28  ;;  %v6159_v48 = vrot.slane %v6157_v12, 3  ;;  %v6162_v33 = vrot.slane %v6160_v62, 4  ;;  %v5588_v41 = vmul.f32 %v18522_v9, %v5552_v23  ;;  %v5969_v5 = vmul.bf16 %v18977_v51, %v22477_v15  ;;  %v16063_v15 = vld [vmem:[#allocation8 + $0x188] sm:$0xff]  }
 0x297   : > { %v5586_v13 = vmul.f32 %v18522_v9, %v5550_v11  ;;  %13932 = vst [vmem:[#allocation3 + $0x78] sm:$0xff] %v13757_v35   ;;  %v6166_v2 = vshrl.u32 %v13140_v37, 16  ;;  %v6169_v10 = vshll.u32 %v13140_v37, 16  ;;  %15149 = vmatpush3.bf16.msra.mxu1 %v16057_v4  ;;  %v22479_v9 = vld [vmem:[#allocation39_spill] sm:$0xff]  ;;  %v5971_v44 = vmul.bf16 %v18990_v47, %v22480_v34 }
 0x298   : > { %v6163_v12 = vor.u32 %v6162_v33, %v6159_v48  ;;  %v5624_v62 = vadd.f32 %v18541_v0, %v5588_v41  ;;  %v5970_v11 = vmul.bf16 %v18986_v50, %v22479_v9  ;;  %15150 = vmatprep.subr.bf16.mxu1 %v16060_v42  ;;  %v13141_v37 = vcombine.low %v5968_v45, %v5969_v5  ;;  %v19016_v41 = vld [vmem:[#allocation3 + $0x5c] sm:$0xf]  ;;  %v22482_v34 = vld [vmem:[#allocation51_spill] sm:$0xff] }
 0x299   : > { %v19000_v23 = vadd.f32 %v18541_v0, %v5586_v13  ;;  %v6168_v35 = vrot.slane %v6166_v2, 3  ;;  %v6171_v60 = vrot.slane %v6169_v10, 4  ;;  %15203 = vmatpush3.bf16.msra.mxu0 %v16067_v28  ;;  %v22105_v4 = vmax.f32 %v18980_v7, 0.0  ;;  %v19021_v2 = vld [vmem:[#allocation3 + $0x60] sm:$0xf] }
 0x29a   : > { %v19011_v0 = vsel %vm2019_vm9, %v18938_v16, %v6163_v12  ;;  %v19013_v48 = vmax.f32 %v5624_v62, 0.0  ;;  %15284 = vmatprep.subr.bf16.mxu0 %v18992_v19  ;;  %v6175_v28 = vshrl.u32 %v13141_v37, 16  ;;  %v6178_v45 = vshll.u32 %v13141_v37, 16  ;;  %v19023_v16 = vld [vmem:[#allocation3 + $0x64] sm:$0xf] }
 0x29b   : > { %22478 = vst [vmem:[#allocation129_spill] sm:$0xff] %v19000_v23  ;;  %v22104_v33 = vmax.f32 %v19000_v23, 0.0  ;;  %15069 = vmatmul.mubr.bf16.gmra.mxu1 %v19011_v0  ;;  %15120 = vmatprep.mubr.bf16.mxu0 %v19011_v0  ;;  %v6172_v10 = vor.u32 %v6171_v60, %v6168_v35  ;;  %v13142_v13 = vcombine.low %v5970_v11, %v5971_v44  ;;  %v19035_v60 = vld [vmem:[#allocation3 + $0x6c] sm:$0xf]  ;;  %v16066_v23 = vld [vmem:[#allocation8 + $0x180] sm:$0xff]  }
 0x29c   : > { %22481 = vst [vmem:[#allocation156_spill] sm:$0xff] %v19013_v48  ;;  %v13624_v5 = vpack.c.bf16 %v19013_v48, %v19013_v48  ;;  %v5972_v9 = vmul.bf16 %v19006_v59, %v22482_v34  ;;  %15151 = vmatpush3.bf16.msra.mxu1 %v16060_v42  ;;  %v6177_v11 = vrot.slane %v6175_v28, 3  ;;  %v6180_v35 = vrot.slane %v6178_v45, 4  ;;  %v19040_v48 = vld [vmem:[#allocation3 + $0x70] sm:$0xf]  ;;  %v22485_v28 = vld [vmem:[#allocation61_spill] sm:$0xff] }
 0x29d   : > { %v13762_v62 = vpack.c.bf16 %v22105_v4, %v22104_v33  ;;  %v19038_v44 = vsel %vm2019_vm9, %v6163_v12, %v6172_v10  ;;  %v6184_v37 = vshrl.u32 %v13142_v13, 16  ;;  %15152 = vmatprep.subr.bf16.mxu1 %v16063_v15  ;;  %v6187_v33 = vshll.u32 %v13142_v13, 16  ;;  %v22483_v4 = vld [vmem:[#allocation52_spill] sm:$0xff] }
 0x29e   : > { %5912 = vst [vmem:[#allocation3 + $0x88] sm:$0xf] %v13624_v5  ;;  %15072 = vmatprep.mubr.bf16.mxu1 %v19038_v44  ;;  %15121 = vmatmul.mubr.bf16.gmra.mxu0 %v19038_v44  ;;  %v5973_v42 = vmul.bf16 %v19016_v41, %v22483_v4  ;;  %v22484_v34 = vld [vmem:[#allocation60_spill] sm:$0xff]  ;;  %v5975_v45 = vmul.bf16 %v19023_v16, %v22485_v28  ;;  %v19052_v8 = vld [vmem:[#allocation3 + $0x78] sm:$0xf] }
 0x29f   : > { %13933 = vst [vmem:[#allocation3 + $0x80] sm:$0xff] %v13762_v62   ;;  %v5974_v12 = vmul.bf16 %v19021_v2, %v22484_v34  ;;  %v19050_v7 = vld [vmem:[#allocation3 + $0x74] sm:$0xf]  ;;  %v6181_v5 = vor.u32 %v6180_v35, %v6177_v11  ;;  %v6186_v62 = vrot.slane %v6184_v37, 3  ;;  %v5976_v29 = vmul.bf16 %v19033_v52, %v22486_v58  ;;  %v19067_v58 = vld [vmem:[#allocation8 + $0x138] sm:$0xff]  }
 0x2a0   : > { %v5977_v13 = vmul.bf16 %v19035_v60, %v22487_v57  ;;  %v6189_v25 = vrot.slane %v6187_v33, 4  ;;  %v13143_v4 = vcombine.low %v5972_v9, %v5973_v42  ;;  %v5978_v34 = vmul.bf16 %v19040_v48, %v22488_v36  ;;  %15153 = vmatpush3.bf16.msra.mxu1 %v16063_v15  ;;  %v22490_v35 = vld [vmem:[#allocation72_spill] sm:$0xff] }
 0x2a1   : > { %v13144_v54 = vcombine.low %v5974_v12, %v5975_v45  ;;  %v19061_v28 = vsel %vm2019_vm9, %v6172_v10, %v6181_v5  ;;  %v5979_v11 = vmul.bf16 %v19050_v7, %v22489_v18  ;;  %v5980_v37 = vmul.bf16 %v19052_v8, %v22490_v35  ;;  %15154 = vmatprep.subr.bf16.mxu1 %v16066_v23 }
 0x2a2   : > { %v13145_v6 = vcombine.low %v5976_v29, %v5977_v13  ;;  %15124 = vmatprep.mubr.bf16.mxu0 %v19061_v28  ;;  %v6190_v9 = vor.u32 %v6189_v25, %v6186_v62  ;;  %v6193_v33 = vshrl.u32 %v13143_v4, 16  ;;  %v6196_v42 = vshll.u32 %v13143_v4, 16  ;;  %v19071_v13 = vld [vmem:[#allocation3 + $0x7c] sm:$0xf] }
 0x2a3   : > { %v6202_v12 = vshrl.u32 %v13144_v54, 16  ;;  %15073 = vmatmul.mubr.bf16.gmra.mxu1 %v19061_v28  ;;  %v6205_v15 = vshll.u32 %v13144_v54, 16  ;;  %v13146_v45 = vcombine.low %v5978_v34, %v5979_v11  ;;  %v22492_v34 = vld [vmem:[#allocation74_spill] sm:$0xff] }
 0x2a4   : > { %v6211_v10 = vshrl.u32 %v13145_v6, 16  ;;  %v6214_v29 = vshll.u32 %v13145_v6, 16  ;;  %v19074_v18 = vsel %vm2019_vm9, %v6181_v5, %v6190_v9  ;;  %v6195_v35 = vrot.slane %v6193_v33, 3  ;;  %15155 = vmatpush3.bf16.msra.mxu1 %v16066_v23  ;;  %v22493_v33 = vld [vmem:[#allocation76_spill] sm:$0xff] }
 0x2a5   : > { %22491 = vst [vmem:[#allocation146_spill] sm:$0xff] %v19074_v18  ;;  %v6198_v36 = vrot.slane %v6196_v42, 4  ;;  %v6204_v57 = vrot.slane %v6202_v12, 3  ;;  %15076 = vmatprep.mubr.bf16.mxu1 %v19074_v18  ;;  %v6207_v25 = vrot.slane %v6205_v15, 4  ;;  %v6220_v22 = vshrl.u32 %v13146_v45, 16  ;;  %15236 = vmatprep.subr.bf16.mxu1 %v19067_v58 }
 0x2a6   : > { %v6213_v4 = vrot.slane %v6211_v10, 3  ;;  %v6216_v62 = vrot.slane %v6214_v29, 4  ;;  %v5945_v61 = vld [vmem:[#allocation3 + $0x80] sm:$0xf]  ;;  %15125 = vmatmul.mubr.bf16.gmra.mxu0 %v19074_v18  ;;  %v6223_v54 = vshll.u32 %v13146_v45, 16  ;;  %v5981_v5 = vmul.bf16 %v19071_v13, %v22492_v34 }
 0x2a7   : > { %v6199_v6 = vor.u32 %v6198_v36, %v6195_v35  ;;  %v5946_v11 = vld [vmem:[#allocation3 + $0x84] sm:$0xf]  ;;  %v5982_v42 = vmul.bf16 %v5945_v61, %v22493_v33  ;;  %v6208_v23 = vor.u32 %v6207_v25, %v6204_v57  ;;  %v6222_v29 = vrot.slane %v6220_v22, 3 }
 0x2a8   : > { %v6217_v12 = vor.u32 %v6216_v62, %v6213_v4  ;;  %v5983_v15 = vmul.bf16 %v5946_v11, %v22494_v1  ;;  %v6225_v38 = vrot.slane %v6223_v54, 4  ;;  %v13147_v31 = vcombine.low %v5980_v37, %v5981_v5  ;;  %v5947_v37 = vld [vmem:[#allocation3 + $0x88] sm:$0xf] }
 0x2a9   : > { %v19084_v10 = vsel %vm2019_vm9, %v6190_v9, %v6199_v6  ;;  %v19088_v36 = vsel %vm2019_vm9, %v6199_v6, %v6208_v23  ;;  %v13159_v18 = vcombine.low %v5982_v42, %v5982_v42  ;;  %v22495_v5 = vld [vmem:[#allocation79_spill] sm:$0xff] }
 0x2aa   : > { %15128 = vmatprep.mubr.bf16.mxu0 %v19084_v10  ;;  %v13148_v35 = vcombine.low %v5982_v42, %v5983_v15  ;;  %v6229_v45 = vshrl.u32 %v13147_v31, 16  ;;  %v6232_v34 = vshll.u32 %v13147_v31, 16  ;;  %v19093_v57 = vsel %vm2019_vm9, %v6208_v23, %v6217_v12 }
 0x2ab   : > { %15077 = vmatmul.mubr.bf16.gmra.mxu1 %v19084_v10  ;;  %v6226_v9 = vor.u32 %v6225_v38, %v6222_v29  ;;  %v6496_v6 = vshrl.u32 %v13159_v18, 16  ;;  %v19098_v31 = vcombine.low %v18797_v3, %v18814_v49  ;;  %v6499_v54 = vshll.u32 %v13159_v18, 16 }
 0x2ac   : > { %15080 = vmatprep.mubr.bf16.mxu1 %v19088_v36  ;;  %v6231_v22 = vrot.slane %v6229_v45, 3  ;;  %v6234_v25 = vrot.slane %v6232_v34, 4  ;;  %v6238_v4 = vshrl.u32 %v13148_v35, 16  ;;  %v6241_v62 = vshll.u32 %v13148_v35, 16  ;;  %v16084_v35 = vld [vmem:[#allocation8 + $0x1f0] sm:$0xff]  }
 0x2ad   : > { %v19102_v42 = vmul.bf16 %v5947_v37, %v22495_v5  ;;  %v19106_v38 = vcombine.low %v18823_v53, %v18861_v30  ;;  %v19109_v34 = vsel %vm2019_vm9, %v6217_v12, %v6226_v9  ;;  %v19113_v15 = vcombine.low %v18870_v46, %v18872_v39 }
 0x2ae   : > { %15129 = vmatmul.mubr.bf16.gmra.mxu0 %v19088_v36  ;;  %v6235_v23 = vor.u32 %v6234_v25, %v6231_v22  ;;  %v19117_v3 = vcombine.low %v18885_v17, %v18923_v24  ;;  %v6240_v18 = vrot.slane %v6238_v4, 3  ;;  %v6243_v49 = vrot.slane %v6241_v62, 4  ;;  %v16086_v22 = vld [vmem:[#allocation8 + $0x1e8] sm:$0xff]   ;;  %v16103_v4 = vld [vmem:[#allocation8 + $0x178] sm:$0xff]   ;;  %v22496_v62 = vld [vmem:[#allocation146_spill] sm:$0xff] }
 0x2af   : > { %15132 = vmatprep.mubr.bf16.mxu0 %v19093_v57  ;;  %v19121_v29 = vcombine.low %v18929_v32, %v18952_v43  ;;  %v19125_v53 = vcombine.low %v18954_v20, %v18975_v21  ;;  %v6498_v30 = vrot.slane %v6496_v6, 3  ;;  %v19129_v12 = vcombine.low %v18977_v51, %v18986_v50  ;;  %v16096_v25 = vld [vmem:[#allocation8 + $0x1c8] sm:$0xff]   ;;  %v22497_v6 = vld [vmem:[#allocation83_spill] sm:$0xff] }
 0x2b0   : > { %v19133_v46 = vcombine.low %v18990_v47, %v19006_v59  ;;  %v19137_v39 = vcombine.low %v19016_v41, %v19021_v2  ;;  %v6501_v17 = vrot.slane %v6499_v54, 4  ;;  %v19142_v24 = vcombine.low %v19023_v16, %v19033_v52  ;;  %v16239_v41 = vld [vmem:[#allocation3 + $0x8] sm:$0xf] }
 0x2b1   : > { %v19146_v32 = vcombine.low %v19035_v60, %v19040_v48  ;;  %v19150_v43 = vcombine.low %v19050_v7, %v19052_v8  ;;  %v19154_v59 = vsel %vm2019_vm9, %v6226_v9, %v6235_v23  ;;  %v13149_v20 = vcombine.low %v19102_v42, %v19102_v42  ;;  %v16238_v48 = vld [vmem:[#allocation3 + $0x4] sm:$0xf] }
 0x2b2   : > { %v19159_v50 = vcombine.low %v19071_v13, %v5945_v61  ;;  %v19161_v52 = vcombine.low %v5946_v11, %v5947_v37  ;;  %v19163_v21 = vor.u32 %v6243_v49, %v6240_v18  ;;  %v6502_v8 = vor.u32 %v6501_v17, %v6498_v30  ;;  %v16073_v9 = vld [vmem:[#allocation8 + $0x130] sm:$0xff]   ;;  %v16097_v37 = vld [vmem:[#allocation8 + $0x100] sm:$0xff]  }
 0x2b3   : > { %15081 = vmatmul.mubr.bf16.gmra.mxu1 %v19093_v57  ;;  %v6247_v51 = vshrl.u32 %v13149_v20, 16  ;;  %v6250_v7 = vshll.u32 %v13149_v20, 16  ;;  %v13178_v2 = vcombine.low %v16238_v48, %v16239_v41  ;;  %v19179_v45 = vcombine.low %v18706_v14, %v18790_v56  ;;  %v16076_v14 = vld [vmem:[#allocation8 + $0x128] sm:$0xff]   ;;  %v16079_v56 = vld [vmem:[#allocation8 + $0x120] sm:$0xff]   ;;  %v16105_v41 = vld [vmem:[#allocation8 + $0x170] sm:$0xff]  }
 0x2b4   : > { %15084 = vmatprep.mubr.bf16.mxu1 %v19109_v34  ;;  %v19169_v47 = vsel %vm2019_vm9, %v6235_v23, %v19163_v21  ;;  %v6503_v61 = vsel %vm2019_vm9, %v6235_v23, %v6502_v8  ;;  %v19206_v23 = vld [vmem:[#allocation3 + $0x90] sm:$0xf] }
 0x2b5   : > { %v6249_v16 = vrot.slane %v6247_v51, 3  ;;  %v6252_v60 = vrot.slane %v6250_v7, 4  ;;  %v22498_v18 = vld [vmem:[#allocation84_spill] sm:$0xff] }
 0x2b6   : > { %15133 = vmatmul.mubr.bf16.gmra.mxu0 %v19109_v34  ;;  %v5986_v49 = vmul.bf16 %v19206_v23, %v22498_v18 }
 0x2b7   : > { %15136 = vmatprep.mubr.bf16.mxu0 %v19154_v59  ;;  %v6253_v13 = vor.u32 %v6252_v60, %v6249_v16  ;;  %v16101_v16 = vld [vmem:[#allocation8 + $0xa8] sm:$0xff]   ;;  %v16109_v60 = vld [vmem:[#allocation8 + $0x158] sm:$0xff]  }
 0x2b8   : > { %v13169_v20 = vcombine.low %v5986_v49, %v5986_v49  ;;  %v7890_v49 = vld [vmem:[#allocation3 + $0x28] sm:$0xf] }
 0x2b9   : > { %v6254_v11 = vsel %vm2019_vm9, %v19163_v21, %v6253_v13  ;;  %v16104_v13 = vld [vmem:[#allocation8 + $0x98] sm:$0xff]  }
 0x2bb   : > { %15085 = vmatmul.mubr.bf16.gmra.mxu1 %v19154_v59 }
 0x2bc   : > { %15088 = vmatprep.mubr.bf16.mxu1 %v19169_v47 }
 0x2be   : > { %15137 = vmatmul.mubr.bf16.gmra.mxu0 %v6503_v61 }
 0x2bf   : > { %15204 = vmatprep.mubr.bf16.mxu0 %v13178_v2  ;;  %v16108_v2 = vld [vmem:[#allocation8 + $0x160] sm:$0xff]  }
 0x2c3   : > { %15089 = vmatmul.mubr.bf16.gmra.mxu1 %v6254_v11  ;;  %v16107_v11 = vld [vmem:[#allocation8 + $0x90] sm:$0xff]  }
 0x2c4   : > { %15156 = vmatprep.mubr.bf16.mxu1 %v18877_v63  ;;  %v16089_v63 = vld [vmem:[#allocation8 + $0x1e0] sm:$0xff]  }
 0x2c6   : > { %15205 = vmatmul.mubr.bf16.vlgmr.msra.gmra.mxu0 %v18787_v27 }
 0x2c7   : > { %15208 = vmatprep.mubr.bf16.mxu0 %v19179_v45  ;;  %15285 = vmatpush3.bf16.msra.mxu0 %v18992_v19  ;;  %v16091_v19 = vld [vmem:[#allocation8 + $0x1d8] sm:$0xff]  }
 0x2c8   : > { %15286 = vmatprep.subr.bf16.mxu0 %v16084_v35 }
 0x2cb   : > { %15157 = vmatmul.mubr.bf16.vlgmr.msra.gmra.mxu1 %v18904_v26  ;;  %15287 = vmatpush3.bf16.msra.mxu0 %v16084_v35  ;;  %v16083_v26 = vld [vmem:[#allocation8 + $0x118] sm:$0xff]   ;;  %v16114_v35 = vld [vmem:[#allocation8 + $0x148] sm:$0xff]  }
 0x2cc   : > { %15160 = vmatprep.mubr.bf16.mxu1 %v18946_v55  ;;  %15237 = vmatpush3.bf16.msra.mxu1 %v19067_v58  ;;  %v16094_v58 = vld [vmem:[#allocation8 + $0x1d0] sm:$0xff]  }
 0x2cd   : > { %15238 = vmatprep.subr.bf16.mxu1 %v16073_v9  ;;  %15288 = vmatprep.subr.bf16.mxu0 %v16086_v22  ;;  %v16088_v55 = vld [vmem:[#allocation8 + $0x110] sm:$0xff]  }
 0x2ce   : > { %15209 = vmatmul.mubr.bf16.gmra.mxu0 %v19098_v31 }
 0x2cf   : > { %15212 = vmatprep.mubr.bf16.mxu0 %v19106_v38  ;;  %15289 = vmatpush3.bf16.msra.mxu0 %v16086_v22  ;;  %v7886_v22 = vld [vmem:[#allocation3 + $0x18] sm:$0xf] }
 0x2d0   : > { %15239 = vmatpush3.bf16.msra.mxu1 %v16073_v9  ;;  %15290 = vmatprep.subr.bf16.mxu0 %v16089_v63  ;;  %v7883_v9 = vld [vmem:[#allocation3 + $0xc] sm:$0xf] }
 0x2d1   : > { %15240 = vmatprep.subr.bf16.mxu1 %v16076_v14 }
 0x2d3   : > { %15161 = vmatmul.mubr.bf16.gmra.mxu1 %v18960_v40  ;;  %15291 = vmatpush3.bf16.msra.mxu0 %v16089_v63  ;;  %v16098_v40 = vld [vmem:[#allocation8 + $0x1c0] sm:$0xff]   ;;  %v7881_v63 = vld [vmem:[#allocation3 + $0x4] sm:$0xf] }
 0x2d4   : > { %15164 = vmatprep.mubr.bf16.mxu1 %v19011_v0  ;;  %15241 = vmatpush3.bf16.msra.mxu1 %v16076_v14  ;;  %v16093_v0 = vld [vmem:[#allocation8 + $0x108] sm:$0xff]   ;;  %v7882_v14 = vld [vmem:[#allocation3 + $0x8] sm:$0xf] }
 0x2d5   : > { %15242 = vmatprep.subr.bf16.mxu1 %v16079_v56  ;;  %15292 = vmatprep.subr.bf16.mxu0 %v16091_v19 }
 0x2d6   : > { %15213 = vmatmul.mubr.bf16.gmra.mxu0 %v19113_v15 }
 0x2d7   : > { %15216 = vmatprep.mubr.bf16.mxu0 %v19117_v3  ;;  %15293 = vmatpush3.bf16.msra.mxu0 %v16091_v19  ;;  %v22500_v19 = vld [vmem:[#allocation88_spill] sm:$0xff] }
 0x2d8   : > { %15243 = vmatpush3.bf16.msra.mxu1 %v16079_v56  ;;  %15294 = vmatprep.subr.bf16.mxu0 %v16094_v58  ;;  %v7885_v56 = vld [vmem:[#allocation3 + $0x14] sm:$0xf] }
 0x2d9   : > { %15244 = vmatprep.subr.bf16.mxu1 %v16083_v26 }
 0x2db   : > { %15165 = vmatmul.mubr.bf16.gmra.mxu1 %v19038_v44  ;;  %15295 = vmatpush3.bf16.msra.mxu0 %v16094_v58  ;;  %v16099_v44 = vld [vmem:[#allocation8 + $0xb8] sm:$0xff]   ;;  %v7920_v58 = vmul.bf16 %v7883_v9, %v22500_v19  ;;  %v22510_v9 = vld [vmem:[#allocation96_spill] sm:$0xff] }
 0x2dc   : > { %15168 = vmatprep.mubr.bf16.mxu1 %v19061_v28  ;;  %15245 = vmatpush3.bf16.msra.mxu1 %v16083_v26  ;;  %v19200_v28 = vld [vmem:[#allocation3 + $0x8c] sm:$0xf] }
 0x2dd   : > { %15246 = vmatprep.subr.bf16.mxu1 %v16088_v55  ;;  %15296 = vmatprep.subr.bf16.mxu0 %v16096_v25  ;;  %v5985_v54 = vmul.bf16 %v19200_v28, %v22497_v6  ;;  %v22501_v26 = vld [vmem:[#allocation91_spill] sm:$0xff] }
 0x2de   : > { %15217 = vmatmul.mubr.bf16.gmra.mxu0 %v19121_v29 }
 0x2df   : > { %15220 = vmatprep.mubr.bf16.mxu0 %v19125_v53  ;;  %15297 = vmatpush3.bf16.msra.mxu0 %v16096_v25  ;;  %v22502_v25 = vld [vmem:[#allocation85_spill] sm:$0xff] }
 0x2e0   : > { %15247 = vmatpush3.bf16.msra.mxu1 %v16088_v55  ;;  %15298 = vmatprep.subr.bf16.mxu0 %v16098_v40  ;;  %v7923_v55 = vmul.bf16 %v7886_v22, %v22501_v26 }
 0x2e1   : > { %15248 = vmatprep.subr.bf16.mxu1 %v16093_v0 }
 0x2e3   : > { %15169 = vmatmul.mubr.bf16.gmra.mxu1 %v22496_v62  ;;  %15299 = vmatpush3.bf16.msra.mxu0 %v16098_v40  ;;  %v7918_v40 = vmul.bf16 %v7881_v63, %v22502_v25  ;;  %v7888_v62 = vld [vmem:[#allocation3 + $0x20] sm:$0xf] }
 0x2e4   : > { %15172 = vmatprep.mubr.bf16.mxu1 %v19084_v10  ;;  %15249 = vmatpush3.bf16.msra.mxu1 %v16093_v0  ;;  %v13168_v10 = vcombine.low %v19102_v42, %v5985_v54  ;;  %v6751_v42 = vshll.u32 %v13169_v20, 16 }
 0x2e5   : > { %15250 = vmatprep.subr.bf16.mxu1 %v16097_v37  ;;  %15380 = vmatprep.subr.bf16.mxu0 %v16103_v4 }
 0x2e6   : > { %15221 = vmatmul.mubr.bf16.gmra.mxu0 %v19129_v12  ;;  %v6739_v30 = vshrl.u32 %v13168_v10, 16  ;;  %v6742_v17 = vshll.u32 %v13168_v10, 16  ;;  %v6753_v61 = vrot.slane %v6751_v42, 4  ;;  %v7887_v10 = vld [vmem:[#allocation3 + $0x1c] sm:$0xf] }
 0x2e7   : > { %15224 = vmatprep.mubr.bf16.mxu0 %v19133_v46 }
 0x2e8   : > { %15251 = vmatpush3.bf16.msra.mxu1 %v16097_v37  ;;  %v6744_v8 = vrot.slane %v6742_v17, 4  ;;  %v22504_v37 = vld [vmem:[#allocation90_spill] sm:$0xff]  ;;  %v22505_v17 = vld [vmem:[#allocation93_spill] sm:$0xff] }
 0x2e9   : > { %15332 = vmatprep.subr.bf16.mxu1 %v16099_v44 }
 0x2eb   : > { %15173 = vmatmul.mubr.bf16.gmra.mxu1 %v19088_v36  ;;  %v6741_v36 = vrot.slane %v6739_v30, 3 }
 0x2ec   : > { %15176 = vmatprep.mubr.bf16.mxu1 %v19093_v57  ;;  %v6748_v57 = vshrl.u32 %v13169_v20, 16  ;;  %v7925_v20 = vmul.bf16 %v7888_v62, %v22505_v17  ;;  %v7915_v17 = vld [vmem:[#allocation3 + $0x8c] sm:$0xf] }
 0x2ed   : > { %v6745_v51 = vor.u32 %v6744_v8, %v6741_v36  ;;  %v7889_v36 = vld [vmem:[#allocation3 + $0x24] sm:$0xf] }
 0x2ee   : > { %15225 = vmatmul.mubr.bf16.gmra.mxu0 %v19137_v39  ;;  %v6750_v7 = vrot.slane %v6748_v57, 3  ;;  %v22506_v57 = vld [vmem:[#allocation92_spill] sm:$0xff] }
 0x2ef   : > { %15228 = vmatprep.mubr.bf16.mxu0 %v19142_v24  ;;  %v6746_v48 = vsel %vm2019_vm9, %v19163_v21, %v6745_v51  ;;  %v16106_v21 = vld [vmem:[#allocation8 + $0x168] sm:$0xff]   ;;  %v7924_v42 = vmul.bf16 %v7887_v10, %v22506_v57 }
 0x2f3   : > { %15177 = vmatmul.mubr.bf16.gmra.mxu1 %v19109_v34  ;;  %v6754_v34 = vor.u32 %v6753_v61, %v6750_v7 }
 0x2f4   : > { %15180 = vmatprep.mubr.bf16.mxu1 %v19154_v59 }
 0x2f5   : > { %v6755_v59 = vsel %vm2019_vm9, %v6745_v51, %v6754_v34  ;;  %v22507_v51 = vld [vmem:[#allocation95_spill] sm:$0xff]  ;;  %v22508_v34 = vld [vmem:[#allocation94_spill] sm:$0xff] }
 0x2f6   : > { %15229 = vmatmul.mubr.bf16.gmra.mxu0 %v19146_v32  ;;  %v7927_v7 = vmul.bf16 %v7890_v49, %v22507_v51  ;;  %v22532_v51 = vld [vmem:[#allocation103_spill] sm:$0xff] }
 0x2f7   : > { %15232 = vmatprep.mubr.bf16.mxu0 %v19150_v43 }
 0x2fb   : > { %15181 = vmatmul.mubr.bf16.gmra.mxu1 %v19169_v47  ;;  %v16100_v47 = vld [vmem:[#allocation8 + $0xb0] sm:$0xff]  }
 0x2fc   : > { %15184 = vmatprep.mubr.bf16.mxu1 %v6746_v48  ;;  %v13223_v48 = vcombine.low %v7924_v42, %v7925_v20  ;;  %v22513_v42 = vld [vmem:[#allocation110_spill] sm:$0xff] }
 0x2fe   : > { %15233 = vmatmul.mubr.bf16.gmra.mxu0 %v19159_v50 }
 0x2ff   : > { %15300 = vmatprep.mubr.bf16.mxu0 %v19179_v45 }
 0x303   : > { %15185 = vmatmul.mubr.bf16.gmra.mxu1 %v6755_v59  ;;  %v7926_v59 = vmul.bf16 %v7889_v36, %v22508_v34 }
 0x304   : > { %15252 = vmatprep.mubr.bf16.mxu1 %v18787_v27  ;;  %v16102_v27 = vld [vmem:[#allocation8 + $0xa0] sm:$0xff]  }
 0x306   : > { %15301 = vmatmul.mubr.bf16.vlgmr.msra.gmra.mxu0 %v19098_v31 }
 0x307   : > { %15304 = vmatprep.mubr.bf16.mxu0 %v19106_v38  ;;  %15381 = vmatpush3.bf16.msra.mxu0 %v16103_v4  ;;  %v7922_v4 = vmul.bf16 %v7885_v56, %v22504_v37 }
 0x308   : > { %15382 = vmatprep.subr.bf16.mxu0 %v16105_v41 }
 0x30b   : > { %15253 = vmatmul.mubr.bf16.vlgmr.msra.gmra.mxu1 %v19179_v45  ;;  %15383 = vmatpush3.bf16.msra.mxu0 %v16105_v41  ;;  %v16115_v45 = vld [vmem:[#allocation8 + $0x80] sm:$0xff]  }
 0x30c   : > { %15256 = vmatprep.mubr.bf16.mxu1 %v19098_v31  ;;  %15333 = vmatpush3.bf16.msra.mxu1 %v16099_v44  ;;  %v16112_v31 = vld [vmem:[#allocation8 + $0x150] sm:$0xff]   ;;  %v13222_v44 = vcombine.low %v7922_v4, %v7923_v55  ;;  %v8083_v4 = vshrl.u32 %v13223_v48, 16 }
 0x30d   : > { %15334 = vmatprep.subr.bf16.mxu1 %v16100_v47  ;;  %15384 = vmatprep.subr.bf16.mxu0 %v16106_v21 }
 0x30e   : > { %15305 = vmatmul.mubr.bf16.gmra.mxu0 %v19113_v15  ;;  %v8071_v8 = vshll.u32 %v13222_v44, 16 }
 0x30f   : > { %15308 = vmatprep.mubr.bf16.mxu0 %v19117_v3  ;;  %15385 = vmatpush3.bf16.msra.mxu0 %v16106_v21 }
 0x310   : > { %15335 = vmatpush3.bf16.msra.mxu1 %v16100_v47  ;;  %15386 = vmatprep.subr.bf16.mxu0 %v16108_v2  ;;  %v13211_v47 = vcombine.low %v19200_v28, %v19206_v23 }
 0x311   : > { %15336 = vmatprep.subr.bf16.mxu1 %v16101_v16 }
 0x313   : > { %15257 = vmatmul.mubr.bf16.gmra.mxu1 %v19106_v38  ;;  %15387 = vmatpush3.bf16.msra.mxu0 %v16108_v2  ;;  %v16116_v38 = vld [vmem:[#allocation8 + $0x140] sm:$0xff]   ;;  %v8073_v2 = vrot.slane %v8071_v8, 1 }
 0x314   : > { %15260 = vmatprep.mubr.bf16.mxu1 %v19113_v15  ;;  %15337 = vmatpush3.bf16.msra.mxu1 %v16101_v16  ;;  %v16111_v15 = vld [vmem:[#allocation8 + $0x88] sm:$0xff]   ;;  %v19266_v16 = vcombine.low %v7926_v59, %v7927_v7 }
 0x315   : > { %15338 = vmatprep.subr.bf16.mxu1 %v16102_v27  ;;  %15388 = vmatprep.subr.bf16.mxu0 %v16109_v60 }
 0x316   : > { %15309 = vmatmul.mubr.bf16.gmra.mxu0 %v19121_v29  ;;  %v8087_v23 = vshll.u32 %v19266_v16, 16 }
 0x317   : > { %15312 = vmatprep.mubr.bf16.mxu0 %v19125_v53  ;;  %15389 = vmatpush3.bf16.msra.mxu0 %v16109_v60 }
 0x318   : > { %15339 = vmatpush3.bf16.msra.mxu1 %v16102_v27  ;;  %15390 = vmatprep.subr.bf16.mxu0 %v16112_v31 }
 0x319   : > { %15340 = vmatprep.subr.bf16.mxu1 %v16104_v13 }
 0x31b   : > { %15261 = vmatmul.mubr.bf16.gmra.mxu1 %v19117_v3  ;;  %15391 = vmatpush3.bf16.msra.mxu0 %v16112_v31  ;;  %v19241_v3 = vld [vmem:[#allocation8 + $0x238] sm:$0xff]  }
 0x31c   : > { %15264 = vmatprep.mubr.bf16.mxu1 %v19121_v29  ;;  %15341 = vmatpush3.bf16.msra.mxu1 %v16104_v13  ;;  %v7884_v29 = vld [vmem:[#allocation3 + $0x10] sm:$0xf]  ;;  %v7891_v31 = vld [vmem:[#allocation3 + $0x2c] sm:$0xf]  ;;  %v7894_v13 = vld [vmem:[#allocation3 + $0x38] sm:$0xf] }
 0x31d   : > { %15342 = vmatprep.subr.bf16.mxu1 %v16107_v11  ;;  %15392 = vmatprep.subr.bf16.mxu0 %v16114_v35  ;;  %v7928_v22 = vmul.bf16 %v7891_v31, %v22510_v9  ;;  %v16124_v9 = vld [vmem:[#allocation8 + $0x200] sm:$0xff]  }
 0x31e   : > { %15313 = vmatmul.mubr.bf16.gmra.mxu0 %v19129_v12 }
 0x31f   : > { %15316 = vmatprep.mubr.bf16.mxu0 %v19133_v46  ;;  %15393 = vmatpush3.bf16.msra.mxu0 %v16114_v35  ;;  %v8079_v35 = vshll.u32 %v13223_v48, 16  ;;  %v22514_v48 = vld [vmem:[#allocation108_spill] sm:$0xff] }
 0x320   : > { %15343 = vmatpush3.bf16.msra.mxu1 %v16107_v11  ;;  %15394 = vmatprep.subr.bf16.mxu0 %v16116_v38 }
 0x321   : > { %15344 = vmatprep.subr.bf16.mxu1 %v16111_v15 }
 0x323   : > { %15265 = vmatmul.mubr.bf16.gmra.mxu1 %v19125_v53  ;;  %15395 = vmatpush3.bf16.msra.mxu0 %v16116_v38  ;;  %v22499_v53 = vld [vmem:[#allocation89_spill] sm:$0xff] }
 0x324   : > { %15268 = vmatprep.mubr.bf16.mxu1 %v19129_v12  ;;  %15345 = vmatpush3.bf16.msra.mxu1 %v16111_v15  ;;  %v7921_v12 = vmul.bf16 %v7884_v29, %v22499_v53  ;;  %v22509_v15 = vld [vmem:[#allocation97_spill] sm:$0xff]  ;;  %v7893_v29 = vld [vmem:[#allocation3 + $0x34] sm:$0xf] }
 0x325   : > { %15346 = vmatprep.subr.bf16.mxu1 %v16115_v45 }
 0x326   : > { %15317 = vmatmul.mubr.bf16.gmra.mxu0 %v19137_v39 }
 0x327   : > { %15320 = vmatprep.mubr.bf16.mxu0 %v19142_v24 }
 0x328   : > { %15347 = vmatpush3.bf16.msra.mxu1 %v16115_v45 }
 0x329   : > { %15428 = vmatprep.subr.bf16.mxu1 %v19241_v3 }
 0x32b   : > { %15269 = vmatmul.mubr.bf16.gmra.mxu1 %v19133_v46  ;;  %v22503_v46 = vld [vmem:[#allocation87_spill] sm:$0xff] }
 0x32c   : > { %15272 = vmatprep.mubr.bf16.mxu1 %v19137_v39  ;;  %v7919_v0 = vmul.bf16 %v7882_v14, %v22503_v46  ;;  %v13221_v39 = vcombine.low %v7920_v58, %v7921_v12  ;;  %v8081_v14 = vrot.slane %v8079_v35, 1  ;;  %v22512_v58 = vld [vmem:[#allocation101_spill] sm:$0xff]  ;;  %v22516_v35 = vld [vmem:[#allocation111_spill] sm:$0xff] }
 0x32d   : > { %v7930_v55 = vmul.bf16 %v7893_v29, %v22512_v58 }
 0x32e   : > { %15321 = vmatmul.mubr.bf16.gmra.mxu0 %v19146_v32  ;;  %v13220_v54 = vcombine.low %v7918_v40, %v7919_v0  ;;  %v8063_v30 = vshll.u32 %v13221_v39, 16  ;;  %v8067_v21 = vshrl.u32 %v13221_v39, 16  ;;  %v8075_v40 = vshrl.u32 %v13222_v44, 16  ;;  %v7896_v0 = vld [vmem:[#allocation3 + $0x40] sm:$0xf] }
 0x32f   : > { %15324 = vmatprep.mubr.bf16.mxu0 %v19150_v43  ;;  %v8089_v39 = vrot.slane %v8087_v23, 1  ;;  %v8085_v20 = vor.u32 %v8083_v4, %v8081_v14  ;;  %v7933_v7 = vmul.bf16 %v7896_v0, %v22513_v42  ;;  %v8091_v23 = vshrl.u32 %v19266_v16, 16  ;;  %v7899_v4 = vld [vmem:[#allocation3 + $0x4c] sm:$0xf] }
 0x330   : > { %v8058_v61 = vshll.u32 %v13220_v54, 16  ;;  %v8056_v27 = vshrl.u32 %v13220_v54, 16  ;;  %v7895_v54 = vld [vmem:[#allocation3 + $0x3c] sm:$0xf]  ;;  %v8077_v10 = vor.u32 %v8075_v40, %v8073_v2 }
 0x331   : > { %v7932_v59 = vmul.bf16 %v7895_v54, %v22514_v48  ;;  %v7902_v54 = vld [vmem:[#allocation3 + $0x58] sm:$0xf] }
 0x332   : > { %v8060_v60 = vrot.slane %v8058_v61, 1  ;;  %v19282_v44 = vsel %vm4605_vm4, %v8077_v10, %v8081_v14 }
 0x333   : > { %15273 = vmatmul.mubr.bf16.gmra.mxu1 %v19142_v24  ;;  %v8065_v24 = vrot.slane %v8063_v30, 1  ;;  %v7898_v30 = vld [vmem:[#allocation3 + $0x48] sm:$0xf] }
 0x334   : > { %15276 = vmatprep.mubr.bf16.mxu1 %v19146_v32  ;;  %v7892_v32 = vld [vmem:[#allocation3 + $0x30] sm:$0xf]  ;;  %v8061_v63 = vor.u32 %v8060_v60, %v8056_v27 }
 0x335   : > { %v8069_v11 = vor.u32 %v8067_v21, %v8065_v24  ;;  %v7929_v45 = vmul.bf16 %v7892_v32, %v22509_v15  ;;  %v7897_v32 = vld [vmem:[#allocation3 + $0x44] sm:$0xf]  ;;  %v22515_v21 = vld [vmem:[#allocation112_spill] sm:$0xff] }
 0x336   : > { %15325 = vmatmul.mubr.bf16.gmra.mxu0 %v19159_v50  ;;  %v8066_v49 = vsel %vm4605_vm4, %v8061_v63, %v8065_v24 }
 0x337   : > { %15328 = vmatprep.mubr.bf16.mxu0 %v19161_v52  ;;  %v8074_v28 = vsel %vm4605_vm4, %v8069_v11, %v8073_v2  ;;  %v7935_v2 = vmul.bf16 %v7898_v30, %v22515_v21  ;;  %v13227_v11 = vcombine.low %v7932_v59, %v7933_v7  ;;  %v22517_v30 = vld [vmem:[#allocation115_spill] sm:$0xff]  ;;  %v22519_v59 = vld [vmem:[#allocation117_spill] sm:$0xff] }
 0x339   : > { %v15110_v41 = vpop.f32.mrf.mxu0 }
 0x33b   : > { %15277 = vmatmul.mubr.bf16.gmra.mxu1 %v19150_v43  ;;  %v6588_v38 = vpop.f32.mrf.mxu0  ;;  %v22511_v43 = vld [vmem:[#allocation102_spill] sm:$0xff] }
 0x33c   : > { %15280 = vmatprep.mubr.bf16.mxu1 %v19159_v50  ;;  %v7931_v12 = vmul.bf16 %v7894_v13, %v22511_v43  ;;  %v13225_v50 = vcombine.low %v7928_v22, %v7929_v45  ;;  %v7934_v45 = vmul.bf16 %v7897_v32, %v22516_v35  ;;  %v16118_v22 = vld [vmem:[#allocation8 + $0x230] sm:$0xff]   ;;  %v7939_v32 = vmul.bf16 %v7902_v54, %v22519_v59  ;;  %v7903_v54 = vld [vmem:[#allocation3 + $0x5c] sm:$0xf] }
 0x33d   : > { %v15111_v56 = vpop.f32.mrf.mxu0  ;;  %v7905_v59 = vld [vmem:[#allocation3 + $0x64] sm:$0xf]  ;;  %v7911_v43 = vld [vmem:[#allocation3 + $0x7c] sm:$0xf] }
 0x33e   : > { %15329 = vmatmul.mubr.bf16.gmra.mxu0 %v13211_v47  ;;  %v19276_v62 = vcombine.low %v7930_v55, %v7931_v12  ;;  %v8095_v8 = vshll.u32 %v13225_v50, 16  ;;  %v8099_v63 = vshrl.u32 %v13225_v50, 16  ;;  %v19300_v40 = vcombine.low %v7934_v45, %v7935_v2 }
 0x33f   : > { %15396 = vmatprep.mubr.bf16.mxu0 %v8074_v28  ;;  %v6591_v36 = vpop.f32.mrf.mxu0 }
 0x340   : > { %v8103_v47 = vshll.u32 %v19276_v62, 16  ;;  %v8097_v13 = vrot.slane %v8095_v8, 1 }
 0x342   : > { %v8105_v14 = vrot.slane %v8103_v47, 1  ;;  %v8101_v10 = vor.u32 %v8099_v63, %v8097_v13 }
 0x343   : > { %15281 = vmatmul.mubr.bf16.gmra.mxu1 %v19161_v52  ;;  %v19287_v52 = vsel %vm4605_vm4, %v8085_v20, %v8089_v39 }
 0x344   : > { %15348 = vmatprep.mubr.bf16.mxu1 %v8066_v49  ;;  %v19312_v8 = vsel %vm4605_vm4, %v8101_v10, %v8105_v14 }
 0x345   : > { %v15062_v61 = vpop.f32.mrf.mxu1 }
 0x346   : > { %15397 = vmatmul.mubr.bf16.vlgmr.msra.gmra.mxu0 %v19282_v44  ;;  %v19289_v24 = vadd.f32 %v15110_v41, %v15062_v61  ;;  %v7900_v41 = vld [vmem:[#allocation3 + $0x50] sm:$0xf] }
 0x347   : > { %15400 = vmatprep.mubr.bf16.mxu0 %v19287_v52  ;;  %v6353_v27 = vpop.f32.mrf.mxu1  ;;  %v7937_v50 = vmul.bf16 %v7900_v41, %v22517_v30  ;;  %v7904_v41 = vld [vmem:[#allocation3 + $0x60] sm:$0xf] }
 0x348   : > { %v19294_v60 = vadd.f32 %v6588_v38, %v6353_v27  ;;  %v15114_v31 = vpop.f32.mrf.mxu0  ;;  %v8093_v38 = vor.u32 %v8091_v23, %v8089_v39  ;;  %v7901_v39 = vld [vmem:[#allocation3 + $0x54] sm:$0xf] }
 0x349   : > { %v15063_v29 = vpop.f32.mrf.mxu1  ;;  %v22520_v27 = vld [vmem:[#allocation116_spill] sm:$0xff] }
 0x34a   : > { %v19298_v12 = vadd.f32 %v15111_v56, %v15063_v29  ;;  %v6604_v55 = vpop.f32.mrf.mxu0  ;;  %v8111_v56 = vshll.u32 %v13227_v11, 16  ;;  %v19308_v20 = vsel %vm4605_vm4, %v8093_v38, %v8097_v13  ;;  %v7938_v13 = vmul.bf16 %v7901_v39, %v22520_v27  ;;  %v16120_v23 = vld [vmem:[#allocation8 + $0x220] sm:$0xff]  }
 0x34b   : > { %15349 = vmatmul.mubr.bf16.vlgmr.msra.gmra.mxu1 %v8074_v28  ;;  %v6356_v0 = vpop.f32.mrf.mxu1  ;;  %v16119_v28 = vld [vmem:[#allocation8 + $0x228] sm:$0xff]   ;;  %v8107_v29 = vshrl.u32 %v19276_v62, 16 }
 0x34c   : > { %15352 = vmatprep.mubr.bf16.mxu1 %v19282_v44  ;;  %15429 = vmatpush3.bf16.msra.mxu1 %v19241_v3  ;;  %v19304_v16 = vadd.f32 %v6591_v36, %v6356_v0  ;;  %v15115_v49 = vpop.f32.mrf.mxu0  ;;  %v8119_v3 = vshll.u32 %v19300_v40, 16  ;;  %v22518_v36 = vld [vmem:[#allocation113_spill] sm:$0xff]  ;;  %v8113_v47 = vrot.slane %v8111_v56, 1  ;;  %v8115_v0 = vshrl.u32 %v13227_v11, 16 }
 0x34d   : > { %15430 = vmatprep.subr.bf16.mxu1 %v16118_v22  ;;  %v7936_v61 = vmul.bf16 %v7899_v4, %v22518_v36  ;;  %v19322_v10 = vcombine.low %v7938_v13, %v7939_v32  ;;  %v8109_v56 = vor.u32 %v8107_v29, %v8105_v14  ;;  %v22522_v32 = vld [vmem:[#allocation118_spill] sm:$0xff]  ;;  %v16121_v14 = vld [vmem:[#allocation8 + $0x218] sm:$0xff]  }
 0x34e   : > { %15401 = vmatmul.mubr.bf16.gmra.mxu0 %v19308_v20  ;;  %v6607_v7 = vpop.f32.mrf.mxu0  ;;  %v8121_v4 = vrot.slane %v8119_v3, 1  ;;  %v8117_v62 = vor.u32 %v8115_v0, %v8113_v47  ;;  %v7940_v13 = vmul.bf16 %v7903_v54, %v22522_v32  ;;  %v16122_v36 = vld [vmem:[#allocation8 + $0x210] sm:$0xff]  }
 0x34f   : > { %15404 = vmatprep.mubr.bf16.mxu0 %v19312_v8  ;;  %v13229_v2 = vcombine.low %v7936_v61, %v7937_v50  ;;  %v7906_v50 = vld [vmem:[#allocation3 + $0x68] sm:$0xf]  ;;  %v19330_v3 = vsel %vm4605_vm4, %v8109_v56, %v8113_v47  ;;  %v8135_v0 = vshll.u32 %v19322_v10, 16 }
 0x350   : > { %15431 = vmatpush3.bf16.msra.mxu1 %v16118_v22 }
 0x351   : > { %v15066_v45 = vpop.f32.mrf.mxu1  ;;  %15432 = vmatprep.subr.bf16.mxu1 %v16119_v28  ;;  %v8131_v35 = vshrl.u32 %v13229_v2, 16  ;;  %v8137_v21 = vrot.slane %v8135_v0, 1  ;;  %v22526_v0 = vld [vmem:[#allocation122_spill] sm:$0xff] }
 0x352   : > { %v19320_v63 = vadd.f32 %v15114_v31, %v15066_v45  ;;  %v15118_v38 = vpop.f32.mrf.mxu0  ;;  %v8127_v31 = vshll.u32 %v13229_v2, 16  ;;  %v22521_v45 = vld [vmem:[#allocation119_spill] sm:$0xff] }
 0x353   : > { %15353 = vmatmul.mubr.bf16.gmra.mxu1 %v19287_v52  ;;  %v6369_v22 = vpop.f32.mrf.mxu1  ;;  %v7941_v27 = vmul.bf16 %v7904_v41, %v22521_v45  ;;  %v22523_v41 = vld [vmem:[#allocation121_spill] sm:$0xff]  ;;  %v8123_v45 = vshrl.u32 %v19300_v40, 16 }
 0x354   : > { %15356 = vmatprep.mubr.bf16.mxu1 %v19308_v20  ;;  %v19326_v39 = vadd.f32 %v6604_v55, %v6369_v22  ;;  %v6620_v61 = vpop.f32.mrf.mxu0  ;;  %15433 = vmatpush3.bf16.msra.mxu1 %v16119_v28  ;;  %v19337_v55 = vsel %vm4605_vm4, %v8117_v62, %v8121_v4  ;;  %v7943_v22 = vmul.bf16 %v7906_v50, %v22523_v41  ;;  %v8129_v54 = vrot.slane %v8127_v31, 1  ;;  %v7908_v62 = vld [vmem:[#allocation3 + $0x70] sm:$0xf]  ;;  %v7907_v50 = vld [vmem:[#allocation3 + $0x6c] sm:$0xf] }
 0x355   : > { %v15067_v11 = vpop.f32.mrf.mxu1  ;;  %15434 = vmatprep.subr.bf16.mxu1 %v16120_v23  ;;  %v13231_v32 = vcombine.low %v7940_v13, %v7941_v27  ;;  %v7910_v31 = vld [vmem:[#allocation3 + $0x78] sm:$0xf]  ;;  %v22525_v27 = vld [vmem:[#allocation123_spill] sm:$0xff] }
 0x356   : > { %v19333_v29 = vadd.f32 %v15115_v49, %v15067_v11  ;;  %15405 = vmatmul.mubr.bf16.gmra.mxu0 %v19330_v3  ;;  %v15119_v28 = vpop.f32.mrf.mxu0  ;;  %v22524_v49 = vld [vmem:[#allocation120_spill] sm:$0xff]  ;;  %v7945_v13 = vmul.bf16 %v7908_v62, %v22525_v27 }
 0x357   : > { %15408 = vmatprep.mubr.bf16.mxu0 %v19337_v55  ;;  %v6372_v47 = vpop.f32.mrf.mxu1  ;;  %v7942_v11 = vmul.bf16 %v7905_v59, %v22524_v49  ;;  %v8133_v59 = vor.u32 %v8131_v35, %v8129_v54  ;;  %v8143_v40 = vshll.u32 %v13231_v32, 16  ;;  %v16123_v49 = vld [vmem:[#allocation8 + $0x208] sm:$0xff]   ;;  %v8147_v58 = vshrl.u32 %v13231_v32, 16 }
 0x358   : > { %v19342_v56 = vadd.f32 %v6607_v7, %v6372_v47  ;;  %15435 = vmatpush3.bf16.msra.mxu1 %v16120_v23  ;;  %v6623_v30 = vpop.f32.mrf.mxu0  ;;  %v8125_v7 = vor.u32 %v8123_v45, %v8121_v4 }
 0x359   : > { %15436 = vmatprep.subr.bf16.mxu1 %v16121_v14  ;;  %v19346_v48 = vcombine.low %v7942_v11, %v7943_v22  ;;  %v7944_v22 = vmul.bf16 %v7907_v50, %v22526_v0  ;;  %v7909_v11 = vld [vmem:[#allocation3 + $0x74] sm:$0xf]  ;;  %v19361_v35 = vsel %vm4605_vm4, %v8133_v59, %v8137_v21  ;;  %v8145_v0 = vrot.slane %v8143_v40, 1 }
 0x35a   : > { %v19354_v2 = vsel %vm4605_vm4, %v8125_v7, %v8129_v54  ;;  %v7912_v54 = vld [vmem:[#allocation3 + $0x80] sm:$0xf]  ;;  %v8139_v59 = vshrl.u32 %v19322_v10, 16 }
 0x35b   : > { %v15070_v41 = vpop.f32.mrf.mxu1  ;;  %15357 = vmatmul.mubr.bf16.gmra.mxu1 %v19312_v8  ;;  %v8151_v45 = vshll.u32 %v19346_v48, 16  ;;  %v8149_v32 = vor.u32 %v8147_v58, %v8145_v0 }
 0x35c   : > { %v19349_v23 = vadd.f32 %v15118_v38, %v15070_v41  ;;  %15360 = vmatprep.mubr.bf16.mxu1 %v19330_v3  ;;  %15437 = vmatpush3.bf16.msra.mxu1 %v16121_v14  ;;  %v22527_v14 = vld [vmem:[#allocation125_spill] sm:$0xff] }
 0x35d   : > { %v6385_v47 = vpop.f32.mrf.mxu1  ;;  %15438 = vmatprep.subr.bf16.mxu1 %v16122_v36  ;;  %v7947_v41 = vmul.bf16 %v7910_v31, %v22527_v14  ;;  %v8153_v15 = vrot.slane %v8151_v45, 1  ;;  %v7913_v45 = vld [vmem:[#allocation3 + $0x84] sm:$0xf] }
 0x35e   : > { %v19357_v4 = vadd.f32 %v6620_v61, %v6385_v47  ;;  %v15122_v38 = vpop.f32.mrf.mxu0  ;;  %15409 = vmatmul.mubr.bf16.gmra.mxu0 %v19354_v2  ;;  %v13233_v61 = vcombine.low %v7944_v22, %v7945_v13  ;;  %v22528_v47 = vld [vmem:[#allocation124_spill] sm:$0xff]  ;;  %v8141_v13 = vor.u32 %v8139_v59, %v8137_v21 }
 0x35f   : > { %v15071_v62 = vpop.f32.mrf.mxu1  ;;  %15412 = vmatprep.mubr.bf16.mxu0 %v19361_v35  ;;  %v7946_v27 = vmul.bf16 %v7909_v11, %v22528_v47  ;;  %v22530_v11 = vld [vmem:[#allocation126_spill] sm:$0xff]  ;;  %v19387_v21 = vsel %vm4605_vm4, %v8149_v32, %v8153_v15 }
 0x360   : > { %v19366_v50 = vadd.f32 %v15119_v28, %v15071_v62  ;;  %v6636_v7 = vpop.f32.mrf.mxu0  ;;  %15439 = vmatpush3.bf16.msra.mxu1 %v16122_v36  ;;  %v22529_v28 = vld [vmem:[#allocation127_spill] sm:$0xff]  ;;  %v8159_v22 = vshll.u32 %v13233_v61, 16  ;;  %v8163_v32 = vshrl.u32 %v13233_v61, 16 }
 0x361   : > { %v6388_v42 = vpop.f32.mrf.mxu1  ;;  %15440 = vmatprep.subr.bf16.mxu1 %v16123_v49  ;;  %v19372_v34 = vcombine.low %v7946_v27, %v7947_v41  ;;  %v7949_v62 = vmul.bf16 %v7912_v54, %v22529_v28  ;;  %v19381_v27 = vsel %vm4605_vm4, %v8141_v13, %v8145_v0  ;;  %v22531_v13 = vld [vmem:[#allocation100_spill] sm:$0xff] }
 0x362   : > { %v19370_v31 = vadd.f32 %v6623_v30, %v6388_v42  ;;  %v15123_v14 = vpop.f32.mrf.mxu0  ;;  %v7948_v42 = vmul.bf16 %v7911_v43, %v22530_v11  ;;  %v7914_v43 = vld [vmem:[#allocation3 + $0x88] sm:$0xf]  ;;  %v8155_v11 = vshrl.u32 %v19346_v48, 16 }
 0x363   : > { %v15074_v40 = vpop.f32.mrf.mxu1  ;;  %15361 = vmatmul.mubr.bf16.gmra.mxu1 %v19337_v55  ;;  %v8167_v58 = vshll.u32 %v19372_v34, 16  ;;  %v7951_v57 = vmul.bf16 %v7914_v43, %v22532_v51 }
 0x364   : > { %v19376_v36 = vadd.f32 %v15122_v38, %v15074_v40  ;;  %15364 = vmatprep.mubr.bf16.mxu1 %v19354_v2  ;;  %v6639_v10 = vpop.f32.mrf.mxu0  ;;  %15441 = vmatpush3.bf16.msra.mxu1 %v16123_v49  ;;  %v13235_v38 = vcombine.low %v7948_v42, %v7949_v62  ;;  %v8161_v40 = vrot.slane %v8159_v22, 1  ;;  %v8157_v22 = vor.u32 %v8155_v11, %v8153_v15 }
 0x365   : > { %v6401_v30 = vpop.f32.mrf.mxu1  ;;  %15442 = vmatprep.subr.bf16.mxu1 %v16124_v9  ;;  %v8169_v62 = vrot.slane %v8167_v58, 1  ;;  %v22533_v58 = vld [vmem:[#allocation104_spill] sm:$0xff] }
 0x366   : > { %v19383_v41 = vadd.f32 %v6636_v7, %v6401_v30  ;;  %v15126_v54 = vpop.f32.mrf.mxu0  ;;  %15413 = vmatmul.mubr.bf16.gmra.mxu0 %v19381_v27  ;;  %v19394_v7 = vmul.bf16 %v7913_v45, %v22531_v13  ;;  %v8175_v42 = vshll.u32 %v13235_v38, 16  ;;  %v8165_v48 = vor.u32 %v8163_v32, %v8161_v40 }
 0x367   : > { %v15075_v59 = vpop.f32.mrf.mxu1  ;;  %15416 = vmatprep.mubr.bf16.mxu0 %v19387_v21  ;;  %v19408_v45 = vsel %vm4605_vm4, %v8157_v22, %v8161_v40  ;;  %v19411_v43 = vmul.bf16 %v7915_v17, %v22533_v58  ;;  %v8179_v40 = vshrl.u32 %v13235_v38, 16  ;;  %v8171_v17 = vshrl.u32 %v19372_v34, 16 }
 0x368   : > { %v19391_v49 = vadd.f32 %v15123_v14, %v15075_v59  ;;  %v6652_v0 = vpop.f32.mrf.mxu0  ;;  %15443 = vmatpush3.bf16.msra.mxu1 %v16124_v9  ;;  %v13245_v61 = vcombine.low %v19394_v7, %v7951_v57  ;;  %v19417_v15 = vsel %vm4605_vm4, %v8165_v48, %v8169_v62  ;;  %v8177_v11 = vrot.slane %v8175_v42, 1 }
 0x369   : > { %v6404_v30 = vpop.f32.mrf.mxu1  ;;  %v8173_v42 = vor.u32 %v8171_v17, %v8169_v62 }
 0x36a   : > { %v19397_v28 = vadd.f32 %v6639_v10, %v6404_v30  ;;  %v15127_v47 = vpop.f32.mrf.mxu0  ;;  %v8181_v58 = vor.u32 %v8179_v40, %v8177_v11  ;;  %v8472_v62 = vshrl.u32 %v13245_v61, 16 }
 0x36b   : > { %v15078_v14 = vpop.f32.mrf.mxu1  ;;  %15365 = vmatmul.mubr.bf16.gmra.mxu1 %v19361_v35  ;;  %v19434_v37 = vsel %vm4605_vm4, %v8173_v42, %v8177_v11  ;;  %v13236_v11 = vcombine.low %v19394_v7, %v19394_v7 }
 0x36c   : > { %v19401_v59 = vadd.f32 %v15126_v54, %v15078_v14  ;;  %15368 = vmatprep.mubr.bf16.mxu1 %v19381_v27  ;;  %v19404_v9 = vpop.f32.mrf.mxu0  ;;  %v8468_v14 = vshll.u32 %v13245_v61, 16 }
 0x36d   : > { %v6417_v10 = vpop.f32.mrf.mxu1 }
 0x36e   : > { %v19413_v30 = vadd.f32 %v6652_v0, %v6417_v10  ;;  %v15130_v51 = vpop.f32.mrf.mxu0  ;;  %15417 = vmatmul.mubr.bf16.gmra.mxu0 %v19408_v45  ;;  %v13246_v0 = vcombine.low %v19411_v43, %v19411_v43  ;;  %v8470_v38 = vrot.slane %v8468_v14, 1 }
 0x36f   : > { %v15079_v54 = vpop.f32.mrf.mxu1  ;;  %15420 = vmatprep.mubr.bf16.mxu0 %v19417_v15 }
 0x370   : > { %v19420_v57 = vadd.f32 %v15127_v47, %v15079_v54  ;;  %v6668_v32 = vpop.f32.mrf.mxu0  ;;  %v8476_v34 = vshll.u32 %v13246_v0, 16  ;;  %v19440_v40 = vsel %vm4605_vm4, %v8181_v58, %v8470_v38 }
 0x371   : > { %v19422_v22 = vpop.f32.mrf.mxu1 }
 0x372   : > { %v15131_v10 = vpop.f32.mrf.mxu0  ;;  %v8478_v0 = vrot.slane %v8476_v34, 1 }
 0x373   : > { %v15082_v48 = vpop.f32.mrf.mxu1  ;;  %15369 = vmatmul.mubr.bf16.gmra.mxu1 %v19387_v21 }
 0x374   : > { %v19428_v13 = vadd.f32 %v15130_v51, %v15082_v48  ;;  %15372 = vmatprep.mubr.bf16.mxu1 %v19408_v45  ;;  %v19431_v47 = vpop.f32.mrf.mxu0 }
 0x375   : > { %v6433_v54 = vpop.f32.mrf.mxu1 }
 0x376   : > { %v19436_v26 = vadd.f32 %v6668_v32, %v6433_v54  ;;  %v15134_v19 = vpop.f32.mrf.mxu0  ;;  %15421 = vmatmul.mubr.bf16.gmra.mxu0 %v19434_v37  ;;  %v19449_v32 = vor.u32 %v8472_v62, %v8470_v38 }
 0x377   : > { %v15083_v51 = vpop.f32.mrf.mxu1  ;;  %15424 = vmatprep.mubr.bf16.mxu0 %v19440_v40 }
 0x378   : > { %v19443_v17 = vadd.f32 %v15131_v10, %v15083_v51  ;;  %v6684_v14 = vpop.f32.mrf.mxu0  ;;  %v8183_v10 = vshll.u32 %v13236_v11, 16  ;;  %v8479_v7 = vsel %vm4605_vm4, %v19449_v32, %v8478_v0 }
 0x379   : > { %v19447_v48 = vpop.f32.mrf.mxu1 }
 0x37a   : > { %v15135_v42 = vpop.f32.mrf.mxu0  ;;  %v8185_v18 = vrot.slane %v8183_v10, 1 }
 0x37b   : > { %v15086_v54 = vpop.f32.mrf.mxu1  ;;  %15373 = vmatmul.mubr.bf16.gmra.mxu1 %v19417_v15 }
 0x37c   : > { %v19452_v46 = vadd.f32 %v15134_v19, %v15086_v54  ;;  %15376 = vmatprep.mubr.bf16.mxu1 %v19434_v37  ;;  %v19455_v61 = vpop.f32.mrf.mxu0  ;;  %v8186_v6 = vsel %vm4605_vm4, %v8181_v58, %v8185_v18 }
 0x37d   : > { %v6449_v51 = vpop.f32.mrf.mxu1 }
 0x37e   : > { %v19459_v25 = vadd.f32 %v6684_v14, %v6449_v51  ;;  %v15138_v38 = vpop.f32.mrf.mxu0  ;;  %15425 = vmatmul.mubr.bf16.gmra.mxu0 %v8479_v7 }
 0x37f   : > { %v15087_v34 = vpop.f32.mrf.mxu1 }
 0x380   : > { %v19461_v62 = vadd.f32 %v15135_v42, %v15087_v34  ;;  %v6700_v53 = vpop.f32.mrf.mxu0 }
 0x381   : > { %v19463_v19 = vpop.f32.mrf.mxu1 }
 0x382   : > { %v15139_v54 = vpop.f32.mrf.mxu0 }
 0x383   : > { %v15090_v5 = vpop.f32.mrf.mxu1  ;;  %15377 = vmatmul.mubr.bf16.gmra.mxu1 %v8186_v6 }
 0x384   : > { %v19466_v11 = vadd.f32 %v15138_v38, %v15090_v5  ;;  %15444 = vmatprep.mubr.bf16.mxu1 %v19282_v44  ;;  %v19469_v14 = vpop.f32.mrf.mxu0 }
 0x385   : > { %22534 = vst [vmem:[#allocation152_spill] sm:$0xff] %v19469_v14  ;;  %v6465_v0 = vpop.f32.mrf.mxu1 }
 0x386   : > { %v19471_v51 = vadd.f32 %v6700_v53, %v6465_v0  ;;  %v15206_v42 = vpop.f32.mrf.mxu0 }
 0x387   : > { %v15091_v7 = vpop.f32.mrf.mxu1 }
 0x388   : > { %v19473_v34 = vadd.f32 %v15139_v54, %v15091_v7  ;;  %v7194_v10 = vpop.f32.mrf.mxu0 }
 0x389   : > { %v19475_v1 = vpop.f32.mrf.mxu1 }
 0x38a   : > { %22535 = vst [vmem:[#allocation158_spill] sm:$0xff] %v19475_v1  ;;  %v15207_v33 = vpop.f32.mrf.mxu0 }
 0x38b   : > { %v15158_v18 = vpop.f32.mrf.mxu1  ;;  %15445 = vmatmul.mubr.bf16.vlgmr.msra.gmra.mxu1 %v19287_v52 }
 0x38c   : > { %v6969_v5 = vadd.f32 %v15158_v18, %v19289_v24  ;;  %15448 = vmatprep.mubr.bf16.mxu1 %v19308_v20  ;;  %v19480_v6 = vpop.f32.mrf.mxu0 }
 0x38d   : > { %v6840_v44 = vpop.f32.mrf.mxu1 }
 0x38e   : > { %v6967_v53 = vadd.f32 %v6840_v44, %v19294_v60  ;;  %v15210_v58 = vpop.f32.mrf.mxu0  ;;  %v19483_v38 = vadd.f32 %v15206_v42, %v6969_v5 }
 0x38f   : > { %v15159_v54 = vpop.f32.mrf.mxu1 }
 0x390   : > { %v6970_v0 = vadd.f32 %v15159_v54, %v19298_v12  ;;  %v7210_v7 = vpop.f32.mrf.mxu0  ;;  %v19486_v14 = vadd.f32 %v7194_v10, %v6967_v53 }
 0x391   : > { %v6843_v1 = vpop.f32.mrf.mxu1 }
 0x392   : > { %v19489_v52 = vadd.f32 %v6843_v1, %v19304_v16  ;;  %v15211_v24 = vpop.f32.mrf.mxu0  ;;  %v19491_v20 = vadd.f32 %v15207_v33, %v6970_v0 }
 0x393   : > { %v15162_v18 = vpop.f32.mrf.mxu1  ;;  %15449 = vmatmul.mubr.bf16.gmra.mxu1 %v19312_v8 }
 0x394   : > { %v6973_v60 = vadd.f32 %v15162_v18, %v19320_v63  ;;  %15452 = vmatprep.mubr.bf16.mxu1 %v19330_v3  ;;  %v19496_v42 = vpop.f32.mrf.mxu0 }
 0x395   : > { %v6856_v12 = vpop.f32.mrf.mxu1 }
 0x396   : > { %v6971_v10 = vadd.f32 %v6856_v12, %v19326_v39  ;;  %v15214_v5 = vpop.f32.mrf.mxu0  ;;  %v19499_v44 = vadd.f32 %v15210_v58, %v6973_v60 }
 0x397   : > { %v15163_v1 = vpop.f32.mrf.mxu1 }
 0x398   : > { %v6974_v16 = vadd.f32 %v15163_v1, %v19333_v29  ;;  %v7226_v33 = vpop.f32.mrf.mxu0  ;;  %v19502_v53 = vadd.f32 %v7210_v7, %v6971_v10 }
 0x399   : > { %v6859_v54 = vpop.f32.mrf.mxu1 }
 0x39a   : > { %v19505_v8 = vadd.f32 %v6859_v54, %v19342_v56  ;;  %v15215_v63 = vpop.f32.mrf.mxu0  ;;  %v19507_v3 = vadd.f32 %v15211_v24, %v6974_v16 }
 0x39b   : > { %v15166_v0 = vpop.f32.mrf.mxu1  ;;  %15453 = vmatmul.mubr.bf16.gmra.mxu1 %v19337_v55 }
 0x39c   : > { %v6977_v39 = vadd.f32 %v15166_v0, %v19349_v23  ;;  %15456 = vmatprep.mubr.bf16.mxu1 %v19354_v2  ;;  %v19512_v58 = vpop.f32.mrf.mxu0 }
 0x39d   : > { %22536 = vst [vmem:[#allocation128_spill] sm:$0xff] %v19512_v58  ;;  %v6872_v29 = vpop.f32.mrf.mxu1 }
 0x39e   : > { %v6975_v7 = vadd.f32 %v6872_v29, %v19357_v4  ;;  %v15218_v18 = vpop.f32.mrf.mxu0  ;;  %v19515_v60 = vadd.f32 %v15214_v5, %v6977_v39  ;;  %v7916_v29 = vld [vmem:[#allocation3 + $0x90] sm:$0xf] }
 0x39f   : > { %v15167_v56 = vpop.f32.mrf.mxu1 }
 0x3a0   : > { %v6978_v12 = vadd.f32 %v15167_v56, %v19366_v50  ;;  %v7242_v24 = vpop.f32.mrf.mxu0  ;;  %v19518_v10 = vadd.f32 %v7226_v33, %v6975_v7 }
 0x3a1   : > { %v6875_v1 = vpop.f32.mrf.mxu1 }
 0x3a2   : > { %v19521_v55 = vadd.f32 %v6875_v1, %v19370_v31  ;;  %v15219_v23 = vpop.f32.mrf.mxu0  ;;  %v19523_v2 = vadd.f32 %v15215_v63, %v6978_v12 }
 0x3a3   : > { %v15170_v16 = vpop.f32.mrf.mxu1  ;;  %15457 = vmatmul.mubr.bf16.gmra.mxu1 %v19361_v35 }
 0x3a4   : > { %22537 = vst [vmem:[#allocation160_spill] sm:$0xff] %v19521_v55  ;;  %v6981_v4 = vadd.f32 %v15170_v16, %v19376_v36  ;;  %15460 = vmatprep.mubr.bf16.mxu1 %v19381_v27  ;;  %v19528_v5 = vpop.f32.mrf.mxu0  ;;  %v7917_v16 = vld [vmem:[#allocation3 + $0x94] sm:$0x1] }
 0x3a5   : > { %22538 = vst [vmem:[#allocation136_spill] sm:$0xff] %v19528_v5  ;;  %v6888_v50 = vpop.f32.mrf.mxu1  ;;  %v22647_v5 = vld [vmem:[#allocation45_spill] sm:$0xff] }
 0x3a6   : > { %v6979_v33 = vadd.f32 %v6888_v50, %v19383_v41  ;;  %v15222_v54 = vpop.f32.mrf.mxu0  ;;  %v19531_v0 = vadd.f32 %v15218_v18, %v6981_v4  ;;  %v22540_v41 = vld [vmem:[#allocation106_spill] sm:$0xff] }
 0x3a7   : > { %v15171_v31 = vpop.f32.mrf.mxu1  ;;  %v7953_v18 = vmul.bf16 %v7916_v29, %v22540_v41 }
 0x3a8   : > { %v6982_v39 = vadd.f32 %v15171_v31, %v19391_v49  ;;  %v7258_v63 = vpop.f32.mrf.mxu0  ;;  %v19534_v7 = vadd.f32 %v7242_v24, %v6979_v33 }
 0x3a9   : > { %v6891_v35 = vpop.f32.mrf.mxu1  ;;  %v13255_v33 = vcombine.low %v19411_v43, %v7953_v18 }
 0x3aa   : > { %v19537_v36 = vadd.f32 %v6891_v35, %v19397_v28  ;;  %v15223_v27 = vpop.f32.mrf.mxu0  ;;  %v19539_v56 = vadd.f32 %v15219_v23, %v6982_v39  ;;  %v22542_v39 = vld [vmem:[#allocation13_spill] sm:$0xff] }
 0x3ab   : > { %v15174_v12 = vpop.f32.mrf.mxu1  ;;  %15461 = vmatmul.mubr.bf16.gmra.mxu1 %v19387_v21  ;;  %v7954_v29 = vmul.bf16 %v7917_v16, %v22542_v39 }
 0x3ac   : > { %22539 = vst [vmem:[#allocation155_spill] sm:$0xff] %v19537_v36  ;;  %v6985_v1 = vadd.f32 %v15174_v12, %v19401_v59  ;;  %15464 = vmatprep.mubr.bf16.mxu1 %v19408_v45  ;;  %v19545_v49 = vpop.f32.mrf.mxu0 }
 0x3ad   : > { %22541 = vst [vmem:[#allocation135_spill] sm:$0xff] %v19545_v49  ;;  %v6904_v24 = vpop.f32.mrf.mxu1  ;;  %v22646_v49 = vld [vmem:[#allocation49_spill] sm:$0xff] }
 0x3ae   : > { %v6983_v4 = vadd.f32 %v6904_v24, %v19413_v30  ;;  %v15226_v28 = vpop.f32.mrf.mxu0  ;;  %v19548_v50 = vadd.f32 %v15222_v54, %v6985_v1  ;;  %v8747_v30 = vshll.u32 %v13255_v33, 16 }
 0x3af   : > { %v15175_v23 = vpop.f32.mrf.mxu1 }
 0x3b0   : > { %v6986_v21 = vadd.f32 %v15175_v23, %v19420_v57  ;;  %v7274_v31 = vpop.f32.mrf.mxu0  ;;  %v19553_v59 = vadd.f32 %v7258_v63, %v6983_v4  ;;  %v13256_v57 = vcombine.low %v7954_v29, %v7954_v29  ;;  %v16125_v63 = vld [vmem:[%s21855_s3 + $0xf8] sm:$0xff]   ;;  %v8749_v16 = vrot.slane %v8747_v30, 1 }
 0x3b1   : > { %v19555_v45 = vpop.f32.mrf.mxu1  ;;  %15476 = vmatprep.subr.bf16.mxu0 %v16125_v63 }
 0x3b2   : > { %v15227_v35 = vpop.f32.mrf.mxu0  ;;  %v19557_v12 = vadd.f32 %v15223_v27, %v6986_v21  ;;  %15477 = vmatpush3.bf16.msra.mxu0 %v16125_v63  ;;  %v8755_v4 = vshll.u32 %v13256_v57, 16 }
 0x3b3   : > { %v15178_v41 = vpop.f32.mrf.mxu1  ;;  %15465 = vmatmul.mubr.bf16.gmra.mxu1 %v19417_v15 }
 0x3b4   : > { %v6989_v54 = vadd.f32 %v15178_v41, %v19428_v13  ;;  %15468 = vmatprep.mubr.bf16.mxu1 %v19434_v37  ;;  %v19562_v43 = vpop.f32.mrf.mxu0  ;;  %v8751_v41 = vshrl.u32 %v13255_v33, 16 }
 0x3b5   : > { %22543 = vst [vmem:[#allocation161_spill] sm:$0xff] %v19562_v43  ;;  %v6920_v18 = vpop.f32.mrf.mxu1 }
 0x3b6   : > { %v6987_v1 = vadd.f32 %v6920_v18, %v19436_v26  ;;  %v15230_v27 = vpop.f32.mrf.mxu0  ;;  %v19568_v24 = vadd.f32 %v15226_v28, %v6989_v54  ;;  %v8750_v28 = vsel %vm4605_vm4, %v19449_v32, %v8749_v16  ;;  %v8753_v33 = vor.u32 %v8751_v41, %v8749_v16 }
 0x3b7   : > { %v15179_v15 = vpop.f32.mrf.mxu1  ;;  %v8757_v54 = vrot.slane %v8755_v4, 1 }
 0x3b8   : > { %v6990_v13 = vadd.f32 %v15179_v15, %v19443_v17  ;;  %v7290_v37 = vpop.f32.mrf.mxu0  ;;  %v19571_v23 = vadd.f32 %v7274_v31, %v6987_v1  ;;  %v16126_v31 = vld [vmem:[%s21855_s3 + $0xf0] sm:$0xff]  }
 0x3b9   : > { %v19573_v21 = vpop.f32.mrf.mxu1  ;;  %15478 = vmatprep.subr.bf16.mxu0 %v16126_v31  ;;  %v8758_v1 = vsel %vm4605_vm4, %v8753_v33, %v8757_v54 }
 0x3ba   : > { %v15231_v29 = vpop.f32.mrf.mxu0  ;;  %v19575_v39 = vadd.f32 %v15227_v35, %v6990_v13  ;;  %15479 = vmatpush3.bf16.msra.mxu0 %v16126_v31 }
 0x3bb   : > { %v15182_v26 = vpop.f32.mrf.mxu1  ;;  %15469 = vmatmul.mubr.bf16.gmra.mxu1 %v19440_v40 }
 0x3bc   : > { %v6993_v30 = vadd.f32 %v15182_v26, %v19452_v46  ;;  %15472 = vmatprep.mubr.bf16.mxu1 %v8750_v28  ;;  %v19581_v17 = vpop.f32.mrf.mxu0 }
 0x3bd   : > { %22544 = vst [vmem:[#allocation132_spill] sm:$0xff] %v19581_v17  ;;  %v6936_v57 = vpop.f32.mrf.mxu1 }
 0x3be   : > { %v6991_v35 = vadd.f32 %v6936_v57, %v19459_v25  ;;  %v15234_v63 = vpop.f32.mrf.mxu0  ;;  %v19587_v18 = vadd.f32 %v15230_v27, %v6993_v30 }
 0x3bf   : > { %v15183_v40 = vpop.f32.mrf.mxu1 }
 0x3c0   : > { %v6994_v46 = vadd.f32 %v15183_v40, %v19461_v62  ;;  %v7306_v32 = vpop.f32.mrf.mxu0  ;;  %v19591_v15 = vadd.f32 %v7290_v37, %v6991_v35  ;;  %v16127_v62 = vld [vmem:[%s21855_s3 + $0xe8] sm:$0xff]  }
 0x3c1   : > { %v19593_v16 = vpop.f32.mrf.mxu1  ;;  %15480 = vmatprep.subr.bf16.mxu0 %v16127_v62 }
 0x3c2   : > { %v15235_v13 = vpop.f32.mrf.mxu0  ;;  %v19595_v41 = vadd.f32 %v15231_v29, %v6994_v46  ;;  %15481 = vmatpush3.bf16.msra.mxu0 %v16127_v62 }
 0x3c3   : > { %v15186_v4 = vpop.f32.mrf.mxu1  ;;  %15473 = vmatmul.mubr.bf16.gmra.mxu1 %v8758_v1 }
 0x3c4   : > { %v6997_v25 = vadd.f32 %v15186_v4, %v19466_v11  ;;  %v19598_v27 = vpop.f32.mrf.mxu0 }
 0x3c5   : > { %22545 = vst [vmem:[#allocation162_spill] sm:$0xff] %v19598_v27  ;;  %v6952_v26 = vpop.f32.mrf.mxu1  ;;  %v22639_v27 = vld [vmem:[#allocation32_spill] sm:$0xff] }
 0x3c6   : > { %v6995_v28 = vadd.f32 %v6952_v26, %v19471_v51  ;;  %v15302_v37 = vpop.f32.mrf.mxu0  ;;  %v19604_v30 = vadd.f32 %v15234_v63, %v6997_v25 }
 0x3c7   : > { %v15187_v33 = vpop.f32.mrf.mxu1 }
 0x3c8   : > { %v6998_v29 = vadd.f32 %v15187_v33, %v19473_v34  ;;  %v19607_v54 = vpop.f32.mrf.mxu0  ;;  %v19609_v11 = vadd.f32 %v7306_v32, %v6995_v28 }
 0x3c9   : > { %22546 = vst [vmem:[#allocation159_spill] sm:$0xff] %v19607_v54  ;;  %v19611_v31 = vpop.f32.mrf.mxu1 }
 0x3ca   : > { %v15303_v57 = vpop.f32.mrf.mxu0  ;;  %v19613_v35 = vadd.f32 %v15235_v13, %v6998_v29 }
 0x3cb   : > { %v15254_v40 = vpop.f32.mrf.mxu1 }
 0x3cc   : > { %v7587_v51 = vadd.f32 %v15254_v40, %v19483_v38  ;;  %v19616_v46 = vpop.f32.mrf.mxu0 }
 0x3cd   : > { %22547 = vst [vmem:[#allocation163_spill] sm:$0xff] %v19616_v46  ;;  %v7458_v63 = vpop.f32.mrf.mxu1 }
 0x3ce   : > { %v19619_v1 = vadd.f32 %v7458_v63, %v19486_v14  ;;  %v15306_v4 = vpop.f32.mrf.mxu0  ;;  %v19621_v34 = vadd.f32 %v15302_v37, %v7587_v51  ;;  %v16128_v14 = vld [vmem:[%s21855_s3 + $0xe0] sm:$0xff]  }
 0x3cf   : > { %v15255_v25 = vpop.f32.mrf.mxu1  ;;  %15482 = vmatprep.subr.bf16.mxu0 %v16128_v14 }
 0x3d0   : > { %22548 = vst [vmem:[#allocation146_spill] sm:$0xff] %v19619_v1  ;;  %v7588_v32 = vadd.f32 %v15255_v25, %v19491_v20  ;;  %v19624_v62 = vpop.f32.mrf.mxu0  ;;  %15483 = vmatpush3.bf16.msra.mxu0 %v16128_v14 }
 0x3d1   : > { %22549 = vst [vmem:[#allocation164_spill] sm:$0xff] %v19624_v62  ;;  %v19626_v26 = vpop.f32.mrf.mxu1 }
 0x3d2   : > { %22550 = vst [vmem:[#allocation165_spill] sm:$0xff] %v19626_v26  ;;  %v15307_v13 = vpop.f32.mrf.mxu0  ;;  %v19628_v28 = vadd.f32 %v15303_v57, %v7588_v32 }
 0x3d3   : > { %v15258_v38 = vpop.f32.mrf.mxu1 }
 0x3d4   : > { %v7591_v33 = vadd.f32 %v15258_v38, %v19499_v44  ;;  %v19631_v29 = vpop.f32.mrf.mxu0  ;;  %v16129_v44 = vld [vmem:[%s21855_s3 + $0x38] sm:$0xff]  }
 0x3d5   : > { %22551 = vst [vmem:[#allocation166_spill] sm:$0xff] %v19631_v29  ;;  %v7474_v37 = vpop.f32.mrf.mxu1  ;;  %15524 = vmatprep.subr.bf16.mxu1 %v16129_v44 }
 0x3d6   : > { %v19637_v40 = vadd.f32 %v7474_v37, %v19502_v53  ;;  %v15310_v20 = vpop.f32.mrf.mxu0  ;;  %v19639_v51 = vadd.f32 %v15306_v4, %v7591_v33  ;;  %15525 = vmatpush3.bf16.msra.mxu1 %v16129_v44  ;;  %v16131_v37 = vld [vmem:[%s21855_s3 + $0x30] sm:$0xff]  }
 0x3d7   : > { %v15259_v63 = vpop.f32.mrf.mxu1  ;;  %15526 = vmatprep.subr.bf16.mxu1 %v16131_v37 }
 0x3d8   : > { %22552 = vst [vmem:[#allocation167_spill] sm:$0xff] %v19637_v40  ;;  %v7592_v57 = vadd.f32 %v15259_v63, %v19507_v3  ;;  %v19642_v25 = vpop.f32.mrf.mxu0  ;;  %v16130_v3 = vld [vmem:[%s21855_s3 + $0xd8] sm:$0xff]  }
 0x3d9   : > { %22553 = vst [vmem:[#allocation168_spill] sm:$0xff] %v19642_v25  ;;  %v19647_v32 = vpop.f32.mrf.mxu1  ;;  %15484 = vmatprep.subr.bf16.mxu0 %v16130_v3  ;;  %v16132_v25 = vld [vmem:[%s21855_s3 + $0x28] sm:$0xff]  }
 0x3da   : > { %22554 = vst [vmem:[#allocation169_spill] sm:$0xff] %v19647_v32  ;;  %v15311_v38 = vpop.f32.mrf.mxu0  ;;  %v19649_v29 = vadd.f32 %v15307_v13, %v7592_v57  ;;  %15485 = vmatpush3.bf16.msra.mxu0 %v16130_v3  ;;  %15527 = vmatpush3.bf16.msra.mxu1 %v16131_v37  ;;  %v16134_v3 = vld [vmem:[%s21855_s3 + $0x20] sm:$0xff]  }
 0x3db   : > { %v15262_v53 = vpop.f32.mrf.mxu1  ;;  %15528 = vmatprep.subr.bf16.mxu1 %v16132_v25 }
 0x3dc   : > { %v7595_v4 = vadd.f32 %v15262_v53, %v19515_v60  ;;  %v19652_v33 = vpop.f32.mrf.mxu0 }
 0x3dd   : > { %22555 = vst [vmem:[#allocation170_spill] sm:$0xff] %v19652_v33  ;;  %v7490_v14 = vpop.f32.mrf.mxu1 }
 0x3de   : > { %v19661_v63 = vadd.f32 %v7490_v14, %v19518_v10  ;;  %v15314_v13 = vpop.f32.mrf.mxu0  ;;  %v19663_v57 = vadd.f32 %v15310_v20, %v7595_v4  ;;  %15529 = vmatpush3.bf16.msra.mxu1 %v16132_v25 }
 0x3df   : > { %v15263_v44 = vpop.f32.mrf.mxu1  ;;  %15530 = vmatprep.subr.bf16.mxu1 %v16134_v3 }
 0x3e0   : > { %22556 = vst [vmem:[#allocation171_spill] sm:$0xff] %v19661_v63  ;;  %v7596_v60 = vadd.f32 %v15263_v44, %v19523_v2  ;;  %v19666_v53 = vpop.f32.mrf.mxu0  ;;  %v16133_v2 = vld [vmem:[%s21855_s3 + $0xd0] sm:$0xff]  }
 0x3e1   : > { %22557 = vst [vmem:[#allocation172_spill] sm:$0xff] %v19666_v53  ;;  %v19668_v33 = vpop.f32.mrf.mxu1  ;;  %15486 = vmatprep.subr.bf16.mxu0 %v16133_v2  ;;  %v16135_v53 = vld [vmem:[%s21855_s3 + $0x18] sm:$0xff]  }
 0x3e2   : > { %22558 = vst [vmem:[#allocation173_spill] sm:$0xff] %v19668_v33  ;;  %v15315_v10 = vpop.f32.mrf.mxu0  ;;  %v19673_v14 = vadd.f32 %v15311_v38, %v7596_v60  ;;  %15487 = vmatpush3.bf16.msra.mxu0 %v16133_v2  ;;  %15531 = vmatpush3.bf16.msra.mxu1 %v16134_v3  ;;  %v16136_v2 = vld [vmem:[%s21855_s3 + $0xc8] sm:$0xff]   ;;  %v16137_v3 = vld [vmem:[%s21855_s3 + $0x10] sm:$0xff]  }
 0x3e3   : > { %v15266_v20 = vpop.f32.mrf.mxu1  ;;  %15532 = vmatprep.subr.bf16.mxu1 %v16135_v53  ;;  %15488 = vmatprep.subr.bf16.mxu0 %v16136_v2 }
 0x3e4   : > { %v7599_v4 = vadd.f32 %v15266_v20, %v19531_v0  ;;  %v19676_v63 = vpop.f32.mrf.mxu0 }
 0x3e5   : > { %22559 = vst [vmem:[#allocation174_spill] sm:$0xff] %v19676_v63  ;;  %v7506_v37 = vpop.f32.mrf.mxu1 }
 0x3e6   : > { %v19685_v44 = vadd.f32 %v7506_v37, %v19534_v7  ;;  %v15318_v38 = vpop.f32.mrf.mxu0  ;;  %v19687_v60 = vadd.f32 %v15314_v13, %v7599_v4  ;;  %15533 = vmatpush3.bf16.msra.mxu1 %v16135_v53  ;;  %15489 = vmatpush3.bf16.msra.mxu0 %v16136_v2  ;;  %v16140_v2 = vld [vmem:[%s21855_s3] sm:$0xff]  }
 0x3e7   : > { %v15267_v0 = vpop.f32.mrf.mxu1  ;;  %15534 = vmatprep.subr.bf16.mxu1 %v16137_v3 }
 0x3e8   : > { %22560 = vst [vmem:[#allocation175_spill] sm:$0xff] %v19685_v44  ;;  %v7600_v25 = vadd.f32 %v15267_v0, %v19539_v56  ;;  %v19690_v20 = vpop.f32.mrf.mxu0 }
 0x3e9   : > { %22561 = vst [vmem:[#allocation176_spill] sm:$0xff] %v19690_v20  ;;  %v19692_v63 = vpop.f32.mrf.mxu1 }
 0x3ea   : > { %22562 = vst [vmem:[#allocation177_spill] sm:$0xff] %v19692_v63  ;;  %v15319_v7 = vpop.f32.mrf.mxu0  ;;  %v19697_v37 = vadd.f32 %v15315_v10, %v7600_v25  ;;  %15535 = vmatpush3.bf16.msra.mxu1 %v16137_v3 }
 0x3eb   : > { %v15270_v13 = vpop.f32.mrf.mxu1 }
 0x3ec   : > { %v7603_v4 = vadd.f32 %v15270_v13, %v19548_v50  ;;  %v19700_v44 = vpop.f32.mrf.mxu0  ;;  %v16138_v13 = vld [vmem:[%s21855_s3 + $0x8] sm:$0xff]  }
 0x3ed   : > { %22563 = vst [vmem:[#allocation178_spill] sm:$0xff] %v19700_v44  ;;  %v7522_v56 = vpop.f32.mrf.mxu1  ;;  %15536 = vmatprep.subr.bf16.mxu1 %v16138_v13 }
 0x3ee   : > { %v19709_v0 = vadd.f32 %v7522_v56, %v19553_v59  ;;  %v15322_v10 = vpop.f32.mrf.mxu0  ;;  %v19711_v25 = vadd.f32 %v15318_v38, %v7603_v4  ;;  %15537 = vmatpush3.bf16.msra.mxu1 %v16138_v13 }
 0x3ef   : > { %v15271_v20 = vpop.f32.mrf.mxu1  ;;  %15538 = vmatprep.subr.bf16.mxu1 %v16140_v2 }
 0x3f0   : > { %22564 = vst [vmem:[#allocation179_spill] sm:$0xff] %v19709_v0  ;;  %v7604_v50 = vadd.f32 %v15271_v20, %v19557_v12  ;;  %v19714_v53 = vpop.f32.mrf.mxu0  ;;  %v16139_v20 = vld [vmem:[%s21855_s3 + $0xc0] sm:$0xff]  }
 0x3f1   : > { %22565 = vst [vmem:[#allocation180_spill] sm:$0xff] %v19714_v53  ;;  %v19719_v44 = vpop.f32.mrf.mxu1  ;;  %15490 = vmatprep.subr.bf16.mxu0 %v16139_v20 }
 0x3f2   : > { %22566 = vst [vmem:[#allocation181_spill] sm:$0xff] %v19719_v44  ;;  %v15323_v59 = vpop.f32.mrf.mxu0  ;;  %v19721_v56 = vadd.f32 %v15319_v7, %v7604_v50  ;;  %15491 = vmatpush3.bf16.msra.mxu0 %v16139_v20  ;;  %15539 = vmatpush3.bf16.msra.mxu1 %v16140_v2 }
 0x3f3   : > { %v15274_v38 = vpop.f32.mrf.mxu1 }
 0x3f4   : > { %v7607_v4 = vadd.f32 %v15274_v38, %v19568_v24  ;;  %v19724_v0 = vpop.f32.mrf.mxu0 }
 0x3f5   : > { %22567 = vst [vmem:[#allocation182_spill] sm:$0xff] %v19724_v0  ;;  %v7538_v12 = vpop.f32.mrf.mxu1 }
 0x3f6   : > { %v19733_v3 = vadd.f32 %v7538_v12, %v19571_v23  ;;  %v15326_v7 = vpop.f32.mrf.mxu0  ;;  %v19735_v50 = vadd.f32 %v15322_v10, %v7607_v4  ;;  %v16142_v10 = vld [vmem:[%s21855_s3 + $0x1b8] sm:$0xff]  }
 0x3f7   : > { %v15275_v53 = vpop.f32.mrf.mxu1  ;;  %15572 = vmatprep.subr.bf16.mxu0 %v16142_v10 }
 0x3f8   : > { %22568 = vst [vmem:[#allocation183_spill] sm:$0xff] %v19733_v3  ;;  %v7608_v24 = vadd.f32 %v15275_v53, %v19575_v39  ;;  %v19738_v13 = vpop.f32.mrf.mxu0 }
 0x3f9   : > { %22569 = vst [vmem:[#allocation184_spill] sm:$0xff] %v19738_v13  ;;  %v19740_v38 = vpop.f32.mrf.mxu1 }
 0x3fa   : > { %22570 = vst [vmem:[#allocation185_spill] sm:$0xff] %v19740_v38  ;;  %v15327_v0 = vpop.f32.mrf.mxu0  ;;  %v19742_v62 = vadd.f32 %v15323_v59, %v7608_v24  ;;  %v22626_v38 = vld [vmem:[#allocation55_spill] sm:$0xff] }
 0x3fb   : > { %v15278_v40 = vpop.f32.mrf.mxu1  ;;  %v1074_v46 = vunpack.c.l.bf16 %v22626_v38 }
 0x3fc   : > { %v7611_v23 = vadd.f32 %v15278_v40, %v19587_v18  ;;  %v19745_v12 = vpop.f32.mrf.mxu0 }
 0x3fd   : > { %22571 = vst [vmem:[#allocation186_spill] sm:$0xff] %v19745_v12  ;;  %v7554_v4 = vpop.f32.mrf.mxu1 }
 0x3fe   : > { %v19751_v39 = vadd.f32 %v7554_v4, %v19591_v15  ;;  %v15330_v53 = vpop.f32.mrf.mxu0  ;;  %v19753_v20 = vadd.f32 %v15326_v7, %v7611_v23 }
 0x3ff   : > { %v15279_v2 = vpop.f32.mrf.mxu1 }
 0x400   : > { %22572 = vst [vmem:[#allocation187_spill] sm:$0xff] %v19751_v39  ;;  %v7612_v59 = vadd.f32 %v15279_v2, %v19595_v41  ;;  %v19756_v24 = vpop.f32.mrf.mxu0  ;;  %v22618_v39 = vld [vmem:[#allocation33_spill] sm:$0xff] }
 0x401   : > { %22573 = vst [vmem:[#allocation188_spill] sm:$0xff] %v19756_v24  ;;  %v19758_v18 = vpop.f32.mrf.mxu1 }
 0x402   : > { %22574 = vst [vmem:[#allocation189_spill] sm:$0xff] %v19758_v18  ;;  %v19760_v40 = vpop.f32.mrf.mxu0  ;;  %v19762_v12 = vadd.f32 %v15327_v0, %v7612_v59  ;;  %v22624_v18 = vld [vmem:[#allocation47_spill] sm:$0xff] }
 0x403   : > { %22575 = vst [vmem:[#allocation190_spill] sm:$0xff] %v19760_v40  ;;  %v15282_v13 = vpop.f32.mrf.mxu1 }
 0x404   : > { %22576 = vst [vmem:[#allocation191_spill] sm:$0xff] %v19762_v12  ;;  %v7615_v3 = vadd.f32 %v15282_v13, %v19604_v30  ;;  %v19765_v15 = vpop.f32.mrf.mxu0  ;;  %v22645_v12 = vld [vmem:[#allocation38_spill] sm:$0xff] }
 0x405   : > { %22577 = vst [vmem:[#allocation192_spill] sm:$0xff] %v19765_v15  ;;  %v7570_v4 = vpop.f32.mrf.mxu1 }
 0x406   : > { %v19768_v7 = vadd.f32 %v7570_v4, %v19609_v11  ;;  %v19770_v23 = vpop.f32.mrf.mxu0  ;;  %v19772_v41 = vadd.f32 %v15330_v53, %v7615_v3 }
 0x407   : > { %22579 = vst [vmem:[#allocation194_spill] sm:$0xff] %v19770_v23  ;;  %v15283_v10 = vpop.f32.mrf.mxu1 }
 0x408   : > { %22578 = vst [vmem:[#allocation193_spill] sm:$0xff] %v19768_v7  ;;  %22580 = vst [vmem:[#allocation195_spill] sm:$0xff] %v19772_v41  ;;  %v19775_v2 = vadd.f32 %v15283_v10, %v19613_v35  ;;  %v19777_v40 = vpop.f32.mrf.mxu0  ;;  %v22625_v41 = vld [vmem:[#allocation43_spill] sm:$0xff] }
 0x409   : > { %22582 = vst [vmem:[#allocation197_spill] sm:$0xff] %v19777_v40  ;;  %v19779_v0 = vpop.f32.mrf.mxu1 }
 0x40a   : > { %22581 = vst [vmem:[#allocation196_spill] sm:$0xff] %v19775_v2  ;;  %22583 = vst [vmem:[#allocation198_spill] sm:$0xff] %v19779_v0  ;;  %v19781_v59 = vpop.f32.mrf.mxu0 }
 0x40b   : > { %22584 = vst [vmem:[#allocation199_spill] sm:$0xff] %v19781_v59  ;;  %v15350_v30 = vpop.f32.mrf.mxu1 }
 0x40c   : > { %v19784_v13 = vadd.f32 %v15350_v30, %v19621_v34  ;;  %v19786_v11 = vpop.f32.mrf.mxu0 }
 0x40d   : > { %22586 = vst [vmem:[#allocation201_spill] sm:$0xff] %v19786_v11  ;;  %v19788_v4 = vpop.f32.mrf.mxu1 }
 0x40e   : > { %22585 = vst [vmem:[#allocation200_spill] sm:$0xff] %v19784_v13  ;;  %22587 = vst [vmem:[#allocation202_spill] sm:$0xff] %v19788_v4  ;;  %v19790_v3 = vpop.f32.mrf.mxu0 }
 0x40f   : > { %22588 = vst [vmem:[#allocation203_spill] sm:$0xff] %v19790_v3  ;;  %v15351_v53 = vpop.f32.mrf.mxu1 }
 0x410   : > { %v19793_v35 = vadd.f32 %v15351_v53, %v19628_v28  ;;  %v19795_v10 = vpop.f32.mrf.mxu0 }
 0x411   : > { %22590 = vst [vmem:[#allocation205_spill] sm:$0xff] %v19795_v10  ;;  %v19797_v40 = vpop.f32.mrf.mxu1 }
 0x412   : > { %22589 = vst [vmem:[#allocation204_spill] sm:$0xff] %v19793_v35  ;;  %22591 = vst [vmem:[#allocation206_spill] sm:$0xff] %v19797_v40  ;;  %v19799_v15 = vpop.f32.mrf.mxu0  ;;  %v22600_v35 = vld [vmem:[#allocation12_spill] sm:$0xff] }
 0x413   : > { %22592 = vst [vmem:[#allocation207_spill] sm:$0xff] %v19799_v15  ;;  %v15354_v59 = vpop.f32.mrf.mxu1  ;;  %v1094_v15 = vsub.s32 6, %v22600_v35  ;;  %v22620_v40 = vld [vmem:[#allocation44_spill] sm:$0xff] }
 0x414   : > { %v19802_v34 = vadd.f32 %v15354_v59, %v19639_v51  ;;  %v19804_v30 = vpop.f32.mrf.mxu0 }
 0x415   : > { %22594 = vst [vmem:[#allocation209_spill] sm:$0xff] %v19804_v30  ;;  %v19806_v11 = vpop.f32.mrf.mxu1 }
 0x416   : > { %22593 = vst [vmem:[#allocation208_spill] sm:$0xff] %v19802_v34  ;;  %22595 = vst [vmem:[#allocation210_spill] sm:$0xff] %v19806_v11  ;;  %v19808_v23 = vpop.f32.mrf.mxu0 }
 0x417   : > { %22596 = vst [vmem:[#allocation211_spill] sm:$0xff] %v19808_v23  ;;  %v15355_v3 = vpop.f32.mrf.mxu1  ;;  %v22605_v23 = vld [vmem:[#allocation16_spill] sm:$0xff] }
 0x418   : > { %v19811_v28 = vadd.f32 %v15355_v3, %v19649_v29  ;;  %v19813_v53 = vpop.f32.mrf.mxu0  ;;  %v1062_v2 = vunpack.c.l.bf16 %v22605_v23  ;;  %v19831_v29 = vld [vmem:[%s21856_s4] sm:$0xff] }
 0x419   : > { %22598 = vst [vmem:[#allocation213_spill] sm:$0xff] %v19813_v53  ;;  %v19815_v10 = vpop.f32.mrf.mxu1  ;;  %22606 = vst [vmem:[#allocation16_spill] sm:$0xff] %v19831_v29  ;;  %v19834_v3 = vrot.slane %v19831_v29, %v1094_v15  ;;  %v22607_v53 = vld [vmem:[#allocation14_spill] sm:$0xff]  ;;  %v22638_v29 = vld [vmem:[#allocation19_spill] sm:$0xff] }
 0x41a   : > { %22597 = vst [vmem:[#allocation212_spill] sm:$0xff] %v19811_v28  ;;  %22599 = vst [vmem:[#allocation214_spill] sm:$0xff] %v19815_v10  ;;  %v19818_v13 = vpop.f32.mrf.mxu0  ;;  %v1067_v10 = vunpack.c.l.bf16 %v22618_v39 }
 0x41b   : > { %22601 = vst [vmem:[#allocation215_spill] sm:$0xff] %v19818_v13  ;;  %v15358_v51 = vpop.f32.mrf.mxu1  ;;  %v1060_v13 = vunpack.c.l.bf16 %v22607_v53  ;;  %v19847_v23 = vmul.f32 %v19834_v3, %v1062_v2  ;;  %v19857_v53 = vld [vmem:[%s21855_s3 + $0x78] sm:$0xff]  }
 0x41c   : > { %v19821_v59 = vadd.f32 %v15358_v51, %v19663_v57  ;;  %v19823_v30 = vpop.f32.mrf.mxu0  ;;  %22613 = vst [vmem:[#allocation223_spill] sm:$0xff] %v19857_v53  ;;  %15620 = vmatprep.subr.bf16.mxu1 %v19857_v53 }
 0x41d   : > { %22603 = vst [vmem:[#allocation217_spill] sm:$0xff] %v19823_v30  ;;  %v19825_v34 = vpop.f32.mrf.mxu1  ;;  %v19850_v24 = vmul.f32 %v19834_v3, %v1060_v13  ;;  %v22619_v13 = vld [vmem:[#allocation29_spill] sm:$0xff] }
 0x41e   : > { %22602 = vst [vmem:[#allocation216_spill] sm:$0xff] %v19821_v59  ;;  %22604 = vst [vmem:[#allocation218_spill] sm:$0xff] %v19825_v34  ;;  %v19837_v28 = vpop.f32.mrf.mxu0  ;;  %v1065_v11 = vunpack.c.l.bf16 %v22619_v13  ;;  %v22628_v13 = vld [vmem:[#allocation48_spill] sm:$0xff] }
 0x41f   : > { %22608 = vst [vmem:[#allocation14_spill] sm:$0xff] %v19837_v28  ;;  %v15359_v57 = vpop.f32.mrf.mxu1  ;;  %v22614_v28 = vld [vmem:[#allocation21_spill] sm:$0xff]  ;;  %v1072_v54 = vunpack.c.l.bf16 %v22628_v13 }
 0x420   : > { %v19840_v51 = vadd.f32 %v15359_v57, %v19673_v14  ;;  %v19842_v30 = vpop.f32.mrf.mxu0  ;;  %v1063_v14 = vunpack.c.l.bf16 %v22614_v28  ;;  %v22615_v57 = vld [vmem:[#allocation15_spill] sm:$0xff]  ;;  %v1101_v13 = vmul.f32 %v19834_v3, %v1065_v11 }
 0x421   : > { %22610 = vst [vmem:[#allocation220_spill] sm:$0xff] %v19842_v30  ;;  %v19844_v59 = vpop.f32.mrf.mxu1  ;;  %v22616_v30 = vld [vmem:[#allocation30_spill] sm:$0xff]  ;;  %v22623_v28 = vld [vmem:[#allocation35_spill] sm:$0xff] }
 0x422   : > { %22609 = vst [vmem:[#allocation219_spill] sm:$0xff] %v19840_v51  ;;  %22611 = vst [vmem:[#allocation221_spill] sm:$0xff] %v19844_v59  ;;  %v19852_v15 = vpop.f32.mrf.mxu0  ;;  %v1061_v51 = vunpack.c.l.bf16 %v22615_v57  ;;  %v1066_v7 = vunpack.c.l.bf16 %v22616_v30  ;;  %v22617_v59 = vld [vmem:[#allocation22_spill] sm:$0xff]  ;;  %v1068_v57 = vunpack.c.l.bf16 %v22623_v28  ;;  %v1071_v30 = vunpack.c.l.bf16 %v22624_v18 }
 0x423   : > { %22612 = vst [vmem:[#allocation222_spill] sm:$0xff] %v19852_v15  ;;  %v1064_v34 = vunpack.c.l.bf16 %v22617_v59  ;;  %v15362_v2 = vpop.f32.mrf.mxu1  ;;  %v1070_v15 = vunpack.c.l.bf16 %v22620_v40  ;;  %v1069_v59 = vunpack.c.l.bf16 %v22625_v41  ;;  %v22629_v40 = vld [vmem:[#allocation17_spill] sm:$0xff]  ;;  %v1099_v28 = vmul.f32 %v19834_v3, %v1063_v14 }
 0x424   : > { %v19867_v4 = vadd.f32 %v15362_v2, %v19687_v60  ;;  %v19869_v0 = vpop.f32.mrf.mxu0  ;;  %v1075_v1 = vunpack.c.l.bf16 %v22629_v40  ;;  %v22630_v60 = vld [vmem:[#allocation54_spill] sm:$0xff]  ;;  %v1097_v18 = vmul.f32 %v19834_v3, %v1061_v51  ;;  %v1102_v41 = vmul.f32 %v19834_v3, %v1066_v7 }
 0x425   : > { %22622 = vst [vmem:[#allocation15_spill] sm:$0xff] %v19869_v0  ;;  %v19876_v39 = vpop.f32.mrf.mxu1  ;;  %v1073_v2 = vunpack.c.l.bf16 %v22630_v60  ;;  %v1100_v38 = vmul.f32 %v19834_v3, %v1064_v34  ;;  %v1106_v40 = vmul.f32 %v19834_v3, %v1070_v15  ;;  %v1107_v14 = vmul.f32 %v19834_v3, %v1071_v30 }
 0x426   : > { %22621 = vst [vmem:[#allocation21_spill] sm:$0xff] %v19867_v4  ;;  %22627 = vst [vmem:[#allocation30_spill] sm:$0xff] %v19876_v39  ;;  %v22631_v4 = vld [vmem:[#allocation20_spill] sm:$0xff]  ;;  %v19882_v44 = vpop.f32.mrf.mxu0  ;;  %v1103_v39 = vmul.f32 %v19834_v3, %v1067_v10  ;;  %v1105_v51 = vmul.f32 %v19834_v3, %v1069_v59  ;;  %v1110_v7 = vmul.f32 %v19834_v3, %v1074_v46  ;;  %v1077_v59 = vunpack.c.l.bf16 %v22638_v29 }
 0x427   : > { %v1078_v0 = vunpack.c.l.bf16 %v22631_v4  ;;  %22632 = vst [vmem:[#allocation22_spill] sm:$0xff] %v19882_v44  ;;  %v15363_v53 = vpop.f32.mrf.mxu1  ;;  %v1104_v4 = vmul.f32 %v19834_v3, %v1068_v57  ;;  %v1108_v34 = vmul.f32 %v19834_v3, %v1072_v54  ;;  %v1111_v10 = vmul.f32 %v19834_v3, %v1075_v1  ;;  %v22641_v54 = vld [vmem:[#allocation36_spill] sm:$0xff]  ;;  %v22642_v1 = vld [vmem:[#allocation31_spill] sm:$0xff] }
 0x428   : > { %v19892_v60 = vadd.f32 %v15363_v53, %v19697_v37  ;;  %v1109_v11 = vmul.f32 %v19834_v3, %v1073_v2  ;;  %v19904_v37 = vpop.f32.mrf.mxu0  ;;  %v22636_v53 = vld [vmem:[#allocation18_spill] sm:$0xff]  ;;  %v1082_v46 = vunpack.c.l.bf16 %v22639_v27  ;;  %v1083_v17 = vunpack.c.l.bf16 %v22641_v54  ;;  %v22651_v54 = vld [vmem:[#allocation59_spill] sm:$0xff] }
 0x429   : > { %v19898_v44 = vpop.f32.mrf.mxu1  ;;  %v1114_v15 = vmul.f32 %v19834_v3, %v1078_v0  ;;  %22635 = vst [vmem:[#allocation44_spill] sm:$0xff] %v19904_v37  ;;  %v1076_v57 = vunpack.c.l.bf16 %v22636_v53  ;;  %v1081_v43 = vunpack.c.l.bf16 %v22642_v1  ;;  %v22644_v0 = vld [vmem:[#allocation46_spill] sm:$0xff]  ;;  %v1084_v53 = vunpack.c.l.bf16 %v22645_v12  ;;  %v22652_v1 = vld [vmem:[#allocation57_spill] sm:$0xff] }
 0x42a   : > { %22633 = vst [vmem:[#allocation33_spill] sm:$0xff] %v19892_v60  ;;  %22634 = vst [vmem:[#allocation29_spill] sm:$0xff] %v19898_v44  ;;  %v22637_v60 = vld [vmem:[#allocation24_spill] sm:$0xff]  ;;  %v22640_v44 = vld [vmem:[#allocation26_spill] sm:$0xff]  ;;  %v1086_v37 = vunpack.c.l.bf16 %v22644_v0  ;;  %v1085_v29 = vunpack.c.l.bf16 %v22647_v5  ;;  %v1091_v55 = vunpack.c.l.bf16 %v22651_v54  ;;  %v1089_v26 = vunpack.c.l.bf16 %v22652_v1 }
 0x42b   : > { %v1079_v30 = vunpack.c.l.bf16 %v22637_v60  ;;  %v15366_v63 = vpop.f32.mrf.mxu1  ;;  %v1080_v33 = vunpack.c.l.bf16 %v22640_v44  ;;  %v1087_v60 = vunpack.c.l.bf16 %v22646_v49  ;;  %v22649_v27 = vld [vmem:[#allocation58_spill] sm:$0xff]  ;;  %v1113_v49 = vmul.f32 %v19834_v3, %v1077_v59 }
 0x42c   : > { %v19914_v2 = vadd.f32 %v15366_v63, %v19711_v25  ;;  %v1090_v32 = vunpack.c.l.bf16 %v22649_v27  ;;  %v22650_v44 = vld [vmem:[#allocation50_spill] sm:$0xff]  ;;  %v19926_v63 = vpop.f32.mrf.mxu0  ;;  %v1112_v25 = vmul.f32 %v19834_v3, %v1076_v57  ;;  %v1118_v5 = vmul.f32 %v19834_v3, %v1082_v46 }
 0x42d   : > { %v19920_v36 = vpop.f32.mrf.mxu1  ;;  %v1088_v58 = vunpack.c.l.bf16 %v22650_v44  ;;  %22653 = vst [vmem:[#allocation43_spill] sm:$0xff] %v19926_v63  ;;  %v1115_v12 = vmul.f32 %v19834_v3, %v1079_v30  ;;  %v1119_v27 = vmul.f32 %v19834_v3, %v1083_v17  ;;  %v1117_v44 = vmul.f32 %v19834_v3, %v1081_v43 }
 0x42e   : > { %22643 = vst [vmem:[#allocation35_spill] sm:$0xff] %v19914_v2  ;;  %22648 = vst [vmem:[#allocation47_spill] sm:$0xff] %v19920_v36  ;;  %v1116_v2 = vmul.f32 %v19834_v3, %v1080_v33  ;;  %v1122_v1 = vmul.f32 %v19834_v3, %v1086_v37  ;;  %v1120_v57 = vmul.f32 %v19834_v3, %v1084_v53  ;;  %v22657_v37 = vld [vmem:[#allocation107_spill] sm:$0xff] }
 0x42f   : > { %v15367_v0 = vpop.f32.mrf.mxu1  ;;  %v1123_v30 = vmul.f32 %v19834_v3, %v1087_v60  ;;  %v1121_v59 = vmul.f32 %v19834_v3, %v1085_v29  ;;  %v1126_v46 = vmul.f32 %v19834_v3, %v1090_v32  ;;  %v1124_v33 = vmul.f32 %v19834_v3, %v1088_v58  ;;  %v22660_v60 = vld [vmem:[#allocation109_spill] sm:$0xff]  ;;  %v22663_v58 = vld [vmem:[#allocation86_spill] sm:$0xff] }
 0x430   : > { %v19936_v54 = vadd.f32 %v15367_v0, %v19721_v56  ;;  %v1127_v17 = vmul.f32 %v19834_v3, %v1091_v55  ;;  %v1125_v43 = vmul.f32 %v19834_v3, %v1089_v26  ;;  %v19948_v56 = vpop.f32.mrf.mxu0  ;;  %v22658_v0 = vmax.f32 %v22657_v37, 0.0  ;;  %v22665_v3 = vld [vmem:[#allocation105_spill] sm:$0xff] }
 0x431   : > { %v19942_v63 = vpop.f32.mrf.mxu1  ;;  %22656 = vst [vmem:[#allocation17_spill] sm:$0xff] %v19948_v56  ;;  %v19957_v29 = vadd.f32 %v22660_v60, %v19850_v24  ;;  %v22664_v36 = vmax.f32 %v22663_v58, 0.0  ;;  %v22666_v56 = vmax.f32 %v22665_v3, 0.0  ;;  %v22667_v37 = vld [vmem:[#allocation137_spill] sm:$0xff] }
 0x432   : > { %22654 = vst [vmem:[#allocation55_spill] sm:$0xff] %v19936_v54  ;;  %22655 = vst [vmem:[#allocation48_spill] sm:$0xff] %v19942_v63  ;;  %v19953_v53 = vadd.f32 %v22658_v0, %v19847_v23  ;;  %v22661_v54 = vld [vmem:[#allocation81_spill] sm:$0xff]  ;;  %v22668_v23 = vmax.f32 %v22667_v37, 0.0 }
 0x433   : > { %v22662_v63 = vmax.f32 %v22661_v54, 0.0  ;;  %v19965_v55 = vadd.f32 %v22664_v36, %v1097_v18  ;;  %v15370_v26 = vpop.f32.mrf.mxu1  ;;  %v19969_v35 = vadd.f32 %v22666_v56, %v1102_v41  ;;  %v22675_v18 = vld [vmem:[#allocation131_spill] sm:$0xff]  ;;  %v22678_v41 = vld [vmem:[#allocation98_spill] sm:$0xff] }
 0x434   : > { %22659 = vst [vmem:[#allocation54_spill] sm:$0xff] %v19953_v53  ;;  %v19973_v0 = vadd.f32 %v22668_v23, %v1100_v38  ;;  %v22669_v53 = vld [vmem:[#allocation141_spill] sm:$0xff]  ;;  %v22676_v58 = vmax.f32 %v22675_v18, 0.0  ;;  %v22679_v56 = vmax.f32 %v22678_v41, 0.0  ;;  %v22681_v38 = vld [vmem:[#allocation142_spill] sm:$0xff] }
 0x435   : > { %v19961_v32 = vadd.f32 %v22662_v63, %v1099_v28  ;;  %v22670_v24 = vmax.f32 %v22669_v53, 0.0  ;;  %v19980_v28 = vadd.f32 %v15370_v26, %v19735_v50  ;;  %v22672_v63 = vld [vmem:[#allocation114_spill] sm:$0xff]  ;;  %v22682_v23 = vmax.f32 %v22681_v38, 0.0  ;;  %v9362_v38 = vld [vmem:[#allocation4] sm:$0x8] }
 0x436   : > { %v22673_v54 = vmax.f32 %v22672_v63, 0.0  ;;  %v19988_v3 = vadd.f32 %v22676_v58, %v1106_v40  ;;  %v19992_v37 = vadd.f32 %v22679_v56, %v1104_v4  ;;  %v22684_v50 = vld [vmem:[#allocation138_spill] sm:$0xff]  ;;  %v22690_v40 = vld [vmem:[#allocation99_spill] sm:$0xff]  ;;  %v22693_v4 = vld [vmem:[#allocation144_spill] sm:$0xff] }
 0x437   : > { %v19977_v60 = vadd.f32 %v22670_v24, %v1103_v39  ;;  %v19996_v53 = vadd.f32 %v22682_v23, %v1107_v14  ;;  %v19998_v39 = vpop.f32.mrf.mxu1  ;;  %v22685_v26 = vmax.f32 %v22684_v50, 0.0  ;;  %v22691_v18 = vmax.f32 %v22690_v40, 0.0  ;;  %v20016_v14 = vpop.f32.mrf.mxu0  ;;  %v9363_v23 = vld [vmem:[#allocation4 + $0x4] sm:$0xf] }
 0x438   : > { %v19984_v36 = vadd.f32 %v22673_v54, %v1101_v13  ;;  %22677 = vst [vmem:[#allocation24_spill] sm:$0xff] %v19988_v3  ;;  %22680 = vst [vmem:[#allocation19_spill] sm:$0xff] %v19992_v37  ;;  %v22687_v13 = vld [vmem:[#allocation134_spill] sm:$0xff]  ;;  %v22694_v41 = vmax.f32 %v22693_v4, 0.0 }
 0x439   : > { %22671 = vst [vmem:[#allocation20_spill] sm:$0xff] %v19977_v60  ;;  %22683 = vst [vmem:[#allocation32_spill] sm:$0xff] %v19996_v53  ;;  %v20002_v24 = vadd.f32 %v22685_v26, %v1105_v51  ;;  %v22688_v63 = vmax.f32 %v22687_v13, 0.0  ;;  %v20010_v58 = vadd.f32 %v22691_v18, %v1108_v34  ;;  %v22696_v53 = vld [vmem:[#allocation139_spill] sm:$0xff]  ;;  %v22699_v26 = vld [vmem:[#allocation140_spill] sm:$0xff] }
 0x43a   : > { %22674 = vst [vmem:[#allocation18_spill] sm:$0xff] %v19984_v36  ;;  %v20014_v56 = vadd.f32 %v22694_v41, %v1111_v10  ;;  %v22697_v50 = vmax.f32 %v22696_v53, 0.0  ;;  %v22700_v13 = vmax.f32 %v22699_v26, 0.0  ;;  %v22705_v18 = vld [vmem:[#allocation143_spill] sm:$0xff]  ;;  %v15371_v41 = vpop.f32.mrf.mxu1  ;;  %v22711_v53 = vld [vmem:[#allocation145_spill] sm:$0xff] }
 0x43b   : > { %22686 = vst [vmem:[#allocation26_spill] sm:$0xff] %v20002_v24  ;;  %v20006_v54 = vadd.f32 %v22688_v63, %v1110_v7  ;;  %22692 = vst [vmem:[#allocation31_spill] sm:$0xff] %v20010_v58  ;;  %v22702_v63 = vld [vmem:[#allocation82_spill] sm:$0xff]  ;;  %v22706_v4 = vmax.f32 %v22705_v18, 0.0  ;;  %v22714_v26 = vld [vmem:[#allocation149_spill] sm:$0xff] }
 0x43c   : > { %22695 = vst [vmem:[#allocation46_spill] sm:$0xff] %v20014_v56  ;;  %v20020_v51 = vadd.f32 %v22697_v50, %v1109_v11  ;;  %v20024_v7 = vadd.f32 %v22700_v13, %v1114_v15  ;;  %v22703_v40 = vmax.f32 %v22702_v63, 0.0  ;;  %v22708_v56 = vld [vmem:[#allocation147_spill] sm:$0xff]  ;;  %v22712_v11 = vmax.f32 %v22711_v53, 0.0  ;;  %v22717_v63 = vld [vmem:[#allocation153_spill] sm:$0xff]  ;;  %v22720_v18 = vld [vmem:[#allocation130_spill] sm:$0xff] }
 0x43d   : > { %22689 = vst [vmem:[#allocation36_spill] sm:$0xff] %v20006_v54  ;;  %v20032_v10 = vadd.f32 %v22706_v4, %v1115_v12  ;;  %v22709_v58 = vmax.f32 %v22708_v56, 0.0  ;;  %v22715_v15 = vmax.f32 %v22714_v26, 0.0  ;;  %v22721_v4 = vmax.f32 %v22720_v18, 0.0  ;;  %v22724_v53 = vld [vmem:[#allocation80_spill] sm:$0xff]  ;;  %v20075_v18 = vpop.f32.mrf.mxu0  ;;  %v22819_v60 = vld [vmem:[#allocation207_spill] sm:$0xff] }
 0x43e   : > { %22698 = vst [vmem:[#allocation38_spill] sm:$0xff] %v20020_v51  ;;  %22701 = vst [vmem:[#allocation49_spill] sm:$0xff] %v20024_v7  ;;  %v20028_v34 = vadd.f32 %v22703_v40, %v1112_v25  ;;  %v20040_v50 = vadd.f32 %v22712_v11, %v1118_v5  ;;  %v20047_v25 = vadd.f32 %v15371_v41, %v19742_v62  ;;  %v22718_v40 = vmax.f32 %v22717_v63, 0.0  ;;  %v22725_v26 = vld [vmem:[#allocation148_spill] sm:$0xff]  ;;  %v22728_v62 = vld [vmem:[#allocation151_spill] sm:$0xff] }
 0x43f   : > { %22707 = vst [vmem:[#allocation58_spill] sm:$0xff] %v20032_v10  ;;  %v20036_v54 = vadd.f32 %v22709_v58, %v1113_v49  ;;  %v20044_v13 = vadd.f32 %v22715_v15, %v1116_v2  ;;  %v20055_v56 = vadd.f32 %v22721_v4, %v1117_v44  ;;  %v20057_v49 = vpop.f32.mrf.mxu1  ;;  %v22723_v58 = vld [vmem:[#allocation77_spill] sm:$0xff]  ;;  %v9400_v11 = vmul.bf16 %v9363_v23, %v22724_v53  ;;  %v22808_v51 = vld [vmem:[#allocation192_spill] sm:$0xff] }
 0x440   : > { %22704 = vst [vmem:[#allocation45_spill] sm:$0xff] %v20028_v34  ;;  %22713 = vst [vmem:[#allocation59_spill] sm:$0xff] %v20040_v50  ;;  %v20051_v12 = vadd.f32 %v22718_v40, %v1119_v27  ;;  %v9399_v5 = vmul.bf16 %v9362_v38, %v22723_v58  ;;  %v22726_v2 = vmax.f32 %v22725_v26, 0.0  ;;  %v22729_v41 = vmax.f32 %v22728_v62, 0.0  ;;  %v22731_v27 = vld [vmem:[#allocation150_spill] sm:$0xff]  ;;  %v22737_v58 = vld [vmem:[#allocation157_spill] sm:$0xff] }
 0x441   : > { %22710 = vst [vmem:[#allocation50_spill] sm:$0xff] %v20036_v54  ;;  %22716 = vst [vmem:[#allocation57_spill] sm:$0xff] %v20044_v13  ;;  %v22732_v63 = vmax.f32 %v22731_v27, 0.0  ;;  %v6656_v44 = vadd.f32 %v19404_v9, %v19422_v22  ;;  %v22734_v38 = vld [vmem:[#allocation154_spill] sm:$0xff]  ;;  %v15374_v26 = vpop.f32.mrf.mxu1  ;;  %v22794_v54 = vld [vmem:[#allocation180_spill] sm:$0xff] }
 0x442   : > { %22719 = vst [vmem:[#allocation107_spill] sm:$0xff] %v20051_v12  ;;  %22722 = vst [vmem:[#allocation109_spill] sm:$0xff] %v20055_v56  ;;  %v20063_v15 = vadd.f32 %v22726_v2, %v1122_v1  ;;  %v20067_v13 = vadd.f32 %v22729_v41, %v1120_v57  ;;  %v22735_v4 = vmax.f32 %v22734_v38, 0.0  ;;  %v22738_v1 = vmax.f32 %v22737_v58, 0.0  ;;  %v22740_v2 = vld [vmem:[#allocation133_spill] sm:$0xff]  ;;  %v22743_v22 = vld [vmem:[#allocation158_spill] sm:$0xff] }
 0x443   : > { %v20071_v40 = vadd.f32 %v22732_v63, %v1123_v30  ;;  %v6672_v57 = vadd.f32 %v19431_v47, %v19447_v48  ;;  %v6688_v30 = vadd.f32 %v19455_v61, %v19463_v19  ;;  %v22741_v62 = vmax.f32 %v22740_v2, 0.0  ;;  %v22744_v41 = vld [vmem:[#allocation152_spill] sm:$0xff]  ;;  %v20103_v61 = vpop.f32.mrf.mxu1  ;;  %v22748_v58 = vld [vmem:[#allocation129_spill] sm:$0xff]  ;;  %v22755_v2 = vld [vmem:[#allocation155_spill] sm:$0xff] }
 0x444   : > { %22727 = vst [vmem:[#allocation81_spill] sm:$0xff] %v20063_v15  ;;  %22730 = vst [vmem:[#allocation86_spill] sm:$0xff] %v20067_v13  ;;  %v20079_v23 = vadd.f32 %v22735_v4, %v1121_v59  ;;  %v20083_v53 = vadd.f32 %v22738_v1, %v1126_v46  ;;  %v6704_v27 = vadd.f32 %v22744_v41, %v22743_v22  ;;  %v22758_v41 = vld [vmem:[#allocation191_spill] sm:$0xff]  ;;  %v22786_v13 = vld [vmem:[#allocation176_spill] sm:$0xff] }
 0x445   : > { %22733 = vst [vmem:[#allocation105_spill] sm:$0xff] %v20071_v40  ;;  %v20091_v9 = vadd.f32 %v22741_v62, %v1124_v33  ;;  %v6984_v59 = vadd.f32 %v19555_v45, %v6656_v44  ;;  %v20097_v63 = vadd.f32 %v15374_v26, %v19753_v20  ;;  %v6988_v46 = vadd.f32 %v19573_v21, %v6672_v57  ;;  %v22745_v33 = vld [vmem:[#allocation156_spill] sm:$0xff]  ;;  %v20111_v20 = vpop.f32.mrf.mxu0  ;;  %v22757_v62 = vld [vmem:[#allocation135_spill] sm:$0xff]  ;;  %v22796_v34 = vld [vmem:[#allocation214_spill] sm:$0xff] }
 0x446   : > { %22736 = vst [vmem:[#allocation137_spill] sm:$0xff] %v20079_v23  ;;  %22739 = vst [vmem:[#allocation141_spill] sm:$0xff] %v20083_v53  ;;  %v6992_v47 = vadd.f32 %v19593_v16, %v6688_v30  ;;  %v7322_v48 = vadd.f32 %v19480_v6, %v19489_v52  ;;  %v13338_v19 = vcombine.low %v9399_v5, %v9400_v11  ;;  %v22747_v44 = vld [vmem:[#allocation12_spill] sm:$0xff]  ;;  %v22749_v16 = vmax.f32 %v22748_v58, 0.0  ;;  %v22751_v6 = vld [vmem:[#allocation165_spill] sm:$0xff] }
 0x447   : > { %22742 = vst [vmem:[#allocation114_spill] sm:$0xff] %v20091_v9  ;;  %v20106_v38 = vadd.f32 %v22745_v33, %v1127_v17  ;;  %v6996_v4 = vadd.f32 %v19611_v31, %v6704_v27  ;;  %v7326_v45 = vadd.f32 %v19496_v42, %v19505_v8  ;;  %v9004_v21 = vsub.s32 2, %v22747_v44  ;;  %v22752_v57 = vld [vmem:[#allocation160_spill] sm:$0xff]  ;;  %v15375_v17 = vpop.f32.mrf.mxu1  ;;  %v22754_v31 = vld [vmem:[#allocation169_spill] sm:$0xff] }
 0x448   : > { %v20116_v1 = vadd.f32 %v22749_v16, %v1125_v43  ;;  %v7586_v52 = vadd.f32 %v22751_v6, %v7322_v48  ;;  %v22753_v5 = vld [vmem:[#allocation128_spill] sm:$0xff]  ;;  %v9040_v30 = vsub.s32 3, %v22747_v44  ;;  %v7338_v22 = vadd.f32 %v22757_v62, %v6984_v59  ;;  %v22759_v43 = vld [vmem:[#allocation161_spill] sm:$0xff] }
 0x449   : > { %22746 = vst [vmem:[#allocation131_spill] sm:$0xff] %v20106_v38  ;;  %v7330_v11 = vadd.f32 %v22753_v5, %v22752_v57  ;;  %v7590_v26 = vadd.f32 %v22754_v31, %v7326_v45  ;;  %v22756_v42 = vld [vmem:[#allocation136_spill] sm:$0xff]  ;;  %v20127_v27 = vadd.f32 %v15375_v17, %v22758_v41  ;;  %v7342_v33 = vadd.f32 %v22759_v43, %v6988_v46  ;;  %v20131_v16 = vpop.f32.mrf.mxu1  ;;  %v22761_v5 = vld [vmem:[#allocation173_spill] sm:$0xff]  ;;  %v22763_v31 = vld [vmem:[#allocation162_spill] sm:$0xff] }
 0x44a   : > { %22750 = vst [vmem:[#allocation98_spill] sm:$0xff] %v20116_v1  ;;  %v7334_v8 = vadd.f32 %v22756_v42, %v22755_v2  ;;  %v22760_v58 = vld [vmem:[#allocation132_spill] sm:$0xff]  ;;  %v9936_v6 = vshrl.u32 %v13338_v19, 16  ;;  %v9939_v57 = vshll.u32 %v13338_v19, 16  ;;  %v22762_v1 = vld [vmem:[#allocation177_spill] sm:$0xff]  ;;  %v7350_v38 = vadd.f32 %v22763_v31, %v6996_v4  ;;  %v20136_v2 = vpop.f32.mrf.mxu0  ;;  %v22766_v46 = vld [vmem:[#allocation146_spill] sm:$0xff] }
 0x44b   : > { %v7346_v48 = vadd.f32 %v22760_v58, %v6992_v47  ;;  %v7594_v44 = vadd.f32 %v22761_v5, %v7330_v11  ;;  %v22764_v59 = vld [vmem:[#allocation16_spill] sm:$0xff]  ;;  %v22765_v17 = vld [vmem:[#allocation181_spill] sm:$0xff]  ;;  %v22767_v41 = vld [vmem:[#allocation159_spill] sm:$0xff]  ;;  %v15378_v9 = vpop.f32.mrf.mxu1 }
 0x44c   : > { %v7598_v45 = vadd.f32 %v22762_v1, %v7334_v8  ;;  %v20139_v42 = vrot.slane %v22764_v59, %v9004_v21  ;;  %v7602_v62 = vadd.f32 %v22765_v17, %v7338_v22  ;;  %v7849_v47 = vadd.f32 %v22767_v41, %v22766_v46  ;;  %v22768_v43 = vld [vmem:[#allocation163_spill] sm:$0xff]  ;;  %v22769_v11 = vld [vmem:[#allocation185_spill] sm:$0xff]  ;;  %v22771_v4 = vld [vmem:[#allocation164_spill] sm:$0xff] }
 0x44d   : > { %v7850_v58 = vadd.f32 %v22768_v43, %v7586_v52  ;;  %v20146_v19 = vrot.slane %v22764_v59, %v9040_v30  ;;  %v7606_v1 = vadd.f32 %v22769_v11, %v7342_v33  ;;  %v22770_v8 = vld [vmem:[#allocation167_spill] sm:$0xff]  ;;  %v22772_v31 = vld [vmem:[#allocation166_spill] sm:$0xff]  ;;  %v22776_v17 = vld [vmem:[#allocation189_spill] sm:$0xff]  ;;  %v20160_v40 = vpop.f32.mrf.mxu1  ;;  %v20162_v30 = vrot.slane %v9936_v6, 3 }
 0x44e   : > { %v7853_v5 = vadd.f32 %v22771_v4, %v22770_v8  ;;  %v7854_v53 = vadd.f32 %v22772_v31, %v7590_v26  ;;  %v22773_v21 = vld [vmem:[#allocation195_spill] sm:$0xff]  ;;  %v20155_v22 = vld [vmem:[#allocation4 + $0x8] sm:$0xf]  ;;  %v7610_v46 = vadd.f32 %v22776_v17, %v7346_v48  ;;  %v22778_v52 = vld [vmem:[#allocation168_spill] sm:$0xff]  ;;  %v20164_v33 = vrot.slane %v9939_v57, 4  ;;  %v20172_v48 = vpop.f32.mrf.mxu0 }
 0x44f   : > { %v20153_v23 = vadd.f32 %v15378_v9, %v22773_v21  ;;  %22775 = vst [vmem:[#allocation138_spill] sm:$0xff] %v20155_v22  ;;  %v22777_v41 = vld [vmem:[#allocation171_spill] sm:$0xff]  ;;  %22779 = vst [vmem:[#allocation134_spill] sm:$0xff] %v20162_v30  ;;  %v22781_v59 = vld [vmem:[#allocation170_spill] sm:$0xff]  ;;  %v20177_v57 = vpop.f32.mrf.mxu1 }
 0x450   : > { %v7857_v43 = vadd.f32 %v22778_v52, %v22777_v41  ;;  %22780 = vst [vmem:[#allocation99_spill] sm:$0xff] %v20164_v33  ;;  %v7858_v11 = vadd.f32 %v22781_v59, %v7594_v44  ;;  %v22782_v8 = vld [vmem:[#allocation175_spill] sm:$0xff]  ;;  %v22783_v26 = vld [vmem:[#allocation172_spill] sm:$0xff]  ;;  %v22784_v9 = vld [vmem:[#allocation174_spill] sm:$0xff] }
 0x451   : > { %22774 = vst [vmem:[#allocation142_spill] sm:$0xff] %v20153_v23  ;;  %v7861_v4 = vadd.f32 %v22783_v26, %v22782_v8  ;;  %v7862_v31 = vadd.f32 %v22784_v9, %v7598_v45  ;;  %v22785_v21 = vld [vmem:[#allocation179_spill] sm:$0xff]  ;;  %v22787_v17 = vld [vmem:[#allocation198_spill] sm:$0xff]  ;;  %v20194_v7 = vpop.f32.mrf.mxu1  ;;  %v22810_v30 = vld [vmem:[#allocation204_spill] sm:$0xff] }
 0x452   : > { %v7865_v15 = vadd.f32 %v22786_v13, %v22785_v21  ;;  %v7614_v41 = vadd.f32 %v22787_v17, %v7350_v38  ;;  %v22788_v52 = vld [vmem:[#allocation202_spill] sm:$0xff]  ;;  %v22793_v9 = vld [vmem:[#allocation183_spill] sm:$0xff]  ;;  %v8417_v38 = vadd.f32 %v22796_v34, %v7854_v53  ;;  %v22803_v34 = vld [vmem:[#allocation196_spill] sm:$0xff] }
 0x453   : > { %v8412_v56 = vadd.f32 %v22788_v52, %v7849_v47  ;;  %v22789_v6 = vld [vmem:[#allocation178_spill] sm:$0xff]  ;;  %v7869_v13 = vadd.f32 %v22794_v54, %v22793_v9  ;;  %v22797_v17 = vld [vmem:[#allocation187_spill] sm:$0xff]  ;;  %v22798_v47 = vld [vmem:[#allocation184_spill] sm:$0xff] }
 0x454   : > { %v7866_v12 = vadd.f32 %v22789_v6, %v7602_v62  ;;  %v22791_v59 = vld [vmem:[#allocation206_spill] sm:$0xff]  ;;  %v20189_v52 = vadd.f32 %v22798_v47, %v22797_v17  ;;  %v22801_v54 = vld [vmem:[#allocation193_spill] sm:$0xff]  ;;  %v22805_v17 = vld [vmem:[#allocation200_spill] sm:$0xff]  ;;  %v20213_v24 = vadd.f32 %v22808_v51, %v7614_v41 }
 0x455   : > { %v8413_v8 = vadd.f32 %v22791_v59, %v7850_v58  ;;  %v22792_v26 = vld [vmem:[#allocation210_spill] sm:$0xff]  ;;  %v15446_v58 = vpop.f32.mrf.mxu1  ;;  %v22811_v33 = vld [vmem:[#allocation199_spill] sm:$0xff]  ;;  %v22813_v50 = vld [vmem:[#allocation208_spill] sm:$0xff] }
 0x456   : > { %v8416_v45 = vadd.f32 %v22792_v26, %v7853_v5  ;;  %v22795_v21 = vld [vmem:[#allocation182_spill] sm:$0xff]  ;;  %v20199_v26 = vpop.f32.mrf.mxu0  ;;  %v8694_v37 = vadd.f32 %v22811_v33, %v22810_v30  ;;  %v22815_v22 = vld [vmem:[#allocation205_spill] sm:$0xff]  ;;  %v22818_v41 = vld [vmem:[#allocation212_spill] sm:$0xff] }
 0x457   : > { %v7870_v10 = vadd.f32 %v22795_v21, %v7606_v1  ;;  %v22799_v62 = vld [vmem:[#allocation186_spill] sm:$0xff]  ;;  %v22802_v1 = vld [vmem:[#allocation188_spill] sm:$0xff]  ;;  %v8843_v51 = vpop.f32.mrf.mxu1  ;;  %v8698_v23 = vadd.f32 %v22819_v60, %v22818_v41  ;;  %v22828_v41 = vld [vmem:[#allocation217_spill] sm:$0xff] }
 0x458   : > { %v20192_v6 = vadd.f32 %v22799_v62, %v7610_v46  ;;  %v22800_v5 = vld [vmem:[#allocation218_spill] sm:$0xff]  ;;  %v20203_v9 = vadd.f32 %v22802_v1, %v22801_v54  ;;  %v22807_v62 = vld [vmem:[#allocation221_spill] sm:$0xff]  ;;  %v8695_v36 = vadd.f32 %v22815_v22, %v8416_v45  ;;  %v20229_v30 = vpop.f32.mrf.mxu0 }
 0x459   : > { %v8420_v59 = vadd.f32 %v22800_v5, %v7857_v43  ;;  %v22804_v53 = vld [vmem:[#allocation190_spill] sm:$0xff]  ;;  %v8421_v44 = vadd.f32 %v22807_v62, %v7858_v11  ;;  %v22809_v43 = vld [vmem:[#allocation197_spill] sm:$0xff]  ;;  %v15447_v60 = vpop.f32.mrf.mxu1 }
 0x45a   : > { %v20207_v21 = vadd.f32 %v22804_v53, %v22803_v34  ;;  %v22806_v46 = vld [vmem:[#allocation194_spill] sm:$0xff]  ;;  %v8691_v5 = vadd.f32 %v22809_v43, %v8412_v56  ;;  %v22812_v1 = vld [vmem:[#allocation201_spill] sm:$0xff]  ;;  %v22814_v34 = vld [vmem:[#allocation203_spill] sm:$0xff] }
 0x45b   : > { %v8693_v47 = vadd.f32 %v22806_v46, %v22805_v17  ;;  %v8692_v3 = vadd.f32 %v22812_v1, %v8413_v8  ;;  %v8697_v53 = vadd.f32 %v22814_v34, %v22813_v50  ;;  %v22816_v17 = vld [vmem:[#allocation30_spill] sm:$0xff]  ;;  %v22817_v11 = vld [vmem:[#allocation29_spill] sm:$0xff]  ;;  %v22822_v50 = vld [vmem:[#allocation211_spill] sm:$0xff] }
 0x45c   : > { %v8424_v46 = vadd.f32 %v22816_v17, %v7861_v4  ;;  %v8425_v62 = vadd.f32 %v22817_v11, %v7862_v31  ;;  %v22820_v56 = vld [vmem:[#allocation209_spill] sm:$0xff]  ;;  %v8970_v8 = vadd.f32 %v8843_v51, %v8691_v5  ;;  %v22824_v31 = vld [vmem:[#allocation47_spill] sm:$0xff]  ;;  %v22825_v1 = vld [vmem:[#allocation48_spill] sm:$0xff]  ;;  %v8973_v51 = vadd.f32 %v15447_v60, %v8694_v37 }
 0x45d   : > { %v8972_v54 = vadd.f32 %v15446_v58, %v8693_v47  ;;  %v20227_v43 = vadd.f32 %v22820_v56, %v8417_v38  ;;  %v22821_v58 = vld [vmem:[#allocation216_spill] sm:$0xff]  ;;  %v22823_v22 = vld [vmem:[#allocation213_spill] sm:$0xff]  ;;  %v8428_v45 = vadd.f32 %v22824_v31, %v7865_v15  ;;  %v8429_v34 = vadd.f32 %v22825_v1, %v7866_v12  ;;  %v22826_v17 = vld [vmem:[#allocation219_spill] sm:$0xff]  ;;  %v8846_v12 = vpop.f32.mrf.mxu1 }
 0x45e   : > { %v20234_v47 = vadd.f32 %v22822_v50, %v22821_v58  ;;  %v20237_v4 = vadd.f32 %v22823_v22, %v8420_v59  ;;  %v22827_v38 = vld [vmem:[#allocation215_spill] sm:$0xff]  ;;  %v20246_v56 = vadd.f32 %v22828_v41, %v8421_v44  ;;  %v22829_v58 = vld [vmem:[#allocation21_spill] sm:$0xff]  ;;  %v22830_v59 = vld [vmem:[#allocation14_spill] sm:$0xff]  ;;  %v8432_v15 = vadd.f32 %v19998_v39, %v7869_v13 }
 0x45f   : > { %v9008_v33 = vmul.f32 %v20139_v42, %v8972_v54  ;;  %v20243_v11 = vadd.f32 %v22827_v38, %v22826_v17  ;;  %v9006_v54 = vmul.f32 %v20139_v42, %v8970_v8  ;;  %v20252_v50 = vadd.f32 %v22830_v59, %v22829_v58  ;;  %v22832_v22 = vld [vmem:[#allocation220_spill] sm:$0xff]  ;;  %v22833_v1 = vld [vmem:[#allocation33_spill] sm:$0xff]  ;;  %v22834_v17 = vld [vmem:[#allocation222_spill] sm:$0xff]  ;;  %v15450_v59 = vpop.f32.mrf.mxu1 }
 0x460   : > { %v20256_v31 = vadd.f32 %v22832_v22, %v8424_v46  ;;  %v20260_v38 = vadd.f32 %v22834_v17, %v22833_v1  ;;  %v22836_v44 = vld [vmem:[#allocation15_spill] sm:$0xff]  ;;  %v9009_v60 = vmul.f32 %v20139_v42, %v8973_v51  ;;  %v8971_v58 = vadd.f32 %v8846_v12, %v8692_v3  ;;  %v22838_v13 = vld [vmem:[#allocation22_spill] sm:$0xff]  ;;  %v22839_v46 = vld [vmem:[#allocation44_spill] sm:$0xff] }
 0x461   : > { %v9044_v5 = vadd.f32 %v20146_v19, %v9008_v33  ;;  %22831 = vst [vmem:[#allocation144_spill] sm:$0xff] %v20252_v50  ;;  %v20263_v41 = vadd.f32 %v22836_v44, %v8425_v62  ;;  %v8663_v33 = vpop.f32.mrf.mxu0  ;;  %v9042_v37 = vadd.f32 %v20146_v19, %v9006_v54  ;;  %v22837_v39 = vld [vmem:[#allocation35_spill] sm:$0xff]  ;;  %v20272_v22 = vadd.f32 %v22839_v46, %v8428_v45  ;;  %v22842_v62 = vld [vmem:[#allocation17_spill] sm:$0xff]  ;;  %v8859_v45 = vpop.f32.mrf.mxu1 }
 0x462   : > { %22835 = vst [vmem:[#allocation139_spill] sm:$0xff] %v20260_v38  ;;  %v20269_v50 = vadd.f32 %v22838_v13, %v22837_v39  ;;  %v22840_v1 = vld [vmem:[#allocation55_spill] sm:$0xff]  ;;  %v20279_v44 = vadd.f32 %v22842_v62, %v8429_v34  ;;  %v9045_v3 = vadd.f32 %v20146_v19, %v9009_v60  ;;  %v9007_v12 = vmul.f32 %v20139_v42, %v8971_v58 }
 0x463   : > { %v9076_v8 = vmax.f32 %v9044_v5, 0.0  ;;  %v22841_v17 = vld [vmem:[#allocation43_spill] sm:$0xff]  ;;  %v22843_v5 = vld [vmem:[#allocation54_spill] sm:$0xff]  ;;  %v9074_v51 = vmax.f32 %v9042_v37, 0.0  ;;  %v8433_v39 = vadd.f32 %v20057_v49, %v7870_v10  ;;  %v8976_v13 = vadd.f32 %v15450_v59, %v8697_v53  ;;  %v15426_v34 = vpop.f32.mrf.mxu0  ;;  %v15451_v58 = vpop.f32.mrf.mxu1 }
 0x464   : > { %v20276_v38 = vadd.f32 %v22841_v17, %v22840_v1  ;;  %v20289_v46 = vadd.f32 %v20016_v14, %v19980_v28  ;;  %v20292_v1 = vadd.f32 %v20075_v18, %v8432_v15  ;;  %v9077_v62 = vmax.f32 %v9045_v3, 0.0 }
 0x465   : > { %v20282_v54 = vadd.f32 %v9076_v8, %v22843_v5  ;;  %v20295_v17 = vadd.f32 %v9074_v51, %v19957_v29  ;;  %v13625_v37 = vpack.c.bf16 %v9074_v51, %v9074_v51  ;;  %v9043_v60 = vadd.f32 %v20146_v19, %v9007_v12 }
 0x466   : > { %v8436_v10 = vadd.f32 %v20103_v61, %v20189_v52  ;;  %v9012_v49 = vmul.f32 %v20139_v42, %v8976_v13  ;;  %v8974_v53 = vadd.f32 %v8859_v45, %v8695_v36  ;;  %v20303_v28 = vadd.f32 %v20111_v20, %v20047_v25  ;;  %v8862_v52 = vpop.f32.mrf.mxu1  ;;  %v8676_v20 = vpop.f32.mrf.mxu0 }
 0x467   : > { %22844 = vst [vmem:[#allocation140_spill] sm:$0xff] %v20295_v17  ;;  %v8437_v14 = vadd.f32 %v20131_v16, %v20192_v6  ;;  %9330 = vst [vmem:[#allocation4 + $0xc] sm:$0xf] %v13625_v37  ;;  %v20308_v29 = vadd.f32 %v9077_v62, %v19961_v32  ;;  %v9075_v18 = vmax.f32 %v9043_v60, 0.0  ;;  %v8977_v15 = vadd.f32 %v15451_v58, %v8698_v23 }
 0x468   : > { %v9048_v59 = vadd.f32 %v20146_v19, %v9012_v49  ;;  %v9010_v61 = vmul.f32 %v20139_v42, %v8974_v53  ;;  %v20313_v36 = vadd.f32 %v20136_v2, %v8433_v39  ;;  %v20317_v25 = vadd.f32 %v20172_v48, %v20097_v63  ;;  %v15454_v3 = vpop.f32.mrf.mxu1  ;;  %v15427_v13 = vpop.f32.mrf.mxu0  ;;  %v22850_v49 = vld [vmem:[#allocation20_spill] sm:$0xff] }
 0x469   : > { %22845 = vst [vmem:[#allocation82_spill] sm:$0xff] %v20308_v29  ;;  %v20320_v16 = vadd.f32 %v9075_v18, %v19965_v55  ;;  %v13767_v32 = vpack.c.bf16 %v9076_v8, %v9075_v18  ;;  %v9013_v6 = vmul.f32 %v20139_v42, %v8977_v15  ;;  %v8975_v23 = vadd.f32 %v8862_v52, %v20227_v43 }
 0x46a   : > { %v9080_v5 = vmax.f32 %v9048_v59, 0.0  ;;  %v9046_v51 = vadd.f32 %v20146_v19, %v9010_v61  ;;  %v20326_v2 = vadd.f32 %v20199_v26, %v8436_v10  ;;  %v20330_v63 = vadd.f32 %v20229_v30, %v20127_v27  ;;  %v8875_v30 = vpop.f32.mrf.mxu1  ;;  %v22853_v59 = vld [vmem:[#allocation18_spill] sm:$0xff] }
 0x46b   : > { %22846 = vst [vmem:[#allocation143_spill] sm:$0xff] %v20320_v16  ;;  %13934 = vst [vmem:[#allocation4 + $0x10] sm:$0xff] %v13767_v32   ;;  %v9049_v55 = vadd.f32 %v20146_v19, %v9013_v6  ;;  %v9011_v48 = vmul.f32 %v20139_v42, %v8975_v23  ;;  %v8980_v8 = vadd.f32 %v15454_v3, %v20234_v47  ;;  %v22855_v3 = vld [vmem:[#allocation138_spill] sm:$0xff] }
 0x46c   : > { %v20335_v12 = vadd.f32 %v8663_v33, %v8437_v14  ;;  %v8440_v43 = vadd.f32 %v20160_v40, %v20203_v9  ;;  %v8443_v26 = vadd.f32 %v20177_v57, %v20207_v21  ;;  %v20342_v39 = vadd.f32 %v9080_v5, %v19969_v35  ;;  %v15455_v9 = vpop.f32.mrf.mxu1  ;;  %v22849_v21 = vld [vmem:[#allocation142_spill] sm:$0xff] }
 0x46d   : > { %v9078_v27 = vmax.f32 %v9046_v51, 0.0  ;;  %v9081_v45 = vmax.f32 %v9049_v55, 0.0  ;;  %v9047_v37 = vadd.f32 %v20146_v19, %v9011_v48  ;;  %v9016_v60 = vmul.f32 %v20139_v42, %v8980_v8  ;;  %v22856_v55 = vld [vmem:[#allocation23_spill] sm:$0xff] }
 0x46e   : > { %22847 = vst [vmem:[#allocation147_spill] sm:$0xff] %v20342_v39  ;;  %v8978_v47 = vadd.f32 %v8875_v30, %v20237_v4  ;;  %v8441_v33 = vadd.f32 %v20194_v7, %v20213_v24  ;;  %v9365_v35 = vld [vmem:[#allocation4 + $0xc] sm:$0xf]  ;;  %v20353_v10 = vadd.f32 %v15426_v34, %v22849_v21  ;;  %v8981_v24 = vadd.f32 %v15455_v9, %v20243_v11  ;;  %v8878_v7 = vpop.f32.mrf.mxu1  ;;  %v8679_v34 = vpop.f32.mrf.mxu0  ;;  %v22860_v30 = vld [vmem:[#allocation144_spill] sm:$0xff] }
 0x46f   : > { %v20350_v40 = vadd.f32 %v9078_v27, %v19973_v0  ;;  %v13772_v57 = vpack.c.bf16 %v9078_v27, %v9077_v62  ;;  %v20356_v53 = vadd.f32 %v9081_v45, %v22850_v49  ;;  %v9079_v58 = vmax.f32 %v9047_v37, 0.0  ;;  %v22852_v0 = vld [vmem:[#allocation25_spill] sm:$0xff]  ;;  %v22861_v37 = vld [vmem:[#allocation27_spill] sm:$0xff] }
 0x470   : > { %v9052_v14 = vadd.f32 %v20146_v19, %v9016_v60  ;;  %v9014_v4 = vmul.f32 %v20139_v42, %v8978_v47  ;;  %v9402_v18 = vmul.bf16 %v9365_v35, %v22852_v0  ;;  %v20362_v62 = vadd.f32 %v8676_v20, %v8440_v43  ;;  %v15458_v11 = vpop.f32.mrf.mxu1 }
 0x471   : > { %22848 = vst [vmem:[#allocation145_spill] sm:$0xff] %v20350_v40  ;;  %22851 = vst [vmem:[#allocation149_spill] sm:$0xff] %v20356_v53  ;;  %v20364_v15 = vadd.f32 %v15427_v13, %v8443_v26  ;;  %v20367_v61 = vadd.f32 %v9079_v58, %v22853_v59  ;;  %v13777_v52 = vpack.c.bf16 %v9080_v5, %v9079_v58  ;;  %v22858_v26 = vld [vmem:[#allocation24_spill] sm:$0xff]  ;;  %v22941_v40 = vld [vmem:[#allocation74_spill] sm:$0xff] }
 0x472   : > { %13935 = vst [vmem:[#allocation4 + $0x18] sm:$0xff] %v13772_v57   ;;  %v9084_v32 = vmax.f32 %v9052_v14, 0.0  ;;  %v9050_v6 = vadd.f32 %v20146_v19, %v9014_v4  ;;  %v9017_v23 = vmul.f32 %v20139_v42, %v8981_v24  ;;  %v8979_v51 = vadd.f32 %v8878_v7, %v20246_v56  ;;  %v9366_v8 = vld [vmem:[#allocation4 + $0x10] sm:$0xf]  ;;  %v8891_v57 = vpop.f32.mrf.mxu1  ;;  %v20384_v49 = vld [vmem:[#allocation4 + $0x14] sm:$0xf] }
 0x473   : > { %22854 = vst [vmem:[#allocation153_spill] sm:$0xff] %v20367_v61  ;;  %v22857_v48 = vmul.bf16 %v22855_v3, %v22856_v55  ;;  %v20375_v43 = vadd.f32 %v8679_v34, %v8441_v33  ;;  %13936 = vst [vmem:[#allocation4 + $0x20] sm:$0xff] %v13777_v52   ;;  %v8984_v13 = vadd.f32 %v15458_v11, %v22860_v30  ;;  %v22862_v33 = vld [vmem:[#allocation19_spill] sm:$0xff]  ;;  %v22865_v11 = vld [vmem:[#allocation28_spill] sm:$0xff] }
 0x474   : > { %v20378_v27 = vadd.f32 %v9084_v32, %v22858_v26  ;;  %v9082_v5 = vmax.f32 %v9050_v6, 0.0  ;;  %v9403_v60 = vmul.bf16 %v9366_v8, %v22861_v37  ;;  %v9053_v47 = vadd.f32 %v20146_v19, %v9017_v23  ;;  %v22864_v23 = vld [vmem:[#allocation139_spill] sm:$0xff]  ;;  %v22866_v3 = vld [vmem:[#allocation32_spill] sm:$0xff] }
 0x475   : > { %v13313_v20 = vcombine.low %v22857_v48, %v9402_v18  ;;  %v9015_v56 = vmul.f32 %v20139_v42, %v8979_v51  ;;  %v9020_v4 = vmul.f32 %v20139_v42, %v8984_v13  ;;  %v8982_v24 = vadd.f32 %v8891_v57, %v20256_v31  ;;  %v15459_v18 = vpop.f32.mrf.mxu1 }
 0x476   : > { %22859 = vst [vmem:[#allocation130_spill] sm:$0xff] %v20378_v27  ;;  %v20387_v58 = vadd.f32 %v9082_v5, %v22862_v33  ;;  %v13782_v14 = vpack.c.bf16 %v9082_v5, %v9081_v45  ;;  %v9085_v7 = vmax.f32 %v9053_v47, 0.0  ;;  %v8985_v51 = vadd.f32 %v15459_v18, %v22864_v23  ;;  %v22870_v33 = vld [vmem:[#allocation99_spill] sm:$0xff] }
 0x477   : > { %v9553_v9 = vshrl.u32 %v13313_v20, 16  ;;  %v9556_v21 = vshll.u32 %v13313_v20, 16  ;;  %v9051_v0 = vadd.f32 %v20146_v19, %v9015_v56  ;;  %v9056_v52 = vadd.f32 %v20146_v19, %v9020_v4  ;;  %v8894_v48 = vpop.f32.mrf.mxu1  ;;  %v22868_v56 = vld [vmem:[#allocation26_spill] sm:$0xff] }
 0x478   : > { %22863 = vst [vmem:[#allocation77_spill] sm:$0xff] %v20387_v58  ;;  %13937 = vst [vmem:[#allocation4 + $0x28] sm:$0xff] %v13782_v14   ;;  %v9018_v6 = vmul.f32 %v20139_v42, %v8982_v24  ;;  %v9404_v45 = vmul.bf16 %v20384_v49, %v22865_v11  ;;  %v20398_v55 = vadd.f32 %v9085_v7, %v22866_v3  ;;  %v22871_v14 = vld [vmem:[#allocation134_spill] sm:$0xff]  ;;  %v22873_v24 = vld [vmem:[#allocation36_spill] sm:$0xff] }
 0x479   : > { %v9555_v34 = vrot.slane %v9553_v9, 3  ;;  %v9558_v59 = vrot.slane %v9556_v21, 4  ;;  %v9083_v31 = vmax.f32 %v9051_v0, 0.0  ;;  %v20400_v26 = vcombine.low %v9365_v35, %v9366_v8  ;;  %v20405_v47 = vld [vmem:[#allocation4 + $0x18] sm:$0xf]  ;;  %v15462_v21 = vpop.f32.mrf.mxu1  ;;  %v22876_v11 = vld [vmem:[#allocation31_spill] sm:$0xff] }
 0x47a   : > { %22867 = vst [vmem:[#allocation80_spill] sm:$0xff] %v20398_v55  ;;  %v9088_v5 = vmax.f32 %v9056_v52, 0.0  ;;  %v9054_v30 = vadd.f32 %v20146_v19, %v9018_v6  ;;  %v9021_v13 = vmul.f32 %v20139_v42, %v8985_v51  ;;  %v8983_v37 = vadd.f32 %v8894_v48, %v20263_v41  ;;  %v20420_v23 = vld [vmem:[#allocation4 + $0x1c] sm:$0xf]  ;;  %v22875_v51 = vld [vmem:[#allocation41_spill] sm:$0xff] }
 0x47b   : > { %v9559_v20 = vor.u32 %v9558_v59, %v9555_v34  ;;  %v20408_v57 = vadd.f32 %v9083_v31, %v22868_v56  ;;  %v13787_v9 = vpack.c.bf16 %v9084_v32, %v9083_v31  ;;  %v22872_v4 = vor.u32 %v22870_v33, %v22871_v14  ;;  %v8907_v32 = vpop.f32.mrf.mxu1  ;;  %v22930_v55 = vld [vmem:[#allocation52_spill] sm:$0xff]  ;;  %v22937_v58 = vld [vmem:[#allocation65_spill] sm:$0xff] }
 0x47c   : > { %v13314_v8 = vcombine.low %v9403_v60, %v9404_v45  ;;  %v20415_v0 = vadd.f32 %v9088_v5, %v22873_v24  ;;  %v9086_v18 = vmax.f32 %v9054_v30, 0.0  ;;  %v9057_v34 = vadd.f32 %v20146_v19, %v9021_v13  ;;  %v20428_v30 = vld [vmem:[#allocation4 + $0x20] sm:$0xf] }
 0x47d   : > { %22869 = vst [vmem:[#allocation148_spill] sm:$0xff] %v20408_v57  ;;  %v9943_v35 = vsel %vm2019_vm9, %v22872_v4, %v9559_v20  ;;  %v9019_v41 = vmul.f32 %v20139_v42, %v8983_v37  ;;  %13938 = vst [vmem:[#allocation4 + $0x30] sm:$0xff] %v13787_v9   ;;  %v8988_v59 = vadd.f32 %v15462_v21, %v20269_v50  ;;  %v15463_v37 = vpop.f32.mrf.mxu1  ;;  %v22878_v21 = vld [vmem:[#allocation46_spill] sm:$0xff] }
 0x47e   : > { %22874 = vst [vmem:[#allocation151_spill] sm:$0xff] %v20415_v0  ;;  %15540 = vmatprep.mubr.bf16.mxu1 %v9943_v35  ;;  %v9561_v52 = vshrl.u32 %v13314_v8, 16  ;;  %v9564_v6 = vshll.u32 %v13314_v8, 16  ;;  %v9405_v60 = vmul.bf16 %v20405_v47, %v22875_v51  ;;  %v20425_v45 = vadd.f32 %v9086_v18, %v22876_v11  ;;  %v16148_v51 = vld [vmem:[%s21855_s3 + $0x70] sm:$0xff]  }
 0x47f   : > { %v13792_v3 = vpack.c.bf16 %v9086_v18, %v9085_v7  ;;  %v9089_v31 = vmax.f32 %v9057_v34, 0.0  ;;  %v9055_v48 = vadd.f32 %v20146_v19, %v9019_v41  ;;  %v9024_v13 = vmul.f32 %v20139_v42, %v8988_v59  ;;  %v22880_v7 = vld [vmem:[#allocation42_spill] sm:$0xff]  ;;  %v8910_v34 = vpop.f32.mrf.mxu1 }
 0x480   : > { %22877 = vst [vmem:[#allocation150_spill] sm:$0xff] %v20425_v45  ;;  %v8986_v50 = vadd.f32 %v8907_v32, %v20272_v22  ;;  %v9563_v56 = vrot.slane %v9561_v52, 3  ;;  %v9566_v9 = vrot.slane %v9564_v6, 4  ;;  %v8989_v4 = vadd.f32 %v15463_v37, %v20276_v38  ;;  %v22881_v22 = vld [vmem:[#allocation53_spill] sm:$0xff]  ;;  %v22882_v59 = vld [vmem:[#allocation38_spill] sm:$0xff] }
 0x481   : > { %13939 = vst [vmem:[#allocation4 + $0x38] sm:$0xff] %v13792_v3   ;;  %v20433_v33 = vadd.f32 %v9089_v31, %v22878_v21  ;;  %v9087_v14 = vmax.f32 %v9055_v48, 0.0  ;;  %v9406_v35 = vmul.bf16 %v20420_v23, %v22880_v7  ;;  %v9060_v8 = vadd.f32 %v20146_v19, %v9024_v13  ;;  %v15466_v13 = vpop.f32.mrf.mxu1 }
 0x482   : > { %v9022_v24 = vmul.f32 %v20139_v42, %v8986_v50  ;;  %v9567_v18 = vor.u32 %v9566_v9, %v9563_v56  ;;  %v9407_v41 = vmul.bf16 %v20428_v30, %v22881_v22  ;;  %v9025_v6 = vmul.f32 %v20139_v42, %v8989_v4  ;;  %v22884_v56 = vld [vmem:[#allocation49_spill] sm:$0xff]  ;;  %v16149_v22 = vld [vmem:[%s21855_s3 + $0x68] sm:$0xff]  }
 0x483   : > { %22879 = vst [vmem:[#allocation154_spill] sm:$0xff] %v20433_v33  ;;  %v20443_v32 = vadd.f32 %v9087_v14, %v22882_v59  ;;  %v13797_v52 = vpack.c.bf16 %v9088_v5, %v9087_v14  ;;  %v8987_v38 = vadd.f32 %v8910_v34, %v20279_v44  ;;  %v9092_v11 = vmax.f32 %v9060_v8, 0.0  ;;  %v8923_v7 = vpop.f32.mrf.mxu1  ;;  %v20465_v34 = vld [vmem:[#allocation4 + $0x24] sm:$0xf] }
 0x484   : > { %v9058_v3 = vadd.f32 %v20146_v19, %v9022_v24  ;;  %v9568_v48 = vsel %vm2019_vm9, %v9559_v20, %v9567_v18  ;;  %v13315_v50 = vcombine.low %v9405_v60, %v9406_v35  ;;  %v20453_v37 = vadd.f32 %v20146_v19, %v9025_v6  ;;  %v22886_v20 = vld [vmem:[#allocation223_spill] sm:$0xff]  ;;  %v22887_v59 = vld [vmem:[#allocation45_spill] sm:$0xff] }
 0x485   : > { %22883 = vst [vmem:[#allocation157_spill] sm:$0xff] %v20443_v32  ;;  %13940 = vst [vmem:[#allocation4 + $0x40] sm:$0xff] %v13797_v52   ;;  %15492 = vmatprep.mubr.bf16.mxu0 %v9568_v48  ;;  %15541 = vmatmul.mubr.bf16.vlgmr.msra.gmra.mxu1 %v9568_v48  ;;  %v9023_v5 = vmul.f32 %v20139_v42, %v8987_v38  ;;  %v8992_v44 = vadd.f32 %v15466_v13, %v20289_v46  ;;  %v20467_v46 = vld [vmem:[#allocation4 + $0x28] sm:$0xf]  ;;  %v15467_v48 = vpop.f32.mrf.mxu1  ;;  %v22929_v32 = vld [vmem:[#allocation51_spill] sm:$0xff] }
 0x486   : > { %v20458_v9 = vadd.f32 %v9092_v11, %v22884_v56  ;;  %v9090_v21 = vmax.f32 %v9058_v3, 0.0  ;;  %v9570_v14 = vshrl.u32 %v13315_v50, 16  ;;  %v9573_v4 = vshll.u32 %v13315_v50, 16  ;;  %15621 = vmatpush3.bf16.msra.mxu1 %v22886_v20  ;;  %v22889_v13 = vld [vmem:[#allocation58_spill] sm:$0xff] }
 0x487   : > { %v9093_v60 = vmax.f32 %v20453_v37, 0.0  ;;  %v9059_v35 = vadd.f32 %v20146_v19, %v9023_v5  ;;  %v9028_v8 = vmul.f32 %v20139_v42, %v8992_v44  ;;  %v8990_v24 = vadd.f32 %v8923_v7, %v20292_v1  ;;  %15622 = vmatprep.subr.bf16.mxu1 %v16148_v51  ;;  %v22891_v7 = vld [vmem:[#allocation56_spill] sm:$0xff] }
 0x488   : > { %22885 = vst [vmem:[#allocation133_spill] sm:$0xff] %v20458_v9  ;;  %v20473_v52 = vadd.f32 %v9090_v21, %v22887_v59  ;;  %v13802_v6 = vpack.c.bf16 %v9090_v21, %v9089_v31  ;;  %v9572_v38 = vrot.slane %v9570_v14, 3  ;;  %v9575_v3 = vrot.slane %v9573_v4, 4  ;;  %v8926_v21 = vpop.f32.mrf.mxu1  ;;  %v20487_v14 = vld [vmem:[#allocation4 + $0x2c] sm:$0xf] }
 0x489   : > { %v20476_v50 = vadd.f32 %v9093_v60, %v22889_v13  ;;  %v9091_v1 = vmax.f32 %v9059_v35, 0.0  ;;  %v20479_v37 = vadd.f32 %v20146_v19, %v9028_v8  ;;  %v9026_v5 = vmul.f32 %v20139_v42, %v8990_v24  ;;  %v22892_v4 = vld [vmem:[#allocation62_spill] sm:$0xff] }
 0x48a   : > { %22888 = vst [vmem:[#allocation158_spill] sm:$0xff] %v20473_v52  ;;  %13941 = vst [vmem:[#allocation4 + $0x48] sm:$0xff] %v13802_v6   ;;  %v20482_v44 = vor.u32 %v9575_v3, %v9572_v38  ;;  %v8993_v56 = vadd.f32 %v15467_v48, %v20303_v28  ;;  %v9408_v31 = vmul.bf16 %v20465_v34, %v22891_v7  ;;  %15623 = vmatpush3.bf16.msra.mxu1 %v16148_v51  ;;  %v22893_v35 = vld [vmem:[#allocation50_spill] sm:$0xff]  ;;  %v16143_v28 = vld [vmem:[%s21855_s3 + $0x1b0] sm:$0xff]   ;;  %v15470_v13 = vpop.f32.mrf.mxu1 }
 0x48b   : > { %22890 = vst [vmem:[#allocation152_spill] sm:$0xff] %v20476_v50  ;;  %v9409_v20 = vmul.bf16 %v20467_v46, %v22892_v4  ;;  %v20492_v8 = vadd.f32 %v9091_v1, %v22893_v35  ;;  %v13807_v59 = vpack.c.bf16 %v9092_v11, %v9091_v1  ;;  %v9096_v24 = vmax.f32 %v20479_v37, 0.0  ;;  %15624 = vmatprep.subr.bf16.mxu1 %v16149_v22  ;;  %v16151_v11 = vld [vmem:[%s21855_s3 + $0x60] sm:$0xff]  }
 0x48c   : > { %v9062_v6 = vadd.f32 %v20146_v19, %v9026_v5  ;;  %v20501_v38 = vsel %vm2019_vm9, %v9567_v18, %v20482_v44  ;;  %v9029_v3 = vmul.f32 %v20139_v42, %v8993_v56  ;;  %v13316_v51 = vcombine.low %v9407_v41, %v9408_v31  ;;  %v22895_v1 = vld [vmem:[#allocation59_spill] sm:$0xff]  ;;  %v8939_v35 = vpop.f32.mrf.mxu1 }
 0x48d   : > { %22894 = vst [vmem:[#allocation156_spill] sm:$0xff] %v20492_v8  ;;  %v8991_v48 = vadd.f32 %v8926_v21, %v20313_v36  ;;  %13942 = vst [vmem:[#allocation4 + $0x50] sm:$0xff] %v13807_v59   ;;  %v20509_v37 = vadd.f32 %v9096_v24, %v22895_v1  ;;  %15493 = vmatmul.mubr.bf16.vlgmr.msra.gmra.mxu0 %v20501_v38  ;;  %15544 = vmatprep.mubr.bf16.mxu1 %v20501_v38  ;;  %v22897_v56 = vld [vmem:[#allocation63_spill] sm:$0xff]  ;;  %v16241_v36 = vld [vmem:[%s21855_s3 + $0x1b8] sm:$0xff]  }
 0x48e   : > { %v9094_v18 = vmax.f32 %v9062_v6, 0.0  ;;  %v8996_v5 = vadd.f32 %v15470_v13, %v20317_v25  ;;  %v9410_v41 = vmul.bf16 %v20487_v14, %v22897_v56  ;;  %15573 = vmatpush3.bf16.msra.mxu0 %v16241_v36  ;;  %v20520_v7 = vadd.f32 %v20146_v19, %v9029_v3  ;;  %15625 = vmatpush3.bf16.msra.mxu1 %v16149_v22  ;;  %v22898_v59 = vld [vmem:[#allocation57_spill] sm:$0xff]  ;;  %v16144_v56 = vld [vmem:[%s21855_s3 + $0x1a8] sm:$0xff]   ;;  %v16152_v3 = vld [vmem:[%s21855_s3 + $0x58] sm:$0xff]  }
 0x48f   : > { %22896 = vst [vmem:[#allocation129_spill] sm:$0xff] %v20509_v37  ;;  %v9579_v31 = vshrl.u32 %v13316_v51, 16  ;;  %v9582_v21 = vshll.u32 %v13316_v51, 16  ;;  %v9027_v4 = vmul.f32 %v20139_v42, %v8991_v48  ;;  %15574 = vmatprep.subr.bf16.mxu0 %v16143_v28  ;;  %15626 = vmatprep.subr.bf16.mxu1 %v16151_v11  ;;  %v20547_v50 = vld [vmem:[#allocation4 + $0x34] sm:$0xf] }
 0x490   : > { %v20524_v6 = vadd.f32 %v9094_v18, %v22898_v59  ;;  %v13812_v25 = vpack.c.bf16 %v9094_v18, %v9093_v60  ;;  %v9032_v13 = vmul.f32 %v20139_v42, %v8996_v5  ;;  %v13317_v1 = vcombine.low %v9409_v20, %v9410_v41  ;;  %v15471_v59 = vpop.f32.mrf.mxu1  ;;  %v22900_v41 = vld [vmem:[#allocation107_spill] sm:$0xff] }
 0x491   : > { %v9097_v51 = vmax.f32 %v20520_v7, 0.0  ;;  %v9581_v48 = vrot.slane %v9579_v31, 3  ;;  %v9584_v22 = vrot.slane %v9582_v21, 4  ;;  %v9063_v36 = vadd.f32 %v20146_v19, %v9027_v4  ;;  %v20543_v31 = vld [vmem:[#allocation4 + $0x30] sm:$0xf] }
 0x492   : > { %22899 = vst [vmem:[#allocation165_spill] sm:$0xff] %v20524_v6  ;;  %13943 = vst [vmem:[#allocation4 + $0x58] sm:$0xff] %v13812_v25   ;;  %v20536_v60 = vadd.f32 %v20146_v19, %v9032_v13  ;;  %v9588_v20 = vshrl.u32 %v13317_v1, 16  ;;  %v9591_v18 = vshll.u32 %v13317_v1, 16  ;;  %v8994_v5 = vadd.f32 %v8939_v35, %v20326_v2  ;;  %15575 = vmatpush3.bf16.msra.mxu0 %v16143_v28  ;;  %v8942_v21 = vpop.f32.mrf.mxu1  ;;  %v16145_v2 = vld [vmem:[%s21855_s3 + $0x1a0] sm:$0xff]   ;;  %v22902_v28 = vld [vmem:[#allocation109_spill] sm:$0xff] }
 0x493   : > { %v20540_v6 = vadd.f32 %v9097_v51, %v22900_v41  ;;  %v9585_v37 = vor.u32 %v9584_v22, %v9581_v48  ;;  %v9095_v8 = vmax.f32 %v9063_v36, 0.0  ;;  %v8997_v7 = vadd.f32 %v15471_v59, %v20330_v63  ;;  %15627 = vmatpush3.bf16.msra.mxu1 %v16151_v11  ;;  %15576 = vmatprep.subr.bf16.mxu0 %v16144_v56  ;;  %v20560_v36 = vld [vmem:[#allocation4 + $0x38] sm:$0xf]  ;;  %v22904_v59 = vld [vmem:[#allocation81_spill] sm:$0xff]  ;;  %v22906_v41 = vld [vmem:[#allocation66_spill] sm:$0xff] }
 0x494   : > { %v22129_v4 = vmax.f32 %v20536_v60, 0.0  ;;  %v9590_v25 = vrot.slane %v9588_v20, 3  ;;  %v9593_v13 = vrot.slane %v9591_v18, 4  ;;  %v9030_v1 = vmul.f32 %v20139_v42, %v8994_v5  ;;  %15628 = vmatprep.subr.bf16.mxu1 %v16152_v3  ;;  %v15474_v22 = vpop.f32.mrf.mxu1  ;;  %v20572_v5 = vld [vmem:[#allocation4 + $0x3c] sm:$0xf] }
 0x495   : > { %22901 = vst [vmem:[#allocation160_spill] sm:$0xff] %v20540_v6  ;;  %v20554_v63 = vsel %vm2019_vm9, %v20482_v44, %v9585_v37  ;;  %v20557_v11 = vadd.f32 %v9095_v8, %v22902_v28  ;;  %v13817_v35 = vpack.c.bf16 %v9096_v24, %v9095_v8  ;;  %v9033_v48 = vmul.f32 %v20139_v42, %v8997_v7  ;;  %v16154_v8 = vld [vmem:[%s21855_s3 + $0x50] sm:$0xff]   ;;  %v22907_v28 = vld [vmem:[#allocation68_spill] sm:$0xff] }
 0x496   : > { %15496 = vmatprep.mubr.bf16.mxu0 %v20554_v63  ;;  %15545 = vmatmul.mubr.bf16.gmra.mxu1 %v20554_v63  ;;  %v20567_v20 = vadd.f32 %v22129_v4, %v22904_v59  ;;  %v20569_v44 = vor.u32 %v9593_v13, %v9590_v25  ;;  %v9066_v18 = vadd.f32 %v20146_v19, %v9030_v1  ;;  %v8955_v13 = vpop.f32.mrf.mxu1  ;;  %v20606_v6 = vld [vmem:[#allocation4 + $0x40] sm:$0xf] }
 0x497   : > { %22903 = vst [vmem:[#allocation128_spill] sm:$0xff] %v20557_v11  ;;  %13944 = vst [vmem:[#allocation4 + $0x60] sm:$0xff] %v13817_v35   ;;  %v20578_v24 = vadd.f32 %v20146_v19, %v9033_v48  ;;  %v9411_v7 = vmul.bf16 %v20543_v31, %v22906_v41  ;;  %v9412_v59 = vmul.bf16 %v20547_v50, %v22907_v28  ;;  %15577 = vmatpush3.bf16.msra.mxu0 %v16144_v56  ;;  %v16147_v41 = vld [vmem:[%s21855_s3 + $0x198] sm:$0xff]  }
 0x498   : > { %22905 = vst [vmem:[#allocation169_spill] sm:$0xff] %v20567_v20  ;;  %v8995_v25 = vadd.f32 %v8942_v21, %v20335_v12  ;;  %v20587_v1 = vsel %vm2019_vm9, %v9585_v37, %v20569_v44  ;;  %v9098_v4 = vmax.f32 %v9066_v18, 0.0  ;;  %v9000_v35 = vadd.f32 %v15474_v22, %v20353_v10  ;;  %v22908_v20 = vld [vmem:[#allocation70_spill] sm:$0xff]  ;;  %15578 = vmatprep.subr.bf16.mxu0 %v16145_v2  ;;  %v22909_v21 = vld [vmem:[#allocation71_spill] sm:$0xff]  ;;  %v15475_v22 = vpop.f32.mrf.mxu1 }
 0x499   : > { %v9413_v48 = vmul.bf16 %v20560_v36, %v22908_v20  ;;  %15629 = vmatpush3.bf16.msra.mxu1 %v16152_v3  ;;  %15497 = vmatmul.mubr.bf16.gmra.mxu0 %v20587_v1  ;;  %v9101_v12 = vmax.f32 %v20578_v24, 0.0  ;;  %v13318_v37 = vcombine.low %v9411_v7, %v9412_v59  ;;  %v9414_v10 = vmul.bf16 %v20572_v5, %v22909_v21  ;;  %v22910_v20 = vld [vmem:[#allocation86_spill] sm:$0xff]  ;;  %v16155_v24 = vld [vmem:[%s21855_s3 + $0x48] sm:$0xff]   ;;  %v22912_v7 = vld [vmem:[#allocation105_spill] sm:$0xff] }
 0x49a   : > { %15548 = vmatprep.mubr.bf16.mxu1 %v20587_v1  ;;  %v9031_v56 = vmul.f32 %v20139_v42, %v8995_v25  ;;  %v20602_v18 = vadd.f32 %v9098_v4, %v22910_v20  ;;  %v13822_v28 = vpack.c.bf16 %v9098_v4, %v9097_v51  ;;  %v9036_v11 = vmul.f32 %v20139_v42, %v9000_v35  ;;  %v16150_v35 = vld [vmem:[%s21855_s3 + $0x190] sm:$0xff]   ;;  %v20670_v9 = vld [vmem:[#allocation4 + $0x58] sm:$0xf] }
 0x49b   : > { %v8998_v3 = vadd.f32 %v8955_v13, %v20362_v62  ;;  %15630 = vmatprep.subr.bf16.mxu1 %v16154_v8  ;;  %v20612_v59 = vadd.f32 %v9101_v12, %v22912_v7  ;;  %v9597_v25 = vshrl.u32 %v13318_v37, 16  ;;  %v9600_v21 = vshll.u32 %v13318_v37, 16  ;;  %15579 = vmatpush3.bf16.msra.mxu0 %v16145_v2 }
 0x49c   : > { %22911 = vst [vmem:[#allocation155_spill] sm:$0xff] %v20602_v18  ;;  %v9067_v20 = vadd.f32 %v20146_v19, %v9031_v56  ;;  %13945 = vst [vmem:[#allocation4 + $0x68] sm:$0xff] %v13822_v28   ;;  %v20616_v51 = vadd.f32 %v20146_v19, %v9036_v11  ;;  %v13319_v62 = vcombine.low %v9413_v48, %v9414_v10  ;;  %15580 = vmatprep.subr.bf16.mxu0 %v16147_v41  ;;  %v22914_v18 = vld [vmem:[#allocation73_spill] sm:$0xff] }
 0x49d   : > { %22913 = vst [vmem:[#allocation136_spill] sm:$0xff] %v20612_v59  ;;  %v9034_v4 = vmul.f32 %v20139_v42, %v8998_v3  ;;  %v9001_v13 = vadd.f32 %v15475_v22, %v20364_v15  ;;  %v9599_v7 = vrot.slane %v9597_v25, 3  ;;  %v9602_v59 = vrot.slane %v9600_v21, 4  ;;  %15631 = vmatpush3.bf16.msra.mxu1 %v16154_v8  ;;  %v20627_v28 = vld [vmem:[#allocation4 + $0x44] sm:$0xf]  ;;  %v8958_v15 = vpop.f32.mrf.mxu1  ;;  %v16157_v8 = vld [vmem:[%s21855_s3 + $0x40] sm:$0xff]  }
 0x49e   : > { %v9099_v37 = vmax.f32 %v9067_v20, 0.0  ;;  %v9415_v2 = vmul.bf16 %v20606_v6, %v22914_v18  ;;  %v22130_v11 = vmax.f32 %v20616_v51, 0.0  ;;  %v9606_v56 = vshrl.u32 %v13319_v62, 16  ;;  %15632 = vmatprep.subr.bf16.mxu1 %v16155_v24  ;;  %v22915_v3 = vld [vmem:[#allocation137_spill] sm:$0xff] }
 0x49f   : > { %v9609_v48 = vshll.u32 %v13319_v62, 16  ;;  %v9070_v10 = vadd.f32 %v20146_v19, %v9034_v4  ;;  %v9603_v22 = vor.u32 %v9602_v59, %v9599_v7  ;;  %v22917_v25 = vmax.f32 %v20536_v60, 0.0  ;;  %15581 = vmatpush3.bf16.msra.mxu0 %v16147_v41  ;;  %v22918_v20 = vld [vmem:[#allocation141_spill] sm:$0xff]  ;;  %v16153_v60 = vld [vmem:[%s21855_s3 + $0x188] sm:$0xff]  }
 0x4a0   : > { %v20630_v52 = vadd.f32 %v9099_v37, %v22915_v3  ;;  %v9037_v18 = vmul.f32 %v20139_v42, %v9001_v13  ;;  %v20641_v62 = vadd.f32 %v22130_v11, %v22918_v20  ;;  %v9608_v4 = vrot.slane %v9606_v56, 3  ;;  %v20643_v3 = vld [vmem:[#allocation4 + $0x48] sm:$0xf]  ;;  %15582 = vmatprep.subr.bf16.mxu0 %v16150_v35  ;;  %v20660_v20 = vld [vmem:[#allocation4 + $0x54] sm:$0xf] }
 0x4a1   : > { %v13827_v21 = vpack.c.bf16 %v22917_v25, %v9099_v37  ;;  %v9611_v59 = vrot.slane %v9609_v48, 4  ;;  %v9102_v7 = vmax.f32 %v9070_v10, 0.0  ;;  %v20650_v41 = vsel %vm2019_vm9, %v20569_v44, %v9603_v22  ;;  %v22920_v37 = vld [vmem:[#allocation75_spill] sm:$0xff]  ;;  %v20656_v48 = vld [vmem:[#allocation4 + $0x4c] sm:$0xf]  ;;  %15633 = vmatpush3.bf16.msra.mxu1 %v16155_v24 }
 0x4a2   : > { %22916 = vst [vmem:[#allocation135_spill] sm:$0xff] %v20630_v52  ;;  %22919 = vst [vmem:[#allocation191_spill] sm:$0xff] %v20641_v62  ;;  %v9073_v13 = vadd.f32 %v20146_v19, %v9037_v18  ;;  %v9416_v25 = vmul.bf16 %v20627_v28, %v22920_v37  ;;  %v8999_v56 = vadd.f32 %v8958_v15, %v20375_v43  ;;  %v20658_v10 = vld [vmem:[#allocation4 + $0x50] sm:$0xf]  ;;  %15500 = vmatprep.mubr.bf16.mxu0 %v20650_v41  ;;  %v22923_v15 = vld [vmem:[#allocation34_spill] sm:$0xff] }
 0x4a3   : > { %13946 = vst [vmem:[#allocation4 + $0x70] sm:$0xff] %v13827_v21   ;;  %15549 = vmatmul.mubr.bf16.gmra.mxu1 %v20650_v41  ;;  %v9612_v44 = vor.u32 %v9611_v59, %v9608_v4  ;;  %v22921_v21 = vld [vmem:[#allocation114_spill] sm:$0xff]  ;;  %v13832_v18 = vpack.c.bf16 %v9102_v7, %v9101_v12  ;;  %v9417_v52 = vmul.bf16 %v20643_v3, %v22923_v15  ;;  %v22924_v12 = vld [vmem:[#allocation37_spill] sm:$0xff] }
 0x4a4   : > { %v20665_v11 = vadd.f32 %v9102_v7, %v22921_v21  ;;  %v9105_v62 = vmax.f32 %v9073_v13, 0.0  ;;  %v13320_v37 = vcombine.low %v9415_v2, %v9416_v25  ;;  %v9035_v43 = vmul.f32 %v20139_v42, %v8999_v56  ;;  %15583 = vmatpush3.bf16.msra.mxu0 %v16150_v35  ;;  %15634 = vmatprep.subr.bf16.mxu1 %v16157_v8  ;;  %v20675_v24 = vld [vmem:[%s21855_s3 + $0x1f8] sm:$0xff]   ;;  %v22925_v42 = vld [vmem:[#allocation39_spill] sm:$0xff]  ;;  %v22926_v7 = vld [vmem:[#allocation40_spill] sm:$0xff] }
 0x4a5   : > { %v20678_v4 = vsel %vm2019_vm9, %v9603_v22, %v9612_v44  ;;  %13947 = vst [vmem:[#allocation4 + $0x78] sm:$0xff] %v13832_v18   ;;  %v9418_v2 = vmul.bf16 %v20656_v48, %v22924_v12  ;;  %v9419_v59 = vmul.bf16 %v20658_v10, %v22925_v42  ;;  %v9420_v13 = vmul.bf16 %v20660_v20, %v22926_v7  ;;  %v20686_v35 = vld [vmem:[#allocation4 + $0x5c] sm:$0xf]  ;;  %v20688_v25 = vld [vmem:[#allocation4 + $0x60] sm:$0xf]  ;;  %v16156_v22 = vld [vmem:[%s21855_s3 + $0x180] sm:$0xff]  }
 0x4a6   : > { %22922 = vst [vmem:[#allocation161_spill] sm:$0xff] %v20665_v11  ;;  %15584 = vmatprep.subr.bf16.mxu0 %v16153_v60  ;;  %15501 = vmatmul.mubr.bf16.gmra.mxu0 %v20678_v4  ;;  %v22927_v56 = vld [vmem:[#allocation131_spill] sm:$0xff]  ;;  %v13656_v18 = vpack.c.bf16 %v9105_v62, %v9105_v62  ;;  %v9615_v15 = vshrl.u32 %v13320_v37, 16  ;;  %v9618_v12 = vshll.u32 %v13320_v37, 16  ;;  %v9071_v42 = vadd.f32 %v20146_v19, %v9035_v43  ;;  %v20701_v45 = vld [vmem:[#allocation4 + $0x64] sm:$0xf] }
 0x4a7   : > { %15552 = vmatprep.mubr.bf16.mxu1 %v20678_v4  ;;  %v20696_v21 = vadd.f32 %v9105_v62, %v22927_v56  ;;  %v13321_v7 = vcombine.low %v9417_v52, %v9418_v2  ;;  %v13322_v11 = vcombine.low %v9419_v59, %v9420_v13  ;;  %v9421_v33 = vmul.bf16 %v20670_v9, %v22929_v32  ;;  %v22932_v59 = vld [vmem:[#allocation61_spill] sm:$0xff] }
 0x4a8   : > { %15635 = vmatpush3.bf16.msra.mxu1 %v16157_v8  ;;  %9361 = vst [vmem:[#allocation4 + $0x88] sm:$0xf] %v13656_v18  ;;  %v9617_v0 = vrot.slane %v9615_v15, 3  ;;  %v9620_v57 = vrot.slane %v9618_v12, 4  ;;  %v9422_v56 = vmul.bf16 %v20686_v35, %v22930_v55  ;;  %15585 = vmatpush3.bf16.msra.mxu0 %v16153_v60  ;;  %v9103_v19 = vmax.f32 %v9071_v42, 0.0  ;;  %v20715_v55 = vld [vmem:[%s21855_s3 + $0x138] sm:$0xff]  }
 0x4a9   : > { %22928 = vst [vmem:[#allocation132_spill] sm:$0xff] %v20696_v21  ;;  %v22931_v21 = vld [vmem:[#allocation60_spill] sm:$0xff]  ;;  %15716 = vmatprep.subr.bf16.mxu1 %v20675_v24  ;;  %v9624_v52 = vshrl.u32 %v13321_v7, 16  ;;  %v9627_v37 = vshll.u32 %v13321_v7, 16  ;;  %v9633_v43 = vshrl.u32 %v13322_v11, 16  ;;  %15586 = vmatprep.subr.bf16.mxu0 %v16156_v22  ;;  %v9636_v2 = vshll.u32 %v13322_v11, 16 }
 0x4aa   : > { %v9423_v62 = vmul.bf16 %v20688_v25, %v22931_v21  ;;  %v9621_v32 = vor.u32 %v9620_v57, %v9617_v0  ;;  %v13323_v8 = vcombine.low %v9421_v33, %v9422_v56  ;;  %v9424_v13 = vmul.bf16 %v20701_v45, %v22932_v59  ;;  %v20710_v18 = vld [vmem:[#allocation4 + $0x68] sm:$0xf]  ;;  %v20722_v0 = vld [vmem:[#allocation4 + $0x6c] sm:$0xf]  ;;  %v20724_v33 = vld [vmem:[#allocation4 + $0x70] sm:$0xf] }
 0x4ab   : > { %v22933_v60 = vld [vmem:[#allocation98_spill] sm:$0xff]  ;;  %v22935_v15 = vmax.f32 %v20616_v51, 0.0  ;;  %v9626_v42 = vrot.slane %v9624_v52, 3  ;;  %v9629_v57 = vrot.slane %v9627_v37, 4  ;;  %v9635_v7 = vrot.slane %v9633_v43, 3  ;;  %v22936_v37 = vld [vmem:[#allocation64_spill] sm:$0xff] }
 0x4ac   : > { %v20718_v21 = vadd.f32 %v9103_v19, %v22933_v60  ;;  %v20727_v11 = vsel %vm2019_vm9, %v9612_v44, %v9621_v32  ;;  %v9638_v56 = vrot.slane %v9636_v2, 4  ;;  %v9642_v59 = vshrl.u32 %v13323_v8, 16  ;;  %15587 = vmatpush3.bf16.msra.mxu0 %v16156_v22  ;;  %v22938_v2 = vld [vmem:[#allocation67_spill] sm:$0xff]  ;;  %v20739_v27 = vld [vmem:[#allocation4 + $0x78] sm:$0xf] }
 0x4ad   : > { %v13837_v12 = vpack.c.bf16 %v22935_v15, %v9103_v19  ;;  %15504 = vmatprep.mubr.bf16.mxu0 %v20727_v11  ;;  %15553 = vmatmul.mubr.bf16.gmra.mxu1 %v20727_v11  ;;  %v9630_v51 = vor.u32 %v9629_v57, %v9626_v42  ;;  %v9645_v19 = vshll.u32 %v13323_v8, 16  ;;  %v13324_v52 = vcombine.low %v9423_v62, %v9424_v13  ;;  %v20733_v15 = vld [vmem:[#allocation4 + $0x74] sm:$0xf]  ;;  %v20745_v42 = vld [vmem:[#allocation4 + $0x7c] sm:$0xf] }
 0x4ae   : > { %22934 = vst [vmem:[#allocation173_spill] sm:$0xff] %v20718_v21  ;;  %v9425_v60 = vmul.bf16 %v20710_v18, %v22936_v37  ;;  %v9639_v21 = vor.u32 %v9638_v56, %v9635_v7  ;;  %v9644_v44 = vrot.slane %v9642_v59, 3  ;;  %v9426_v43 = vmul.bf16 %v20722_v0, %v22937_v58  ;;  %15668 = vmatprep.subr.bf16.mxu0 %v20715_v55  ;;  %v22939_v7 = vld [vmem:[#allocation69_spill] sm:$0xff]  ;;  %v22940_v37 = vld [vmem:[#allocation72_spill] sm:$0xff] }
 0x4af   : > { %13948 = vst [vmem:[#allocation4 + $0x80] sm:$0xff] %v13837_v12   ;;  %v9427_v22 = vmul.bf16 %v20724_v33, %v22938_v2  ;;  %v20743_v8 = vsel %vm2019_vm9, %v9621_v32, %v9630_v51  ;;  %v9647_v62 = vrot.slane %v9645_v19, 4  ;;  %v9651_v13 = vshrl.u32 %v13324_v52, 16 }
 0x4b0   : > { %v9654_v12 = vshll.u32 %v13324_v52, 16  ;;  %15505 = vmatmul.mubr.bf16.gmra.mxu0 %v20743_v8  ;;  %15556 = vmatprep.mubr.bf16.mxu1 %v20743_v8  ;;  %v20750_v58 = vsel %vm2019_vm9, %v9630_v51, %v9639_v21  ;;  %v13325_v57 = vcombine.low %v9425_v60, %v9426_v43  ;;  %v9428_v56 = vmul.bf16 %v20733_v15, %v22939_v7 }
 0x4b1   : > { %15508 = vmatprep.mubr.bf16.mxu0 %v20750_v58  ;;  %v9648_v32 = vor.u32 %v9647_v62, %v9644_v44  ;;  %v9653_v59 = vrot.slane %v9651_v13, 3  ;;  %v9429_v52 = vmul.bf16 %v20739_v27, %v22940_v37  ;;  %v9430_v39 = vmul.bf16 %v20745_v42, %v22941_v40 }
 0x4b2   : > { %v9656_v19 = vrot.slane %v9654_v12, 4  ;;  %v9660_v2 = vshrl.u32 %v13325_v57, 16  ;;  %v9663_v61 = vshll.u32 %v13325_v57, 16  ;;  %v13326_v53 = vcombine.low %v9427_v22, %v9428_v56  ;;  %v22942_v56 = vld [vmem:[#allocation76_spill] sm:$0xff] }
 0x4b3   : > { %v20760_v51 = vsel %vm2019_vm9, %v9639_v21, %v9648_v32  ;;  %v20764_v43 = vcombine.low %v20384_v49, %v20405_v47  ;;  %v13327_v57 = vcombine.low %v9429_v52, %v9430_v39  ;;  %v22943_v49 = vld [vmem:[#allocation78_spill] sm:$0xff] }
 0x4b4   : > { %v9657_v60 = vor.u32 %v9656_v19, %v9653_v59  ;;  %v9662_v44 = vrot.slane %v9660_v2, 3  ;;  %v9665_v62 = vrot.slane %v9663_v61, 4  ;;  %v9669_v13 = vshrl.u32 %v13326_v53, 16  ;;  %v9396_v52 = vld [vmem:[#allocation4 + $0x88] sm:$0xf] }
 0x4b5   : > { %v9672_v12 = vshll.u32 %v13326_v53, 16  ;;  %15557 = vmatmul.mubr.bf16.gmra.mxu1 %v20750_v58  ;;  %v9678_v61 = vshrl.u32 %v13327_v57, 16  ;;  %v9681_v2 = vshll.u32 %v13327_v57, 16  ;;  %v20787_v57 = vcombine.low %v20465_v34, %v20467_v46 }
 0x4b6   : > { %v9394_v7 = vld [vmem:[#allocation4 + $0x80] sm:$0xf]  ;;  %v9395_v22 = vld [vmem:[#allocation4 + $0x84] sm:$0xf]  ;;  %15560 = vmatprep.mubr.bf16.mxu1 %v20760_v51  ;;  %v20770_v40 = vsel %vm2019_vm9, %v9648_v32, %v9657_v60  ;;  %v9671_v21 = vrot.slane %v9669_v13, 3  ;;  %v9666_v19 = vor.u32 %v9665_v62, %v9662_v44  ;;  %v20783_v62 = vcombine.low %v20420_v23, %v20428_v30 }
 0x4b7   : > { %v9431_v37 = vmul.bf16 %v9394_v7, %v22942_v56  ;;  %v9674_v59 = vrot.slane %v9672_v12, 4  ;;  %v9432_v47 = vmul.bf16 %v9395_v22, %v22943_v49  ;;  %v9680_v13 = vrot.slane %v9678_v61, 3  ;;  %v22944_v49 = vld [vmem:[#allocation79_spill] sm:$0xff]  ;;  %v16176_v61 = vld [vmem:[%s21855_s3 + $0x1e8] sm:$0xff]  }
 0x4b8   : > { %15509 = vmatmul.mubr.bf16.gmra.mxu0 %v20760_v51  ;;  %v20776_v32 = vsel %vm2019_vm9, %v9657_v60, %v9666_v19  ;;  %v9683_v12 = vrot.slane %v9681_v2, 4  ;;  %v20779_v44 = vmul.bf16 %v9396_v52, %v22944_v49  ;;  %v20800_v23 = vcombine.low %v20547_v50, %v20560_v36  ;;  %v16184_v2 = vld [vmem:[%s21855_s3 + $0x1d0] sm:$0xff]   ;;  %v22946_v49 = vld [vmem:[#allocation84_spill] sm:$0xff] }
 0x4b9   : > { %v13328_v53 = vcombine.low %v9431_v37, %v9432_v47  ;;  %v13339_v16 = vcombine.low %v9431_v37, %v9431_v37  ;;  %15512 = vmatprep.mubr.bf16.mxu0 %v20770_v40  ;;  %v9675_v39 = vor.u32 %v9674_v59, %v9671_v21  ;;  %v20795_v59 = vcombine.low %v20487_v14, %v20543_v31 }
 0x4ba   : > { %v20804_v30 = vcombine.low %v20572_v5, %v20606_v6  ;;  %v20808_v34 = vcombine.low %v20627_v28, %v20643_v3  ;;  %v20812_v46 = vcombine.low %v20656_v48, %v20658_v10  ;;  %v20820_v50 = vcombine.low %v20686_v35, %v20688_v25 }
 0x4bb   : > { %v9687_v56 = vshrl.u32 %v13328_v53, 16  ;;  %v9690_v29 = vshll.u32 %v13328_v53, 16  ;;  %v9945_v17 = vshrl.u32 %v13339_v16, 16  ;;  %v20791_v37 = vsel %vm2019_vm9, %v9666_v19, %v9675_v39  ;;  %v16163_v19 = vld [vmem:[%s21855_s3 + $0x130] sm:$0xff]   ;;  %v16183_v53 = vld [vmem:[%s21855_s3 + $0x108] sm:$0xff]  }
 0x4bc   : > { %v9948_v21 = vshll.u32 %v13339_v16, 16  ;;  %v9684_v16 = vor.u32 %v9683_v12, %v9680_v13  ;;  %v20825_v14 = vcombine.low %v20701_v45, %v20710_v18  ;;  %v20829_v6 = vcombine.low %v20722_v0, %v20724_v33  ;;  %v16242_v0 = vld [vmem:[#allocation4 + $0x4] sm:$0xf]  ;;  %v16243_v33 = vld [vmem:[#allocation4 + $0x8] sm:$0xf] }
 0x4bd   : > { %15561 = vmatmul.mubr.bf16.gmra.mxu1 %v20770_v40  ;;  %v9689_v60 = vrot.slane %v9687_v56, 3  ;;  %v9692_v47 = vrot.slane %v9690_v29, 4  ;;  %v20816_v29 = vcombine.low %v20660_v20, %v20670_v9  ;;  %v13329_v9 = vcombine.low %v20779_v44, %v20779_v44  ;;  %v20926_v56 = vld [vmem:[#allocation4 + $0x8c] sm:$0xf] }
 0x4be   : > { %15564 = vmatprep.mubr.bf16.mxu1 %v20776_v32  ;;  %v20836_v31 = vcombine.low %v20733_v15, %v20739_v27  ;;  %v20839_v36 = vcombine.low %v20745_v42, %v9394_v7  ;;  %v20841_v5 = vcombine.low %v9395_v22, %v9396_v52  ;;  %v9947_v28 = vrot.slane %v9945_v17, 3  ;;  %v16174_v22 = vld [vmem:[%s21855_s3 + $0x1f0] sm:$0xff]   ;;  %v16189_v52 = vld [vmem:[%s21855_s3 + $0xb8] sm:$0xff]  }
 0x4bf   : > { %v20843_v45 = vor.u32 %v9692_v47, %v9689_v60  ;;  %v9950_v3 = vrot.slane %v9948_v21, 4  ;;  %v20846_v48 = vsel %vm2019_vm9, %v9675_v39, %v9684_v16  ;;  %v9696_v10 = vshrl.u32 %v13329_v9, 16  ;;  %v16188_v39 = vld [vmem:[%s21855_s3 + $0x1c0] sm:$0xff]  }
 0x4c0   : > { %15513 = vmatmul.mubr.bf16.gmra.mxu0 %v20776_v32  ;;  %v9699_v20 = vshll.u32 %v13329_v9, 16  ;;  %v13390_v15 = vcombine.low %v16242_v0, %v16243_v33  ;;  %v16201_v0 = vld [vmem:[%s21855_s3 + $0x88] sm:$0xff]   ;;  %v16206_v33 = vld [vmem:[%s21855_s3 + $0x140] sm:$0xff]  }
 0x4c1   : > { %15516 = vmatprep.mubr.bf16.mxu0 %v20791_v37  ;;  %v20852_v27 = vsel %vm2019_vm9, %v9684_v16, %v20843_v45  ;;  %v9951_v35 = vor.u32 %v9950_v3, %v9947_v28  ;;  %v9698_v17 = vrot.slane %v9696_v10, 3 }
 0x4c2   : > { %v9701_v25 = vrot.slane %v9699_v20, 4 }
 0x4c3   : > { %v9952_v18 = vsel %vm2019_vm9, %v9684_v16, %v9951_v35  ;;  %v16195_v35 = vld [vmem:[%s21855_s3 + $0x170] sm:$0xff]  }
 0x4c4   : > { %v9702_v42 = vor.u32 %v9701_v25, %v9698_v17  ;;  %v16198_v17 = vld [vmem:[%s21855_s3 + $0x160] sm:$0xff]   ;;  %v16194_v25 = vld [vmem:[%s21855_s3 + $0x98] sm:$0xff]  }
 0x4c5   : > { %15565 = vmatmul.mubr.bf16.gmra.mxu1 %v20791_v37 }
 0x4c6   : > { %15568 = vmatprep.mubr.bf16.mxu1 %v20846_v48  ;;  %v9703_v7 = vsel %vm2019_vm9, %v20843_v45, %v9702_v42  ;;  %v11332_v42 = vld [vmem:[#allocation4 + $0xc] sm:$0xf] }
 0x4c8   : > { %15517 = vmatmul.mubr.bf16.gmra.mxu0 %v20846_v48 }
 0x4c9   : > { %15520 = vmatprep.mubr.bf16.mxu0 %v20852_v27 }
 0x4cd   : > { %15569 = vmatmul.mubr.bf16.gmra.mxu1 %v9952_v18  ;;  %v16202_v18 = vld [vmem:[%s21855_s3 + $0x150] sm:$0xff]  }
 0x4ce   : > { %15636 = vmatprep.mubr.bf16.mxu1 %v13390_v15  ;;  %v11331_v15 = vld [vmem:[#allocation4 + $0x8] sm:$0xf] }
 0x4d0   : > { %15521 = vmatmul.mubr.bf16.gmra.mxu0 %v9703_v7  ;;  %v11335_v7 = vld [vmem:[#allocation4 + $0x18] sm:$0xf] }
 0x4d1   : > { %15588 = vmatprep.mubr.bf16.mxu0 %v20501_v38  ;;  %v16166_v38 = vld [vmem:[%s21855_s3 + $0x128] sm:$0xff]  }
 0x4d5   : > { %15637 = vmatmul.mubr.bf16.vlgmr.msra.gmra.mxu1 %v20400_v26 }
 0x4d6   : > { %15640 = vmatprep.mubr.bf16.mxu1 %v20764_v43  ;;  %15717 = vmatpush3.bf16.msra.mxu1 %v20675_v24  ;;  %v16179_v24 = vld [vmem:[%s21855_s3 + $0x1e0] sm:$0xff]  }
 0x4d7   : > { %15718 = vmatprep.subr.bf16.mxu1 %v16174_v22 }
 0x4d8   : > { %15589 = vmatmul.mubr.bf16.vlgmr.msra.gmra.mxu0 %v20554_v63  ;;  %v16169_v63 = vld [vmem:[%s21855_s3 + $0x120] sm:$0xff]  }
 0x4d9   : > { %15592 = vmatprep.mubr.bf16.mxu0 %v20587_v1  ;;  %15669 = vmatpush3.bf16.msra.mxu0 %v20715_v55  ;;  %v16181_v1 = vld [vmem:[%s21855_s3 + $0x1d8] sm:$0xff]  }
 0x4da   : > { %15670 = vmatprep.subr.bf16.mxu0 %v16163_v19  ;;  %15719 = vmatpush3.bf16.msra.mxu1 %v16174_v22  ;;  %v16173_v55 = vld [vmem:[%s21855_s3 + $0x118] sm:$0xff]   ;;  %v22947_v22 = vld [vmem:[#allocation89_spill] sm:$0xff] }
 0x4db   : > { %15720 = vmatprep.subr.bf16.mxu1 %v16176_v61 }
 0x4dd   : > { %15641 = vmatmul.mubr.bf16.gmra.mxu1 %v20783_v62  ;;  %15671 = vmatpush3.bf16.msra.mxu0 %v16163_v19 }
 0x4de   : > { %15644 = vmatprep.mubr.bf16.mxu1 %v20787_v57  ;;  %15672 = vmatprep.subr.bf16.mxu0 %v16166_v38 }
 0x4df   : > { %15721 = vmatpush3.bf16.msra.mxu1 %v16176_v61  ;;  %v11334_v61 = vld [vmem:[#allocation4 + $0x14] sm:$0xf] }
 0x4e0   : > { %15593 = vmatmul.mubr.bf16.gmra.mxu0 %v20650_v41  ;;  %15722 = vmatprep.subr.bf16.mxu1 %v16179_v24  ;;  %v16178_v41 = vld [vmem:[%s21855_s3 + $0x110] sm:$0xff]  }
 0x4e1   : > { %15596 = vmatprep.mubr.bf16.mxu0 %v20678_v4  ;;  %15673 = vmatpush3.bf16.msra.mxu0 %v16166_v38  ;;  %v16186_v4 = vld [vmem:[%s21855_s3 + $0x1c8] sm:$0xff]   ;;  %v22948_v38 = vld [vmem:[#allocation85_spill] sm:$0xff] }
 0x4e2   : > { %15674 = vmatprep.subr.bf16.mxu0 %v16169_v63 }
 0x4e3   : > { %15723 = vmatpush3.bf16.msra.mxu1 %v16179_v24 }
 0x4e4   : > { %15724 = vmatprep.subr.bf16.mxu1 %v16181_v1 }
 0x4e5   : > { %15645 = vmatmul.mubr.bf16.gmra.mxu1 %v20795_v59  ;;  %15675 = vmatpush3.bf16.msra.mxu0 %v16169_v63  ;;  %v22949_v63 = vld [vmem:[#allocation87_spill] sm:$0xff] }
 0x4e6   : > { %15648 = vmatprep.mubr.bf16.mxu1 %v20800_v23  ;;  %15676 = vmatprep.subr.bf16.mxu0 %v16173_v55 }
 0x4e7   : > { %15725 = vmatpush3.bf16.msra.mxu1 %v16181_v1  ;;  %v11368_v1 = vmul.bf16 %v11331_v15, %v22949_v63 }
 0x4e8   : > { %15597 = vmatmul.mubr.bf16.gmra.mxu0 %v20727_v11  ;;  %15726 = vmatprep.subr.bf16.mxu1 %v16184_v2  ;;  %v16187_v11 = vld [vmem:[%s21855_s3 + $0x100] sm:$0xff]  }
 0x4e9   : > { %15600 = vmatprep.mubr.bf16.mxu0 %v20743_v8  ;;  %15677 = vmatpush3.bf16.msra.mxu0 %v16173_v55  ;;  %v16193_v8 = vld [vmem:[%s21855_s3 + $0x178] sm:$0xff]   ;;  %v22950_v55 = vld [vmem:[#allocation88_spill] sm:$0xff] }
 0x4ea   : > { %15678 = vmatprep.subr.bf16.mxu0 %v16178_v41 }
 0x4eb   : > { %15727 = vmatpush3.bf16.msra.mxu1 %v16184_v2  ;;  %v11369_v2 = vmul.bf16 %v11332_v42, %v22950_v55 }
 0x4ec   : > { %15728 = vmatprep.subr.bf16.mxu1 %v16186_v4 }
 0x4ed   : > { %15649 = vmatmul.mubr.bf16.gmra.mxu1 %v20804_v30  ;;  %15679 = vmatpush3.bf16.msra.mxu0 %v16178_v41  ;;  %v22951_v41 = vld [vmem:[#allocation91_spill] sm:$0xff] }
 0x4ee   : > { %15652 = vmatprep.mubr.bf16.mxu1 %v20808_v34  ;;  %15680 = vmatprep.subr.bf16.mxu0 %v16183_v53 }
 0x4ef   : > { %15729 = vmatpush3.bf16.msra.mxu1 %v16186_v4 }
 0x4f0   : > { %15601 = vmatmul.mubr.bf16.gmra.mxu0 %v20750_v58  ;;  %15730 = vmatprep.subr.bf16.mxu1 %v16188_v39  ;;  %v22945_v58 = vld [vmem:[#allocation83_spill] sm:$0xff] }
 0x4f1   : > { %15604 = vmatprep.mubr.bf16.mxu0 %v20760_v51  ;;  %15681 = vmatpush3.bf16.msra.mxu0 %v16183_v53  ;;  %v9434_v13 = vmul.bf16 %v20926_v56, %v22945_v58  ;;  %v20933_v51 = vld [vmem:[#allocation4 + $0x90] sm:$0xf]  ;;  %v11339_v58 = vld [vmem:[#allocation4 + $0x28] sm:$0xf] }
 0x4f2   : > { %15682 = vmatprep.subr.bf16.mxu0 %v16187_v11  ;;  %v9435_v60 = vmul.bf16 %v20933_v51, %v22946_v49 }
 0x4f3   : > { %15731 = vmatpush3.bf16.msra.mxu1 %v16188_v39  ;;  %v13364_v12 = vcombine.low %v20779_v44, %v9434_v13 }
 0x4f4   : > { %15812 = vmatprep.subr.bf16.mxu1 %v16193_v8  ;;  %v13365_v16 = vcombine.low %v9435_v60, %v9435_v60 }
 0x4f5   : > { %15653 = vmatmul.mubr.bf16.gmra.mxu1 %v20812_v46  ;;  %15683 = vmatpush3.bf16.msra.mxu0 %v16187_v11  ;;  %v10188_v21 = vshrl.u32 %v13364_v12, 16  ;;  %v10191_v47 = vshll.u32 %v13364_v12, 16  ;;  %v11337_v11 = vld [vmem:[#allocation4 + $0x20] sm:$0xf] }
 0x4f6   : > { %15656 = vmatprep.mubr.bf16.mxu1 %v20816_v29  ;;  %15764 = vmatprep.subr.bf16.mxu0 %v16189_v52  ;;  %v10197_v28 = vshrl.u32 %v13365_v16, 16  ;;  %v22953_v12 = vld [vmem:[#allocation93_spill] sm:$0xff] }
 0x4f7   : > { %v10193_v9 = vrot.slane %v10191_v47, 4  ;;  %v11374_v49 = vmul.bf16 %v11337_v11, %v22953_v12  ;;  %v11346_v12 = vld [vmem:[#allocation4 + $0x44] sm:$0xf] }
 0x4f8   : > { %15605 = vmatmul.mubr.bf16.gmra.mxu0 %v20770_v40  ;;  %v10190_v40 = vrot.slane %v10188_v21, 3  ;;  %v10199_v3 = vrot.slane %v10197_v28, 3  ;;  %v11338_v21 = vld [vmem:[#allocation4 + $0x24] sm:$0xf] }
 0x4f9   : > { %15608 = vmatprep.mubr.bf16.mxu0 %v20776_v32  ;;  %v10200_v32 = vshll.u32 %v13365_v16, 16  ;;  %v22954_v16 = vld [vmem:[#allocation92_spill] sm:$0xff] }
 0x4fa   : > { %v10194_v44 = vor.u32 %v10193_v9, %v10190_v40  ;;  %v22955_v9 = vld [vmem:[#allocation95_spill] sm:$0xff] }
 0x4fb   : > { %v10202_v10 = vrot.slane %v10200_v32, 4  ;;  %v11376_v28 = vmul.bf16 %v11339_v58, %v22955_v9 }
 0x4fc   : > { %v10195_v20 = vsel %vm2019_vm9, %v20843_v45, %v10194_v44  ;;  %v16190_v45 = vld [vmem:[%s21855_s3 + $0xb0] sm:$0xff]  }
 0x4fd   : > { %15657 = vmatmul.mubr.bf16.gmra.mxu1 %v20820_v50 }
 0x4fe   : > { %15660 = vmatprep.mubr.bf16.mxu1 %v20825_v14 }
 0x500   : > { %15609 = vmatmul.mubr.bf16.gmra.mxu0 %v20791_v37  ;;  %v10203_v37 = vor.u32 %v10202_v10, %v10199_v3 }
 0x501   : > { %15612 = vmatprep.mubr.bf16.mxu0 %v20846_v48 }
 0x502   : > { %v10204_v48 = vsel %vm2019_vm9, %v10194_v44, %v10203_v37  ;;  %v22956_v44 = vld [vmem:[#allocation94_spill] sm:$0xff]  ;;  %v11341_v37 = vld [vmem:[#allocation4 + $0x30] sm:$0xf] }
 0x503   : > { %v11375_v3 = vmul.bf16 %v11338_v21, %v22956_v44 }
 0x505   : > { %15661 = vmatmul.mubr.bf16.gmra.mxu1 %v20829_v6 }
 0x506   : > { %15664 = vmatprep.mubr.bf16.mxu1 %v20836_v31 }
 0x508   : > { %15613 = vmatmul.mubr.bf16.gmra.mxu0 %v20852_v27  ;;  %v16196_v27 = vld [vmem:[%s21855_s3 + $0x168] sm:$0xff]  }
 0x509   : > { %15616 = vmatprep.mubr.bf16.mxu0 %v10195_v20 }
 0x50d   : > { %15665 = vmatmul.mubr.bf16.gmra.mxu1 %v20839_v36 }
 0x50e   : > { %15732 = vmatprep.mubr.bf16.mxu1 %v20764_v43 }
 0x510   : > { %15617 = vmatmul.mubr.bf16.gmra.mxu0 %v10204_v48  ;;  %v13455_v48 = vcombine.low %v20926_v56, %v20933_v51  ;;  %v22959_v51 = vld [vmem:[#allocation102_spill] sm:$0xff] }
 0x511   : > { %15684 = vmatprep.mubr.bf16.mxu0 %v20400_v26  ;;  %v16191_v26 = vld [vmem:[%s21855_s3 + $0xa8] sm:$0xff]  }
 0x515   : > { %15733 = vmatmul.mubr.bf16.vlgmr.msra.gmra.mxu1 %v20783_v62 }
 0x516   : > { %15736 = vmatprep.mubr.bf16.mxu1 %v20787_v57  ;;  %15813 = vmatpush3.bf16.msra.mxu1 %v16193_v8 }
 0x517   : > { %15814 = vmatprep.subr.bf16.mxu1 %v16195_v35 }
 0x518   : > { %15685 = vmatmul.mubr.bf16.vlgmr.msra.gmra.mxu0 %v20764_v43  ;;  %v16192_v43 = vld [vmem:[%s21855_s3 + $0xa0] sm:$0xff]  }
 0x519   : > { %15688 = vmatprep.mubr.bf16.mxu0 %v20783_v62  ;;  %15765 = vmatpush3.bf16.msra.mxu0 %v16189_v52  ;;  %v16199_v62 = vld [vmem:[%s21855_s3 + $0x158] sm:$0xff]   ;;  %v11336_v52 = vld [vmem:[#allocation4 + $0x1c] sm:$0xf] }
 0x51a   : > { %15766 = vmatprep.subr.bf16.mxu0 %v16190_v45  ;;  %15815 = vmatpush3.bf16.msra.mxu1 %v16195_v35  ;;  %v11373_v40 = vmul.bf16 %v11336_v52, %v22954_v16 }
 0x51b   : > { %15816 = vmatprep.subr.bf16.mxu1 %v16196_v27 }
 0x51d   : > { %15737 = vmatmul.mubr.bf16.gmra.mxu1 %v20795_v59  ;;  %15767 = vmatpush3.bf16.msra.mxu0 %v16190_v45 }
 0x51e   : > { %15740 = vmatprep.mubr.bf16.mxu1 %v20800_v23  ;;  %15768 = vmatprep.subr.bf16.mxu0 %v16191_v26 }
 0x51f   : > { %15817 = vmatpush3.bf16.msra.mxu1 %v16196_v27  ;;  %v21040_v27 = vcombine.low %v11375_v3, %v11376_v28  ;;  %v22964_v3 = vld [vmem:[#allocation111_spill] sm:$0xff] }
 0x520   : > { %15689 = vmatmul.mubr.bf16.gmra.mxu0 %v20787_v57  ;;  %15818 = vmatprep.subr.bf16.mxu1 %v16198_v17  ;;  %v16197_v57 = vld [vmem:[%s21855_s3 + $0x90] sm:$0xff]  }
 0x521   : > { %15692 = vmatprep.mubr.bf16.mxu0 %v20795_v59  ;;  %15769 = vmatpush3.bf16.msra.mxu0 %v16191_v26  ;;  %v16204_v59 = vld [vmem:[%s21855_s3 + $0x148] sm:$0xff]   ;;  %v11340_v26 = vld [vmem:[#allocation4 + $0x2c] sm:$0xf] }
 0x522   : > { %15770 = vmatprep.subr.bf16.mxu0 %v16192_v43 }
 0x523   : > { %15819 = vmatpush3.bf16.msra.mxu1 %v16198_v17  ;;  %v11343_v17 = vld [vmem:[#allocation4 + $0x38] sm:$0xf] }
 0x524   : > { %15820 = vmatprep.subr.bf16.mxu1 %v16199_v62 }
 0x525   : > { %15741 = vmatmul.mubr.bf16.gmra.mxu1 %v20804_v30  ;;  %15771 = vmatpush3.bf16.msra.mxu0 %v16192_v43 }
 0x526   : > { %15744 = vmatprep.mubr.bf16.mxu1 %v20808_v34  ;;  %15772 = vmatprep.subr.bf16.mxu0 %v16194_v25 }
 0x527   : > { %15821 = vmatpush3.bf16.msra.mxu1 %v16199_v62 }
 0x528   : > { %15693 = vmatmul.mubr.bf16.gmra.mxu0 %v20800_v23  ;;  %15822 = vmatprep.subr.bf16.mxu1 %v16202_v18  ;;  %v16205_v23 = vld [vmem:[%s21855_s3 + $0x80] sm:$0xff]  }
 0x529   : > { %15696 = vmatprep.mubr.bf16.mxu0 %v20804_v30  ;;  %15773 = vmatpush3.bf16.msra.mxu0 %v16194_v25  ;;  %v21013_v30 = vld [vmem:[%s21855_s3 + $0x238] sm:$0xff]  }
 0x52a   : > { %15774 = vmatprep.subr.bf16.mxu0 %v16197_v57 }
 0x52b   : > { %15823 = vmatpush3.bf16.msra.mxu1 %v16202_v18  ;;  %v22957_v18 = vld [vmem:[#allocation97_spill] sm:$0xff] }
 0x52c   : > { %15824 = vmatprep.subr.bf16.mxu1 %v16204_v59 }
 0x52d   : > { %15745 = vmatmul.mubr.bf16.gmra.mxu1 %v20812_v46  ;;  %15775 = vmatpush3.bf16.msra.mxu0 %v16197_v57  ;;  %v11378_v57 = vmul.bf16 %v11341_v37, %v22957_v18  ;;  %v11349_v37 = vld [vmem:[#allocation4 + $0x50] sm:$0xf]  ;;  %v11351_v18 = vld [vmem:[#allocation4 + $0x58] sm:$0xf] }
 0x52e   : > { %15748 = vmatprep.mubr.bf16.mxu1 %v20816_v29  ;;  %15776 = vmatprep.subr.bf16.mxu0 %v16201_v0 }
 0x52f   : > { %15825 = vmatpush3.bf16.msra.mxu1 %v16204_v59  ;;  %v11342_v59 = vld [vmem:[#allocation4 + $0x34] sm:$0xf] }
 0x530   : > { %15697 = vmatmul.mubr.bf16.gmra.mxu0 %v20808_v34  ;;  %15826 = vmatprep.subr.bf16.mxu1 %v16206_v33  ;;  %v11333_v34 = vld [vmem:[#allocation4 + $0x10] sm:$0xf] }
 0x531   : > { %15700 = vmatprep.mubr.bf16.mxu0 %v20812_v46  ;;  %15777 = vmatpush3.bf16.msra.mxu0 %v16201_v0  ;;  %v11330_v46 = vld [vmem:[#allocation4 + $0x4] sm:$0xf]  ;;  %v11370_v19 = vmul.bf16 %v11333_v34, %v22947_v22 }
 0x532   : > { %15778 = vmatprep.subr.bf16.mxu0 %v16205_v23  ;;  %v11367_v24 = vmul.bf16 %v11330_v46, %v22948_v38 }
 0x533   : > { %15827 = vmatpush3.bf16.msra.mxu1 %v16206_v33  ;;  %v13481_v53 = vcombine.low %v11369_v2, %v11370_v19  ;;  %v22958_v33 = vld [vmem:[#allocation96_spill] sm:$0xff] }
 0x534   : > { %v13480_v39 = vcombine.low %v11367_v24, %v11368_v1  ;;  %v11377_v56 = vmul.bf16 %v11340_v26, %v22958_v33  ;;  %v11345_v24 = vld [vmem:[#allocation4 + $0x40] sm:$0xf] }
 0x535   : > { %15749 = vmatmul.mubr.bf16.gmra.mxu1 %v20820_v50  ;;  %15779 = vmatpush3.bf16.msra.mxu0 %v16205_v23  ;;  %v11512_v13 = vshll.u32 %v13481_v53, 16  ;;  %v11516_v35 = vshrl.u32 %v13481_v53, 16  ;;  %v11380_v23 = vmul.bf16 %v11343_v17, %v22959_v51  ;;  %v11348_v17 = vld [vmem:[#allocation4 + $0x4c] sm:$0xf] }
 0x536   : > { %15752 = vmatprep.mubr.bf16.mxu1 %v20825_v14  ;;  %15860 = vmatprep.subr.bf16.mxu0 %v21013_v30  ;;  %v11507_v60 = vshll.u32 %v13480_v39, 16  ;;  %v11505_v10 = vshrl.u32 %v13480_v39, 16  ;;  %v13485_v42 = vcombine.low %v11377_v56, %v11378_v57  ;;  %v22966_v56 = vld [vmem:[#allocation113_spill] sm:$0xff] }
 0x537   : > { %v11385_v51 = vmul.bf16 %v11348_v17, %v22966_v56 }
 0x538   : > { %15701 = vmatmul.mubr.bf16.gmra.mxu0 %v20816_v29  ;;  %v11372_v29 = vmul.bf16 %v11335_v7, %v22951_v41  ;;  %v11509_v20 = vrot.slane %v11507_v60, 1  ;;  %v22960_v7 = vld [vmem:[#allocation101_spill] sm:$0xff] }
 0x539   : > { %15704 = vmatprep.mubr.bf16.mxu0 %v20820_v50  ;;  %v22952_v50 = vld [vmem:[#allocation90_spill] sm:$0xff]  ;;  %v11379_v22 = vmul.bf16 %v11342_v59, %v22960_v7 }
 0x53a   : > { %v11371_v4 = vmul.bf16 %v11334_v61, %v22952_v50  ;;  %v11344_v50 = vld [vmem:[#allocation4 + $0x3c] sm:$0xf] }
 0x53b   : > { %v21052_v2 = vcombine.low %v11379_v22, %v11380_v23  ;;  %v11350_v23 = vld [vmem:[#allocation4 + $0x54] sm:$0xf] }
 0x53c   : > { %v13482_v8 = vcombine.low %v11371_v4, %v11372_v29  ;;  %v11347_v4 = vld [vmem:[#allocation4 + $0x48] sm:$0xf] }
 0x53d   : > { %15753 = vmatmul.mubr.bf16.gmra.mxu1 %v20829_v6  ;;  %v11552_v60 = vshll.u32 %v21052_v2, 16 }
 0x53e   : > { %15756 = vmatprep.mubr.bf16.mxu1 %v20836_v31  ;;  %v11520_v47 = vshll.u32 %v13482_v8, 16  ;;  %v11524_v19 = vshrl.u32 %v13482_v8, 16  ;;  %v22961_v8 = vld [vmem:[#allocation110_spill] sm:$0xff] }
 0x53f   : > { %v11382_v52 = vmul.bf16 %v11345_v24, %v22961_v8 }
 0x540   : > { %15705 = vmatmul.mubr.bf16.gmra.mxu0 %v20825_v14  ;;  %v11514_v14 = vrot.slane %v11512_v13, 1  ;;  %v11522_v45 = vrot.slane %v11520_v47, 1  ;;  %v22962_v47 = vld [vmem:[#allocation108_spill] sm:$0xff] }
 0x541   : > { %15708 = vmatprep.mubr.bf16.mxu0 %v20829_v6  ;;  %v13483_v6 = vcombine.low %v11373_v40, %v11374_v49  ;;  %v11381_v16 = vmul.bf16 %v11344_v50, %v22962_v47  ;;  %v22963_v40 = vld [vmem:[#allocation112_spill] sm:$0xff]  ;;  %v11556_v50 = vshrl.u32 %v21052_v2, 16 }
 0x542   : > { %v11518_v43 = vor.u32 %v11516_v35, %v11514_v14  ;;  %v11526_v41 = vor.u32 %v11524_v19, %v11522_v45  ;;  %v11384_v9 = vmul.bf16 %v11347_v4, %v22963_v40  ;;  %v11554_v35 = vrot.slane %v11552_v60, 1  ;;  %v16210_v19 = vld [vmem:[%s21855_s3 + $0x220] sm:$0xff]   ;;  %v11355_v60 = vld [vmem:[#allocation4 + $0x68] sm:$0xf] }
 0x543   : > { %v11528_v62 = vshll.u32 %v13483_v6, 16  ;;  %v11532_v63 = vshrl.u32 %v13483_v6, 16  ;;  %v13487_v44 = vcombine.low %v11381_v16, %v11382_v52  ;;  %v22969_v40 = vld [vmem:[#allocation119_spill] sm:$0xff] }
 0x544   : > { %v11523_v0 = vsel %vm4605_vm4, %v11518_v43, %v11522_v45  ;;  %v11558_v52 = vor.u32 %v11556_v50, %v11554_v35 }
 0x545   : > { %15757 = vmatmul.mubr.bf16.gmra.mxu1 %v20839_v36  ;;  %v15542_v32 = vpop.f32.mrf.mxu1  ;;  %v11530_v34 = vrot.slane %v11528_v62, 1  ;;  %v11560_v59 = vshll.u32 %v13487_v44, 16 }
 0x546   : > { %15760 = vmatprep.mubr.bf16.mxu1 %v20841_v5 }
 0x547   : > { %v10037_v25 = vpop.f32.mrf.mxu1  ;;  %v11534_v53 = vor.u32 %v11532_v63, %v11530_v34  ;;  %v21058_v58 = vsel %vm4605_vm4, %v11526_v41, %v11530_v34  ;;  %v11562_v63 = vrot.slane %v11560_v59, 1 }
 0x548   : > { %15709 = vmatmul.mubr.bf16.gmra.mxu0 %v20836_v31  ;;  %v11510_v31 = vor.u32 %v11509_v20, %v11505_v10  ;;  %v11383_v10 = vmul.bf16 %v11346_v12, %v22964_v3  ;;  %v11540_v20 = vshrl.u32 %v21040_v27, 16  ;;  %v11352_v12 = vld [vmem:[#allocation4 + $0x5c] sm:$0xf] }
 0x549   : > { %15712 = vmatprep.mubr.bf16.mxu0 %v20839_v36  ;;  %v11536_v36 = vshll.u32 %v21040_v27, 16  ;;  %v15543_v15 = vpop.f32.mrf.mxu1 }
 0x54a   : > { %v11515_v61 = vsel %vm4605_vm4, %v11510_v31, %v11514_v14  ;;  %v16208_v14 = vld [vmem:[%s21855_s3 + $0x230] sm:$0xff]   ;;  %v21079_v26 = vcombine.low %v11383_v10, %v11384_v9  ;;  %v22970_v10 = vld [vmem:[#allocation118_spill] sm:$0xff] }
 0x54b   : > { %v11538_v1 = vrot.slane %v11536_v36, 1  ;;  %v10040_v39 = vpop.f32.mrf.mxu1 }
 0x54c   : > { %v11572_v59 = vshrl.u32 %v21079_v26, 16 }
 0x54d   : > { %15761 = vmatmul.mubr.bf16.gmra.mxu1 %v13455_v48  ;;  %v15494_v46 = vpop.f32.mrf.mxu0  ;;  %v21064_v49 = vsel %vm4605_vm4, %v11534_v53, %v11538_v1  ;;  %v11548_v48 = vshrl.u32 %v13485_v42, 16  ;;  %v11542_v43 = vor.u32 %v11540_v20, %v11538_v1  ;;  %v11353_v53 = vld [vmem:[#allocation4 + $0x60] sm:$0xf]  ;;  %v11389_v20 = vmul.bf16 %v11352_v12, %v22970_v10 }
 0x54e   : > { %15828 = vmatprep.mubr.bf16.mxu1 %v11523_v0  ;;  %v21050_v38 = vadd.f32 %v15542_v32, %v15494_v46  ;;  %v11390_v9 = vmul.bf16 %v11353_v53, %v22969_v40 }
 0x54f   : > { %v9802_v55 = vpop.f32.mrf.mxu0 }
 0x550   : > { %15713 = vmatmul.mubr.bf16.gmra.mxu0 %v20841_v5  ;;  %v21054_v29 = vadd.f32 %v10037_v25, %v9802_v55  ;;  %v11544_v5 = vshll.u32 %v13485_v42, 16  ;;  %v16209_v25 = vld [vmem:[%s21855_s3 + $0x228] sm:$0xff]   ;;  %v22967_v42 = vld [vmem:[#allocation117_spill] sm:$0xff] }
 0x551   : > { %15780 = vmatprep.mubr.bf16.mxu0 %v11515_v61  ;;  %v15495_v11 = vpop.f32.mrf.mxu0  ;;  %v11388_v7 = vmul.bf16 %v11351_v18, %v22967_v42  ;;  %v22968_v55 = vld [vmem:[#allocation116_spill] sm:$0xff] }
 0x552   : > { %v21060_v13 = vadd.f32 %v15543_v15, %v15495_v11  ;;  %v11546_v6 = vrot.slane %v11544_v5, 1  ;;  %v11568_v15 = vshll.u32 %v21079_v26, 16  ;;  %v11387_v41 = vmul.bf16 %v11350_v23, %v22968_v55  ;;  %v22972_v18 = vld [vmem:[#allocation120_spill] sm:$0xff]  ;;  %v22973_v55 = vld [vmem:[#allocation123_spill] sm:$0xff] }
 0x553   : > { %v9805_v21 = vpop.f32.mrf.mxu0  ;;  %v16213_v26 = vld [vmem:[%s21855_s3 + $0x208] sm:$0xff]  }
 0x554   : > { %v21070_v28 = vadd.f32 %v10040_v39, %v9805_v21  ;;  %v11550_v27 = vor.u32 %v11548_v48, %v11546_v6  ;;  %v21088_v36 = vsel %vm4605_vm4, %v11542_v43, %v11546_v6  ;;  %v11564_v39 = vshrl.u32 %v13487_v44, 16  ;;  %v16211_v21 = vld [vmem:[%s21855_s3 + $0x218] sm:$0xff]  }
 0x555   : > { %15829 = vmatmul.mubr.bf16.vlgmr.msra.gmra.mxu1 %v21058_v58  ;;  %v11570_v11 = vrot.slane %v11568_v15, 1  ;;  %v21111_v8 = vcombine.low %v11387_v41, %v11388_v7  ;;  %v11356_v15 = vld [vmem:[#allocation4 + $0x6c] sm:$0xf] }
 0x556   : > { %15832 = vmatprep.mubr.bf16.mxu1 %v21064_v49  ;;  %v15546_v32 = vpop.f32.mrf.mxu1  ;;  %v21093_v34 = vsel %vm4605_vm4, %v11550_v27, %v11554_v35  ;;  %v11566_v47 = vor.u32 %v11564_v39, %v11562_v63  ;;  %v11358_v39 = vld [vmem:[#allocation4 + $0x74] sm:$0xf] }
 0x557   : > { %v11584_v3 = vshll.u32 %v21111_v8, 16  ;;  %v11574_v7 = vor.u32 %v11572_v59, %v11570_v11 }
 0x558   : > { %15781 = vmatmul.mubr.bf16.vlgmr.msra.gmra.mxu0 %v11523_v0  ;;  %v10053_v45 = vpop.f32.mrf.mxu1  ;;  %v21122_v6 = vsel %vm4605_vm4, %v11566_v47, %v11570_v11  ;;  %v11361_v47 = vld [vmem:[#allocation4 + $0x80] sm:$0xf] }
 0x559   : > { %15784 = vmatprep.mubr.bf16.mxu0 %v21058_v58  ;;  %15861 = vmatpush3.bf16.msra.mxu0 %v21013_v30  ;;  %v15498_v62 = vpop.f32.mrf.mxu0  ;;  %v22965_v30 = vld [vmem:[#allocation115_spill] sm:$0xff] }
 0x55a   : > { %15862 = vmatprep.subr.bf16.mxu0 %v16208_v14  ;;  %v21084_v57 = vadd.f32 %v15546_v32, %v15498_v62  ;;  %v15547_v31 = vpop.f32.mrf.mxu1  ;;  %v11386_v0 = vmul.bf16 %v11349_v37, %v22965_v30  ;;  %v11354_v32 = vld [vmem:[#allocation4 + $0x64] sm:$0xf]  ;;  %v11357_v30 = vld [vmem:[#allocation4 + $0x70] sm:$0xf] }
 0x55b   : > { %v9818_v33 = vpop.f32.mrf.mxu0  ;;  %v22971_v37 = vld [vmem:[#allocation121_spill] sm:$0xff]  ;;  %v11391_v27 = vmul.bf16 %v11354_v32, %v22972_v18  ;;  %v11394_v41 = vmul.bf16 %v11357_v30, %v22973_v55  ;;  %v22977_v18 = vld [vmem:[#allocation127_spill] sm:$0xff] }
 0x55c   : > { %v21095_v46 = vadd.f32 %v10053_v45, %v9818_v33  ;;  %v10056_v61 = vpop.f32.mrf.mxu1  ;;  %v13489_v1 = vcombine.low %v11385_v51, %v11386_v0  ;;  %v11392_v48 = vmul.bf16 %v11355_v60, %v22971_v37  ;;  %v16212_v45 = vld [vmem:[%s21855_s3 + $0x210] sm:$0xff]   ;;  %v11586_v51 = vrot.slane %v11584_v3, 1 }
 0x55d   : > { %15833 = vmatmul.mubr.bf16.gmra.mxu1 %v21088_v36  ;;  %15863 = vmatpush3.bf16.msra.mxu0 %v16208_v14  ;;  %v15499_v22 = vpop.f32.mrf.mxu0  ;;  %v21118_v14 = vsel %vm4605_vm4, %v11558_v52, %v11562_v63 }
 0x55e   : > { %15836 = vmatprep.mubr.bf16.mxu1 %v21093_v34  ;;  %15864 = vmatprep.subr.bf16.mxu0 %v16209_v25  ;;  %v21103_v24 = vadd.f32 %v15547_v31, %v15499_v22  ;;  %v11576_v16 = vshll.u32 %v13489_v1, 16  ;;  %v11580_v56 = vshrl.u32 %v13489_v1, 16  ;;  %v21139_v23 = vcombine.low %v11391_v27, %v11392_v48  ;;  %v11359_v22 = vld [vmem:[#allocation4 + $0x78] sm:$0xf]  ;;  %v11360_v48 = vld [vmem:[#allocation4 + $0x7c] sm:$0xf] }
 0x55f   : > { %v9821_v4 = vpop.f32.mrf.mxu0  ;;  %v11398_v27 = vmul.bf16 %v11361_v47, %v22977_v18 }
 0x560   : > { %15785 = vmatmul.mubr.bf16.gmra.mxu0 %v21064_v49  ;;  %v21109_v5 = vadd.f32 %v10056_v61, %v9821_v4  ;;  %v11578_v62 = vrot.slane %v11576_v16, 1  ;;  %v22974_v4 = vld [vmem:[#allocation122_spill] sm:$0xff]  ;;  %v11600_v60 = vshll.u32 %v21139_v23, 16  ;;  %v16214_v16 = vld [vmem:[%s21855_s3 + $0x200] sm:$0xff]  }
 0x561   : > { %15788 = vmatprep.mubr.bf16.mxu0 %v21088_v36  ;;  %15865 = vmatpush3.bf16.msra.mxu0 %v16209_v25  ;;  %v13491_v25 = vcombine.low %v11389_v20, %v11390_v9  ;;  %v11393_v53 = vmul.bf16 %v11356_v15, %v22974_v4  ;;  %v11588_v20 = vshrl.u32 %v21111_v8, 16 }
 0x562   : > { %15866 = vmatprep.subr.bf16.mxu0 %v16210_v19  ;;  %v11582_v61 = vor.u32 %v11580_v56, %v11578_v62  ;;  %v21148_v1 = vsel %vm4605_vm4, %v11574_v7, %v11578_v62  ;;  %v22978_v56 = vld [vmem:[#allocation126_spill] sm:$0xff] }
 0x563   : > { %v15550_v2 = vpop.f32.mrf.mxu1  ;;  %v11592_v63 = vshll.u32 %v13491_v25, 16  ;;  %v13493_v32 = vcombine.low %v11393_v53, %v11394_v41  ;;  %v11596_v37 = vshrl.u32 %v13491_v25, 16  ;;  %v11590_v59 = vor.u32 %v11588_v20, %v11586_v51  ;;  %v11364_v20 = vld [vmem:[#allocation4 + $0x8c] sm:$0xf] }
 0x564   : > { %v21153_v52 = vsel %vm4605_vm4, %v11582_v61, %v11586_v51  ;;  %v11397_v15 = vmul.bf16 %v11360_v48, %v22978_v56 }
 0x565   : > { %15837 = vmatmul.mubr.bf16.gmra.mxu1 %v21118_v14  ;;  %v10069_v44 = vpop.f32.mrf.mxu1  ;;  %15867 = vmatpush3.bf16.msra.mxu0 %v16210_v19  ;;  %v11594_v9 = vrot.slane %v11592_v63, 1  ;;  %v11608_v25 = vshll.u32 %v13493_v32, 16  ;;  %v11612_v47 = vshrl.u32 %v13493_v32, 16 }
 0x566   : > { %15840 = vmatprep.mubr.bf16.mxu1 %v21122_v6  ;;  %v15502_v35 = vpop.f32.mrf.mxu0  ;;  %15868 = vmatprep.subr.bf16.mxu0 %v16211_v21  ;;  %v13495_v55 = vcombine.low %v11397_v15, %v11398_v27 }
 0x567   : > { %v21131_v17 = vadd.f32 %v15550_v2, %v15502_v35  ;;  %v15551_v43 = vpop.f32.mrf.mxu1  ;;  %v11598_v8 = vor.u32 %v11596_v37, %v11594_v9  ;;  %v21176_v7 = vsel %vm4605_vm4, %v11590_v59, %v11594_v9  ;;  %v22981_v59 = vld [vmem:[#allocation104_spill] sm:$0xff] }
 0x568   : > { %15789 = vmatmul.mubr.bf16.gmra.mxu0 %v21093_v34  ;;  %v9834_v31 = vpop.f32.mrf.mxu0 }
 0x569   : > { %15792 = vmatprep.mubr.bf16.mxu0 %v21118_v14  ;;  %v21137_v0 = vadd.f32 %v10069_v44, %v9834_v31  ;;  %v10072_v33 = vpop.f32.mrf.mxu1  ;;  %15869 = vmatpush3.bf16.msra.mxu0 %v16211_v21  ;;  %v22975_v21 = vld [vmem:[#allocation125_spill] sm:$0xff]  ;;  %v22976_v44 = vld [vmem:[#allocation124_spill] sm:$0xff] }
 0x56a   : > { %v15503_v42 = vpop.f32.mrf.mxu0  ;;  %15870 = vmatprep.subr.bf16.mxu0 %v16212_v45  ;;  %v11396_v2 = vmul.bf16 %v11359_v22, %v22975_v21  ;;  %v11395_v3 = vmul.bf16 %v11358_v39, %v22976_v44  ;;  %v11362_v22 = vld [vmem:[#allocation4 + $0x84] sm:$0xf]  ;;  %v11610_v39 = vrot.slane %v11608_v25, 1  ;;  %v11624_v44 = vshll.u32 %v13495_v55, 16 }
 0x56b   : > { %v21144_v19 = vadd.f32 %v15551_v43, %v15503_v42  ;;  %v11602_v43 = vrot.slane %v11600_v60, 1 }
 0x56c   : > { %v9837_v50 = vpop.f32.mrf.mxu0  ;;  %v21169_v62 = vcombine.low %v11395_v3, %v11396_v2  ;;  %v11604_v2 = vshrl.u32 %v21139_v23, 16  ;;  %v22980_v3 = vld [vmem:[#allocation103_spill] sm:$0xff]  ;;  %v11614_v27 = vor.u32 %v11612_v47, %v11610_v39  ;;  %v11626_v56 = vrot.slane %v11624_v44, 1 }
 0x56d   : > { %v15554_v11 = vpop.f32.mrf.mxu1  ;;  %15841 = vmatmul.mubr.bf16.gmra.mxu1 %v21148_v1  ;;  %v21155_v12 = vadd.f32 %v10072_v33, %v9837_v50  ;;  %15871 = vmatpush3.bf16.msra.mxu0 %v16212_v45  ;;  %v21182_v51 = vsel %vm4605_vm4, %v11598_v8, %v11602_v43  ;;  %v11363_v50 = vld [vmem:[#allocation4 + $0x88] sm:$0xf] }
 0x56e   : > { %15844 = vmatprep.mubr.bf16.mxu1 %v21153_v52  ;;  %15872 = vmatprep.subr.bf16.mxu0 %v16213_v26  ;;  %v11606_v48 = vor.u32 %v11604_v2, %v11602_v43 }
 0x56f   : > { %v10085_v40 = vpop.f32.mrf.mxu1 }
 0x570   : > { %v15506_v10 = vpop.f32.mrf.mxu0  ;;  %15793 = vmatmul.mubr.bf16.gmra.mxu0 %v21122_v6  ;;  %v21201_v32 = vsel %vm4605_vm4, %v11606_v48, %v11610_v39 }
 0x571   : > { %v21166_v35 = vadd.f32 %v15554_v11, %v15506_v10  ;;  %v15555_v45 = vpop.f32.mrf.mxu1  ;;  %15796 = vmatprep.mubr.bf16.mxu0 %v21148_v1  ;;  %15873 = vmatpush3.bf16.msra.mxu0 %v16213_v26  ;;  %v11616_v26 = vshll.u32 %v21169_v62, 16  ;;  %v22979_v11 = vld [vmem:[#allocation100_spill] sm:$0xff]  ;;  %v11400_v10 = vmul.bf16 %v11363_v50, %v22980_v3  ;;  %v11620_v50 = vshrl.u32 %v21169_v62, 16 }
 0x572   : > { %v9850_v31 = vpop.f32.mrf.mxu0  ;;  %15874 = vmatprep.subr.bf16.mxu0 %v16214_v16  ;;  %v21189_v60 = vmul.bf16 %v11362_v22, %v22979_v11 }
 0x573   : > { %v21172_v30 = vadd.f32 %v10085_v40, %v9850_v31  ;;  %v10088_v33 = vpop.f32.mrf.mxu1  ;;  %v11618_v9 = vrot.slane %v11616_v26, 1 }
 0x574   : > { %v15507_v42 = vpop.f32.mrf.mxu0  ;;  %v13521_v31 = vcombine.low %v21189_v60, %v11400_v10 }
 0x575   : > { %v21178_v61 = vadd.f32 %v15555_v45, %v15507_v42  ;;  %v15558_v63 = vpop.f32.mrf.mxu1  ;;  %15845 = vmatmul.mubr.bf16.gmra.mxu1 %v21176_v7  ;;  %15875 = vmatpush3.bf16.msra.mxu0 %v16214_v16  ;;  %v21210_v43 = vsel %vm4605_vm4, %v11614_v27, %v11618_v9  ;;  %v11622_v47 = vor.u32 %v11620_v50, %v11618_v9 }
 0x576   : > { %15848 = vmatprep.mubr.bf16.mxu1 %v21182_v51  ;;  %v9853_v41 = vpop.f32.mrf.mxu0  ;;  %v11917_v26 = vshll.u32 %v13521_v31, 16  ;;  %v13496_v9 = vcombine.low %v21189_v60, %v21189_v60  ;;  %v11921_v27 = vshrl.u32 %v13521_v31, 16 }
 0x577   : > { %v21186_v4 = vadd.f32 %v10088_v33, %v9853_v41  ;;  %v10101_v53 = vpop.f32.mrf.mxu1  ;;  %v21204_v33 = vmul.bf16 %v11364_v20, %v22981_v59  ;;  %v21225_v10 = vsel %vm4605_vm4, %v11622_v47, %v11626_v56 }
 0x578   : > { %v15510_v21 = vpop.f32.mrf.mxu0  ;;  %15797 = vmatmul.mubr.bf16.gmra.mxu0 %v21153_v52  ;;  %v11919_v44 = vrot.slane %v11917_v26, 1  ;;  %v11632_v26 = vshll.u32 %v13496_v9, 16 }
 0x579   : > { %v21193_v40 = vadd.f32 %v15558_v63, %v15510_v21  ;;  %v15559_v16 = vpop.f32.mrf.mxu1  ;;  %15800 = vmatprep.mubr.bf16.mxu0 %v21176_v7  ;;  %v11628_v63 = vshrl.u32 %v13495_v55, 16 }
 0x57a   : > { %v9866_v37 = vpop.f32.mrf.mxu0  ;;  %v11634_v47 = vrot.slane %v11632_v26, 1 }
 0x57b   : > { %v21197_v45 = vadd.f32 %v10101_v53, %v9866_v37  ;;  %v10104_v18 = vpop.f32.mrf.mxu1  ;;  %v13522_v53 = vcombine.low %v21204_v33, %v21204_v33  ;;  %v11630_v21 = vor.u32 %v11628_v63, %v11626_v56  ;;  %v21239_v56 = vor.u32 %v11921_v27, %v11919_v44 }
 0x57c   : > { %v15511_v23 = vpop.f32.mrf.mxu0 }
 0x57d   : > { %v21206_v8 = vadd.f32 %v15559_v16, %v15511_v23  ;;  %v15562_v25 = vpop.f32.mrf.mxu1  ;;  %15849 = vmatmul.mubr.bf16.gmra.mxu1 %v21201_v32  ;;  %v11925_v62 = vshll.u32 %v13522_v53, 16  ;;  %v21231_v48 = vsel %vm4605_vm4, %v11630_v21, %v11919_v44 }
 0x57e   : > { %15852 = vmatprep.mubr.bf16.mxu1 %v21210_v43  ;;  %v9869_v15 = vpop.f32.mrf.mxu0 }
 0x57f   : > { %v21213_v42 = vadd.f32 %v10104_v18, %v9869_v15  ;;  %v10117_v22 = vpop.f32.mrf.mxu1  ;;  %v11927_v15 = vrot.slane %v11925_v62, 1  ;;  %v11635_v62 = vsel %vm4605_vm4, %v11630_v21, %v11634_v47 }
 0x580   : > { %v15514_v41 = vpop.f32.mrf.mxu0  ;;  %15801 = vmatmul.mubr.bf16.gmra.mxu0 %v21182_v51 }
 0x581   : > { %v21219_v39 = vadd.f32 %v15562_v25, %v15514_v41  ;;  %v15563_v11 = vpop.f32.mrf.mxu1  ;;  %15804 = vmatprep.mubr.bf16.mxu0 %v21201_v32  ;;  %v11928_v53 = vsel %vm4605_vm4, %v21239_v56, %v11927_v15 }
 0x582   : > { %v9882_v2 = vpop.f32.mrf.mxu0 }
 0x583   : > { %v21222_v16 = vadd.f32 %v10117_v22, %v9882_v2  ;;  %v10120_v55 = vpop.f32.mrf.mxu1 }
 0x584   : > { %v15515_v3 = vpop.f32.mrf.mxu0 }
 0x585   : > { %v21227_v20 = vadd.f32 %v15563_v11, %v15515_v3  ;;  %v15566_v37 = vpop.f32.mrf.mxu1  ;;  %15853 = vmatmul.mubr.bf16.gmra.mxu1 %v21225_v10 }
 0x586   : > { %15856 = vmatprep.mubr.bf16.mxu1 %v21231_v48  ;;  %v9885_v18 = vpop.f32.mrf.mxu0 }
 0x587   : > { %v21236_v23 = vadd.f32 %v10120_v55, %v9885_v18  ;;  %v10133_v59 = vpop.f32.mrf.mxu1 }
 0x588   : > { %v15518_v25 = vpop.f32.mrf.mxu0  ;;  %15805 = vmatmul.mubr.bf16.gmra.mxu0 %v21210_v43 }
 0x589   : > { %v21241_v22 = vadd.f32 %v15566_v37, %v15518_v25  ;;  %v15567_v63 = vpop.f32.mrf.mxu1  ;;  %15808 = vmatprep.mubr.bf16.mxu0 %v21225_v10 }
 0x58a   : > { %v9898_v60 = vpop.f32.mrf.mxu0 }
 0x58b   : > { %v21244_v41 = vadd.f32 %v10133_v59, %v9898_v60  ;;  %v10136_v50 = vpop.f32.mrf.mxu1 }
 0x58c   : > { %v15519_v31 = vpop.f32.mrf.mxu0 }
 0x58d   : > { %v21248_v11 = vadd.f32 %v15567_v63, %v15519_v31  ;;  %v15570_v2 = vpop.f32.mrf.mxu1  ;;  %15857 = vmatmul.mubr.bf16.gmra.mxu1 %v11928_v53 }
 0x58e   : > { %v9901_v55 = vpop.f32.mrf.mxu0 }
 0x58f   : > { %v21250_v44 = vadd.f32 %v10136_v50, %v9901_v55  ;;  %v10149_v3 = vpop.f32.mrf.mxu1 }
 0x590   : > { %v15522_v37 = vpop.f32.mrf.mxu0  ;;  %15809 = vmatmul.mubr.bf16.gmra.mxu0 %v11635_v62 }
 0x591   : > { %v21253_v9 = vadd.f32 %v15570_v2, %v15522_v37  ;;  %v15571_v18 = vpop.f32.mrf.mxu1  ;;  %15876 = vmatprep.mubr.bf16.mxu0 %v21058_v58 }
 0x592   : > { %v9914_v27 = vpop.f32.mrf.mxu0 }
 0x593   : > { %v21256_v59 = vadd.f32 %v10149_v3, %v9914_v27  ;;  %v10152_v25 = vpop.f32.mrf.mxu1 }
 0x594   : > { %v15523_v15 = vpop.f32.mrf.mxu0 }
 0x595   : > { %v21258_v63 = vadd.f32 %v15571_v18, %v15523_v15  ;;  %v15638_v26 = vpop.f32.mrf.mxu1 }
 0x596   : > { %v9917_v60 = vpop.f32.mrf.mxu0 }
 0x597   : > { %v21260_v50 = vadd.f32 %v10152_v25, %v9917_v60  ;;  %v10643_v31 = vpop.f32.mrf.mxu1 }
 0x598   : > { %v15590_v21 = vpop.f32.mrf.mxu0  ;;  %15877 = vmatmul.mubr.bf16.vlgmr.msra.gmra.mxu0 %v21064_v49 }
 0x599   : > { %v10418_v53 = vadd.f32 %v15590_v21, %v21050_v38  ;;  %v15639_v2 = vpop.f32.mrf.mxu1  ;;  %15880 = vmatprep.mubr.bf16.mxu0 %v21088_v36 }
 0x59a   : > { %v10289_v58 = vpop.f32.mrf.mxu0 }
 0x59b   : > { %v10416_v47 = vadd.f32 %v10289_v58, %v21054_v29  ;;  %v10646_v55 = vpop.f32.mrf.mxu1  ;;  %v21266_v3 = vadd.f32 %v15638_v26, %v10418_v53 }
 0x59c   : > { %v15591_v62 = vpop.f32.mrf.mxu0 }
 0x59d   : > { %v10419_v37 = vadd.f32 %v15591_v62, %v21060_v13  ;;  %v15642_v18 = vpop.f32.mrf.mxu1  ;;  %v21269_v27 = vadd.f32 %v10643_v31, %v10416_v47 }
 0x59e   : > { %v10292_v25 = vpop.f32.mrf.mxu0 }
 0x59f   : > { %v10417_v49 = vadd.f32 %v10292_v25, %v21070_v28  ;;  %v10659_v15 = vpop.f32.mrf.mxu1  ;;  %v21272_v38 = vadd.f32 %v15639_v2, %v10419_v37 }
 0x5a0   : > { %v15594_v60 = vpop.f32.mrf.mxu0  ;;  %15881 = vmatmul.mubr.bf16.gmra.mxu0 %v21093_v34 }
 0x5a1   : > { %v10422_v29 = vadd.f32 %v15594_v60, %v21084_v57  ;;  %v15643_v36 = vpop.f32.mrf.mxu1  ;;  %15884 = vmatprep.mubr.bf16.mxu0 %v21118_v14  ;;  %v21277_v26 = vadd.f32 %v10646_v55, %v10417_v49 }
 0x5a2   : > { %v10305_v13 = vpop.f32.mrf.mxu0 }
 0x5a3   : > { %v10420_v31 = vadd.f32 %v10305_v13, %v21095_v46  ;;  %v10662_v21 = vpop.f32.mrf.mxu1  ;;  %v21280_v53 = vadd.f32 %v15642_v18, %v10422_v29 }
 0x5a4   : > { %v15595_v28 = vpop.f32.mrf.mxu0 }
 0x5a5   : > { %v10423_v2 = vadd.f32 %v15595_v28, %v21103_v24  ;;  %v15646_v58 = vpop.f32.mrf.mxu1  ;;  %v21283_v47 = vadd.f32 %v10659_v15, %v10420_v31 }
 0x5a6   : > { %v10308_v34 = vpop.f32.mrf.mxu0 }
 0x5a7   : > { %v10421_v57 = vadd.f32 %v10308_v34, %v21109_v5  ;;  %v10675_v62 = vpop.f32.mrf.mxu1  ;;  %v21286_v37 = vadd.f32 %v15643_v36, %v10423_v2 }
 0x5a8   : > { %v15598_v14 = vpop.f32.mrf.mxu0  ;;  %15885 = vmatmul.mubr.bf16.gmra.mxu0 %v21122_v6 }
 0x5a9   : > { %v10426_v46 = vadd.f32 %v15598_v14, %v21131_v17  ;;  %v15647_v55 = vpop.f32.mrf.mxu1  ;;  %15888 = vmatprep.mubr.bf16.mxu0 %v21148_v1  ;;  %v21291_v18 = vadd.f32 %v10662_v21, %v10421_v57  ;;  %v11365_v14 = vld [vmem:[#allocation4 + $0x90] sm:$0xf] }
 0x5aa   : > { %v10321_v24 = vpop.f32.mrf.mxu0 }
 0x5ab   : > { %v10424_v25 = vadd.f32 %v10321_v24, %v21137_v0  ;;  %v10678_v49 = vpop.f32.mrf.mxu1  ;;  %v21294_v15 = vadd.f32 %v15646_v58, %v10426_v46 }
 0x5ac   : > { %v15599_v5 = vpop.f32.mrf.mxu0 }
 0x5ad   : > { %v10427_v60 = vadd.f32 %v15599_v5, %v21144_v19  ;;  %v15650_v29 = vpop.f32.mrf.mxu1  ;;  %v21297_v36 = vadd.f32 %v10675_v62, %v10424_v25 }
 0x5ae   : > { %v10324_v6 = vpop.f32.mrf.mxu0 }
 0x5af   : > { %v10425_v17 = vadd.f32 %v10324_v6, %v21155_v12  ;;  %v10691_v13 = vpop.f32.mrf.mxu1  ;;  %v21300_v31 = vadd.f32 %v15647_v55, %v10427_v60 }
 0x5b0   : > { %v15602_v1 = vpop.f32.mrf.mxu0  ;;  %15889 = vmatmul.mubr.bf16.gmra.mxu0 %v21153_v52 }
 0x5b1   : > { %v10430_v0 = vadd.f32 %v15602_v1, %v21166_v35  ;;  %v15651_v21 = vpop.f32.mrf.mxu1  ;;  %15892 = vmatprep.mubr.bf16.mxu0 %v21176_v7  ;;  %v21305_v28 = vadd.f32 %v10678_v49, %v10425_v17 }
 0x5b2   : > { %v10337_v19 = vpop.f32.mrf.mxu0 }
 0x5b3   : > { %v10428_v2 = vadd.f32 %v10337_v19, %v21172_v30  ;;  %v10694_v58 = vpop.f32.mrf.mxu1  ;;  %v21308_v34 = vadd.f32 %v15650_v29, %v10430_v0  ;;  %v22982_v30 = vld [vmem:[#allocation106_spill] sm:$0xff]  ;;  %v11366_v29 = vld [vmem:[#allocation4 + $0x94] sm:$0x1] }
 0x5b4   : > { %v15603_v12 = vpop.f32.mrf.mxu0  ;;  %v11402_v25 = vmul.bf16 %v11365_v14, %v22982_v30 }
 0x5b5   : > { %v10431_v57 = vadd.f32 %v15603_v12, %v21178_v61  ;;  %v15654_v62 = vpop.f32.mrf.mxu1  ;;  %v21311_v46 = vadd.f32 %v10691_v13, %v10428_v2 }
 0x5b6   : > { %v10340_v52 = vpop.f32.mrf.mxu0  ;;  %v13547_v1 = vcombine.low %v21204_v33, %v11402_v25 }
 0x5b7   : > { %v10429_v35 = vadd.f32 %v10340_v52, %v21186_v4  ;;  %v10707_v55 = vpop.f32.mrf.mxu1  ;;  %v21314_v7 = vadd.f32 %v15651_v21, %v10431_v57  ;;  %v22983_v21 = vld [vmem:[#allocation13_spill] sm:$0xff] }
 0x5b8   : > { %v15606_v24 = vpop.f32.mrf.mxu0  ;;  %15893 = vmatmul.mubr.bf16.gmra.mxu0 %v21182_v51  ;;  %v12196_v57 = vshll.u32 %v13547_v1, 16 }
 0x5b9   : > { %v10434_v49 = vadd.f32 %v15606_v24, %v21193_v40  ;;  %v15655_v5 = vpop.f32.mrf.mxu1  ;;  %15896 = vmatprep.mubr.bf16.mxu0 %v21201_v32  ;;  %v21320_v61 = vadd.f32 %v10694_v58, %v10429_v35  ;;  %v11403_v40 = vmul.bf16 %v11366_v29, %v22983_v21 }
 0x5ba   : > { %v10353_v60 = vpop.f32.mrf.mxu0  ;;  %v12198_v30 = vrot.slane %v12196_v57, 1 }
 0x5bb   : > { %v10432_v6 = vadd.f32 %v10353_v60, %v21197_v45  ;;  %v10710_v4 = vpop.f32.mrf.mxu1  ;;  %v21323_v17 = vadd.f32 %v15654_v62, %v10434_v49  ;;  %v12200_v49 = vshrl.u32 %v13547_v1, 16 }
 0x5bc   : > { %v15607_v13 = vpop.f32.mrf.mxu0 }
 0x5bd   : > { %v10435_v51 = vadd.f32 %v15607_v13, %v21206_v8  ;;  %v15658_v0 = vpop.f32.mrf.mxu1  ;;  %v21328_v19 = vadd.f32 %v10707_v55, %v10432_v6  ;;  %v13548_v8 = vcombine.low %v11403_v40, %v11403_v40  ;;  %v12202_v1 = vor.u32 %v12200_v49, %v12198_v30 }
 0x5be   : > { %v10356_v32 = vpop.f32.mrf.mxu0 }
 0x5bf   : > { %v10433_v2 = vadd.f32 %v10356_v32, %v21213_v42  ;;  %v10723_v58 = vpop.f32.mrf.mxu1  ;;  %v21331_v12 = vadd.f32 %v15655_v5, %v10435_v51  ;;  %v12204_v5 = vshll.u32 %v13548_v8, 16 }
 0x5c0   : > { %v15610_v45 = vpop.f32.mrf.mxu0  ;;  %15897 = vmatmul.mubr.bf16.gmra.mxu0 %v21210_v43 }
 0x5c1   : > { %v10438_v62 = vadd.f32 %v15610_v45, %v21219_v39  ;;  %v15659_v33 = vpop.f32.mrf.mxu1  ;;  %15900 = vmatprep.mubr.bf16.mxu0 %v21225_v10  ;;  %v21336_v14 = vadd.f32 %v10710_v4, %v10433_v2  ;;  %v12206_v51 = vrot.slane %v12204_v5, 1 }
 0x5c2   : > { %v10369_v52 = vpop.f32.mrf.mxu0 }
 0x5c3   : > { %v10436_v35 = vadd.f32 %v10369_v52, %v21222_v16  ;;  %v10726_v55 = vpop.f32.mrf.mxu1  ;;  %v21339_v42 = vadd.f32 %v15658_v0, %v10438_v62  ;;  %v12199_v16 = vsel %vm4605_vm4, %v21239_v56, %v12198_v30  ;;  %v12207_v56 = vsel %vm4605_vm4, %v12202_v1, %v12206_v51 }
 0x5c4   : > { %v15611_v24 = vpop.f32.mrf.mxu0 }
 0x5c5   : > { %v10439_v25 = vadd.f32 %v15611_v24, %v21227_v20  ;;  %v15662_v43 = vpop.f32.mrf.mxu1  ;;  %v21342_v39 = vadd.f32 %v10723_v58, %v10436_v35 }
 0x5c6   : > { %v10372_v60 = vpop.f32.mrf.mxu0 }
 0x5c7   : > { %v10437_v10 = vadd.f32 %v10372_v60, %v21236_v23  ;;  %v10739_v29 = vpop.f32.mrf.mxu1  ;;  %v21345_v6 = vadd.f32 %v15659_v33, %v10439_v25 }
 0x5c8   : > { %v15614_v4 = vpop.f32.mrf.mxu0  ;;  %15901 = vmatmul.mubr.bf16.gmra.mxu0 %v21231_v48 }
 0x5c9   : > { %v10442_v13 = vadd.f32 %v15614_v4, %v21241_v22  ;;  %v15663_v20 = vpop.f32.mrf.mxu1  ;;  %15904 = vmatprep.mubr.bf16.mxu0 %v12199_v16  ;;  %v21351_v0 = vadd.f32 %v10726_v55, %v10437_v10 }
 0x5ca   : > { %v10385_v21 = vpop.f32.mrf.mxu0 }
 0x5cb   : > { %v10440_v23 = vadd.f32 %v10385_v21, %v21244_v41  ;;  %v10742_v40 = vpop.f32.mrf.mxu1  ;;  %v21354_v32 = vadd.f32 %v15662_v43, %v10442_v13 }
 0x5cc   : > { %v15615_v2 = vpop.f32.mrf.mxu0 }
 0x5cd   : > { %v10443_v48 = vadd.f32 %v15615_v2, %v21248_v11  ;;  %v15666_v58 = vpop.f32.mrf.mxu1  ;;  %v21358_v45 = vadd.f32 %v10739_v29, %v10440_v23 }
 0x5ce   : > { %v10388_v22 = vpop.f32.mrf.mxu0 }
 0x5cf   : > { %v10441_v57 = vadd.f32 %v10388_v22, %v21250_v44  ;;  %v10755_v62 = vpop.f32.mrf.mxu1  ;;  %v21361_v33 = vadd.f32 %v15663_v20, %v10443_v48 }
 0x5d0   : > { %v15618_v8 = vpop.f32.mrf.mxu0  ;;  %15905 = vmatmul.mubr.bf16.gmra.mxu0 %v12207_v56 }
 0x5d1   : > { %v10446_v41 = vadd.f32 %v15618_v8, %v21253_v9  ;;  %v15667_v52 = vpop.f32.mrf.mxu1  ;;  %v21364_v35 = vadd.f32 %v10742_v40, %v10441_v57 }
 0x5d2   : > { %v10401_v55 = vpop.f32.mrf.mxu0 }
 0x5d3   : > { %v10444_v11 = vadd.f32 %v10401_v55, %v21256_v59  ;;  %v10758_v24 = vpop.f32.mrf.mxu1  ;;  %v21367_v30 = vadd.f32 %v15666_v58, %v10446_v41 }
 0x5d4   : > { %v15619_v25 = vpop.f32.mrf.mxu0 }
 0x5d5   : > { %v10447_v43 = vadd.f32 %v15619_v25, %v21258_v63  ;;  %v15734_v44 = vpop.f32.mrf.mxu1  ;;  %v21370_v49 = vadd.f32 %v10755_v62, %v10444_v11 }
 0x5d6   : > { %v10404_v5 = vpop.f32.mrf.mxu0 }
 0x5d7   : > { %v10445_v60 = vadd.f32 %v10404_v5, %v21260_v50  ;;  %v11171_v10 = vpop.f32.mrf.mxu1  ;;  %v21373_v9 = vadd.f32 %v15667_v52, %v10447_v43 }
 0x5d8   : > { %v15686_v29 = vpop.f32.mrf.mxu0 }
 0x5d9   : > { %v11036_v4 = vadd.f32 %v15686_v29, %v21266_v3  ;;  %v21376_v16 = vpop.f32.mrf.mxu1  ;;  %v21378_v59 = vadd.f32 %v10758_v24, %v10445_v60 }
 0x5da   : > { %v10907_v13 = vpop.f32.mrf.mxu0 }
 0x5db   : > { %v11034_v20 = vadd.f32 %v10907_v13, %v21269_v27  ;;  %v21381_v63 = vpop.f32.mrf.mxu1  ;;  %v21383_v1 = vadd.f32 %v15734_v44, %v11036_v4 }
 0x5dc   : > { %v15687_v51 = vpop.f32.mrf.mxu0 }
 0x5dd   : > { %v21386_v50 = vadd.f32 %v15687_v51, %v21272_v38  ;;  %v15738_v21 = vpop.f32.mrf.mxu1  ;;  %v21388_v23 = vadd.f32 %v11171_v10, %v11034_v20 }
 0x5de   : > { %v10910_v40 = vpop.f32.mrf.mxu0 }
 0x5df   : > { %v21391_v3 = vadd.f32 %v10910_v40, %v21277_v26  ;;  %v11187_v2 = vpop.f32.mrf.mxu1 }
 0x5e0   : > { %v15690_v48 = vpop.f32.mrf.mxu0 }
 0x5e1   : > { %v11040_v58 = vadd.f32 %v15690_v48, %v21280_v53  ;;  %v21394_v27 = vpop.f32.mrf.mxu1 }
 0x5e2   : > { %v10923_v56 = vpop.f32.mrf.mxu0 }
 0x5e3   : > { %v11038_v22 = vadd.f32 %v10923_v56, %v21283_v47  ;;  %v21397_v57 = vpop.f32.mrf.mxu1  ;;  %v21399_v38 = vadd.f32 %v15738_v21, %v11040_v58 }
 0x5e4   : > { %v15691_v62 = vpop.f32.mrf.mxu0 }
 0x5e5   : > { %v21402_v8 = vadd.f32 %v15691_v62, %v21286_v37  ;;  %v15742_v41 = vpop.f32.mrf.mxu1  ;;  %v21404_v26 = vadd.f32 %v11187_v2, %v11038_v22 }
 0x5e6   : > { %v10926_v52 = vpop.f32.mrf.mxu0 }
 0x5e7   : > { %v21407_v55 = vadd.f32 %v10926_v52, %v21291_v18  ;;  %v11203_v53 = vpop.f32.mrf.mxu1 }
 0x5e8   : > { %v15694_v11 = vpop.f32.mrf.mxu0 }
 0x5e9   : > { %v11044_v24 = vadd.f32 %v15694_v11, %v21294_v15  ;;  %v21410_v47 = vpop.f32.mrf.mxu1 }
 0x5ea   : > { %v10939_v25 = vpop.f32.mrf.mxu0 }
 0x5eb   : > { %v11042_v43 = vadd.f32 %v10939_v25, %v21297_v36  ;;  %v21413_v44 = vpop.f32.mrf.mxu1  ;;  %v21415_v37 = vadd.f32 %v15742_v41, %v11044_v24 }
 0x5ec   : > { %v15695_v5 = vpop.f32.mrf.mxu0 }
 0x5ed   : > { %v21418_v60 = vadd.f32 %v15695_v5, %v21300_v31  ;;  %v15746_v10 = vpop.f32.mrf.mxu1  ;;  %v21420_v18 = vadd.f32 %v11203_v53, %v11042_v43 }
 0x5ee   : > { %v10942_v29 = vpop.f32.mrf.mxu0 }
 0x5ef   : > { %v21423_v4 = vadd.f32 %v10942_v29, %v21305_v28  ;;  %v11219_v15 = vpop.f32.mrf.mxu1 }
 0x5f0   : > { %v15698_v13 = vpop.f32.mrf.mxu0 }
 0x5f1   : > { %v11048_v20 = vadd.f32 %v15698_v13, %v21308_v34  ;;  %v21426_v36 = vpop.f32.mrf.mxu1 }
 0x5f2   : > { %v10955_v51 = vpop.f32.mrf.mxu0 }
 0x5f3   : > { %v11046_v21 = vadd.f32 %v10955_v51, %v21311_v46  ;;  %v21429_v40 = vpop.f32.mrf.mxu1  ;;  %v21431_v31 = vadd.f32 %v15746_v10, %v11048_v20 }
 0x5f4   : > { %v15699_v2 = vpop.f32.mrf.mxu0 }
 0x5f5   : > { %v21434_v48 = vadd.f32 %v15699_v2, %v21314_v7  ;;  %v15750_v58 = vpop.f32.mrf.mxu1  ;;  %v21436_v28 = vadd.f32 %v11219_v15, %v11046_v21 }
 0x5f6   : > { %v10958_v56 = vpop.f32.mrf.mxu0 }
 0x5f7   : > { %v21439_v22 = vadd.f32 %v10958_v56, %v21320_v61  ;;  %v11235_v34 = vpop.f32.mrf.mxu1 }
 0x5f8   : > { %v15702_v62 = vpop.f32.mrf.mxu0 }
 0x5f9   : > { %v11052_v41 = vadd.f32 %v15702_v62, %v21323_v17  ;;  %v21442_v46 = vpop.f32.mrf.mxu1 }
 0x5fa   : > { %v10971_v52 = vpop.f32.mrf.mxu0 }
 0x5fb   : > { %v11050_v53 = vadd.f32 %v10971_v52, %v21328_v19  ;;  %v21445_v11 = vpop.f32.mrf.mxu1  ;;  %v21447_v7 = vadd.f32 %v15750_v58, %v11052_v41 }
 0x5fc   : > { %22984 = vst [vmem:[#allocation177_spill] sm:$0xff] %v21445_v11  ;;  %v15703_v24 = vpop.f32.mrf.mxu0 }
 0x5fd   : > { %v21450_v25 = vadd.f32 %v15703_v24, %v21331_v12  ;;  %v15754_v43 = vpop.f32.mrf.mxu1  ;;  %v21452_v61 = vadd.f32 %v11235_v34, %v11050_v53 }
 0x5fe   : > { %v10974_v5 = vpop.f32.mrf.mxu0 }
 0x5ff   : > { %v21455_v10 = vadd.f32 %v10974_v5, %v21336_v14  ;;  %v11251_v17 = vpop.f32.mrf.mxu1 }
 0x600   : > { %v15706_v29 = vpop.f32.mrf.mxu0 }
 0x601   : > { %22985 = vst [vmem:[#allocation162_spill] sm:$0xff] %v21455_v10  ;;  %v11056_v15 = vadd.f32 %v15706_v29, %v21339_v42  ;;  %v21458_v19 = vpop.f32.mrf.mxu1 }
 0x602   : > { %22986 = vst [vmem:[#allocation16_spill] sm:$0xff] %v21458_v19  ;;  %v10987_v13 = vpop.f32.mrf.mxu0 }
 0x603   : > { %v11054_v20 = vadd.f32 %v10987_v13, %v21342_v39  ;;  %v21461_v51 = vpop.f32.mrf.mxu1  ;;  %v21463_v12 = vadd.f32 %v15754_v43, %v11056_v15 }
 0x604   : > { %22987 = vst [vmem:[#allocation181_spill] sm:$0xff] %v21461_v51  ;;  %v15707_v21 = vpop.f32.mrf.mxu0 }
 0x605   : > { %v21466_v2 = vadd.f32 %v15707_v21, %v21345_v6  ;;  %v15758_v58 = vpop.f32.mrf.mxu1  ;;  %v21468_v14 = vadd.f32 %v11251_v17, %v11054_v20 }
 0x606   : > { %v10990_v56 = vpop.f32.mrf.mxu0 }
 0x607   : > { %22988 = vst [vmem:[#allocation146_spill] sm:$0xff] %v21466_v2  ;;  %v21471_v34 = vadd.f32 %v10990_v56, %v21351_v0  ;;  %v11267_v42 = vpop.f32.mrf.mxu1 }
 0x608   : > { %v15710_v62 = vpop.f32.mrf.mxu0 }
 0x609   : > { %22989 = vst [vmem:[#allocation159_spill] sm:$0xff] %v21471_v34  ;;  %v11060_v41 = vadd.f32 %v15710_v62, %v21354_v32  ;;  %v21474_v39 = vpop.f32.mrf.mxu1 }
 0x60a   : > { %22990 = vst [vmem:[#allocation163_spill] sm:$0xff] %v21474_v39  ;;  %v11003_v52 = vpop.f32.mrf.mxu0 }
 0x60b   : > { %v11058_v53 = vadd.f32 %v11003_v52, %v21358_v45  ;;  %v21477_v24 = vpop.f32.mrf.mxu1  ;;  %v21479_v6 = vadd.f32 %v15758_v58, %v11060_v41 }
 0x60c   : > { %22991 = vst [vmem:[#allocation185_spill] sm:$0xff] %v21477_v24  ;;  %v15711_v43 = vpop.f32.mrf.mxu0 }
 0x60d   : > { %v21482_v5 = vadd.f32 %v15711_v43, %v21361_v33  ;;  %v15762_v17 = vpop.f32.mrf.mxu1  ;;  %v21484_v0 = vadd.f32 %v11267_v42, %v11058_v53 }
 0x60e   : > { %v11006_v29 = vpop.f32.mrf.mxu0 }
 0x60f   : > { %22992 = vst [vmem:[#allocation167_spill] sm:$0xff] %v21482_v5  ;;  %v21487_v15 = vadd.f32 %v11006_v29, %v21364_v35  ;;  %v11283_v32 = vpop.f32.mrf.mxu1 }
 0x610   : > { %v15714_v13 = vpop.f32.mrf.mxu0 }
 0x611   : > { %22993 = vst [vmem:[#allocation164_spill] sm:$0xff] %v21487_v15  ;;  %v11064_v20 = vadd.f32 %v15714_v13, %v21367_v30  ;;  %v21490_v45 = vpop.f32.mrf.mxu1 }
 0x612   : > { %22994 = vst [vmem:[#allocation166_spill] sm:$0xff] %v21490_v45  ;;  %v11019_v21 = vpop.f32.mrf.mxu0 }
 0x613   : > { %v11062_v58 = vadd.f32 %v11019_v21, %v21370_v49  ;;  %v21493_v56 = vadd.f32 %v15762_v17, %v11064_v20  ;;  %v21495_v62 = vpop.f32.mrf.mxu1 }
 0x614   : > { %v15715_v33 = vpop.f32.mrf.mxu0  ;;  %22995 = vst [vmem:[#allocation195_spill] sm:$0xff] %v21495_v62 }
 0x615   : > { %v21498_v42 = vadd.f32 %v15715_v33, %v21373_v9  ;;  %v21500_v41 = vadd.f32 %v11283_v32, %v11062_v58  ;;  %v21505_v53 = vpop.f32.mrf.mxu1 }
 0x616   : > { %v11022_v35 = vpop.f32.mrf.mxu0 }
 0x617   : > { %22996 = vst [vmem:[#allocation189_spill] sm:$0xff] %v21498_v42  ;;  %v21503_v52 = vadd.f32 %v11022_v35, %v21378_v59  ;;  %v21513_v13 = vpop.f32.mrf.mxu1 }
 0x618   : > { %v15782_v30 = vpop.f32.mrf.mxu0 }
 0x619   : > { %22997 = vst [vmem:[#allocation171_spill] sm:$0xff] %v21503_v52  ;;  %v21508_v43 = vadd.f32 %v15782_v30, %v21383_v1  ;;  %v21517_v20 = vpop.f32.mrf.mxu1 }
 0x61a   : > { %v11734_v49 = vpop.f32.mrf.mxu0 }
 0x61b   : > { %v21511_v17 = vadd.f32 %v11734_v49, %v21388_v23  ;;  %v21527_v33 = vpop.f32.mrf.mxu1 }
 0x61c   : > { %v15783_v29 = vpop.f32.mrf.mxu0 }
 0x61d   : > { %v21531_v30 = vpop.f32.mrf.mxu1 }
 0x61e   : > { %v21515_v9 = vpop.f32.mrf.mxu0 }
 0x620   : > { %v15786_v32 = vpop.f32.mrf.mxu0 }
 0x621   : > { %v21520_v59 = vadd.f32 %v15786_v32, %v21399_v38 }
 0x622   : > { %v11750_v21 = vpop.f32.mrf.mxu0 }
 0x623   : > { %v21523_v58 = vadd.f32 %v11750_v21, %v21404_v26  ;;  %v21541_v26 = vpop.f32.mrf.mxu1 }
 0x624   : > { %v21525_v1 = vpop.f32.mrf.mxu0 }
 0x625   : > { %v21545_v45 = vpop.f32.mrf.mxu1 }
 0x626   : > { %v21529_v23 = vpop.f32.mrf.mxu0 }
 0x628   : > { %v15790_v35 = vpop.f32.mrf.mxu0 }
 0x629   : > { %v21534_v49 = vadd.f32 %v15790_v35, %v21415_v37 }
 0x62a   : > { %v11766_v62 = vpop.f32.mrf.mxu0 }
 0x62b   : > { %v21537_v38 = vadd.f32 %v11766_v62, %v21420_v18  ;;  %v21555_v18 = vpop.f32.mrf.mxu1 }
 0x62c   : > { %v21539_v32 = vpop.f32.mrf.mxu0 }
 0x62d   : > { %v21559_v39 = vpop.f32.mrf.mxu1 }
 0x62e   : > { %v21543_v21 = vpop.f32.mrf.mxu0 }
 0x630   : > { %v15794_v52 = vpop.f32.mrf.mxu0 }
 0x631   : > { %v21548_v42 = vadd.f32 %v15794_v52, %v21431_v31 }
 0x632   : > { %v11782_v24 = vpop.f32.mrf.mxu0 }
 0x633   : > { %v21551_v37 = vadd.f32 %v11782_v24, %v21436_v28  ;;  %v21569_v28 = vpop.f32.mrf.mxu1 }
 0x634   : > { %v21553_v35 = vpop.f32.mrf.mxu0 }
 0x635   : > { %v21573_v19 = vpop.f32.mrf.mxu1 }
 0x636   : > { %v21557_v62 = vpop.f32.mrf.mxu0 }
 0x638   : > { %v15798_v15 = vpop.f32.mrf.mxu0 }
 0x639   : > { %v21562_v5 = vadd.f32 %v15798_v15, %v21447_v7 }
 0x63a   : > { %v11798_v51 = vpop.f32.mrf.mxu0 }
 0x63b   : > { %22998 = vst [vmem:[#allocation168_spill] sm:$0xff] %v21562_v5  ;;  %v21565_v31 = vadd.f32 %v11798_v51, %v21452_v61  ;;  %v21583_v61 = vpop.f32.mrf.mxu1 }
 0x63c   : > { %v21567_v52 = vpop.f32.mrf.mxu0 }
 0x63d   : > { %22999 = vst [vmem:[#allocation170_spill] sm:$0xff] %v21565_v31  ;;  %23000 = vst [vmem:[#allocation175_spill] sm:$0xff] %v21567_v52  ;;  %v21587_v10 = vpop.f32.mrf.mxu1 }
 0x63e   : > { %v21571_v24 = vpop.f32.mrf.mxu0 }
 0x63f   : > { %23001 = vst [vmem:[#allocation172_spill] sm:$0xff] %v21571_v24 }
 0x640   : > { %v15802_v34 = vpop.f32.mrf.mxu0 }
 0x641   : > { %v21576_v2 = vadd.f32 %v15802_v34, %v21463_v12 }
 0x642   : > { %v11814_v11 = vpop.f32.mrf.mxu0 }
 0x643   : > { %23002 = vst [vmem:[#allocation174_spill] sm:$0xff] %v21576_v2  ;;  %v21579_v7 = vadd.f32 %v11814_v11, %v21468_v14  ;;  %v21597_v11 = vpop.f32.mrf.mxu1 }
 0x644   : > { %v21581_v15 = vpop.f32.mrf.mxu0 }
 0x645   : > { %23003 = vst [vmem:[#allocation179_spill] sm:$0xff] %v21579_v7  ;;  %23004 = vst [vmem:[#allocation176_spill] sm:$0xff] %v21581_v15  ;;  %v21601_v2 = vpop.f32.mrf.mxu1 }
 0x646   : > { %v21585_v51 = vpop.f32.mrf.mxu0 }
 0x647   : > { %23005 = vst [vmem:[#allocation198_spill] sm:$0xff] %v21585_v51 }
 0x648   : > { %v15806_v31 = vpop.f32.mrf.mxu0 }
 0x649   : > { %v21590_v24 = vadd.f32 %v15806_v31, %v21479_v6  ;;  %v23012_v31 = vld [vmem:[#allocation12_spill] sm:$0xff] }
 0x64a   : > { %v11830_v5 = vpop.f32.mrf.mxu0 }
 0x64b   : > { %23006 = vst [vmem:[#allocation202_spill] sm:$0xff] %v21590_v24  ;;  %v21593_v12 = vadd.f32 %v11830_v5, %v21484_v0  ;;  %v12453_v24 = vsub.s32 4, %v23012_v31  ;;  %v11301_v0 = vadd.f32 %v21376_v16, %v21386_v50 }
 0x64c   : > { %v21595_v34 = vpop.f32.mrf.mxu0 }
 0x64d   : > { %23007 = vst [vmem:[#allocation178_spill] sm:$0xff] %v21593_v12  ;;  %23008 = vst [vmem:[#allocation206_spill] sm:$0xff] %v21595_v34  ;;  %v21614_v12 = vpop.f32.mrf.mxu1  ;;  %v11864_v52 = vadd.f32 %v15783_v29, %v11301_v0 }
 0x64e   : > { %v21599_v14 = vpop.f32.mrf.mxu0 }
 0x64f   : > { %23009 = vst [vmem:[#allocation210_spill] sm:$0xff] %v21599_v14  ;;  %v12489_v14 = vsub.s32 5, %v23012_v31  ;;  %v12143_v29 = vadd.f32 %v21517_v20, %v11864_v52 }
 0x650   : > { %v15810_v7 = vpop.f32.mrf.mxu0 }
 0x651   : > { %v21604_v51 = vadd.f32 %v15810_v7, %v21493_v56  ;;  %v11299_v56 = vadd.f32 %v21381_v63, %v21391_v3  ;;  %v16244_v7 = vld [vmem:[%s21856_s4] sm:$0xff]  ;;  %v12140_v63 = vadd.f32 %v21513_v13, %v21511_v17 }
 0x652   : > { %v11846_v15 = vpop.f32.mrf.mxu0 }
 0x653   : > { %23010 = vst [vmem:[#allocation183_spill] sm:$0xff] %v21604_v51  ;;  %v21607_v6 = vadd.f32 %v11846_v15, %v21500_v41  ;;  %v12142_v41 = vadd.f32 %v21505_v53, %v21508_v43  ;;  %v21626_v15 = vrot.slane %v16244_v7, %v12453_v24  ;;  %v11862_v50 = vadd.f32 %v21515_v9, %v11299_v56 }
 0x654   : > { %v21610_v5 = vpop.f32.mrf.mxu0  ;;  %v11305_v24 = vadd.f32 %v21394_v27, %v21402_v8  ;;  %v11303_v27 = vadd.f32 %v21397_v57, %v21407_v55  ;;  %v12146_v8 = vadd.f32 %v21531_v30, %v21520_v59  ;;  %v23014_v59 = vld [vmem:[#allocation140_spill] sm:$0xff] }
 0x655   : > { %23011 = vst [vmem:[#allocation180_spill] sm:$0xff] %v21607_v6  ;;  %v21629_v6 = vpop.f32.mrf.mxu1 }
 0x656   : > { %v21617_v34 = vpop.f32.mrf.mxu0  ;;  %v11868_v17 = vadd.f32 %v21525_v1, %v11305_v24 }
 0x657   : > { %23013 = vst [vmem:[#allocation182_spill] sm:$0xff] %v21617_v34  ;;  %v21631_v34 = vrot.slane %v16244_v7, %v12489_v14  ;;  %v21639_v51 = vpop.f32.mrf.mxu1 }
 0x658   : > { %v15878_v16 = vpop.f32.mrf.mxu0  ;;  %v12147_v55 = vadd.f32 %v21545_v45, %v11868_v17 }
 0x659   : > { %v12421_v31 = vadd.f32 %v15878_v16, %v12142_v41  ;;  %v12141_v41 = vadd.f32 %v21527_v33, %v11862_v50  ;;  %v21653_v33 = vpop.f32.mrf.mxu1 }
 0x65a   : > { %v12292_v3 = vpop.f32.mrf.mxu0 }
 0x65b   : > { %v12457_v53 = vmul.f32 %v21626_v15, %v12421_v31  ;;  %v12419_v43 = vadd.f32 %v12292_v3, %v12140_v63  ;;  %v12144_v63 = vadd.f32 %v21541_v26, %v21523_v58 }
 0x65c   : > { %v15879_v0 = vpop.f32.mrf.mxu0 }
 0x65d   : > { %v12493_v9 = vadd.f32 %v21631_v34, %v12457_v53  ;;  %v12455_v14 = vmul.f32 %v21626_v15, %v12419_v43  ;;  %v12422_v56 = vadd.f32 %v15879_v0, %v12143_v29  ;;  %v11866_v43 = vadd.f32 %v21529_v23, %v11303_v27  ;;  %v23015_v23 = vld [vmem:[#allocation82_spill] sm:$0xff] }
 0x65e   : > { %v12295_v13 = vpop.f32.mrf.mxu0 }
 0x65f   : > { %v12525_v7 = vmax.f32 %v12493_v9, 0.0  ;;  %v12491_v16 = vadd.f32 %v21631_v34, %v12455_v14  ;;  %v12458_v20 = vmul.f32 %v21626_v15, %v12422_v56  ;;  %v12420_v52 = vadd.f32 %v12295_v13, %v12141_v41  ;;  %v21665_v14 = vpop.f32.mrf.mxu1 }
 0x660   : > { %v15882_v31 = vpop.f32.mrf.mxu0 }
 0x661   : > { %v12589_v1 = vadd.f32 %v12525_v7, %v20282_v54  ;;  %v12523_v50 = vmax.f32 %v12491_v16, 0.0  ;;  %v12494_v3 = vadd.f32 %v21631_v34, %v12458_v20  ;;  %v12456_v53 = vmul.f32 %v21626_v15, %v12420_v52  ;;  %v23016_v52 = vld [vmem:[#allocation143_spill] sm:$0xff] }
 0x662   : > { %v12425_v29 = vadd.f32 %v15882_v31, %v12146_v8  ;;  %v12308_v57 = vpop.f32.mrf.mxu0  ;;  %v11309_v54 = vadd.f32 %v21410_v47, %v21418_v60  ;;  %v12145_v60 = vadd.f32 %v21555_v18, %v11866_v43  ;;  %v12150_v16 = vadd.f32 %v21559_v39, %v21534_v49 }
 0x663   : > { %v12587_v30 = vadd.f32 %v12523_v50, %v23014_v59  ;;  %v12526_v24 = vmax.f32 %v12494_v3, 0.0  ;;  %v12492_v58 = vadd.f32 %v21631_v34, %v12456_v53  ;;  %v12423_v26 = vadd.f32 %v12308_v57, %v12144_v63  ;;  %v21688_v53 = vpop.f32.mrf.mxu1  ;;  %v23017_v57 = vld [vmem:[#allocation147_spill] sm:$0xff] }
 0x664   : > { %v12461_v0 = vmul.f32 %v21626_v15, %v12425_v29  ;;  %v15883_v9 = vpop.f32.mrf.mxu0  ;;  %v11872_v17 = vadd.f32 %v21539_v32, %v11309_v54  ;;  %v11307_v31 = vadd.f32 %v21413_v44, %v21423_v4  ;;  %v12148_v18 = vadd.f32 %v21569_v28, %v21537_v38 }
 0x665   : > { %v12590_v56 = vadd.f32 %v12526_v24, %v23015_v23  ;;  %v12524_v41 = vmax.f32 %v12492_v58, 0.0  ;;  %v12459_v13 = vmul.f32 %v21626_v15, %v12423_v26  ;;  %v12426_v45 = vadd.f32 %v15883_v9, %v12147_v55  ;;  %v23018_v24 = vld [vmem:[#allocation145_spill] sm:$0xff] }
 0x666   : > { %v12497_v47 = vadd.f32 %v21631_v34, %v12461_v0  ;;  %v12311_v7 = vpop.f32.mrf.mxu0  ;;  %v11870_v29 = vadd.f32 %v21543_v21, %v11307_v31  ;;  %v12151_v59 = vadd.f32 %v21573_v19, %v11872_v17  ;;  %v11313_v26 = vadd.f32 %v21426_v36, %v21434_v48  ;;  %v21702_v0 = vpop.f32.mrf.mxu1  ;;  %v23019_v9 = vld [vmem:[#allocation149_spill] sm:$0xff] }
 0x667   : > { %v13847_v20 = vpack.c.bf16 %v12590_v56, %v12589_v1  ;;  %v12588_v27 = vadd.f32 %v12524_v41, %v23016_v52  ;;  %v12495_v32 = vadd.f32 %v21631_v34, %v12459_v13  ;;  %v12462_v8 = vmul.f32 %v21626_v15, %v12426_v45  ;;  %v23020_v52 = vld [vmem:[#allocation153_spill] sm:$0xff] }
 0x668   : > { %v12529_v63 = vmax.f32 %v12497_v47, 0.0  ;;  %v12424_v50 = vadd.f32 %v12311_v7, %v12145_v60  ;;  %v15886_v3 = vpop.f32.mrf.mxu0  ;;  %v11876_v13 = vadd.f32 %v21553_v35, %v11313_v26  ;;  %v12149_v17 = vadd.f32 %v21583_v61, %v11870_v29 }
 0x669   : > { %13949 = vst [vmem:[%s21675_s13 + $0x8] sm:$0xff] %v13847_v20   ;;  %v13842_v39 = vpack.c.bf16 %v12588_v27, %v12587_v30  ;;  %v12527_v49 = vmax.f32 %v12495_v32, 0.0  ;;  %v12498_v1 = vadd.f32 %v21631_v34, %v12462_v8  ;;  %v12429_v43 = vadd.f32 %v15886_v3, %v12150_v16  ;;  %v21718_v8 = vpop.f32.mrf.mxu1 }
 0x66a   : > { %v12593_v55 = vadd.f32 %v12529_v63, %v23017_v57  ;;  %v12460_v44 = vmul.f32 %v21626_v15, %v12424_v50  ;;  %v12324_v4 = vpop.f32.mrf.mxu0  ;;  %v12154_v36 = vadd.f32 %v21587_v10, %v21548_v42  ;;  %v11311_v20 = vadd.f32 %v21429_v40, %v21439_v22  ;;  %v23021_v10 = vld [vmem:[#allocation130_spill] sm:$0xff] }
 0x66b   : > { %13843 = vst [vmem:[%s21675_s13] sm:$0xff] %v13842_v39   ;;  %v12591_v38 = vadd.f32 %v12527_v49, %v23018_v24  ;;  %v12530_v28 = vmax.f32 %v12498_v1, 0.0  ;;  %v12465_v58 = vmul.f32 %v21626_v15, %v12429_v43  ;;  %v12427_v30 = vadd.f32 %v12324_v4, %v12148_v18  ;;  %v23022_v49 = vld [vmem:[#allocation77_spill] sm:$0xff] }
 0x66c   : > { %v12496_v54 = vadd.f32 %v21631_v34, %v12460_v44  ;;  %v15887_v21 = vpop.f32.mrf.mxu0  ;;  %v12152_v61 = vadd.f32 %v21597_v11, %v21551_v37  ;;  %v11874_v3 = vadd.f32 %v21557_v62, %v11311_v20  ;;  %v12155_v39 = vadd.f32 %v21601_v2, %v11876_v13  ;;  %v21732_v62 = vpop.f32.mrf.mxu1  ;;  %v23023_v44 = vld [vmem:[#allocation80_spill] sm:$0xff] }
 0x66d   : > { %v12594_v23 = vadd.f32 %v12530_v28, %v23019_v9  ;;  %v12501_v56 = vadd.f32 %v21631_v34, %v12465_v58  ;;  %v12463_v19 = vmul.f32 %v21626_v15, %v12427_v30  ;;  %v12430_v41 = vadd.f32 %v15887_v21, %v12151_v59  ;;  %v23028_v13 = vld [vmem:[#allocation148_spill] sm:$0xff] }
 0x66e   : > { %v12528_v45 = vmax.f32 %v12496_v54, 0.0  ;;  %v12327_v47 = vpop.f32.mrf.mxu0  ;;  %v11317_v29 = vadd.f32 %v21442_v46, %v21450_v25  ;;  %v12153_v30 = vadd.f32 %v21614_v12, %v11874_v3  ;;  %v23025_v25 = vld [vmem:[#allocation168_spill] sm:$0xff]  ;;  %v23033_v3 = vld [vmem:[#allocation146_spill] sm:$0xff] }
 0x66f   : > { %v13857_v48 = vpack.c.bf16 %v12594_v23, %v12593_v55  ;;  %v12533_v60 = vmax.f32 %v12501_v56, 0.0  ;;  %v12499_v7 = vadd.f32 %v21631_v34, %v12463_v19  ;;  %v12466_v16 = vmul.f32 %v21626_v15, %v12430_v41  ;;  %v23026_v56 = vld [vmem:[#allocation162_spill] sm:$0xff]  ;;  %v23027_v19 = vld [vmem:[#allocation177_spill] sm:$0xff] }
 0x670   : > { %v12592_v27 = vadd.f32 %v12528_v45, %v23020_v52  ;;  %v12428_v32 = vadd.f32 %v12327_v47, %v12149_v17  ;;  %v15890_v35 = vpop.f32.mrf.mxu0  ;;  %v12158_v26 = vadd.f32 %v21629_v6, %v23025_v25  ;;  %v11315_v41 = vadd.f32 %v23027_v19, %v23026_v56  ;;  %v23030_v6 = vld [vmem:[#allocation151_spill] sm:$0xff]  ;;  %v23031_v52 = vld [vmem:[#allocation172_spill] sm:$0xff] }
 0x671   : > { %13951 = vst [vmem:[%s21675_s13 + $0x18] sm:$0xff] %v13857_v48   ;;  %v12597_v42 = vadd.f32 %v12533_v60, %v23021_v10  ;;  %v12531_v31 = vmax.f32 %v12499_v7, 0.0  ;;  %v12502_v63 = vadd.f32 %v21631_v34, %v12466_v16  ;;  %v12433_v50 = vadd.f32 %v15890_v35, %v12154_v36  ;;  %v23029_v36 = vld [vmem:[#allocation170_spill] sm:$0xff]  ;;  %v21748_v48 = vpop.f32.mrf.mxu1 }
 0x672   : > { %v13852_v40 = vpack.c.bf16 %v12592_v27, %v12591_v38  ;;  %v12464_v22 = vmul.f32 %v21626_v15, %v12428_v32  ;;  %v12340_v18 = vpop.f32.mrf.mxu0  ;;  %v23024_v38 = vld [vmem:[#allocation175_spill] sm:$0xff]  ;;  %v12156_v12 = vadd.f32 %v21639_v51, %v23029_v36  ;;  %v11878_v27 = vadd.f32 %v23031_v52, %v11315_v41 }
 0x673   : > { %v12595_v37 = vadd.f32 %v12531_v31, %v23022_v49  ;;  %v12534_v11 = vmax.f32 %v12502_v63, 0.0  ;;  %v12469_v1 = vmul.f32 %v21626_v15, %v12433_v50  ;;  %v12431_v43 = vadd.f32 %v12340_v18, %v12152_v61  ;;  %v12109_v49 = vpop.f32.mrf.mxu1 }
 0x674   : > { %13950 = vst [vmem:[%s21675_s13 + $0x10] sm:$0xff] %v13852_v40   ;;  %v12500_v57 = vadd.f32 %v21631_v34, %v12464_v22  ;;  %v15891_v55 = vpop.f32.mrf.mxu0  ;;  %v11880_v28 = vadd.f32 %v23024_v38, %v11317_v29  ;;  %v23034_v40 = vld [vmem:[#allocation16_spill] sm:$0xff] }
 0x675   : > { %v12598_v4 = vadd.f32 %v12534_v11, %v23023_v44  ;;  %v12505_v59 = vadd.f32 %v21631_v34, %v12469_v1  ;;  %v12467_v2 = vmul.f32 %v21626_v15, %v12431_v43  ;;  %v12434_v24 = vadd.f32 %v15891_v55, %v12155_v39  ;;  %v23036_v29 = vld [vmem:[#allocation176_spill] sm:$0xff]  ;;  %v15855_v56 = vpop.f32.mrf.mxu1 }
 0x676   : > { %v12532_v58 = vmax.f32 %v12500_v57, 0.0  ;;  %v12343_v46 = vpop.f32.mrf.mxu0  ;;  %v12159_v10 = vadd.f32 %v21653_v33, %v11880_v28  ;;  %v11321_v22 = vadd.f32 %v23034_v40, %v23033_v3  ;;  %v12157_v44 = vadd.f32 %v21665_v14, %v11878_v27  ;;  %v23045_v27 = vld [vmem:[#allocation167_spill] sm:$0xff]  ;;  %v23048_v3 = vld [vmem:[#allocation206_spill] sm:$0xff] }
 0x677   : > { %v13867_v54 = vpack.c.bf16 %v12598_v4, %v12597_v42  ;;  %v12537_v21 = vmax.f32 %v12505_v59, 0.0  ;;  %v12503_v9 = vadd.f32 %v21631_v34, %v12467_v2  ;;  %v12470_v23 = vmul.f32 %v21626_v15, %v12434_v24  ;;  %v23032_v42 = vld [vmem:[#allocation150_spill] sm:$0xff] }
 0x678   : > { %v12596_v45 = vadd.f32 %v12532_v58, %v23028_v13  ;;  %v12432_v17 = vadd.f32 %v12343_v46, %v12153_v30  ;;  %v15894_v47 = vpop.f32.mrf.mxu0  ;;  %v11884_v57 = vadd.f32 %v23036_v29, %v11321_v22  ;;  %v23037_v59 = vld [vmem:[#allocation174_spill] sm:$0xff]  ;;  %v23038_v30 = vld [vmem:[#allocation159_spill] sm:$0xff]  ;;  %v23039_v46 = vld [vmem:[#allocation181_spill] sm:$0xff] }
 0x679   : > { %13953 = vst [vmem:[%s21675_s13 + $0x28] sm:$0xff] %v13867_v54   ;;  %v12601_v60 = vadd.f32 %v12537_v21, %v23030_v6  ;;  %v12535_v7 = vmax.f32 %v12503_v9, 0.0  ;;  %v12506_v16 = vadd.f32 %v21631_v34, %v12470_v23  ;;  %v12437_v20 = vadd.f32 %v15894_v47, %v12158_v26  ;;  %v23040_v26 = vld [vmem:[#allocation157_spill] sm:$0xff]  ;;  %v23041_v23 = vld [vmem:[#allocation179_spill] sm:$0xff] }
 0x67a   : > { %v13862_v32 = vpack.c.bf16 %v12596_v45, %v12595_v37  ;;  %v12468_v35 = vmul.f32 %v21626_v15, %v12432_v17  ;;  %v12356_v61 = vpop.f32.mrf.mxu0  ;;  %v23035_v37 = vld [vmem:[#allocation154_spill] sm:$0xff]  ;;  %v12162_v2 = vadd.f32 %v21688_v53, %v23037_v59  ;;  %v11319_v25 = vadd.f32 %v23039_v46, %v23038_v30  ;;  %v23042_v53 = vld [vmem:[#allocation133_spill] sm:$0xff] }
 0x67b   : > { %v12599_v51 = vadd.f32 %v12535_v7, %v23032_v42  ;;  %v12538_v31 = vmax.f32 %v12506_v16, 0.0  ;;  %v12473_v63 = vmul.f32 %v21626_v15, %v12437_v20  ;;  %v12435_v50 = vadd.f32 %v12356_v61, %v12156_v12  ;;  %v23043_v17 = vld [vmem:[#allocation198_spill] sm:$0xff]  ;;  %v12112_v42 = vpop.f32.mrf.mxu1 }
 0x67c   : > { %13952 = vst [vmem:[%s21675_s13 + $0x20] sm:$0xff] %v13862_v32   ;;  %v12504_v18 = vadd.f32 %v21631_v34, %v12468_v35  ;;  %v15895_v39 = vpop.f32.mrf.mxu0  ;;  %v12160_v14 = vadd.f32 %v21702_v0, %v23041_v23  ;;  %v11882_v47 = vadd.f32 %v23043_v17, %v11319_v25  ;;  %v23044_v7 = vld [vmem:[#allocation158_spill] sm:$0xff]  ;;  %v23046_v32 = vld [vmem:[#allocation163_spill] sm:$0xff] }
 0x67d   : > { %v12602_v11 = vadd.f32 %v12538_v31, %v23035_v37  ;;  %v12509_v1 = vadd.f32 %v21631_v34, %v12473_v63  ;;  %v12471_v33 = vmul.f32 %v21626_v15, %v12435_v50  ;;  %v12438_v43 = vadd.f32 %v15895_v39, %v12159_v10  ;;  %v23049_v37 = vld [vmem:[#allocation202_spill] sm:$0xff] }
 0x67e   : > { %v12536_v55 = vmax.f32 %v12504_v18, 0.0  ;;  %v12359_v4 = vpop.f32.mrf.mxu0  ;;  %v11325_v35 = vadd.f32 %v23046_v32, %v23045_v27  ;;  %v12161_v18 = vadd.f32 %v21732_v62, %v11882_v47  ;;  %v15858_v62 = vpop.f32.mrf.mxu1  ;;  %v23058_v17 = vld [vmem:[#allocation166_spill] sm:$0xff] }
 0x67f   : > { %v13877_v24 = vpack.c.bf16 %v12602_v11, %v12601_v60  ;;  %v12541_v38 = vmax.f32 %v12509_v1, 0.0  ;;  %v12507_v28 = vadd.f32 %v21631_v34, %v12471_v33  ;;  %v12474_v58 = vmul.f32 %v21626_v15, %v12438_v43 }
 0x680   : > { %v12600_v54 = vadd.f32 %v12536_v55, %v23040_v26  ;;  %v12436_v21 = vadd.f32 %v12359_v4, %v12157_v44  ;;  %v15898_v9 = vpop.f32.mrf.mxu0  ;;  %v12163_v60 = vadd.f32 %v21718_v8, %v11884_v57  ;;  %v11888_v40 = vadd.f32 %v23048_v3, %v11325_v35  ;;  %v23050_v57 = vld [vmem:[#allocation164_spill] sm:$0xff]  ;;  %v23051_v55 = vld [vmem:[#allocation185_spill] sm:$0xff]  ;;  %v23055_v26 = vld [vmem:[#allocation210_spill] sm:$0xff] }
 0x681   : > { %13955 = vst [vmem:[%s21675_s13 + $0x38] sm:$0xff] %v13877_v24   ;;  %v12605_v19 = vadd.f32 %v12541_v38, %v23042_v53  ;;  %v12539_v41 = vmax.f32 %v12507_v28, 0.0  ;;  %v12510_v13 = vadd.f32 %v21631_v34, %v12474_v58  ;;  %v12441_v45 = vadd.f32 %v15898_v9, %v12162_v2  ;;  %v23052_v4 = vld [vmem:[#allocation156_spill] sm:$0xff]  ;;  %v23053_v38 = vld [vmem:[#allocation178_spill] sm:$0xff]  ;;  %v23054_v58 = vld [vmem:[#allocation129_spill] sm:$0xff] }
 0x682   : > { %v13872_v36 = vpack.c.bf16 %v12600_v54, %v12599_v51  ;;  %v12472_v12 = vmul.f32 %v21626_v15, %v12436_v21  ;;  %v12372_v6 = vpop.f32.mrf.mxu0  ;;  %v23047_v51 = vld [vmem:[#allocation152_spill] sm:$0xff]  ;;  %v12166_v11 = vadd.f32 %v21748_v48, %v23049_v37  ;;  %v11323_v44 = vadd.f32 %v23051_v55, %v23050_v57  ;;  %v23056_v53 = vld [vmem:[#allocation165_spill] sm:$0xff]  ;;  %v23060_v35 = vld [vmem:[#allocation183_spill] sm:$0xff] }
 0x683   : > { %v12603_v16 = vadd.f32 %v12539_v41, %v23044_v7  ;;  %v12542_v0 = vmax.f32 %v12510_v13, 0.0  ;;  %v12477_v20 = vmul.f32 %v21626_v15, %v12441_v45  ;;  %v12439_v52 = vadd.f32 %v12372_v6, %v12160_v14  ;;  %v23057_v45 = vld [vmem:[#allocation189_spill] sm:$0xff]  ;;  %v12125_v6 = vpop.f32.mrf.mxu1  ;;  %v23064_v37 = vld [vmem:[#allocation180_spill] sm:$0xff]  ;;  %v23066_v57 = vld [vmem:[#allocation182_spill] sm:$0xff] }
 0x684   : > { %13954 = vst [vmem:[%s21675_s13 + $0x30] sm:$0xff] %v13872_v36   ;;  %v12508_v61 = vadd.f32 %v21631_v34, %v12472_v12  ;;  %v15899_v10 = vpop.f32.mrf.mxu0  ;;  %v12164_v28 = vadd.f32 %v12109_v49, %v23053_v38  ;;  %v11886_v54 = vadd.f32 %v23055_v26, %v11323_v44  ;;  %v12167_v14 = vadd.f32 %v15855_v56, %v11888_v40  ;;  %v23063_v40 = vld [vmem:[#allocation128_spill] sm:$0xff] }
 0x685   : > { %v12606_v31 = vadd.f32 %v12542_v0, %v23047_v51  ;;  %v12513_v63 = vadd.f32 %v21631_v34, %v12477_v20  ;;  %v12475_v8 = vmul.f32 %v21626_v15, %v12439_v52  ;;  %v12442_v50 = vadd.f32 %v15899_v10, %v12163_v60  ;;  %v23059_v60 = vld [vmem:[#allocation160_spill] sm:$0xff] }
 0x686   : > { %v12540_v22 = vmax.f32 %v12508_v61, 0.0  ;;  %v12375_v39 = vpop.f32.mrf.mxu0  ;;  %v11329_v47 = vadd.f32 %v23058_v17, %v23057_v45  ;;  %v12165_v27 = vadd.f32 %v12112_v42, %v11886_v54  ;;  %v12170_v61 = vadd.f32 %v15858_v62, %v23060_v35  ;;  %v15859_v42 = vpop.f32.mrf.mxu1  ;;  %v23069_v45 = vld [vmem:[#allocation135_spill] sm:$0xff] }
 0x687   : > { %v13887_v1 = vpack.c.bf16 %v12606_v31, %v12605_v19  ;;  %v12545_v33 = vmax.f32 %v12513_v63, 0.0  ;;  %v12511_v43 = vadd.f32 %v21631_v34, %v12475_v8  ;;  %v12478_v29 = vmul.f32 %v21626_v15, %v12442_v50  ;;  %v23061_v8 = vld [vmem:[#allocation171_spill] sm:$0xff] }
 0x688   : > { %v12604_v59 = vadd.f32 %v12540_v22, %v23052_v4  ;;  %v12440_v2 = vadd.f32 %v12375_v39, %v12161_v18  ;;  %v15902_v24 = vpop.f32.mrf.mxu0  ;;  %v11892_v20 = vadd.f32 %v21610_v5, %v11329_v47  ;;  %v23062_v50 = vld [vmem:[#allocation195_spill] sm:$0xff]  ;;  %v12168_v5 = vadd.f32 %v12125_v6, %v23064_v37 }
 0x689   : > { %13957 = vst [vmem:[%s21675_s13 + $0x48] sm:$0xff] %v13887_v1   ;;  %v12609_v48 = vadd.f32 %v12545_v33, %v23054_v58  ;;  %v12543_v30 = vmax.f32 %v12511_v43, 0.0  ;;  %v12514_v46 = vadd.f32 %v21631_v34, %v12478_v29  ;;  %v12445_v25 = vadd.f32 %v15902_v24, %v12166_v11  ;;  %v23065_v11 = vld [vmem:[#allocation169_spill] sm:$0xff]  ;;  %v23067_v24 = vld [vmem:[#allocation155_spill] sm:$0xff] }
 0x68a   : > { %v13882_v21 = vpack.c.bf16 %v12604_v59, %v12603_v16  ;;  %v12476_v9 = vmul.f32 %v21626_v15, %v12440_v2  ;;  %v12388_v23 = vpop.f32.mrf.mxu0  ;;  %v11327_v3 = vadd.f32 %v23062_v50, %v23061_v8  ;;  %v12171_v2 = vadd.f32 %v15859_v42, %v11892_v20 }
 0x68b   : > { %v12607_v19 = vadd.f32 %v12543_v30, %v23056_v53  ;;  %v12546_v41 = vmax.f32 %v12514_v46, 0.0  ;;  %v12481_v49 = vmul.f32 %v21626_v15, %v12445_v25  ;;  %v12443_v13 = vadd.f32 %v12388_v23, %v12164_v28  ;;  %v12128_v46 = vpop.f32.mrf.mxu1  ;;  %v23068_v25 = vld [vmem:[#allocation136_spill] sm:$0xff] }
 0x68c   : > { %13956 = vst [vmem:[%s21675_s13 + $0x40] sm:$0xff] %v13882_v21   ;;  %v12512_v36 = vadd.f32 %v21631_v34, %v12476_v9  ;;  %v15903_v12 = vpop.f32.mrf.mxu0  ;;  %v11890_v55 = vadd.f32 %v23066_v57, %v11327_v3 }
 0x68d   : > { %v12610_v7 = vadd.f32 %v12546_v41, %v23059_v60  ;;  %v12517_v16 = vadd.f32 %v21631_v34, %v12481_v49  ;;  %v12479_v56 = vmul.f32 %v21626_v15, %v12443_v13  ;;  %v12446_v0 = vadd.f32 %v15903_v12, %v12167_v14 }
 0x68e   : > { %v12544_v52 = vmax.f32 %v12512_v36, 0.0  ;;  %v12391_v32 = vpop.f32.mrf.mxu0  ;;  %v12169_v14 = vadd.f32 %v12128_v46, %v11890_v55  ;;  %v23070_v36 = vld [vmem:[#allocation191_spill] sm:$0xff] }
 0x68f   : > { %v13897_v10 = vpack.c.bf16 %v12610_v7, %v12609_v48  ;;  %v12549_v51 = vmax.f32 %v12517_v16, 0.0  ;;  %v12515_v31 = vadd.f32 %v21631_v34, %v12479_v56  ;;  %v12482_v63 = vmul.f32 %v21626_v15, %v12446_v0  ;;  %v23071_v56 = vld [vmem:[#allocation161_spill] sm:$0xff] }
 0x690   : > { %v12608_v22 = vadd.f32 %v12544_v52, %v23063_v40  ;;  %v12444_v18 = vadd.f32 %v12391_v32, %v12165_v27  ;;  %v15906_v39 = vpop.f32.mrf.mxu0  ;;  %v23072_v27 = vld [vmem:[#allocation132_spill] sm:$0xff] }
 0x691   : > { %13959 = vst [vmem:[%s21675_s13 + $0x58] sm:$0xff] %v13897_v10   ;;  %v12613_v1 = vadd.f32 %v12549_v51, %v23065_v11  ;;  %v12547_v33 = vmax.f32 %v12515_v31, 0.0  ;;  %v12518_v43 = vadd.f32 %v21631_v34, %v12482_v63  ;;  %v12449_v29 = vadd.f32 %v15906_v39, %v12170_v61  ;;  %v23073_v10 = vld [vmem:[#allocation173_spill] sm:$0xff] }
 0x692   : > { %v13892_v44 = vpack.c.bf16 %v12608_v22, %v12607_v19  ;;  %v12480_v4 = vmul.f32 %v21626_v15, %v12444_v18  ;;  %v12404_v59 = vpop.f32.mrf.mxu0 }
 0x693   : > { %v12611_v38 = vadd.f32 %v12547_v33, %v23067_v24  ;;  %v12550_v28 = vmax.f32 %v12518_v43, 0.0  ;;  %v12485_v62 = vmul.f32 %v21626_v15, %v12449_v29  ;;  %v12447_v58 = vadd.f32 %v12404_v59, %v12168_v5 }
 0x694   : > { %13958 = vst [vmem:[%s21675_s13 + $0x50] sm:$0xff] %v13892_v44   ;;  %v12516_v48 = vadd.f32 %v21631_v34, %v12480_v4  ;;  %v15907_v30 = vpop.f32.mrf.mxu0 }
 0x695   : > { %v12614_v26 = vadd.f32 %v12550_v28, %v23068_v25  ;;  %v12521_v54 = vadd.f32 %v21631_v34, %v12485_v62  ;;  %v12483_v21 = vmul.f32 %v21626_v15, %v12447_v58  ;;  %v12450_v9 = vadd.f32 %v15907_v30, %v12171_v2 }
 0x696   : > { %v12548_v23 = vmax.f32 %v12516_v48, 0.0  ;;  %v12407_v53 = vpop.f32.mrf.mxu0 }
 0x697   : > { %v13907_v19 = vpack.c.bf16 %v12614_v26, %v12613_v1  ;;  %v12553_v41 = vmax.f32 %v12521_v54, 0.0  ;;  %v12519_v49 = vadd.f32 %v21631_v34, %v12483_v21  ;;  %v12486_v13 = vmul.f32 %v21626_v15, %v12450_v9 }
 0x698   : > { %v12612_v17 = vadd.f32 %v12548_v23, %v23069_v45  ;;  %v12448_v47 = vadd.f32 %v12407_v53, %v12169_v14 }
 0x699   : > { %13961 = vst [vmem:[%s21675_s13 + $0x68] sm:$0xff] %v13907_v19   ;;  %v12617_v12 = vadd.f32 %v12553_v41, %v23070_v36  ;;  %v12551_v6 = vmax.f32 %v12519_v49, 0.0  ;;  %v12522_v60 = vadd.f32 %v21631_v34, %v12486_v13 }
 0x69a   : > { %v13902_v7 = vpack.c.bf16 %v12612_v17, %v12611_v38  ;;  %v12484_v16 = vmul.f32 %v21626_v15, %v12448_v47 }
 0x69b   : > { %v12615_v0 = vadd.f32 %v12551_v6, %v23071_v56  ;;  %v12554_v20 = vmax.f32 %v12522_v60, 0.0 }
 0x69c   : > { %13960 = vst [vmem:[%s21675_s13 + $0x60] sm:$0xff] %v13902_v7   ;;  %v12520_v52 = vadd.f32 %v21631_v34, %v12484_v16 }
 0x69d   : > { %v12618_v32 = vadd.f32 %v12554_v20, %v23072_v27 }
 0x69e   : > { %v12552_v35 = vmax.f32 %v12520_v52, 0.0 }
 0x69f   : > { %v13917_v61 = vpack.c.bf16 %v12618_v32, %v12617_v12 }
 0x6a0   : > { %v12616_v51 = vadd.f32 %v12552_v35, %v23073_v10 }
 0x6a1   : > { %13963 = vst [vmem:[%s21675_s13 + $0x78] sm:$0xff] %v13917_v61  }
 0x6a2   : > { %v13912_v31 = vpack.c.bf16 %v12616_v51, %v12615_v0 }
 0x6a4   : > { %13962 = vst [vmem:[%s21675_s13 + $0x70] sm:$0xff] %v13912_v31  }
 0x6a5 PF: > { %s17_s18 = sadd.s32 1, %s16311_s18  }
 0x6a6   : > { %p14_p2 = scmp.ge.s32.totalorder %s17_s18, 4  }
 0x6a8   :  { %16 = sbr.rel (!%p14_p2) target bundleno = 2 (0x2), region = 103 }
 0x6ad   :  { %12864 = vsyncpa [#allocation7], 1 }
 0x6ae   :  { %12866 = vsyncpa [#allocation7 + $0x1], 1 }
 0x6af   :  { %12867 = vsyncpa [#allocation9], 1 }

</bundles_post_ra>
